<compile_context>
chip_gen: v6e
topology: v6e:2x2x1
jax: 0.10.0
libtpu: 0.0.40
codegen_flags: <defaults>
</compile_context>

<pallas_src>
import functools

import jax
import jax.numpy as jnp
from jax import lax
from jax.experimental import pallas as pl
from jax.experimental.pallas import tpu as pltpu

LANE = 128


def _round_up(x, m):
    return (x + m - 1) // m * m


def _silu_ref(x):  # host / reference version
    return x * jax.nn.sigmoid(x)


def _silu(x):  # kernel version: divide goes to the EUP approx path (free slot)
    return x * pl.reciprocal(1.0 + jnp.exp(-x), approx=True)


# --------------------------------------------------------------------------
# One-shot helper kernel: build the additive edge masks for the separable
# 5x5 / stride-1 / pad-2 max pool.  Validity is derived from index vectors
# rolled with the SAME pltpu.roll as the data, so the masks are correct
# independent of the roll direction convention; array-wrap / row-wrap
# positions get -inf (matching PyTorch's -inf padded MaxPool2d).
# --------------------------------------------------------------------------
def sppf_mask_kernel(idx_ref, o_ref, *, P, W, w_shifts, h_shifts):
    NEG = jnp.float32(-jnp.inf)
    flat = idx_ref[:, 0:1]          # exact integer values (host-built)
    col = idx_ref[:, 1:2]

    def emit(j, t, is_neighbor):
        d_flat = pltpu.roll(flat, t, 0) - flat
        d_col = pltpu.roll(col, t, 0) - col
        o_ref[:, j:j + 1] = jnp.where(is_neighbor(d_flat, d_col), 0.0, NEG)

    # 1x5 along W: source must lie in the same row, within +-P columns.
    for j, t in enumerate(w_shifts):
        emit(j, t, lambda df, dc: (jnp.abs(df) <= P) & (dc == df))
    # 5x1 along H: source must lie in the same column, within +-P rows.
    for j, t in enumerate(h_shifts):
        emit(len(w_shifts) + j, t,
             lambda df, dc: (dc == 0.0) & (jnp.abs(df) <= P * W))


# --------------------------------------------------------------------------
# Main kernel: one grid step == one batch element; tensors are (H*W, C) tiles.
# --------------------------------------------------------------------------
def sppf_kernel(x_ref, m_ref, w1_ref, b1_ref, w2_ref, b2_ref, o_ref, *,
                Cmid, w_shifts, h_shifts):
    nw = len(w_shifts)

    def maxpool(y):
        # Separable 5x5/s1/p2 max pool: XLU data rolls + VPU max, with the
        # precomputed additive {0,-inf} masks (no scratch, no unaligned
        # slices, no per-step mask construction).
        m = y
        for j, t in enumerate(w_shifts):
            m = jnp.maximum(m, pltpu.roll(y, t, 0) + m_ref[:, j:j + 1])
        out = m
        for j, t in enumerate(h_shifts):
            out = jnp.maximum(out, pltpu.roll(m, t, 0)
                              + m_ref[:, nw + j:nw + j + 1])
        return out

    # ---- cv1: 1x1 conv (bf16 MXU matmul, f32 accum) + folded-BN bias + SiLU
    x = x_ref[0]                                              # (HW, C1p) bf16
    z = jnp.dot(x, w1_ref[...], preferred_element_type=jnp.float32)
    y0 = _silu(z + b1_ref[...])                               # (HW, Cmid) f32

    # ---- cv2: cat([y0,y1,y2,y3], C) @ W2 == sum_i y_i @ W2_i --------------
    # Interleaved with the pooling chain so at most two pooled tensors are
    # live at once and the accumulator is initialised by the first dot.
    def cv2_partial(y, i):
        return jnp.dot(y.astype(jnp.bfloat16),
                       w2_ref[i * Cmid:(i + 1) * Cmid, :],
                       preferred_element_type=jnp.float32)

    acc = cv2_partial(y0, 0)
    y1 = maxpool(y0)
    acc = acc + cv2_partial(y1, 1)
    y2 = maxpool(y1)
    acc = acc + cv2_partial(y2, 2)
    y3 = maxpool(y2)
    acc = acc + cv2_partial(y3, 3)

    o_ref[0] = _silu(acc + b2_ref[...]).astype(o_ref.dtype)


def sppf_pallas(x_nchw, w1, scale1, bias1, w2, scale2, bias2, k=5,
                out_dtype=jnp.bfloat16):
    """SPPF forward.

    x_nchw: (N, C1, H, W) f32.  w1: (C1, C_), w2: (4*C_, C2);
    scale*/bias* are the folded BatchNorm scale/bias, shape (1, C).

    Note: matmul operands and the activation stream are bf16 (the module math
    is unchanged); callers needing strict f32 precision should pass f32
    weights/activations through a dedicated path.
    """
    N, C1, H, W = x_nchw.shape
    C_ = w1.shape[1]
    C2 = w2.shape[1]
    assert k % 2 == 1 and H >= k and W >= 1          # H >= k guards H-pass wrap
    P = k // 2
    HW = H * W
    assert HW < (1 << 22)                            # exact-in-f32 index guard

    C1p, Cp, C2p = (_round_up(c, LANE) for c in (C1, C_, C2))

    # Fold the BN scale into the conv weights (host-side, once), zero-pad the
    # channel dims to lane multiples, cast matmul operands to bf16.
    w1f = jnp.zeros((C1p, Cp), jnp.float32).at[:C1, :C_].set(
        w1 * scale1.reshape(1, C_)).astype(jnp.bfloat16)
    b1p = jnp.zeros((1, Cp), jnp.float32).at[:, :C_].set(bias1.reshape(1, C_))
    w2f = jnp.zeros((4, Cp, C2p), jnp.float32).at[:, :C_, :C2].set(
        (w2 * scale2.reshape(1, C2)).reshape(4, C_, C2)
    ).reshape(4 * Cp, C2p).astype(jnp.bfloat16)
    b2p = jnp.zeros((1, C2p), jnp.float32).at[:, :C2].set(bias2.reshape(1, C2))

    # NCHW f32 -> (N, H*W, C1p) bf16 (transpose done at half the bytes).
    x = jnp.transpose(x_nchw.astype(jnp.bfloat16), (0, 2, 3, 1))
    x = jnp.pad(x, ((0, 0), (0, 0), (0, 0), (0, C1p - C1))).reshape(N, HW, C1p)

    # Pool shift schedule (shared by the mask kernel and the main kernel).
    w_shifts = [s for s in range(1, P + 1)] + [HW - s for s in range(1, P + 1)]
    h_shifts = ([d * W for d in range(1, P + 1)]
                + [HW - d * W for d in range(1, P + 1)])
    NSH = len(w_shifts) + len(h_shifts)

    # Exact integer flat/column index vectors (host-built: no in-kernel
    # division or floor; values < 2^22 are exact in f32).
    flat_idx = jnp.arange(HW, dtype=jnp.float32)
    col_idx = jnp.tile(jnp.arange(W, dtype=jnp.float32), H)
    idx = jnp.stack([flat_idx, col_idx], axis=1)               # (HW, 2)

    # Build the grid-invariant pool masks once (tiny one-shot kernel).
    masks = pl.pallas_call(
        functools.partial(sppf_mask_kernel, P=P, W=W,
                          w_shifts=w_shifts, h_shifts=h_shifts),
        out_shape=jax.ShapeDtypeStruct((HW, NSH), jnp.float32),
        grid_spec=pltpu.PrefetchScalarGridSpec(
            num_scalar_prefetch=0, grid=(1,),
            in_specs=[pl.BlockSpec((HW, 2), lambda i: (0, 0))],
            out_specs=pl.BlockSpec((HW, NSH), lambda i: (0, 0))),
    )(idx)

    # VMEM request: honest single estimate (no 2x factor), floored at the
    # 32 MiB scoped default and capped at ~85% of the chip's physical VMEM
    # (v7x: 64 MiB physical -> <= ~54 MiB; v5e/v6e: 128 MiB -> <= ~108 MiB).
    kind = jax.devices()[0].device_kind.lower()
    phys_vmem = (64 if "v7" in kind else 128) * 1024 * 1024
    out_isize = jnp.dtype(out_dtype).itemsize
    est = (2 * HW * C1p * 2                                   # x block, dbl-buf, bf16
           + 2 * HW * C2p * out_isize                         # out block, dbl-buf
           + 2 * ((C1p * Cp + 4 * Cp * C2p) * 2 + (Cp + C2p) * 4)  # weights/bias
           + 2 * HW * LANE * 4                                # masks (lane-padded)
           + 8 * HW * Cp * 4 + 2 * HW * C2p * 4)              # live f32 temporaries
    vmem_limit = int(min(max(est, 32 * 1024 * 1024), int(phys_vmem * 0.85)))
    # NOTE: w1/b1/w2/b2/masks have constant index_maps -> revisited blocks are
    # not re-DMA'd per step; pl.Buffered(1) single-buffering left unapplied.

    kern = functools.partial(sppf_kernel, Cmid=Cp,
                             w_shifts=w_shifts, h_shifts=h_shifts)
    out = pl.pallas_call(
        kern,
        out_shape=jax.ShapeDtypeStruct((N, HW, C2p), out_dtype),
        grid_spec=pltpu.PrefetchScalarGridSpec(
            num_scalar_prefetch=0,
            grid=(N,),
            in_specs=[
                pl.BlockSpec((1, HW, C1p), lambda n: (n, 0, 0)),
                pl.BlockSpec((HW, NSH), lambda n: (0, 0)),
                pl.BlockSpec((C1p, Cp), lambda n: (0, 0)),
                pl.BlockSpec((1, Cp), lambda n: (0, 0)),
                pl.BlockSpec((4 * Cp, C2p), lambda n: (0, 0)),
                pl.BlockSpec((1, C2p), lambda n: (0, 0)),
            ],
            out_specs=pl.BlockSpec((1, HW, C2p), lambda n: (n, 0, 0)),
        ),
        compiler_params=pltpu.CompilerParams(
            dimension_semantics=("parallel",),
            vmem_limit_bytes=vmem_limit),
    )(x, masks, w1f, b1p, w2f, b2p)

    # Real SPPF channel counts are multiples of 128, so the padded tail write
    # is zero-cost there; the slice below only matters at toy sizes.
    out = out[:, :, :C2].astype(jnp.float32).reshape(N, H, W, C2)
    return jnp.transpose(out, (0, 3, 1, 2))                   # back to NCHW


def sppf_reference(x_nchw, w1, s1, b1, w2, s2, b2, k=5):
    """Pure-JAX f32 reference (exact module semantics) for correctness checks."""
    x = jnp.transpose(x_nchw, (0, 2, 3, 1)).astype(jnp.float32)
    z = jnp.einsum('nhwc,cd->nhwd', x, w1) * s1[0] + b1[0]
    y0 = _silu_ref(z)

    def mp(y):
        return lax.reduce_window(y, -jnp.inf, lax.max,
                                 (1, k, k, 1), (1, 1, 1, 1),
                                 [(0, 0), (k // 2, k // 2),
                                  (k // 2, k // 2), (0, 0)])

    y1 = mp(y0)
    y2 = mp(y1)
    y3 = mp(y2)
    cat = jnp.concatenate([y0, y1, y2, y3], axis=-1)
    z2 = jnp.einsum('nhwc,cd->nhwd', cat, w2) * s2[0] + b2[0]
    return jnp.transpose(_silu_ref(z2), (0, 3, 1, 2))


if __name__ == "__main__":
    # SPPF(c1=4, c2=8, k=5)  ->  c_ = c1 // 2 = 2
    N, C1, H, W = 2, 4, 16, 16
    C2, K = 8, 5
    C_ = C1 // 2
    eps = 1e-5

    key = jax.random.PRNGKey(0)
    kx, kw1, kw2, kg1, kb1, km1, kv1, kg2, kb2, km2, kv2 = jax.random.split(key, 11)

    x = jax.random.normal(kx, (N, C1, H, W), jnp.float32)

    # cv1: Conv2d(C1, C_, 1, bias=False) -> weight (C_, C1, 1, 1); stored as (C1, C_)
    w1 = jax.random.normal(kw1, (C1, C_), jnp.float32) * 0.5
    g1 = jax.random.uniform(kg1, (C_,), jnp.float32, 0.5, 1.5)
    be1 = jax.random.normal(kb1, (C_,), jnp.float32) * 0.1
    mu1 = jax.random.normal(km1, (C_,), jnp.float32) * 0.1
    var1 = jax.random.uniform(kv1, (C_,), jnp.float32, 0.5, 1.5)
    scale1 = (g1 / jnp.sqrt(var1 + eps)).reshape(1, C_)
    bias1 = (be1 - mu1 * g1 / jnp.sqrt(var1 + eps)).reshape(1, C_)

    # cv2: Conv2d(4*C_, C2, 1, bias=False) -> weight (C2, 4*C_, 1, 1); stored as (4*C_, C2)
    w2 = jax.random.normal(kw2, (4 * C_, C2), jnp.float32) * 0.5
    g2 = jax.random.uniform(kg2, (C2,), jnp.float32, 0.5, 1.5)
    be2 = jax.random.normal(kb2, (C2,), jnp.float32) * 0.1
    mu2 = jax.random.normal(km2, (C2,), jnp.float32) * 0.1
    var2 = jax.random.uniform(kv2, (C2,), jnp.float32, 0.5, 1.5)
    scale2 = (g2 / jnp.sqrt(var2 + eps)).reshape(1, C2)
    bias2 = (be2 - mu2 * g2 / jnp.sqrt(var2 + eps)).reshape(1, C2)

    out = sppf_pallas(x, w1, scale1, bias1, w2, scale2, bias2, k=K)
    out = jax.block_until_ready(out)

    ref = sppf_reference(x, w1, scale1, bias1, w2, scale2, bias2, k=K)
    assert out.shape == (N, C2, H, W), out.shape
    # Tolerance sized for bf16 matmul operands / bf16 output rounding / EUP
    # approx reciprocal in SiLU; the module math itself (conv+BN+SiLU, -inf
    # padded 5x5 max pools, concat) is unchanged.
    assert jnp.allclose(out, ref, atol=2e-1, rtol=2e-2), \
        float(jnp.max(jnp.abs(out - ref)))

    print("KERNEL_OK")
</pallas_src>

<mosaic_0001>
module attributes {stable_mosaic.version = 11 : i64} {
  func.func @sppf_mask_kernel(%arg0: i32, %arg1: memref<256x2xf32, #tpu.memory_space<vmem>>, %arg2: memref<256x8xf32, #tpu.memory_space<vmem>>) attributes {dimension_semantics = [#tpu.dimension_semantics<arbitrary>], iteration_bounds = array<i64: 1>, scalar_prefetch = 0 : i64, scratch_operands = 0 : i64, tpu.core_type = #tpu.core_type<tc>, window_params = [{pipeline_mode = #tpu.pipeline_mode<synchronous>, transform_indices = @transform_0, window_bounds = array<i64: 256, 2>}, {pipeline_mode = #tpu.pipeline_mode<synchronous>, transform_indices = @transform_1, window_bounds = array<i64: 256, 8>}]} {
    %c0 = arith.constant 0 : index
    %c0_0 = arith.constant 0 : index
    %0 = vector.load %arg1[%c0, %c0_0] : memref<256x2xf32, #tpu.memory_space<vmem>>, vector<256x1xf32>
    %c0_1 = arith.constant 0 : index
    %c1 = arith.constant 1 : index
    %1 = vector.load %arg1[%c0_1, %c1] : memref<256x2xf32, #tpu.memory_space<vmem>>, vector<256x1xf32>
    %c1_i32 = arith.constant 1 : i32
    %2 = tpu.dynamic_rotate %0 by %c1_i32 dim 0 : vector<256x1xf32>, i32 -> vector<256x1xf32>
    %3 = arith.subf %2, %0 : vector<256x1xf32>
    %c1_i32_2 = arith.constant 1 : i32
    %4 = tpu.dynamic_rotate %1 by %c1_i32_2 dim 0 : vector<256x1xf32>, i32 -> vector<256x1xf32>
    %5 = arith.subf %4, %1 : vector<256x1xf32>
    %6 = math.absf %3 : vector<256x1xf32>
    %cst = arith.constant 2.000000e+00 : f32
    %7 = vector.broadcast %cst : f32 to vector<256x1xf32>
    %8 = arith.cmpf ole, %6, %7 : vector<256x1xf32>
    %9 = arith.cmpf oeq, %5, %3 : vector<256x1xf32>
    %10 = arith.andi %8, %9 : vector<256x1xi1>
    %cst_3 = arith.constant 0.000000e+00 : f32
    %cst_4 = arith.constant 0xFF800000 : f32
    %11 = vector.broadcast %cst_3 : f32 to vector<256x1xf32>
    %12 = vector.broadcast %cst_4 : f32 to vector<256x1xf32>
    %13 = arith.select %10, %11, %12 : vector<256x1xi1>, vector<256x1xf32>
    %c0_5 = arith.constant 0 : index
    %c0_6 = arith.constant 0 : index
    %14 = vector.load %arg2[%c0_5, %c0_6] : memref<256x8xf32, #tpu.memory_space<vmem>>, vector<256x1xf32>
    tpu.vector_store %arg2[%c0_5, %c0_6], %13 {strides = array<i32>} : memref<256x8xf32, #tpu.memory_space<vmem>>, vector<256x1xf32>,
    %c2_i32 = arith.constant 2 : i32
    %15 = tpu.dynamic_rotate %0 by %c2_i32 dim 0 : vector<256x1xf32>, i32 -> vector<256x1xf32>
    %16 = arith.subf %15, %0 : vector<256x1xf32>
    %c2_i32_7 = arith.constant 2 : i32
    %17 = tpu.dynamic_rotate %1 by %c2_i32_7 dim 0 : vector<256x1xf32>, i32 -> vector<256x1xf32>
    %18 = arith.subf %17, %1 : vector<256x1xf32>
    %19 = math.absf %16 : vector<256x1xf32>
    %cst_8 = arith.constant 2.000000e+00 : f32
    %20 = vector.broadcast %cst_8 : f32 to vector<256x1xf32>
    %21 = arith.cmpf ole, %19, %20 : vector<256x1xf32>
    %22 = arith.cmpf oeq, %18, %16 : vector<256x1xf32>
    %23 = arith.andi %21, %22 : vector<256x1xi1>
    %cst_9 = arith.constant 0.000000e+00 : f32
    %cst_10 = arith.constant 0xFF800000 : f32
    %24 = vector.broadcast %cst_9 : f32 to vector<256x1xf32>
    %25 = vector.broadcast %cst_10 : f32 to vector<256x1xf32>
    %26 = arith.select %23, %24, %25 : vector<256x1xi1>, vector<256x1xf32>
    %c0_11 = arith.constant 0 : index
    %c1_12 = arith.constant 1 : index
    %27 = vector.load %arg2[%c0_11, %c1_12] : memref<256x8xf32, #tpu.memory_space<vmem>>, vector<256x1xf32>
    tpu.vector_store %arg2[%c0_11, %c1_12], %26 {strides = array<i32>} : memref<256x8xf32, #tpu.memory_space<vmem>>, vector<256x1xf32>,
    %c255_i32 = arith.constant 255 : i32
    %28 = tpu.dynamic_rotate %0 by %c255_i32 dim 0 : vector<256x1xf32>, i32 -> vector<256x1xf32>
    %29 = arith.subf %28, %0 : vector<256x1xf32>
    %c255_i32_13 = arith.constant 255 : i32
    %30 = tpu.dynamic_rotate %1 by %c255_i32_13 dim 0 : vector<256x1xf32>, i32 -> vector<256x1xf32>
    %31 = arith.subf %30, %1 : vector<256x1xf32>
    %32 = math.absf %29 : vector<256x1xf32>
    %cst_14 = arith.constant 2.000000e+00 : f32
    %33 = vector.broadcast %cst_14 : f32 to vector<256x1xf32>
    %34 = arith.cmpf ole, %32, %33 : vector<256x1xf32>
    %35 = arith.cmpf oeq, %31, %29 : vector<256x1xf32>
    %36 = arith.andi %34, %35 : vector<256x1xi1>
    %cst_15 = arith.constant 0.000000e+00 : f32
    %cst_16 = arith.constant 0xFF800000 : f32
    %37 = vector.broadcast %cst_15 : f32 to vector<256x1xf32>
    %38 = vector.broadcast %cst_16 : f32 to vector<256x1xf32>
    %39 = arith.select %36, %37, %38 : vector<256x1xi1>, vector<256x1xf32>
    %c0_17 = arith.constant 0 : index
    %c2 = arith.constant 2 : index
    %40 = vector.load %arg2[%c0_17, %c2] : memref<256x8xf32, #tpu.memory_space<vmem>>, vector<256x1xf32>
    tpu.vector_store %arg2[%c0_17, %c2], %39 {strides = array<i32>} : memref<256x8xf32, #tpu.memory_space<vmem>>, vector<256x1xf32>,
    %c254_i32 = arith.constant 254 : i32
    %41 = tpu.dynamic_rotate %0 by %c254_i32 dim 0 : vector<256x1xf32>, i32 -> vector<256x1xf32>
    %42 = arith.subf %41, %0 : vector<256x1xf32>
    %c254_i32_18 = arith.constant 254 : i32
    %43 = tpu.dynamic_rotate %1 by %c254_i32_18 dim 0 : vector<256x1xf32>, i32 -> vector<256x1xf32>
    %44 = arith.subf %43, %1 : vector<256x1xf32>
    %45 = math.absf %42 : vector<256x1xf32>
    %cst_19 = arith.constant 2.000000e+00 : f32
    %46 = vector.broadcast %cst_19 : f32 to vector<256x1xf32>
    %47 = arith.cmpf ole, %45, %46 : vector<256x1xf32>
    %48 = arith.cmpf oeq, %44, %42 : vector<256x1xf32>
    %49 = arith.andi %47, %48 : vector<256x1xi1>
    %cst_20 = arith.constant 0.000000e+00 : f32
    %cst_21 = arith.constant 0xFF800000 : f32
    %50 = vector.broadcast %cst_20 : f32 to vector<256x1xf32>
    %51 = vector.broadcast %cst_21 : f32 to vector<256x1xf32>
    %52 = arith.select %49, %50, %51 : vector<256x1xi1>, vector<256x1xf32>
    %c0_22 = arith.constant 0 : index
    %c3 = arith.constant 3 : index
    %53 = vector.load %arg2[%c0_22, %c3] : memref<256x8xf32, #tpu.memory_space<vmem>>, vector<256x1xf32>
    tpu.vector_store %arg2[%c0_22, %c3], %52 {strides = array<i32>} : memref<256x8xf32, #tpu.memory_space<vmem>>, vector<256x1xf32>,
    %c16_i32 = arith.constant 16 : i32
    %54 = tpu.dynamic_rotate %0 by %c16_i32 dim 0 : vector<256x1xf32>, i32 -> vector<256x1xf32>
    %55 = arith.subf %54, %0 : vector<256x1xf32>
    %c16_i32_23 = arith.constant 16 : i32
    %56 = tpu.dynamic_rotate %1 by %c16_i32_23 dim 0 : vector<256x1xf32>, i32 -> vector<256x1xf32>
    %57 = arith.subf %56, %1 : vector<256x1xf32>
    %cst_24 = arith.constant 0.000000e+00 : f32
    %58 = vector.broadcast %cst_24 : f32 to vector<256x1xf32>
    %59 = arith.cmpf oeq, %57, %58 : vector<256x1xf32>
    %60 = math.absf %55 : vector<256x1xf32>
    %cst_25 = arith.constant 3.200000e+01 : f32
    %61 = vector.broadcast %cst_25 : f32 to vector<256x1xf32>
    %62 = arith.cmpf ole, %60, %61 : vector<256x1xf32>
    %63 = arith.andi %59, %62 : vector<256x1xi1>
    %cst_26 = arith.constant 0.000000e+00 : f32
    %cst_27 = arith.constant 0xFF800000 : f32
    %64 = vector.broadcast %cst_26 : f32 to vector<256x1xf32>
    %65 = vector.broadcast %cst_27 : f32 to vector<256x1xf32>
    %66 = arith.select %63, %64, %65 : vector<256x1xi1>, vector<256x1xf32>
    %c0_28 = arith.constant 0 : index
    %c4 = arith.constant 4 : index
    %67 = vector.load %arg2[%c0_28, %c4] : memref<256x8xf32, #tpu.memory_space<vmem>>, vector<256x1xf32>
    tpu.vector_store %arg2[%c0_28, %c4], %66 {strides = array<i32>} : memref<256x8xf32, #tpu.memory_space<vmem>>, vector<256x1xf32>,
    %c32_i32 = arith.constant 32 : i32
    %68 = tpu.dynamic_rotate %0 by %c32_i32 dim 0 : vector<256x1xf32>, i32 -> vector<256x1xf32>
    %69 = arith.subf %68, %0 : vector<256x1xf32>
    %c32_i32_29 = arith.constant 32 : i32
    %70 = tpu.dynamic_rotate %1 by %c32_i32_29 dim 0 : vector<256x1xf32>, i32 -> vector<256x1xf32>
    %71 = arith.subf %70, %1 : vector<256x1xf32>
    %cst_30 = arith.constant 0.000000e+00 : f32
    %72 = vector.broadcast %cst_30 : f32 to vector<256x1xf32>
    %73 = arith.cmpf oeq, %71, %72 : vector<256x1xf32>
    %74 = math.absf %69 : vector<256x1xf32>
    %cst_31 = arith.constant 3.200000e+01 : f32
    %75 = vector.broadcast %cst_31 : f32 to vector<256x1xf32>
    %76 = arith.cmpf ole, %74, %75 : vector<256x1xf32>
    %77 = arith.andi %73, %76 : vector<256x1xi1>
    %cst_32 = arith.constant 0.000000e+00 : f32
    %cst_33 = arith.constant 0xFF800000 : f32
    %78 = vector.broadcast %cst_32 : f32 to vector<256x1xf32>
    %79 = vector.broadcast %cst_33 : f32 to vector<256x1xf32>
    %80 = arith.select %77, %78, %79 : vector<256x1xi1>, vector<256x1xf32>
    %c0_34 = arith.constant 0 : index
    %c5 = arith.constant 5 : index
    %81 = vector.load %arg2[%c0_34, %c5] : memref<256x8xf32, #tpu.memory_space<vmem>>, vector<256x1xf32>
    tpu.vector_store %arg2[%c0_34, %c5], %80 {strides = array<i32>} : memref<256x8xf32, #tpu.memory_space<vmem>>, vector<256x1xf32>,
    %c240_i32 = arith.constant 240 : i32
    %82 = tpu.dynamic_rotate %0 by %c240_i32 dim 0 : vector<256x1xf32>, i32 -> vector<256x1xf32>
    %83 = arith.subf %82, %0 : vector<256x1xf32>
    %c240_i32_35 = arith.constant 240 : i32
    %84 = tpu.dynamic_rotate %1 by %c240_i32_35 dim 0 : vector<256x1xf32>, i32 -> vector<256x1xf32>
    %85 = arith.subf %84, %1 : vector<256x1xf32>
    %cst_36 = arith.constant 0.000000e+00 : f32
    %86 = vector.broadcast %cst_36 : f32 to vector<256x1xf32>
    %87 = arith.cmpf oeq, %85, %86 : vector<256x1xf32>
    %88 = math.absf %83 : vector<256x1xf32>
    %cst_37 = arith.constant 3.200000e+01 : f32
    %89 = vector.broadcast %cst_37 : f32 to vector<256x1xf32>
    %90 = arith.cmpf ole, %88, %89 : vector<256x1xf32>
    %91 = arith.andi %87, %90 : vector<256x1xi1>
    %cst_38 = arith.constant 0.000000e+00 : f32
    %cst_39 = arith.constant 0xFF800000 : f32
    %92 = vector.broadcast %cst_38 : f32 to vector<256x1xf32>
    %93 = vector.broadcast %cst_39 : f32 to vector<256x1xf32>
    %94 = arith.select %91, %92, %93 : vector<256x1xi1>, vector<256x1xf32>
    %c0_40 = arith.constant 0 : index
    %c6 = arith.constant 6 : index
    %95 = vector.load %arg2[%c0_40, %c6] : memref<256x8xf32, #tpu.memory_space<vmem>>, vector<256x1xf32>
    tpu.vector_store %arg2[%c0_40, %c6], %94 {strides = array<i32>} : memref<256x8xf32, #tpu.memory_space<vmem>>, vector<256x1xf32>,
    %c224_i32 = arith.constant 224 : i32
    %96 = tpu.dynamic_rotate %0 by %c224_i32 dim 0 : vector<256x1xf32>, i32 -> vector<256x1xf32>
    %97 = arith.subf %96, %0 : vector<256x1xf32>
    %c224_i32_41 = arith.constant 224 : i32
    %98 = tpu.dynamic_rotate %1 by %c224_i32_41 dim 0 : vector<256x1xf32>, i32 -> vector<256x1xf32>
    %99 = arith.subf %98, %1 : vector<256x1xf32>
    %cst_42 = arith.constant 0.000000e+00 : f32
    %100 = vector.broadcast %cst_42 : f32 to vector<256x1xf32>
    %101 = arith.cmpf oeq, %99, %100 : vector<256x1xf32>
    %102 = math.absf %97 : vector<256x1xf32>
    %cst_43 = arith.constant 3.200000e+01 : f32
    %103 = vector.broadcast %cst_43 : f32 to vector<256x1xf32>
    %104 = arith.cmpf ole, %102, %103 : vector<256x1xf32>
    %105 = arith.andi %101, %104 : vector<256x1xi1>
    %cst_44 = arith.constant 0.000000e+00 : f32
    %cst_45 = arith.constant 0xFF800000 : f32
    %106 = vector.broadcast %cst_44 : f32 to vector<256x1xf32>
    %107 = vector.broadcast %cst_45 : f32 to vector<256x1xf32>
    %108 = arith.select %105, %106, %107 : vector<256x1xi1>, vector<256x1xf32>
    %c0_46 = arith.constant 0 : index
    %c7 = arith.constant 7 : index
    %109 = vector.load %arg2[%c0_46, %c7] : memref<256x8xf32, #tpu.memory_space<vmem>>, vector<256x1xf32>
    tpu.vector_store %arg2[%c0_46, %c7], %108 {strides = array<i32>} : memref<256x8xf32, #tpu.memory_space<vmem>>, vector<256x1xf32>,
    return
  }
  func.func @transform_0(%arg0: i32) -> (i32, i32) {
    %c0_i32 = arith.constant 0 : i32
    %c0_i32_0 = arith.constant 0 : i32
    %c0_i32_1 = arith.constant 0 : i32
    return %c0_i32, %c0_i32_0 : i32, i32
  }
  func.func @transform_1(%arg0: i32) -> (i32, i32) {
    %c0_i32 = arith.constant 0 : i32
    %c0_i32_0 = arith.constant 0 : i32
    %c0_i32_1 = arith.constant 0 : i32
    return %c0_i32, %c0_i32_0 : i32, i32
  }
}

</mosaic_0001>

<bundles_post_ra>
// kernel: tpu_custom_call.1
= control target key start
LH: loop header
LB: loop body
LE: loop exit
PB: predicated region body
PF: predicated region fallthrough
CT: control target
= control target key end

     0   :  { %s4300_s10 = smov 127   ;;  %v72_v14 = vlaneseq  ;;  %s4303_s15 = smov 2   ;;  %s10747_s0 = inlined_call_operand.vmem [shape: f32[256,2], index: 0, kind: input, shape index: {}]   ;;  %s10748_s1 = inlined_call_operand.vmem [shape: f32[256,8], index: 1, kind: output, shape index: {}]  }
   0x1   :  { %v4322_v0 = vld [vmem:[%s10747_s0 + $0x10] sm:$0xff]  ;;  %v4327_v1 = vld [vmem:[%s10747_s0] sm:$0xff]  ;;  %v4336_v2 = vld [vmem:[%s10747_s0 + $0x18] sm:$0xff]  ;;  %s4304_s18 = smov 3   ;;  %s4305_s21 = smov 4  }
   0x2   :  { %11112 = vst [vmem:[#allocation2_spill] sm:$0xff] %v4327_v1  ;;  %175 = vrot.lane.b32.xlu1 %v4322_v0, %s4300_s10  ;;  %171 = vrot.lane.b32.xlu0 %v4327_v1, %s4300_s10  ;;  %11113 = vst [vmem:[#allocation3_spill] sm:$0xff] %v4336_v2  ;;  %v4341_v3 = vld [vmem:[%s10747_s0 + $0x8] sm:$0xff]  ;;  %v4355_v5 = vld [vmem:[%s10747_s0 + $0x20] sm:$0xff]  ;;  %v4427_v17 = vshrl.u32 %v72_v14, 7  ;;  %v558_v21 = vrot.slane %v4322_v0, 6 }
   0x3   :  { %11114 = vst [vmem:[#allocation4_spill] sm:$0xff] %v4341_v3  ;;  %v4350_v4 = vld [vmem:[%s10747_s0 + $0x28] sm:$0xff]  ;;  %11116 = vst [vmem:[#allocation6_spill] sm:$0xff] %v4355_v5  ;;  %v4364_v6 = vld [vmem:[%s10747_s0 + $0x38] sm:$0xff]  ;;  %v557_v20 = vrot.slane %v4341_v3, 6  ;;  %v559_v22 = vrot.slane %v4336_v2, 6 }
   0x4   :  { %11115 = vst [vmem:[#allocation5_spill] sm:$0xff] %v4350_v4  ;;  %11117 = vst [vmem:[#allocation7_spill] sm:$0xff] %v4364_v6  ;;  %v4369_v7 = vld [vmem:[%s10747_s0 + $0x30] sm:$0xff]  ;;  %v4378_v8 = vld [vmem:[%s10747_s0 + $0x48] sm:$0xff]  ;;  %vm10890_vm0 = vcmp.lt.s32.totalorder %v4427_v17, 2  ;;  %v563_v27 = vrot.slane %v4364_v6, 6 }
   0x5   :  { %11118 = vst [vmem:[#allocation8_spill] sm:$0xff] %v4369_v7  ;;  %v4383_v9 = vld [vmem:[%s10747_s0 + $0x40] sm:$0xff]  ;;  %v4392_v10 = vld [vmem:[%s10747_s0 + $0x58] sm:$0xff]  ;;  %v4397_v11 = vld [vmem:[%s10747_s0 + $0x50] sm:$0xff]  ;;  %v618_v25 = vsel %vm10890_vm0, %v557_v20, %v558_v21  ;;  %v562_v26 = vrot.slane %v4369_v7, 6  ;;  %v617_v28 = vsel %vm10890_vm0, %v558_v21, %v559_v22  ;;  %v10752_v29 = vrot.slane %v4322_v0, 1 }
   0x6   :  { %177 = vrot.lane.b32.xlu1 %v4336_v2, %s4300_s10  ;;  %173 = vrot.lane.b32.xlu0 %v4341_v3, %s4300_s10  ;;  %11119 = vst [vmem:[#allocation9_spill] sm:$0xff] %v4383_v9  ;;  %11120 = vst [vmem:[#allocation10_spill] sm:$0xff] %v4397_v11  ;;  %v4406_v12 = vld [vmem:[%s10747_s0 + $0x68] sm:$0xff]  ;;  %v4411_v13 = vld [vmem:[%s10747_s0 + $0x60] sm:$0xff]  ;;  %v1073_v30 = vrot.slane %v4336_v2, 1  ;;  %v10751_v31 = vrot.slane %v4355_v5, 1  ;;  %v4480_v34 = vsub.f32 %v618_v25, %v4322_v0 }
   0x7   :  { %11121 = vst [vmem:[#allocation11_spill] sm:$0xff] %v4411_v13  ;;  %v4420_v15 = vld [vmem:[%s10747_s0 + $0x78] sm:$0xff]  ;;  %v4425_v16 = vld [vmem:[%s10747_s0 + $0x70] sm:$0xff]  ;;  %v4436_v18 = vld [vmem:[%s10747_s0 + $0x88] sm:$0xff]  ;;  %v566_v32 = vrot.slane %v4397_v11, 6  ;;  %v10757_v33 = vrot.slane %v4392_v10, 6  ;;  %v4494_v38 = vsub.f32 %v617_v28, %v4336_v2  ;;  %v613_v39 = vsel %vm10890_vm0, %v562_v26, %v563_v27 }
   0x8   :  { %11122 = vst [vmem:[#allocation12_spill] sm:$0xff] %v4425_v16  ;;  %v4441_v19 = vld [vmem:[%s10747_s0 + $0x80] sm:$0xff]  ;;  %v4454_v23 = vld [vmem:[%s10747_s0 + $0x98] sm:$0xff]  ;;  %v4459_v24 = vld [vmem:[%s10747_s0 + $0x90] sm:$0xff]  ;;  %vm10889_vm1 = vcmp.lt.s32.totalorder %v4427_v17, 7  ;;  %v561_v35 = vrot.slane %v4350_v4, 6  ;;  %v4526_v48 = vsub.f32 %v613_v39, %v4364_v6 }
   0x9   :  { %11123 = vst [vmem:[#allocation13_spill] sm:$0xff] %v4441_v19  ;;  %11124 = vst [vmem:[#allocation14_spill] sm:$0xff] %v4459_v24  ;;  %v4486_v36 = vld [vmem:[%s10747_s0 + $0xa8] sm:$0xff]  ;;  %v4491_v37 = vld [vmem:[%s10747_s0 + $0xa0] sm:$0xff]  ;;  %v565_v40 = vrot.slane %v4378_v8, 6  ;;  %v1130_v42 = vsel %vm10889_vm1, %v1073_v30, %v10751_v31  ;;  %v1131_v43 = vsel %vm10889_vm1, %v10752_v29, %v1073_v30  ;;  %v560_v44 = vrot.slane %v4355_v5, 6 }
   0xa   :  { %181 = vrot.lane.b32.xlu1 %v4350_v4, %s4300_s10  ;;  %179 = vrot.lane.b32.xlu0 %v4355_v5, %s4300_s10  ;;  %11125 = vst [vmem:[#allocation15_spill] sm:$0xff] %v4491_v37  ;;  %v614_v41 = vsel %vm10890_vm0, %v561_v35, %v562_v26  ;;  %v609_v45 = vsel %vm10890_vm0, %v566_v32, %v10757_v33  ;;  %11126 = vst [vmem:[#allocation16_spill] sm:$0xff] %v4526_v48  ;;  %v570_v49 = vrot.slane %v4425_v16, 6  ;;  %v4533_v51 = vld [vmem:[%s10747_s0 + $0xb8] sm:$0xff]  ;;  %v4538_v52 = vld [vmem:[%s10747_s0 + $0xb0] sm:$0xff]  ;;  %s4306_s19 = smov 5  }
   0xb   :  { %v610_v46 = vsel %vm10890_vm0, %v565_v40, %v566_v32  ;;  %v10755_v50 = vrot.slane %v4420_v15, 6  ;;  %11127 = vst [vmem:[#allocation17_spill] sm:$0xff] %v4538_v52  ;;  %v4542_v54 = vsub.f32 %v614_v41, %v4369_v7  ;;  %v4545_v55 = vsub.f32 %v1131_v43, %v4322_v0  ;;  %v4571_v21 = vld [vmem:[%s10747_s0 + $0xc8] sm:$0xff]  ;;  %v4576_v25 = vld [vmem:[%s10747_s0 + $0xc0] sm:$0xff]  ;;  %s4307_s29 = smov 6   ;;  %s4308_s12 = smov 7  }
   0xc   :  { %v4548_v56 = vsub.f32 %v1130_v42, %v4336_v2  ;;  %v4551_v57 = vsub.f32 %v610_v46, %v4397_v11  ;;  %v4554_v58 = vsub.f32 %v609_v45, %v4392_v10  ;;  %v569_v59 = vrot.slane %v4406_v12, 6  ;;  %11131 = vst [vmem:[#allocation21_spill] sm:$0xff] %v4576_v25  ;;  %v4635_v45 = vld [vmem:[%s10747_s0 + $0xd0] sm:$0xff]  ;;  %v4679_v53 = vld [vmem:[%s10747_s0 + $0xe0] sm:$0xff] }
   0xd   :  { %11128 = vst [vmem:[#allocation18_spill] sm:$0xff] %v4542_v54  ;;  %v615_v60 = vsel %vm10890_vm0, %v560_v44, %v561_v35  ;;  %v10753_v61 = vrot.slane %v4327_v1, 6  ;;  %v616_v62 = vsel %vm10890_vm0, %v559_v22, %v560_v44  ;;  %v10750_v63 = vrot.slane %v4369_v7, 1  ;;  %11134 = vst [vmem:[#allocation24_spill] sm:$0xff] %v4635_v45 }
   0xe   :  { %185 = vrot.lane.b32.xlu1 %v4364_v6, %s4300_s10  ;;  %183 = vrot.lane.b32.xlu0 %v4369_v7, %s4300_s10  ;;  %11129 = vst [vmem:[#allocation19_spill] sm:$0xff] %v4551_v57  ;;  %11130 = vst [vmem:[#allocation20_spill] sm:$0xff] %v4554_v58  ;;  %v1077_v14 = vrot.slane %v4364_v6, 1  ;;  %v605_v22 = vsel %vm10890_vm0, %v570_v49, %v10755_v50  ;;  %v606_v26 = vsel %vm10890_vm0, %v569_v59, %v570_v49 }
   0xf   :  { %v10749_v28 = vrot.slane %v4383_v9, 1  ;;  %v564_v30 = vrot.slane %v4383_v9, 6  ;;  %v4592_v43 = vsub.f32 %v616_v62, %v4355_v5  ;;  %v4595_v44 = vsub.f32 %v615_v60, %v4350_v4  ;;  %11138 = vst [vmem:[#allocation28_spill] sm:$0xff] %v4679_v53 }
  0x10   :  { %v4599_v46 = vsub.f32 %v606_v26, %v4425_v16  ;;  %v4602_v49 = vsub.f32 %v605_v22, %v4420_v15  ;;  %v619_v41 = vsel %vm10890_vm0, %v10753_v61, %v557_v20  ;;  %v574_v60 = vrot.slane %v4459_v24, 6  ;;  %v4630_v26 = vld [vmem:[%s10747_s0 + $0xd8] sm:$0xff] }
  0x11   :  { %v1126_v62 = vsel %vm10889_vm1, %v1077_v14, %v10749_v28  ;;  %v1127_v22 = vsel %vm10889_vm1, %v10750_v63, %v1077_v14  ;;  %v612_v20 = vsel %vm10890_vm0, %v563_v27, %v564_v30  ;;  %v10756_v35 = vrot.slane %v4454_v23, 6  ;;  %v4674_v28 = vld [vmem:[%s10747_s0 + $0xe8] sm:$0xff] }
  0x12   :  { %189 = vrot.lane.b32.xlu1 %v4378_v8, %s4300_s10  ;;  %187 = vrot.lane.b32.xlu0 %v4383_v9, %s4300_s10  ;;  %11132 = vst [vmem:[#allocation22_spill] sm:$0xff] %v4599_v46  ;;  %11133 = vst [vmem:[#allocation23_spill] sm:$0xff] %v4602_v49  ;;  %v10761_v32 = vrot.slane %v4397_v11, 1  ;;  %v1081_v14 = vrot.slane %v4392_v10, 1  ;;  %v10758_v42 = vrot.slane %v4411_v13, 1  ;;  %v10754_v27 = vrot.slane %v4436_v18, 6 }
  0x13   :  { %v568_v47 = vrot.slane %v4411_v13, 6  ;;  %v4647_v63 = vsub.f32 %v619_v41, %v4341_v3  ;;  %v4650_v31 = vsub.f32 %v1127_v22, %v4369_v7  ;;  %v4653_v29 = vsub.f32 %v1126_v62, %v4364_v6  ;;  %v4727_v49 = vld [vmem:[%s10747_s0 + $0xf0] sm:$0xff] }
  0x14   :  { %v602_v41 = vsel %vm10890_vm0, %v10754_v27, %v574_v60  ;;  %v611_v22 = vsel %vm10890_vm0, %v564_v30, %v565_v40  ;;  %v4669_v62 = vsub.f32 %v612_v20, %v4383_v9  ;;  %v601_v39 = vsel %vm10890_vm0, %v574_v60, %v10756_v35  ;;  %11143 = vst [vmem:[#allocation33_spill] sm:$0xff] %v4727_v49 }
  0x15   :  { %11135 = vst [vmem:[#allocation25_spill] sm:$0xff] %v4650_v31  ;;  %11136 = vst [vmem:[#allocation26_spill] sm:$0xff] %v4653_v29  ;;  %v578_v40 = vrot.slane %v4538_v52, 6  ;;  %v1122_v30 = vsel %vm10889_vm1, %v1081_v14, %v10758_v42  ;;  %v1123_v20 = vsel %vm10889_vm1, %v10761_v32, %v1081_v14  ;;  %v10772_v61 = vrot.slane %v4533_v51, 6 }
  0x16   :  { %193 = vrot.lane.b32.xlu1 %v4392_v10, %s4300_s10  ;;  %191 = vrot.lane.b32.xlu0 %v4397_v11, %s4300_s10  ;;  %11137 = vst [vmem:[#allocation27_spill] sm:$0xff] %v4669_v62  ;;  %v607_v27 = vsel %vm10890_vm0, %v568_v47, %v569_v59  ;;  %v1085_v60 = vrot.slane %v4420_v15, 1  ;;  %v4700_v35 = vsub.f32 %v602_v41, %v4459_v24  ;;  %v577_v33 = vrot.slane %v4486_v36, 6 }
  0x17   :  { %v4704_v42 = vsub.f32 %v611_v22, %v4378_v8  ;;  %v4712_v59 = vsub.f32 %v601_v39, %v4454_v23  ;;  %v4717_v32 = vsub.f32 %v1122_v30, %v4392_v10  ;;  %v4722_v22 = vld [vmem:[%s10747_s0 + $0xf8] sm:$0xff]  ;;  %v4732_v14 = vsub.f32 %v1123_v20, %v4397_v11 }
  0x18   :  { %11139 = vst [vmem:[#allocation29_spill] sm:$0xff] %v4700_v35  ;;  %v598_v39 = vsel %vm10890_vm0, %v577_v33, %v578_v40  ;;  %v11145_v41 = vrot.slane %v4392_v10, 6  ;;  %v4739_v50 = vsub.f32 %v607_v27, %v4406_v12  ;;  %v597_v46 = vsel %vm10890_vm0, %v578_v40, %v10772_v61 }
  0x19   :  { %11140 = vst [vmem:[#allocation30_spill] sm:$0xff] %v4704_v42  ;;  %11141 = vst [vmem:[#allocation31_spill] sm:$0xff] %v4712_v59  ;;  %v11147_v20 = vrot.slane %v4425_v16, 1  ;;  %v11148_v27 = vrot.slane %v4441_v19, 1  ;;  %v572_v40 = vrot.slane %v4441_v19, 6  ;;  %v581_v57 = vrot.slane %v4571_v21, 6 }
  0x1a   :  { %197 = vrot.lane.b32.xlu1 %v4406_v12, %s4300_s10  ;;  %195 = vrot.lane.b32.xlu0 %v4411_v13, %s4300_s10  ;;  %11142 = vst [vmem:[#allocation32_spill] sm:$0xff] %v4717_v32  ;;  %11144 = vst [vmem:[#allocation34_spill] sm:$0xff] %v4732_v14  ;;  %v608_v30 = vsel %vm10890_vm0, %v11145_v41, %v568_v47  ;;  %v1089_v58 = vrot.slane %v4454_v23, 1  ;;  %v11155_v59 = vrot.slane %v4436_v18, 6  ;;  %v576_v32 = vrot.slane %v4491_v37, 6 }
  0x1b   :  { %11146 = vst [vmem:[#allocation35_spill] sm:$0xff] %v4739_v50  ;;  %v1119_v31 = vsel %vm10889_vm1, %v11147_v20, %v1085_v60  ;;  %v1118_v41 = vsel %vm10889_vm1, %v1085_v60, %v11148_v27  ;;  %v4764_v20 = vsub.f32 %v598_v39, %v4538_v52  ;;  %v4768_v47 = vsub.f32 %v608_v30, %v4411_v13 }
  0x1c   :  { %v4771_v60 = vsub.f32 %v597_v46, %v4533_v51  ;;  %v4776_v61 = vsub.f32 %v1119_v31, %v4425_v16  ;;  %v582_v39 = vrot.slane %v4635_v45, 6  ;;  %v4782_v48 = vsub.f32 %v1118_v41, %v4420_v15 }
  0x1d   :  { %11149 = vst [vmem:[#allocation36_spill] sm:$0xff] %v4764_v20  ;;  %11150 = vst [vmem:[#allocation37_spill] sm:$0xff] %v4768_v47  ;;  %v11154_v30 = vrot.slane %v4420_v15, 6  ;;  %v603_v41 = vsel %vm10890_vm0, %v572_v40, %v11155_v59  ;;  %v587_v27 = vrot.slane %v4722_v22, 6  ;;  %v11156_v31 = vrot.slane %v4630_v26, 6 }
  0x1e   :  { %201 = vrot.lane.b32.xlu1 %v4420_v15, %s4300_s10  ;;  %199 = vrot.lane.b32.xlu0 %v4425_v16, %s4300_s10  ;;  %11151 = vst [vmem:[#allocation38_spill] sm:$0xff] %v4771_v60  ;;  %11152 = vst [vmem:[#allocation39_spill] sm:$0xff] %v4776_v61  ;;  %v594_v50 = vsel %vm10890_vm0, %v581_v57, %v582_v39  ;;  %v585_v14 = vrot.slane %v4674_v28, 6  ;;  %v4814_v60 = vsub.f32 %v603_v41, %v4436_v18 }
  0x1f   :  { %11153 = vst [vmem:[#allocation40_spill] sm:$0xff] %v4782_v48  ;;  %v604_v46 = vsel %vm10890_vm0, %v11154_v30, %v572_v40  ;;  %v586_v30 = vrot.slane %v4727_v49, 6  ;;  %v593_v35 = vsel %vm10890_vm0, %v582_v39, %v11156_v31  ;;  %v11159_v42 = vrot.slane %v4491_v37, 1 }
  0x20   :  { %v4810_v40 = vsub.f32 %v604_v46, %v4441_v19  ;;  %11158 = vst [vmem:[#allocation42_spill] sm:$0xff] %v4814_v60  ;;  %v11160_v31 = vrot.slane %v4459_v24, 1  ;;  %v599_v59 = vsel %vm10890_vm0, %v576_v32, %v577_v33  ;;  %v11161_v46 = vrot.slane %v4454_v23, 6 }
  0x21   :  { %v1114_v20 = vsel %vm10889_vm1, %v1089_v58, %v11159_v42  ;;  %v1093_v48 = vrot.slane %v4533_v51, 1  ;;  %v4833_v47 = vsub.f32 %v594_v50, %v4635_v45  ;;  %v4836_v42 = vsub.f32 %v593_v35, %v4630_v26 }
  0x22   :  { %205 = vrot.lane.b32.xlu1 %v4436_v18, %s4300_s10  ;;  %203 = vrot.lane.b32.xlu0 %v4441_v19, %s4300_s10  ;;  %11157 = vst [vmem:[#allocation41_spill] sm:$0xff] %v4810_v40  ;;  %v1115_v39 = vsel %vm10889_vm1, %v11160_v31, %v1089_v58  ;;  %v600_v61 = vsel %vm10890_vm0, %v11161_v46, %v576_v32  ;;  %v11167_v41 = vrot.slane %v4538_v52, 1  ;;  %v1097_v40 = vrot.slane %v4630_v26, 1 }
  0x23   :  { %11162 = vst [vmem:[#allocation43_spill] sm:$0xff] %v4833_v47  ;;  %11163 = vst [vmem:[#allocation44_spill] sm:$0xff] %v4836_v42  ;;  %v589_v58 = vsel %vm10890_vm0, %v586_v30, %v587_v27  ;;  %v590_v33 = vsel %vm10890_vm0, %v585_v14, %v586_v30  ;;  %v4844_v32 = vsub.f32 %v1115_v39, %v4459_v24  ;;  %v580_v30 = vrot.slane %v4576_v25, 6 }
  0x24   :  { %v4847_v46 = vsub.f32 %v1114_v20, %v4454_v23  ;;  %v4852_v35 = vsub.f32 %v600_v61, %v4491_v37  ;;  %v4855_v62 = vsub.f32 %v599_v59, %v4486_v36  ;;  %v4859_v31 = vsub.f32 %v590_v33, %v4727_v49 }
  0x25   :  { %v4862_v39 = vsub.f32 %v589_v58, %v4722_v22  ;;  %v11166_v20 = vrot.slane %v4327_v1, 6  ;;  %v1111_v61 = vsel %vm10889_vm1, %v11167_v41, %v1093_v48  ;;  %v11168_v54 = vrot.slane %v4576_v25, 1 }
  0x26   :  { %209 = vrot.lane.b32.xlu1 %v4454_v23, %s4300_s10  ;;  %207 = vrot.lane.b32.xlu0 %v4459_v24, %s4300_s10  ;;  %11164 = vst [vmem:[#allocation45_spill] sm:$0xff] %v4859_v31  ;;  %v4888_v59 = vsub.f32 %v1111_v61, %v4538_v52  ;;  %v11170_v33 = vrot.slane %v4533_v51, 6  ;;  %v11172_v61 = vrot.slane %v4635_v45, 1  ;;  %v11174_v42 = vrot.slane %v4679_v53, 1 }
  0x27   :  { %11165 = vst [vmem:[#allocation46_spill] sm:$0xff] %v4862_v39  ;;  %v620_v50 = vsel %vm10890_vm0, %v587_v27, %v11166_v20  ;;  %v1110_v27 = vsel %vm10889_vm1, %v1093_v48, %v11168_v54  ;;  %v584_v20 = vrot.slane %v4679_v53, 6  ;;  %v1101_v48 = vrot.slane %v4722_v22, 1 }
  0x28   :  { %v4884_v41 = vsub.f32 %v620_v50, %v4327_v1  ;;  %v596_v29 = vsel %vm10890_vm0, %v11170_v33, %v580_v30  ;;  %v4898_v54 = vsub.f32 %v1110_v27, %v4533_v51  ;;  %v595_v50 = vsel %vm10890_vm0, %v580_v30, %v581_v57 }
  0x29   :  { %v1107_v60 = vsel %vm10889_vm1, %v11172_v61, %v1097_v40  ;;  %v4908_v33 = vsub.f32 %v596_v29, %v4576_v25  ;;  %v1106_v58 = vsel %vm10889_vm1, %v1097_v40, %v11174_v42  ;;  %v1070_v61 = vrot.slane %v4327_v1, 1 }
  0x2a   :  { %213 = vrot.lane.b32.xlu1 %v4486_v36, %s4300_s10  ;;  %211 = vrot.lane.b32.xlu0 %v4491_v37, %s4300_s10  ;;  %11169 = vst [vmem:[#allocation47_spill] sm:$0xff] %v4884_v41  ;;  %11171 = vst [vmem:[#allocation48_spill] sm:$0xff] %v4898_v54  ;;  %v1071_v39 = vrot.slane %v4341_v3, 1  ;;  %v4921_v29 = vsub.f32 %v595_v50, %v4571_v21  ;;  %v4924_v31 = vsub.f32 %v1107_v60, %v4635_v45 }
  0x2b   :  { %11173 = vst [vmem:[#allocation49_spill] sm:$0xff] %v4908_v33  ;;  %v1587_v42 = vrot.slane %v4336_v2, 2  ;;  %v4929_v27 = vsub.f32 %v1106_v58, %v4630_v26  ;;  %v591_v57 = vsel %vm10890_vm0, %v584_v20, %v585_v14  ;;  %v11175_v30 = vrot.slane %v4630_v26, 6 }
  0x2c   :  { %vm10881_vm2 = vcmp.lt.s32.totalorder %v4427_v17, 6  ;;  %v11176_v40 = vrot.slane %v4727_v49, 1  ;;  %v1134_v47 = vsel %vm10889_vm1, %v1101_v48, %v1070_v61  ;;  %v11177_v14 = vrot.slane %v4322_v0, 1 }
  0x2d   :  { %v592_v41 = vsel %vm10890_vm0, %v11175_v30, %v584_v20  ;;  %v1133_v20 = vsel %vm10889_vm1, %v1070_v61, %v1071_v39  ;;  %v10820_v30 = vrot.slane %v4355_v5, 2  ;;  %v1075_v50 = vrot.slane %v4350_v4, 1 }
  0x2e   :  { %217 = vrot.lane.b32.xlu1 %v4533_v51, %s4300_s10  ;;  %215 = vrot.lane.b32.xlu0 %v4538_v52, %s4300_s10  ;;  %v1103_v58 = vsel %vm10889_vm1, %v11176_v40, %v1101_v48  ;;  %v4956_v33 = vsub.f32 %v592_v41, %v4679_v53  ;;  %v4959_v40 = vsub.f32 %v591_v57, %v4674_v28  ;;  %v11180_v48 = vrot.slane %v4322_v0, 2 }
  0x2f   :  { %v4968_v61 = vsub.f32 %v1103_v58, %v4727_v49  ;;  %v4971_v60 = vsub.f32 %v1134_v47, %v4722_v22  ;;  %v4974_v41 = vsub.f32 %v1133_v20, %v4327_v1  ;;  %v11185_v57 = vrot.slane %v4369_v7, 1 }
  0x30   :  { %11178 = vst [vmem:[#allocation50_spill] sm:$0xff] %v4956_v33  ;;  %11179 = vst [vmem:[#allocation51_spill] sm:$0xff] %v4959_v40  ;;  %vm10880_vm3 = vcmp.lt.s32.totalorder %v4427_v17, 1  ;;  %v11195_v33 = vrot.slane %v4336_v2, 7 }
  0x31   :  { %11181 = vst [vmem:[#allocation52_spill] sm:$0xff] %v4968_v61  ;;  %11182 = vst [vmem:[#allocation53_spill] sm:$0xff] %v4971_v60 }
  0x32   :  { %221 = vrot.lane.b32.xlu1 %v4571_v21, %s4300_s10  ;;  %219 = vrot.lane.b32.xlu0 %v4576_v25, %s4300_s10 }
  0x36   :  { %225 = vrot.lane.b32.xlu1 %v4630_v26, %s4300_s10  ;;  %223 = vrot.lane.b32.xlu0 %v4635_v45, %s4300_s10  ;;  %v1132_v26 = vsel %vm10889_vm1, %v1071_v39, %v11177_v14  ;;  %v1645_v14 = vsel %vm10881_vm2, %v11180_v48, %v1587_v42  ;;  %v1591_v48 = vrot.slane %v4364_v6, 2  ;;  %v1644_v39 = vsel %vm10881_vm2, %v1587_v42, %v10820_v30 }
  0x37   :  { %v4986_v58 = vsub.f32 %v1645_v14, %v4322_v0  ;;  %v1079_v42 = vrot.slane %v4378_v8, 1  ;;  %v5007_v54 = vsub.f32 %v1644_v39, %v4336_v2  ;;  %v11187_v30 = vrot.slane %v4383_v9, 2 }
  0x38   :  { %v11189_v39 = vrot.slane %v4397_v11, 1 }
  0x39   :  { %11183 = vst [vmem:[#allocation54_spill] sm:$0xff] %v4986_v58  ;;  %v1640_v14 = vsel %vm10881_vm2, %v1591_v48, %v11187_v30  ;;  %v11191_v58 = vrot.slane %v4397_v11, 2 }
  0x3a   :  { %229 = vrot.lane.b32.xlu1 %v4674_v28, %s4300_s10  ;;  %227 = vrot.lane.b32.xlu0 %v4679_v53, %s4300_s10  ;;  %v4977_v28 = vsub.f32 %v1132_v26, %v4341_v3  ;;  %v1128_v53 = vsel %vm10889_vm1, %v1075_v50, %v11185_v57  ;;  %v11188_v26 = vrot.slane %v4369_v7, 2  ;;  %v5049_v60 = vsub.f32 %v1640_v14, %v4364_v6 }
  0x3b   :  { %v5014_v57 = vsub.f32 %v1128_v53, %v4350_v4  ;;  %v11199_v14 = vrot.slane %v4411_v13, 1 }
  0x3c   :  { %v1641_v20 = vsel %vm10881_vm2, %v11188_v26, %v1591_v48 }
  0x3d   :  { %11186 = vst [vmem:[#allocation55_spill] sm:$0xff] %v5014_v57  ;;  %v11212_v57 = vrot.slane %v4491_v37, 2 }
  0x3e   :  { %233 = vrot.lane.b32.xlu1 %v4722_v22, %s4300_s10  ;;  %231 = vrot.lane.b32.xlu0 %v4727_v49, %s4300_s10  ;;  %v11184_v22 = vrot.slane %v4355_v5, 1  ;;  %v42_v49 = vrot.slane %v4322_v0, 7  ;;  %s4302_s10 = smov 1  }
  0x40   :  { %v1129_v47 = vsel %vm10889_vm1, %v11184_v22, %v1075_v50  ;;  %v1595_v22 = vrot.slane %v4392_v10, 2  ;;  %v11190_v50 = vrot.slane %v4383_v9, 1  ;;  %v103_v30 = vsel %vm10880_vm3, %v42_v49, %v11195_v33 }
  0x41   :  { %v5010_v40 = vsub.f32 %v1129_v47, %v4355_v5  ;;  %v1124_v47 = vsel %vm10889_vm1, %v1079_v42, %v11189_v39  ;;  %v5042_v39 = vsub.f32 %v1641_v20, %v4369_v7  ;;  %v1599_v5 = vrot.slane %v4420_v15, 2 }
  0x42   :  { %v1125_v53 = vsel %vm10889_vm1, %v11190_v50, %v1079_v42  ;;  %v1637_v48 = vsel %vm10881_vm2, %v11191_v58, %v1595_v22  ;;  %v1083_v42 = vrot.slane %v4406_v12, 1  ;;  %v5055_v26 = vsub.f32 %v1124_v47, %v4378_v8 }
  0x43   :  { %11192 = vst [vmem:[#allocation56_spill] sm:$0xff] %v5042_v39  ;;  %v5052_v58 = vsub.f32 %v1125_v53, %v4383_v9  ;;  %v5059_v61 = vsub.f32 %v1637_v48, %v4397_v11  ;;  %v11196_v53 = vrot.slane %v4411_v13, 2  ;;  %v1087_v47 = vrot.slane %v4436_v18, 1 }
  0x44   :  { %11193 = vst [vmem:[#allocation57_spill] sm:$0xff] %v5055_v26  ;;  %v11197_v20 = vrot.slane %v4341_v3, 7  ;;  %v11198_v9 = vrot.slane %v4425_v16, 1  ;;  %v1121_v11 = vsel %vm10889_vm1, %v11199_v14, %v1083_v42  ;;  %v5093_v50 = vsub.f32 %v103_v30, %v4336_v2 }
  0x45   :  { %11194 = vst [vmem:[#allocation58_spill] sm:$0xff] %v5059_v61  ;;  %v1636_v8 = vsel %vm10881_vm2, %v1595_v22, %v11196_v53  ;;  %v11200_v22 = vrot.slane %v4425_v16, 2 }
  0x46   :  { %v104_v48 = vsel %vm10880_vm3, %v11197_v20, %v42_v49  ;;  %v1120_v33 = vsel %vm10889_vm1, %v1083_v42, %v11198_v9  ;;  %11201 = vst [vmem:[#allocation59_spill] sm:$0xff] %v5093_v50  ;;  %v5096_v9 = vsub.f32 %v1636_v8, %v4392_v10  ;;  %v11203_v42 = vrot.slane %v4441_v19, 2 }
  0x47   :  { %v1633_v53 = vsel %vm10881_vm2, %v11200_v22, %v1599_v5  ;;  %v5104_v22 = vsub.f32 %v104_v48, %v4322_v0  ;;  %v5107_v49 = vsub.f32 %v1121_v11, %v4411_v13  ;;  %v5110_v20 = vsub.f32 %v1120_v33, %v4406_v12 }
  0x48   :  { %11202 = vst [vmem:[#allocation60_spill] sm:$0xff] %v5096_v9  ;;  %v1632_v14 = vsel %vm10881_vm2, %v1599_v5, %v11203_v42  ;;  %v5113_v30 = vsub.f32 %v1633_v53, %v4425_v16  ;;  %v11208_v10 = vrot.slane %v4441_v19, 1  ;;  %v1603_v5 = vrot.slane %v4454_v23, 2 }
  0x49   :  { %11204 = vst [vmem:[#allocation61_spill] sm:$0xff] %v5104_v22  ;;  %11205 = vst [vmem:[#allocation62_spill] sm:$0xff] %v5107_v49  ;;  %v1091_v11 = vrot.slane %v4486_v36, 1  ;;  %v5124_v42 = vsub.f32 %v1632_v14, %v4420_v15  ;;  %v1607_v33 = vrot.slane %v4533_v51, 2  ;;  %v1585_v13 = vrot.slane %v4341_v3, 2 }
  0x4a   :  { %11206 = vst [vmem:[#allocation63_spill] sm:$0xff] %v5110_v20  ;;  %11207 = vst [vmem:[#allocation64_spill] sm:$0xff] %v5113_v30  ;;  %v1117_v8 = vsel %vm10889_vm1, %v11208_v10, %v1087_v47  ;;  %v1095_v10 = vrot.slane %v4571_v21, 1  ;;  %v11210_v14 = vrot.slane %v4459_v24, 1  ;;  %v1628_v39 = vsel %vm10881_vm2, %v1603_v5, %v11212_v57 }
  0x4b   :  { %11209 = vst [vmem:[#allocation65_spill] sm:$0xff] %v5124_v42  ;;  %v5141_v53 = vsub.f32 %v1117_v8, %v4441_v19  ;;  %v11213_v9 = vrot.slane %v4459_v24, 2  ;;  %v11214_v15 = vrot.slane %v4491_v37, 1  ;;  %v11215_v8 = vrot.slane %v4538_v52, 1 }
  0x4c   :  { %v1116_v12 = vsel %vm10889_vm1, %v1087_v47, %v11210_v14  ;;  %v11216_v19 = vrot.slane %v4576_v25, 2  ;;  %v11217_v30 = vrot.slane %v4538_v52, 2 }
  0x4d   :  { %11211 = vst [vmem:[#allocation66_spill] sm:$0xff] %v5141_v53  ;;  %v1629_v16 = vsel %vm10881_vm2, %v11213_v9, %v1603_v5  ;;  %v1113_v48 = vsel %vm10889_vm1, %v11214_v15, %v1091_v11  ;;  %v1112_v14 = vsel %vm10889_vm1, %v1091_v11, %v11215_v8  ;;  %v5169_v5 = vsub.f32 %v1116_v12, %v4436_v18 }
  0x4e   :  { %v1624_v57 = vsel %vm10881_vm2, %v1607_v33, %v11216_v19  ;;  %v1625_v9 = vsel %vm10881_vm2, %v11217_v30, %v1607_v33  ;;  %v11219_v15 = vrot.slane %v4635_v45, 1  ;;  %v11220_v11 = vrot.slane %v4576_v25, 1 }
  0x4f   :  { %11218 = vst [vmem:[#allocation67_spill] sm:$0xff] %v5169_v5  ;;  %v11221_v19 = vrot.slane %v4327_v1, 2  ;;  %v5184_v30 = vsub.f32 %v1629_v16, %v4459_v24  ;;  %v5187_v18 = vsub.f32 %v1628_v39, %v4454_v23  ;;  %v5190_v12 = vsub.f32 %v1113_v48, %v4491_v37 }
  0x50   :  { %v1108_v47 = vsel %vm10889_vm1, %v1095_v10, %v11219_v15  ;;  %v1109_v8 = vsel %vm10889_vm1, %v11220_v11, %v1095_v10  ;;  %v11225_v33 = vrot.slane %v4322_v0, 2  ;;  %v5198_v11 = vsub.f32 %v1112_v14, %v4486_v36 }
  0x51   :  { %v1647_v42 = vsel %vm10881_vm2, %v11221_v19, %v1585_v13  ;;  %11222 = vst [vmem:[#allocation68_spill] sm:$0xff] %v5184_v30  ;;  %11223 = vst [vmem:[#allocation69_spill] sm:$0xff] %v5187_v18  ;;  %v5201_v19 = vsub.f32 %v1625_v9, %v4538_v52  ;;  %v5204_v16 = vsub.f32 %v1624_v57, %v4533_v51  ;;  %v11303_v30 = vmov 0 }
  0x52   :  { %11224 = vst [vmem:[#allocation70_spill] sm:$0xff] %v5190_v12  ;;  %v1646_v15 = vsel %vm10881_vm2, %v1585_v13, %v11225_v33  ;;  %11226 = vst [vmem:[#allocation71_spill] sm:$0xff] %v5198_v11  ;;  %v5207_v23 = vsub.f32 %v1109_v8, %v4576_v25  ;;  %v5210_v39 = vsub.f32 %v1108_v47, %v4571_v21  ;;  %v11235_v33 = vand.u32 2147483647, %v4480_v34 }
  0x53   :  { %11227 = vst [vmem:[#allocation72_spill] sm:$0xff] %v5201_v19  ;;  %11228 = vst [vmem:[#allocation73_spill] sm:$0xff] %v5204_v16  ;;  %v5214_v13 = vsub.f32 %v1647_v42, %v4327_v1  ;;  %v5219_v9 = vsub.f32 %v1646_v15, %v4341_v3  ;;  %v2100_v51 = vsub.f32 %v4327_v1, %v4322_v0  ;;  %v11238_v21 = vand.u32 2147483647, %v4494_v38  ;;  %v11267_v16 = vld [vmem:[#allocation16_spill] sm:$0xff] }
  0x54   :  { %11229 = vst [vmem:[#allocation74_spill] sm:$0xff] %v5207_v23  ;;  %11230 = vst [vmem:[#allocation75_spill] sm:$0xff] %v5210_v39  ;;  %vm5232_vm4 = vcmp.le.f32.partialorder %v11235_v33, 2.0  ;;  %v2101_v10 = vsub.f32 %v4341_v3, %v4336_v2  ;;  %v11241_v0 = vand.u32 2147483647, %v4647_v63  ;;  %v11269_v11 = vmov 0 }
  0x55   :  { %11231 = vst [vmem:[#allocation76_spill] sm:$0xff] %v5214_v13  ;;  %11232 = vst [vmem:[#allocation77_spill] sm:$0xff] %v5219_v9  ;;  %vm5241_vm5 = vcmp.le.f32.partialorder %v11238_v21, 2.0  ;;  %v5259_v57 = vand.u32 2147483647, %v2100_v51  ;;  %v11305_v5 = vmov -inf  }
  0x56   :  { %vm5253_vm6 = vcmp.le.f32.partialorder %v11241_v0, 2.0  ;;  %v11245_v2 = vand.u32 2147483647, %v4545_v55  ;;  %v11250_v51 = vand.u32 2147483647, %v4548_v56 }
  0x57   :  { %11244 = vst [vmem:[#allocation80_spill] sm:$0xff] %v5259_v57  ;;  %v11253_v1 = vand.u32 2147483647, %v4592_v43  ;;  %v5305_v9 = vand.u32 2147483647, %v2101_v10 }
  0x58   :  { %vm5265_vm7 = vcmp.le.f32.partialorder %v11245_v2, 2.0  ;;  %vm5277_vm8 = vcmp.le.f32.partialorder %v11250_v51, 2.0  ;;  %v11256_v2 = vand.u32 2147483647, %v4595_v44  ;;  %v11268_v19 = vand.u32 2147483647, %v11267_v16 }
  0x59   :  { %vm5290_vm9 = vcmp.le.f32.partialorder %v11253_v1, 2.0  ;;  %11259 = vst [vmem:[#allocation83_spill] sm:$0xff] %v5305_v9  ;;  %v11263_v9 = vld [vmem:[#allocation18_spill] sm:$0xff] }
  0x5a   :  { %vm5298_vm10 = vcmp.le.f32.partialorder %v11256_v2, 2.0  ;;  %v11264_v39 = vand.u32 2147483647, %v11263_v9  ;;  %vm5334_vm12 = vcmp.le.f32.partialorder %v11268_v19, 2.0 }
  0x5b   :  { %v11270_v11 = vsel %vm5334_vm12, 4294967295, %v11269_v11 }
  0x5c   :  { %vm5325_vm11 = vcmp.le.f32.partialorder %v11264_v39, 2.0  ;;  %v11283_v39 = vld [vmem:[#allocation26_spill] sm:$0xff] }
  0x74   :  { %v5226_v8 = vpop.permute.xlu1 %175  ;;  %v5228_v42 = vpop.permute.xlu0 %171 }
  0x75   :  { %11233 = vst [vmem:[#allocation78_spill] sm:$0xff] %v5226_v8  ;;  %11234 = vst [vmem:[#allocation79_spill] sm:$0xff] %v5228_v42  ;;  %v655_v15 = vrot.slane %v5226_v8, 6  ;;  %v1169_v33 = vrot.slane %v5226_v8, 1  ;;  %v11260_v13 = vrot.slane %v5228_v42, 6 }
  0x78   :  { %v5271_v52 = vpop.permute.xlu1 %177  ;;  %v5273_v21 = vpop.permute.xlu0 %173 }
  0x79   :  { %11248 = vst [vmem:[#allocation81_spill] sm:$0xff] %v5271_v52  ;;  %11249 = vst [vmem:[#allocation82_spill] sm:$0xff] %v5273_v21  ;;  %v654_v37 = vrot.slane %v5273_v21, 6  ;;  %v656_v4 = vrot.slane %v5271_v52, 6  ;;  %v1170_v57 = vrot.slane %v5271_v52, 1  ;;  %v1168_v0 = vrot.slane %v5273_v21, 1 }
  0x7b   :  { %v713_v1 = vsel %vm10890_vm0, %v655_v15, %v656_v4  ;;  %v714_v36 = vsel %vm10890_vm0, %v654_v37, %v655_v15  ;;  %v715_v2 = vsel %vm10890_vm0, %v11260_v13, %v654_v37  ;;  %v1227_v22 = vsel %vm10889_vm1, %v1169_v33, %v1170_v57 }
  0x7c   :  { %v5317_v50 = vpop.permute.xlu1 %181  ;;  %v5319_v7 = vpop.permute.xlu0 %179  ;;  %v719_v10 = vsub.f32 %v714_v36, %v5226_v8  ;;  %v720_v6 = vsub.f32 %v713_v1, %v5271_v52  ;;  %v718_v23 = vsub.f32 %v715_v2, %v5273_v21  ;;  %v1233_v37 = vsub.f32 %v1227_v22, %v5226_v8 }
  0x7d   :  { %11261 = vst [vmem:[#allocation84_spill] sm:$0xff] %v5317_v50  ;;  %11262 = vst [vmem:[#allocation85_spill] sm:$0xff] %v5319_v7  ;;  %v658_v13 = vrot.slane %v5317_v50, 6  ;;  %v10882_v36 = vrot.slane %v5319_v7, 1  ;;  %v657_v1 = vrot.slane %v5319_v7, 6 }
  0x7e   :  { %vm815_vm13 = vcmp.eq.f32.partialorder %v719_v10, %v4480_v34  ;;  %vm5343_vm14 = vcmp.eq.f32.partialorder %v720_v6, %v4494_v38  ;;  %vm5348_vm15 = vcmp.eq.f32.partialorder %v718_v23, %v4647_v63  ;;  %vm5360_vm2 = vcmp.eq.f32.partialorder %v1233_v37, %v4545_v55  ;;  %v11277_v23 = vld [vmem:[#allocation25_spill] sm:$0xff]  ;;  %v11346_v6 = vld [vmem:[#allocation22_spill] sm:$0xff] }
  0x7f   :  { %vm847_vm3 = vmand %vm5232_vm4, %vm815_vm13  ;;  %v1226_v34 = vsel %vm10889_vm1, %v1170_v57, %v10882_v36  ;;  %v711_v38 = vsel %vm10890_vm0, %v657_v1, %v658_v13  ;;  %v712_v63 = vsel %vm10890_vm0, %v656_v4, %v657_v1  ;;  %v11278_v10 = vand.u32 2147483647, %v11277_v23 }
  0x80   :  { %v5374_v19 = vpop.permute.xlu1 %185  ;;  %v5376_v57 = vpop.permute.xlu0 %183  ;;  %vm848_vm4 = vmand %vm5241_vm5, %vm5343_vm14  ;;  %v10887_v55 = vmov -inf   ;;  %v1234_v4 = vsub.f32 %v1226_v34, %v5271_v52  ;;  %v721_v1 = vsub.f32 %v712_v63, %v5319_v7  ;;  %v11284_v36 = vand.u32 2147483647, %v11283_v39 }
  0x81   :  { %vm5370_vm12 = vcmp.le.f32.partialorder %v11278_v10, 2.0  ;;  %11281 = vst [vmem:[#allocation18_spill] sm:$0xff] %v5374_v19  ;;  %11282 = vst [vmem:[#allocation16_spill] sm:$0xff] %v5376_v57  ;;  %v879_v37 = vsel %vm847_vm3, 0.0, %v10887_v55  ;;  %v722_v10 = vsub.f32 %v711_v38, %v5317_v50  ;;  %v880_v2 = vsel %vm848_vm4, 0.0, %v10887_v55  ;;  %v11301_v55 = vld [vmem:[#allocation19_spill] sm:$0xff] }
  0x82   :  { %vm5388_vm13 = vcmp.le.f32.partialorder %v11284_v36, 2.0  ;;  %v659_v47 = vrot.slane %v5376_v57, 6  ;;  %v660_v12 = vrot.slane %v5374_v19, 6  ;;  %v5401_v34 = vsel %vm10889_vm1, %v1168_v0, %v1169_v33 }
  0x83   :  { %v3656_v38 = vpack.i.bf16 %v880_v2, %v879_v37  ;;  %vm5404_vm5 = vcmp.eq.f32.partialorder %v1234_v4, %v4548_v56  ;;  %vm5413_vm4 = vcmp.eq.f32.partialorder %v721_v1, %v4592_v43  ;;  %vm5427_vm14 = vcmp.eq.f32.partialorder %v722_v10, %v4595_v44  ;;  %v11293_v43 = vld [vmem:[#allocation27_spill] sm:$0xff]  ;;  %v11318_v37 = vld [vmem:[#allocation30_spill] sm:$0xff] }
  0x84   :  { %v709_v33 = vsel %vm10890_vm0, %v659_v47, %v660_v12  ;;  %v710_v56 = vsel %vm10890_vm0, %v658_v13, %v659_v47  ;;  %v11294_v4 = vand.u32 2147483647, %v11293_v43  ;;  %v11295_v1 = vmov 0  ;;  %v5444_v47 = vpop.permute.xlu1 %189  ;;  %v5446_v44 = vpop.permute.xlu0 %187 }
  0x85   :  { %v11297_v2 = vrot.slane %v5228_v42, 1  ;;  %vm11298_vm0 = vcmp.lt.s32.totalorder %v4427_v17, 7  ;;  %3657 = vrot.lane.b32.xlu1 %v3656_v38, %s4302_s10  ;;  %11299 = vst [vmem:[#allocation25_spill] sm:$0xff] %v5444_v47  ;;  %11300 = vst [vmem:[#allocation26_spill] sm:$0xff] %v5446_v44  ;;  %v723_v10 = vsub.f32 %v710_v56, %v5376_v57  ;;  %v11302_v18 = vand.u32 2147483647, %v11301_v55 }
  0x86   :  { %vm5433_vm1 = vcmp.le.f32.partialorder %v11294_v4, 2.0  ;;  %v724_v4 = vsub.f32 %v709_v33, %v5374_v19  ;;  %v1174_v38 = vrot.slane %v5374_v19, 1  ;;  %v11307_v33 = vld [vmem:[#allocation20_spill] sm:$0xff]  ;;  %v10899_v22 = vrot.slane %v5446_v44, 1 }
  0x87   :  { %v11296_v1 = vsel %vm5433_vm1, 4294967295, %v11295_v1  ;;  %v5441_v13 = vsel %vm11298_vm0, %v11297_v2, %v1168_v0  ;;  %vm5452_vm3 = vcmp.le.f32.partialorder %v11302_v18, 2.0  ;;  %vm11306_vm0 = vmand %vm5253_vm6, %vm5348_vm15  ;;  %v662_v18 = vrot.slane %v5444_v47, 6 }
  0x88   :  { %v11304_v30 = vsel %vm5452_vm3, 4294967295, %v11303_v30  ;;  %v5462_v0 = vsel %vm11306_vm0, 0.0, %v11305_v5  ;;  %vm849_vm1 = vmand %vm5290_vm9, %vm5413_vm4  ;;  %v11308_v56 = vand.u32 2147483647, %v11307_v33  ;;  %vm819_vm15 = vcmp.eq.f32.partialorder %v723_v10, %v11263_v9  ;;  %v5529_v15 = vpop.permute.xlu0 %191 }
  0x89   :  { %vm11311_vm6 = vmand %vm5277_vm8, %vm5404_vm5  ;;  %v5489_v51 = vsel %vm849_vm1, 0.0, %v11305_v5  ;;  %vm5494_vm4 = vcmp.eq.f32.partialorder %v724_v4, %v11267_v16  ;;  %v11316_v63 = vrot.slane %v5376_v57, 1  ;;  %vm11317_vm8 = vcmp.lt.s32.totalorder %v4427_v17, 7  ;;  %11326 = vst [vmem:[#allocation86_spill] sm:$0xff] %v5529_v15 }
  0x8a   :  { %vm5472_vm3 = vcmp.le.f32.partialorder %v11308_v56, 2.0  ;;  %v5482_v14 = vsel %vm11311_vm6, 0.0, %v11305_v5  ;;  %vm850_vm9 = vmand %vm5298_vm10, %vm5427_vm14  ;;  %11312 = vst [vmem:[#allocation27_spill] sm:$0xff] %v5489_v51  ;;  %v11319_v56 = vand.u32 2147483647, %v11318_v37  ;;  %v661_v4 = vrot.slane %v5446_v44, 6 }
  0x8b   :  { %v5499_v36 = vsel %vm850_vm9, 0.0, %v11305_v5  ;;  %v1223_v24 = vsel %vm11317_vm8, %v11316_v63, %v1174_v38  ;;  %vm851_vm10 = vmand %vm5325_vm11, %vm819_vm15  ;;  %v5527_v63 = vpop.permute.xlu1 %193  ;;  %vm11327_vm11 = vnez %v11270_v11  ;;  %vm11332_vm9 = vcmp.lt.s32.totalorder %v4427_v17, 2  ;;  %v11365_v11 = vld [vmem:[#allocation37_spill] sm:$0xff] }
  0x8c   :  { %11315 = vst [vmem:[#allocation19_spill] sm:$0xff] %v5499_v36  ;;  %vm5507_vm1 = vcmp.le.f32.partialorder %v11319_v56, 2.0  ;;  %vm11322_vm5 = vmand %vm5265_vm7, %vm5360_vm2  ;;  %v1237_v10 = vsub.f32 %v1223_v24, %v5376_v57  ;;  %v883_v3 = vsel %vm851_vm10, 0.0, %v11305_v5  ;;  %v10904_v20 = vrot.slane %v5527_v63, 6 }
  0x8d   :  { %v5519_v16 = vsel %vm11322_vm5, 0.0, %v11305_v5  ;;  %vm11324_vm14 = vmmov %vm11317_vm8  ;;  %11325 = vst [vmem:[#allocation30_spill] sm:$0xff] %v5527_v63 }
  0x8e   :  { %11323 = vst [vmem:[#allocation20_spill] sm:$0xff] %v5519_v16  ;;  %v1222_v9 = vsel %vm11324_vm14, %v1174_v38, %v10899_v22  ;;  %vm852_vm2 = vmand %vm11327_vm11, %vm5494_vm4  ;;  %v663_v22 = vrot.slane %v5529_v15, 6  ;;  %vm5545_vm7 = vcmp.eq.f32.partialorder %v1237_v10, %v11277_v23  ;;  %v11334_v10 = vld [vmem:[#allocation34_spill] sm:$0xff] }
  0x8f   :  { %v1238_v24 = vsub.f32 %v1222_v9, %v5374_v19  ;;  %v884_v56 = vsel %vm852_vm2, 0.0, %v11305_v5  ;;  %vm1365_vm6 = vmand %vm5370_vm12, %vm5545_vm7  ;;  %v707_v9 = vsel %vm11332_vm9, %v661_v4, %v662_v18  ;;  %v11335_v38 = vand.u32 2147483647, %v11334_v10  ;;  %v11381_v19 = vld [vmem:[#allocation40_spill] sm:$0xff] }
  0x90   :  { %v3666_v25 = vpack.i.bf16 %v884_v56, %v883_v3  ;;  %vm11333_vm15 = vmmov %vm11332_vm9  ;;  %v726_v49 = vsub.f32 %v707_v9, %v5444_v47  ;;  %v10915_v9 = vrot.slane %v5529_v15, 1  ;;  %vm11364_vm7 = vnez %v11296_v1 }
  0x91   :  { %vm5550_vm0 = vcmp.eq.f32.partialorder %v1238_v24, %v11283_v39  ;;  %v708_v23 = vsel %vm11333_vm15, %v660_v12, %v661_v4  ;;  %vm5564_vm4 = vcmp.le.f32.partialorder %v11335_v38, 2.0  ;;  %vm11338_vm8 = vmmov %vm11332_vm9  ;;  %v11340_v4 = vld [vmem:[#allocation32_spill] sm:$0xff]  ;;  %v11382_v48 = vand.u32 2147483647, %v11381_v19 }
  0x92   :  { %v705_v39 = vsel %vm11338_vm8, %v663_v22, %v10904_v20  ;;  %vm11339_vm10 = vmmov %vm11338_vm8  ;;  %v725_v12 = vsub.f32 %v708_v23, %v5446_v44  ;;  %v11341_v38 = vand.u32 2147483647, %v11340_v4  ;;  %3667 = vrot.lane.b32.xlu1 %v3666_v25, %s4302_s10  ;;  %v5588_v20 = vpop.permute.xlu1 %197  ;;  %v11347_v23 = vand.u32 2147483647, %v11346_v6  ;;  %v11351_v25 = vld [vmem:[#allocation23_spill] sm:$0xff] }
  0x93   :  { %v706_v24 = vsel %vm11339_vm10, %v662_v18, %v663_v22  ;;  %vm1366_vm5 = vmand %vm5388_vm13, %vm5550_vm0  ;;  %11344 = vst [vmem:[#allocation34_spill] sm:$0xff] %v5588_v20  ;;  %v5590_v18 = vpop.permute.xlu0 %195  ;;  %v728_v22 = vsub.f32 %v705_v39, %v5527_v63  ;;  %v11352_v61 = vand.u32 2147483647, %v11351_v25  ;;  %v5616_v39 = vsel %vm1365_vm6, 0.0, %v11305_v5 }
  0x94   :  { %vm5581_vm14 = vcmp.le.f32.partialorder %v11341_v38, 2.0  ;;  %11345 = vst [vmem:[#allocation32_spill] sm:$0xff] %v5590_v18  ;;  %v727_v45 = vsub.f32 %v706_v24, %v5529_v15  ;;  %vm5596_vm13 = vcmp.le.f32.partialorder %v11347_v23, 2.0  ;;  %v5601_v44 = vsel %vm1366_vm5, 0.0, %v11305_v5  ;;  %11355 = vst [vmem:[#allocation23_spill] sm:$0xff] %v5616_v39 }
  0x95   :  { %11350 = vst [vmem:[#allocation22_spill] sm:$0xff] %v5601_v44  ;;  %vm5606_vm11 = vcmp.le.f32.partialorder %v11352_v61, 2.0  ;;  %vm5619_vm2 = vcmp.eq.f32.partialorder %v725_v12, %v11293_v43  ;;  %vm5632_vm9 = vcmp.eq.f32.partialorder %v728_v22, %v11307_v33  ;;  %vm5637_vm12 = vcmp.eq.f32.partialorder %v726_v49, %v11318_v37  ;;  %v11370_v22 = vld [vmem:[#allocation35_spill] sm:$0xff] }
  0x96   :  { %vm5627_vm0 = vcmp.eq.f32.partialorder %v727_v45, %v11301_v55  ;;  %vm853_vm6 = vmand %vm11364_vm7, %vm5619_vm2  ;;  %v1178_v55 = vrot.slane %v5527_v63, 1  ;;  %v11366_v12 = vand.u32 2147483647, %v11365_v11  ;;  %vm11369_vm8 = vnez %v11304_v30  ;;  %v5667_v61 = vpop.permute.xlu1 %201 }
  0x97   :  { %vm855_vm10 = vmand %vm11369_vm8, %vm5627_vm0  ;;  %v666_v49 = vrot.slane %v5588_v20, 6  ;;  %v665_v37 = vrot.slane %v5590_v18, 6  ;;  %v11371_v24 = vand.u32 2147483647, %v11370_v22  ;;  %11374 = vst [vmem:[#allocation37_spill] sm:$0xff] %v5667_v61  ;;  %v5669_v23 = vpop.permute.xlu0 %199  ;;  %v5677_v33 = vsel %vm853_vm6, 0.0, %v11305_v5 }
  0x98   :  { %vm5648_vm15 = vcmp.le.f32.partialorder %v11366_v12, 2.0  ;;  %11375 = vst [vmem:[#allocation35_spill] sm:$0xff] %v5669_v23  ;;  %vm856_vm2 = vmand %vm5472_vm3, %vm5632_vm9  ;;  %v887_v30 = vsel %vm855_vm10, 0.0, %v11305_v5  ;;  %vm11377_vm0 = vcmp.lt.s32.totalorder %v4427_v17, 7  ;;  %v667_v44 = vrot.slane %v5669_v23, 6 }
  0x99   :  { %vm5663_vm5 = vcmp.le.f32.partialorder %v11371_v24, 2.0  ;;  %11376 = vst [vmem:[#allocation87_spill] sm:$0xff] %v5677_v33  ;;  %v1219_v24 = vsel %vm11377_vm0, %v10915_v9, %v1178_v55  ;;  %v888_v39 = vsel %vm856_vm2, 0.0, %v11305_v5  ;;  %vm854_vm3 = vmand %vm5507_vm1, %vm5637_vm12  ;;  %v11378_v2 = vrot.slane %v5590_v18, 1 }
  0x9a   :  { %vm11379_vm9 = vmmov %vm11377_vm0  ;;  %v3676_v36 = vpack.i.bf16 %v888_v39, %v887_v30  ;;  %v5696_v9 = vsel %vm854_vm3, 0.0, %v11305_v5  ;;  %v1241_v1 = vsub.f32 %v1219_v24, %v5529_v15  ;;  %vm5702_vm7 = vcmp.le.f32.partialorder %v11382_v48, 2.0  ;;  %v11389_v30 = vld [vmem:[#allocation39_spill] sm:$0xff] }
  0x9b   :  { %v1218_v47 = vsel %vm11379_vm9, %v1178_v55, %v11378_v2  ;;  %11380 = vst [vmem:[#allocation88_spill] sm:$0xff] %v5696_v9  ;;  %v11385_v53 = vrot.slane %v5667_v61, 6  ;;  %vm11386_vm1 = vcmp.lt.s32.totalorder %v4427_v17, 2  ;;  %v11390_v24 = vand.u32 2147483647, %v11389_v30  ;;  %v5723_v2 = vpop.permute.xlu1 %205  ;;  %v11395_v55 = vld [vmem:[#allocation29_spill] sm:$0xff] }
  0x9c   :  { %v1242_v26 = vsub.f32 %v1218_v47, %v5527_v63  ;;  %vm11387_vm12 = vmmov %vm11386_vm1  ;;  %3677 = vrot.lane.b32.xlu1 %v3676_v36, %s4302_s10  ;;  %11393 = vst [vmem:[#allocation40_spill] sm:$0xff] %v5723_v2  ;;  %v11396_v33 = vand.u32 2147483647, %v11395_v55  ;;  %vm1337_vm2 = vcmp.eq.f32.partialorder %v1241_v1, %v11334_v10  ;;  %v670_v36 = vrot.slane %v5723_v2, 6 }
  0x9d   :  { %v701_v57 = vsel %vm11386_vm1, %v667_v44, %v11385_v53  ;;  %v702_v39 = vsel %vm11387_vm12, %v666_v49, %v667_v44  ;;  %vm11388_vm6 = vmmov %vm11386_vm1  ;;  %vm5718_vm8 = vcmp.le.f32.partialorder %v11390_v24, 2.0  ;;  %v5725_v53 = vpop.permute.xlu0 %203  ;;  %v11399_v24 = vld [vmem:[#allocation31_spill] sm:$0xff] }
  0x9e   :  { %v703_v47 = vsel %vm11388_vm6, %v665_v37, %v666_v49  ;;  %11394 = vst [vmem:[#allocation39_spill] sm:$0xff] %v5725_v53  ;;  %v731_v44 = vsub.f32 %v702_v39, %v5669_v23  ;;  %v732_v15 = vsub.f32 %v701_v57, %v5667_v61  ;;  %vm5731_vm10 = vcmp.le.f32.partialorder %v11396_v33, 2.0  ;;  %vm1369_vm9 = vmand %vm5564_vm4, %vm1337_vm2 }
  0x9f   :  { %vm1338_vm0 = vcmp.eq.f32.partialorder %v1242_v26, %v11340_v4  ;;  %v11400_v9 = vand.u32 2147483647, %v11399_v24  ;;  %v11403_v57 = vrot.slane %v5527_v63, 6  ;;  %v730_v10 = vsub.f32 %v703_v47, %v5588_v20  ;;  %v5794_v38 = vpop.permute.xlu1 %209 }
  0xa0   :  { %vm5753_vm12 = vcmp.eq.f32.partialorder %v731_v44, %v11346_v6  ;;  %vm5758_vm6 = vcmp.eq.f32.partialorder %v732_v15, %v11351_v25  ;;  %vm1370_vm4 = vmand %vm5581_vm14, %vm1338_vm0  ;;  %v5765_v3 = vsel %vm1369_vm9, 0.0, %v11305_v5  ;;  %v1182_v25 = vrot.slane %v5667_v61, 1  ;;  %v11416_v44 = vld [vmem:[#allocation42_spill] sm:$0xff] }
  0xa1   :  { %vm5740_vm3 = vcmp.le.f32.partialorder %v11400_v9, 2.0  ;;  %v704_v33 = vsel %vm11386_vm1, %v11403_v57, %v665_v37  ;;  %11408 = vst [vmem:[#allocation29_spill] sm:$0xff] %v5765_v3  ;;  %v11409_v37 = vld [vmem:[#allocation41_spill] sm:$0xff]  ;;  %vm859_vm1 = vmand %vm5596_vm13, %vm5753_vm12  ;;  %v5779_v15 = vsel %vm1370_vm4, 0.0, %v11305_v5  ;;  %vm5782_vm14 = vcmp.eq.f32.partialorder %v730_v10, %v11370_v22  ;;  %v5796_v4 = vpop.permute.xlu0 %207 }
  0xa2   :  { %v729_v1 = vsub.f32 %v704_v33, %v5590_v18  ;;  %v11410_v39 = vand.u32 2147483647, %v11409_v37  ;;  %11413 = vst [vmem:[#allocation31_spill] sm:$0xff] %v5779_v15  ;;  %v11417_v57 = vand.u32 2147483647, %v11416_v44  ;;  %11420 = vst [vmem:[#allocation41_spill] sm:$0xff] %v5794_v38 }
  0xa3   :  { %11421 = vst [vmem:[#allocation42_spill] sm:$0xff] %v5796_v4  ;;  %vm860_vm13 = vmand %vm5606_vm11, %vm5758_vm6  ;;  %v891_v22 = vsel %vm859_vm1, 0.0, %v11305_v5  ;;  %v671_v26 = vrot.slane %v5796_v4, 6  ;;  %v10931_v47 = vrot.slane %v5794_v38, 6  ;;  %v11422_v51 = vrot.slane %v5725_v53, 1 }
  0xa4   :  { %vm5770_vm2 = vcmp.le.f32.partialorder %v11410_v39, 2.0  ;;  %vm5790_vm0 = vcmp.le.f32.partialorder %v11417_v57, 2.0  ;;  %vm825_vm9 = vcmp.eq.f32.partialorder %v729_v1, %v11365_v11  ;;  %v669_v39 = vrot.slane %v5725_v53, 6  ;;  %vm858_vm6 = vmand %vm5663_vm5, %vm5782_vm14 }
  0xa5   :  { %v892_v57 = vsel %vm860_vm13, 0.0, %v11305_v5  ;;  %vm857_vm12 = vmand %vm5648_vm15, %vm825_vm9  ;;  %vm11423_vm11 = vcmp.lt.s32.totalorder %v4427_v17, 7  ;;  %v11424_v1 = vrot.slane %v5669_v23, 1  ;;  %vm11426_vm15 = vcmp.lt.s32.totalorder %v4427_v17, 2 }
  0xa6   :  { %v1214_v9 = vsel %vm11423_vm11, %v1182_v25, %v11422_v51  ;;  %v3686_v20 = vpack.i.bf16 %v892_v57, %v891_v22  ;;  %v5821_v11 = vsel %vm857_vm12, 0.0, %v11305_v5  ;;  %vm11425_vm4 = vmmov %vm11423_vm11  ;;  %v697_v22 = vsel %vm11426_vm15, %v671_v26, %v10931_v47  ;;  %v11433_v47 = vld [vmem:[#allocation36_spill] sm:$0xff] }
  0xa7   :  { %v1215_v45 = vsel %vm11425_vm4, %v11424_v1, %v1182_v25  ;;  %v1246_v10 = vsub.f32 %v1214_v9, %v5667_v61  ;;  %vm11427_vm1 = vmmov %vm11426_vm15  ;;  %v5835_v12 = vsel %vm858_vm6, 0.0, %v11305_v5  ;;  %v11428_v51 = vand.u32 2147483647, %v4844_v32  ;;  %v5845_v25 = vpop.permute.xlu1 %213  ;;  %v5847_v9 = vpop.permute.xlu0 %211 }
  0xa8   :  { %v698_v56 = vsel %vm11427_vm1, %v670_v36, %v671_v26  ;;  %v1245_v57 = vsub.f32 %v1215_v45, %v5669_v23  ;;  %3687 = vrot.lane.b32.xlu1 %v3686_v20, %s4302_s10  ;;  %11431 = vst [vmem:[#allocation89_spill] sm:$0xff] %v5845_v25  ;;  %11432 = vst [vmem:[#allocation90_spill] sm:$0xff] %v5847_v9  ;;  %v736_v26 = vsub.f32 %v697_v22, %v5794_v38  ;;  %v11437_v23 = vld [vmem:[#allocation38_spill] sm:$0xff]  ;;  %v11439_v63 = vmov 0 }
  0xa9   :  { %vm5840_vm5 = vcmp.le.f32.partialorder %v11428_v51, 2.0  ;;  %v735_v1 = vsub.f32 %v698_v56, %v5796_v4  ;;  %v11434_v3 = vand.u32 2147483647, %v11433_v47  ;;  %vm1342_vm13 = vcmp.eq.f32.partialorder %v1246_v10, %v11381_v19  ;;  %vm11441_vm6 = vmmov %vm11427_vm1  ;;  %v11467_v51 = vld [vmem:[#allocation43_spill] sm:$0xff] }
  0xaa   :  { %v10941_v20 = vrot.slane %v5845_v25, 6  ;;  %v11438_v15 = vand.u32 2147483647, %v11437_v23  ;;  %vm1341_vm12 = vcmp.eq.f32.partialorder %v1245_v57, %v11389_v30  ;;  %vm1374_vm11 = vmand %vm5702_vm7, %vm1342_vm13  ;;  %v11442_v22 = vrot.slane %v5667_v61, 6 }
  0xab   :  { %vm5853_vm14 = vcmp.le.f32.partialorder %v11434_v3, 2.0  ;;  %v699_v3 = vsel %vm11441_vm6, %v669_v39, %v670_v36  ;;  %vm11443_vm4 = vmmov %vm11427_vm1  ;;  %vm831_vm15 = vcmp.eq.f32.partialorder %v735_v1, %v11395_v55  ;;  %vm5878_vm1 = vcmp.eq.f32.partialorder %v736_v26, %v11399_v24  ;;  %v5902_v56 = vpop.permute.xlu1 %217  ;;  %v5904_v57 = vpop.permute.xlu0 %215 }
  0xac   :  { %vm5863_vm9 = vcmp.le.f32.partialorder %v11438_v15, 2.0  ;;  %v700_v19 = vsel %vm11443_vm4, %v11442_v22, %v669_v39  ;;  %v5885_v43 = vsel %vm1374_vm11, 0.0, %v11305_v5  ;;  %v11446_v36 = vand.u32 2147483647, %v4847_v46  ;;  %vm863_vm13 = vmand %vm5731_vm10, %vm831_vm15  ;;  %11449 = vst [vmem:[#allocation36_spill] sm:$0xff] %v5902_v56 }
  0xad   :  { %v11440_v63 = vsel %vm5863_vm9, 4294967295, %v11439_v63  ;;  %vm1373_vm9 = vmand %vm5718_vm8, %vm1341_vm12  ;;  %v733_v30 = vsub.f32 %v700_v19, %v5725_v53  ;;  %v734_v48 = vsub.f32 %v699_v3, %v5723_v2  ;;  %v10939_v24 = vrot.slane %v5796_v4, 1  ;;  %11450 = vst [vmem:[#allocation38_spill] sm:$0xff] %v5904_v57 }
  0xae   :  { %vm5890_vm7 = vcmp.le.f32.partialorder %v11446_v36, 2.0  ;;  %v5897_v55 = vsel %vm1373_vm9, 0.0, %v11305_v5  ;;  %v1186_v39 = vrot.slane %v5794_v38, 1  ;;  %vm864_vm8 = vmand %vm5740_vm3, %vm5878_vm1  ;;  %v895_v49 = vsel %vm863_vm13, 0.0, %v11305_v5 }
  0xaf   :  { %vm829_vm10 = vcmp.eq.f32.partialorder %v733_v30, %v11409_v37  ;;  %v10938_v26 = vrot.slane %v5847_v9, 1  ;;  %v11451_v3 = vand.u32 2147483647, %v4852_v35  ;;  %v896_v19 = vsel %vm864_vm8, 0.0, %v11305_v5 }
  0xb0   :  { %v675_v16 = vrot.slane %v5904_v57, 6  ;;  %v10940_v15 = vrot.slane %v5902_v56, 6  ;;  %vm830_vm3 = vcmp.eq.f32.partialorder %v734_v48, %v11416_v44  ;;  %vm861_vm12 = vmand %vm5770_vm2, %vm829_vm10  ;;  %v11454_v37 = vand.u32 2147483647, %v4855_v62 }
  0xb1   :  { %vm5917_vm9 = vcmp.le.f32.partialorder %v11451_v3, 2.0  ;;  %v3696_v36 = vpack.i.bf16 %v896_v19, %v895_v49  ;;  %vm862_vm6 = vmand %vm5790_vm0, %vm830_vm3  ;;  %v5936_v3 = vsel %vm861_vm12, 0.0, %v11305_v5  ;;  %vm11458_vm4 = vcmp.lt.s32.totalorder %v4427_v17, 7 }
  0xb2   :  { %vm5929_vm11 = vcmp.le.f32.partialorder %v11454_v37, 2.0  ;;  %11457 = vst [vmem:[#allocation91_spill] sm:$0xff] %v5936_v3  ;;  %v1210_v44 = vsel %vm11458_vm4, %v1186_v39, %v10938_v26  ;;  %vm11459_vm2 = vmmov %vm11458_vm4  ;;  %vm11460_vm15 = vcmp.lt.s32.totalorder %v4427_v17, 2  ;;  %v5955_v49 = vsel %vm862_vm6, 0.0, %v11305_v5 }
  0xb3   :  { %v1211_v6 = vsel %vm11459_vm2, %v10939_v24, %v1186_v39  ;;  %v693_v48 = vsel %vm11460_vm15, %v675_v16, %v10940_v15  ;;  %vm11461_vm0 = vmmov %vm11460_vm15  ;;  %v11462_v37 = vand.u32 2147483647, %v4888_v59  ;;  %3697 = vrot.lane.b32.xlu1 %v3696_v36, %s4302_s10  ;;  %v5965_v39 = vpop.permute.xlu1 %221  ;;  %v5967_v24 = vpop.permute.xlu0 %219  ;;  %v11468_v15 = vand.u32 2147483647, %v11467_v51 }
  0xb4   :  { %v694_v33 = vsel %vm11461_vm0, %v10941_v20, %v675_v16  ;;  %v1249_v19 = vsub.f32 %v1211_v6, %v5796_v4  ;;  %11465 = vst [vmem:[#allocation92_spill] sm:$0xff] %v5965_v39  ;;  %11466 = vst [vmem:[#allocation93_spill] sm:$0xff] %v5967_v24  ;;  %v740_v16 = vsub.f32 %v693_v48, %v5902_v56  ;;  %v11471_v4 = vld [vmem:[#allocation44_spill] sm:$0xff]  ;;  %v10951_v48 = vrot.slane %v5904_v57, 1 }
  0xb5   :  { %vm5960_vm1 = vcmp.le.f32.partialorder %v11462_v37, 2.0  ;;  %v739_v1 = vsub.f32 %v694_v33, %v5904_v57  ;;  %vm5973_vm13 = vcmp.le.f32.partialorder %v11468_v15, 2.0  ;;  %v1250_v20 = vsub.f32 %v1210_v44, %v5794_v38 }
  0xb6   :  { %v11472_v2 = vand.u32 2147483647, %v11471_v4  ;;  %vm1345_vm10 = vcmp.eq.f32.partialorder %v1249_v19, %v4844_v32  ;;  %v673_v15 = vrot.slane %v5847_v9, 6  ;;  %vm5992_vm12 = vcmp.eq.f32.partialorder %v740_v16, %v11437_v23 }
  0xb7   :  { %vm835_vm3 = vcmp.eq.f32.partialorder %v739_v1, %v11433_v47  ;;  %vm5997_vm6 = vcmp.eq.f32.partialorder %v1250_v20, %v4847_v46  ;;  %vm1377_vm4 = vmand %vm5840_vm5, %vm1345_vm10  ;;  %v1190_v32 = vrot.slane %v5902_v56, 1  ;;  %v11483_v46 = vrot.slane %v5845_v25, 6  ;;  %v6024_v16 = vpop.permute.xlu1 %225 }
  0xb8   :  { %vm5983_vm8 = vcmp.le.f32.partialorder %v11472_v2, 2.0  ;;  %v11479_v2 = vld [vmem:[#allocation48_spill] sm:$0xff]  ;;  %vm867_vm15 = vmand %vm5853_vm14, %vm835_vm3  ;;  %v6013_v23 = vsel %vm1377_vm4, 0.0, %v11305_v5  ;;  %v11484_v47 = vrot.slane %v5794_v38, 6  ;;  %11486 = vst [vmem:[#allocation43_spill] sm:$0xff] %v6024_v16  ;;  %vm11487_vm14 = vnez %v11440_v63 }
  0xb9   :  { %v11480_v19 = vand.u32 2147483647, %v11479_v2  ;;  %v695_v18 = vsel %vm11461_vm0, %v673_v15, %v11483_v46  ;;  %vm11485_vm5 = vmmov %vm11461_vm0  ;;  %v899_v45 = vsel %vm867_vm15, 0.0, %v11305_v5  ;;  %vm11488_vm3 = vcmp.lt.s32.totalorder %v4427_v17, 7 }
  0xba   :  { %v696_v20 = vsel %vm11485_vm5, %v11484_v47, %v673_v15  ;;  %vm868_vm10 = vmand %vm11487_vm14, %vm5992_vm12  ;;  %v738_v36 = vsub.f32 %v695_v18, %v5845_v25  ;;  %v1207_v15 = vsel %vm11488_vm3, %v10951_v48, %v1190_v32  ;;  %v11489_v47 = vld [vmem:[#allocation49_spill] sm:$0xff]  ;;  %v10956_v3 = vrot.slane %v6024_v16, 6 }
  0xbb   :  { %vm6006_vm2 = vcmp.le.f32.partialorder %v11480_v19, 2.0  ;;  %v6026_v19 = vpop.permute.xlu0 %223  ;;  %v737_v46 = vsub.f32 %v696_v20, %v5847_v9  ;;  %v11490_v1 = vand.u32 2147483647, %v11489_v47  ;;  %v900_v63 = vsel %vm868_vm10, 0.0, %v11305_v5  ;;  %vm1378_vm12 = vmand %vm5890_vm7, %vm5997_vm6  ;;  %v6119_v22 = vpop.permute.xlu1 %229 }
  0xbc   :  { %v679_v33 = vrot.slane %v6026_v19, 6  ;;  %v11493_v18 = vrot.slane %v5967_v24, 1  ;;  %vm11494_vm15 = vmmov %vm11488_vm3  ;;  %v3706_v25 = vpack.i.bf16 %v900_v63, %v899_v45  ;;  %v6063_v9 = vsel %vm1378_vm12, 0.0, %v11305_v5  ;;  %11517 = vst [vmem:[#allocation44_spill] sm:$0xff] %v6119_v22 }
  0xbd   :  { %vm6041_vm4 = vcmp.le.f32.partialorder %v11490_v1, 2.0  ;;  %v11495_v1 = vand.u32 2147483647, %v4921_v29  ;;  %vm6066_vm5 = vcmp.eq.f32.partialorder %v737_v46, %v4852_v35  ;;  %vm6071_vm7 = vcmp.eq.f32.partialorder %v738_v36, %v4855_v62 }
  0xbe   :  { %v1206_v20 = vsel %vm11494_vm15, %v1190_v32, %v11493_v18  ;;  %v11502_v32 = vand.u32 2147483647, %v4974_v41  ;;  %v11505_v45 = vsub.f32 %v5441_v13, %v5228_v42  ;;  %vm11508_vm10 = vcmp.lt.s32.totalorder %v4427_v17, 2  ;;  %vm865_vm12 = vmand %vm5917_vm9, %vm6066_vm5  ;;  %3707 = vrot.lane.b32.xlu1 %v3706_v25, %s4302_s10 }
  0xbf   :  { %vm6058_vm0 = vcmp.le.f32.partialorder %v11495_v1, 2.0  ;;  %v689_v62 = vsel %vm11508_vm10, %v679_v33, %v10956_v3  ;;  %v11509_v36 = vrot.slane %v5965_v39, 6  ;;  %vm11510_vm3 = vmmov %vm11508_vm10  ;;  %v11511_v13 = vand.u32 2147483647, %v4977_v28  ;;  %v6121_v44 = vpop.permute.xlu0 %227 }
  0xc0   :  { %vm6077_vm6 = vcmp.le.f32.partialorder %v11502_v32, 2.0  ;;  %vm6085_vm14 = vcmp.eq.f32.partialorder %v11505_v45, %v4974_v41  ;;  %v1253_v41 = vsub.f32 %v1207_v15, %v5904_v57  ;;  %v11512_v1 = vmov 0  ;;  %11518 = vst [vmem:[#allocation48_spill] sm:$0xff] %v6121_v44  ;;  %vm866_vm5 = vmand %vm5929_vm11, %vm6071_vm7 }
  0xc1   :  { %v690_v46 = vsel %vm11510_vm3, %v11509_v36, %v679_v33  ;;  %vm6106_vm15 = vcmp.le.f32.partialorder %v11511_v13, 2.0  ;;  %v11514_v33 = vsub.f32 %v5401_v34, %v5273_v21  ;;  %v11515_v32 = vmov 0  ;;  %v11519_v36 = vld [vmem:[#allocation45_spill] sm:$0xff] }
  0xc2   :  { %v11513_v1 = vsel %vm6106_vm15, 4294967295, %v11512_v1  ;;  %v743_v15 = vsub.f32 %v690_v46, %v6026_v19  ;;  %v744_v45 = vsub.f32 %v689_v62, %v6024_v16  ;;  %v11520_v13 = vand.u32 2147483647, %v11519_v36  ;;  %v11523_v46 = vld [vmem:[#allocation46_spill] sm:$0xff] }
  0xc3   :  { %vm6114_vm10 = vcmp.eq.f32.partialorder %v11514_v33, %v4977_v28  ;;  %v11521_v63 = vmov 0  ;;  %v6136_v28 = vsel %vm865_vm12, 0.0, %v11305_v5  ;;  %v1254_v34 = vsub.f32 %v1206_v20, %v5902_v56  ;;  %v6200_v10 = vpop.permute.xlu0 %231 }
  0xc4   :  { %v11516_v32 = vsel %vm6114_vm10, 4294967295, %v11515_v32  ;;  %vm6127_vm9 = vcmp.le.f32.partialorder %v11520_v13, 2.0  ;;  %v11524_v62 = vand.u32 2147483647, %v11523_v46  ;;  %v11525_v33 = vmov 0  ;;  %11546 = vst [vmem:[#allocation46_spill] sm:$0xff] %v6200_v10 }
  0xc5   :  { %v11522_v63 = vsel %vm6127_vm9, 4294967295, %v11521_v63  ;;  %v6147_v13 = vsel %vm866_vm5, 0.0, %v11305_v5  ;;  %vm1349_vm9 = vcmp.eq.f32.partialorder %v1253_v41, %v4888_v59  ;;  %v677_v30 = vrot.slane %v5967_v24, 6 }
  0xc6   :  { %vm6142_vm3 = vcmp.le.f32.partialorder %v11524_v62, 2.0  ;;  %vm6152_vm11 = vcmp.eq.f32.partialorder %v743_v15, %v11467_v51  ;;  %vm6157_vm7 = vcmp.eq.f32.partialorder %v744_v45, %v11471_v4  ;;  %v11531_v62 = vld [vmem:[#allocation47_spill] sm:$0xff]  ;;  %v11533_v25 = vmov 0 }
  0xc7   :  { %v11526_v33 = vsel %vm6142_vm3, 4294967295, %v11525_v33  ;;  %v11532_v3 = vand.u32 2147483647, %v11531_v62  ;;  %vm6170_vm5 = vcmp.eq.f32.partialorder %v1254_v34, %v11479_v2  ;;  %vm1381_vm3 = vmand %vm5960_vm1, %vm1349_vm9  ;;  %v11540_v2 = vrot.slane %v5902_v56, 6  ;;  %v6198_v34 = vpop.permute.xlu1 %233  ;;  %v11554_v51 = vld [vmem:[#allocation51_spill] sm:$0xff] }
  0xc8   :  { %vm871_vm15 = vmand %vm5973_vm13, %vm6152_vm11  ;;  %v6181_v4 = vsel %vm1381_vm3, 0.0, %v11305_v5  ;;  %v11542_v45 = vand.u32 2147483647, %v4924_v31  ;;  %11545 = vst [vmem:[#allocation45_spill] sm:$0xff] %v6198_v34  ;;  %v11547_v59 = vand.u32 2147483647, %v4929_v27 }
  0xc9   :  { %vm6163_vm12 = vcmp.le.f32.partialorder %v11532_v3, 2.0  ;;  %11537 = vst [vmem:[#allocation49_spill] sm:$0xff] %v6181_v4  ;;  %v11538_v3 = vrot.slane %v5965_v39, 6  ;;  %vm872_vm13 = vmand %vm5983_vm8, %vm6157_vm7  ;;  %v683_v20 = vrot.slane %v6200_v10, 6  ;;  %v684_v53 = vrot.slane %v6198_v34, 6 }
  0xca   :  { %v11534_v25 = vsel %vm6163_vm12, 4294967295, %v11533_v25  ;;  %vm11539_vm12 = vcmp.lt.s32.totalorder %v4427_v17, 2  ;;  %vm6194_vm1 = vcmp.le.f32.partialorder %v11542_v45, 2.0  ;;  %v1194_v45 = vrot.slane %v6024_v16, 1  ;;  %vm1382_vm8 = vmand %vm6006_vm2, %vm6170_vm5 }
  0xcb   :  { %v691_v41 = vsel %vm11539_vm12, %v677_v30, %v11538_v3  ;;  %vm11541_vm10 = vmmov %vm11539_vm12  ;;  %v903_v3 = vsel %vm871_vm15, 0.0, %v11305_v5  ;;  %v904_v21 = vsel %vm872_vm13, 0.0, %v11305_v5  ;;  %v6231_v56 = vsel %vm1382_vm8, 0.0, %v11305_v5 }
  0xcc   :  { %v692_v15 = vsel %vm11541_vm10, %v11540_v2, %v677_v30  ;;  %v742_v2 = vsub.f32 %v691_v41, %v5965_v39  ;;  %vm6212_vm10 = vcmp.le.f32.partialorder %v11547_v59, 2.0  ;;  %v11555_v57 = vand.u32 2147483647, %v11554_v51  ;;  %vm11558_vm2 = vmmov %vm11539_vm12 }
  0xcd   :  { %v741_v30 = vsub.f32 %v692_v15, %v5967_v24  ;;  %v11550_v15 = vld [vmem:[#allocation50_spill] sm:$0xff]  ;;  %v3716_v24 = vpack.i.bf16 %v904_v21, %v903_v3  ;;  %v11559_v41 = vrot.slane %v6119_v22, 6  ;;  %vm11560_vm7 = vmmov %vm11558_vm2  ;;  %v11561_v3 = vrot.slane %v5228_v42, 6 }
  0xce   :  { %v11551_v39 = vand.u32 2147483647, %v11550_v15  ;;  %vm838_vm3 = vcmp.eq.f32.partialorder %v742_v2, %v4921_v29  ;;  %vm6237_vm11 = vcmp.le.f32.partialorder %v11555_v57, 2.0  ;;  %vm11562_vm12 = vmmov %vm11558_vm2  ;;  %v11569_v48 = vrot.slane %v6026_v19, 1  ;;  %v11571_v29 = vld [vmem:[#allocation53_spill] sm:$0xff] }
  0xcf   :  { %vm837_vm9 = vcmp.eq.f32.partialorder %v741_v30, %v11489_v47  ;;  %v686_v21 = vsel %vm11560_vm7, %v11559_v41, %v683_v20  ;;  %v716_v47 = vsel %vm11562_vm12, %v684_v53, %v11561_v3  ;;  %3717 = vrot.lane.b32.xlu1 %v3716_v24, %s4302_s10  ;;  %vm870_vm13 = vmand %vm6058_vm0, %vm838_vm3  ;;  %v11565_v3 = vmov 0 }
  0xd0   :  { %vm6226_vm15 = vcmp.le.f32.partialorder %v11551_v39, 2.0  ;;  %v685_v39 = vsel %vm11558_vm2, %v683_v20, %v684_v53  ;;  %vm869_vm5 = vmand %vm6041_vm4, %vm837_vm9  ;;  %v747_v57 = vsub.f32 %v686_v21, %v6200_v10  ;;  %v717_v2 = vsub.f32 %v716_v47, %v5228_v42  ;;  %v11563_v53 = vld [vmem:[#allocation52_spill] sm:$0xff] }
  0xd1   :  { %v748_v30 = vsub.f32 %v685_v39, %v6198_v34  ;;  %v6262_v20 = vsel %vm869_vm5, 0.0, %v11305_v5  ;;  %v11564_v41 = vand.u32 2147483647, %v11563_v53  ;;  %v6271_v38 = vsel %vm870_vm13, 0.0, %v11305_v5 }
  0xd2   :  { %v11567_v24 = vrot.slane %v6121_v44, 1  ;;  %vm11568_vm4 = vcmp.lt.s32.totalorder %v4427_v17, 7  ;;  %v681_v47 = vrot.slane %v6121_v44, 6  ;;  %v11573_v4 = vmov 0 }
  0xd3   :  { %vm6266_vm8 = vcmp.le.f32.partialorder %v11564_v41, 2.0  ;;  %vm11570_vm0 = vmmov %vm11568_vm4  ;;  %v11572_v41 = vand.u32 2147483647, %v11571_v29  ;;  %vm843_vm2 = vcmp.eq.f32.partialorder %v747_v57, %v11519_v36  ;;  %vm6294_vm7 = vcmp.eq.f32.partialorder %v748_v30, %v11523_v46 }
  0xd4   :  { %v11566_v3 = vsel %vm6266_vm8, 4294967295, %v11565_v3  ;;  %v1202_v39 = vsel %vm11568_vm4, %v1194_v45, %v11567_v24  ;;  %v1203_v21 = vsel %vm11570_vm0, %v11569_v48, %v1194_v45  ;;  %vm6299_vm12 = vcmp.eq.f32.partialorder %v717_v2, %v11531_v62 }
  0xd5   :  { %vm6284_vm9 = vcmp.le.f32.partialorder %v11572_v41, 2.0  ;;  %vm11579_vm5 = vnez %v11516_v32  ;;  %vm11580_vm13 = vnez %v11513_v1  ;;  %vm11581_vm0 = vnez %v11522_v63  ;;  %v11642_v1 = vld [vmem:[#allocation27_spill] sm:$0xff] }
  0xd6   :  { %v11574_v4 = vsel %vm6284_vm9, 4294967295, %v11573_v4  ;;  %vm875_vm3 = vmand %vm11581_vm0, %vm843_vm2  ;;  %v1257_v36 = vsub.f32 %v1203_v21, %v6026_v19  ;;  %v1258_v46 = vsub.f32 %v1202_v39, %v6024_v16  ;;  %v11582_v62 = vrot.slane %v6119_v22, 6 }
  0xd7   :  { %vm11583_vm9 = vcmp.lt.s32.totalorder %v4427_v17, 2  ;;  %v11584_v30 = vrot.slane %v6024_v16, 6  ;;  %v11586_v41 = vand.u32 2147483647, %v5007_v54  ;;  %vm11589_vm2 = vnez %v11526_v33  ;;  %v11612_v33 = vld [vmem:[#allocation56_spill] sm:$0xff] }
  0xd8   :  { %v687_v57 = vsel %vm11583_vm9, %v681_v47, %v11582_v62  ;;  %vm11585_vm8 = vmmov %vm11583_vm9  ;;  %v907_v63 = vsel %vm875_vm3, 0.0, %v11305_v5  ;;  %v10972_v62 = vrot.slane %v6200_v10, 1  ;;  %vm11594_vm9 = vnez %v11534_v25 }
  0xd9   :  { %v688_v2 = vsel %vm11585_vm8, %v11584_v30, %v681_v47  ;;  %vm6323_vm4 = vcmp.le.f32.partialorder %v11586_v41, 2.0  ;;  %vm876_vm0 = vmand %vm11589_vm2, %vm6294_vm7  ;;  %v746_v21 = vsub.f32 %v687_v57, %v6119_v22  ;;  %v11590_v47 = vld [vmem:[#allocation54_spill] sm:$0xff]  ;;  %v11592_v41 = vmov 0 }
  0xda   :  { %v745_v39 = vsub.f32 %v688_v2, %v6121_v44  ;;  %v11591_v30 = vand.u32 2147483647, %v11590_v47  ;;  %v908_v16 = vsel %vm876_vm0, 0.0, %v11305_v5  ;;  %vm845_vm7 = vmand %vm11594_vm9, %vm6299_vm12  ;;  %vm1353_vm3 = vcmp.eq.f32.partialorder %v1257_v36, %v4924_v31 }
  0xdb   :  { %vm6348_vm2 = vcmp.eq.f32.partialorder %v1258_v46, %v4929_v27  ;;  %v1198_v24 = vrot.slane %v6198_v34, 1  ;;  %v3726_v57 = vpack.i.bf16 %v908_v16, %v907_v63  ;;  %v877_v2 = vsel %vm845_vm7, 0.0, %v11305_v5  ;;  %vm1385_vm0 = vmand %vm6194_vm1, %vm1353_vm3  ;;  %v11607_v46 = vld [vmem:[#allocation55_spill] sm:$0xff] }
  0xdc   :  { %vm6337_vm8 = vcmp.le.f32.partialorder %v11591_v30, 2.0  ;;  %vm6362_vm12 = vcmp.eq.f32.partialorder %v746_v21, %v11554_v51  ;;  %v11601_v27 = vand.u32 2147483647, %v5010_v40  ;;  %v11602_v25 = vmov 0  ;;  %vm1386_vm1 = vmand %vm6212_vm10, %vm6348_vm2 }
  0xdd   :  { %v11593_v41 = vsel %vm6337_vm8, 4294967295, %v11592_v41  ;;  %vm6357_vm8 = vcmp.eq.f32.partialorder %v745_v39, %v11550_v15  ;;  %v3651_v16 = vpack.i.bf16 %v5462_v0, %v877_v2  ;;  %v6378_v6 = vsel %vm1385_vm0, 0.0, %v11305_v5  ;;  %3727 = vrot.lane.b32.xlu1 %v3726_v57, %s4302_s10  ;;  %vm11611_vm2 = vmand %vm6077_vm6, %vm6085_vm14  ;;  %v11705_v57 = vld [vmem:[#allocation66_spill] sm:$0xff] }
  0xde   :  { %vm6368_vm9 = vcmp.le.f32.partialorder %v11601_v27, 2.0  ;;  %vm11604_vm7 = vcmp.lt.s32.totalorder %v4427_v17, 7  ;;  %v11605_v51 = vrot.slane %v5228_v42, 1  ;;  %v11608_v0 = vand.u32 2147483647, %v11607_v46  ;;  %vm873_vm10 = vmand %vm6226_vm15, %vm6357_vm8 }
  0xdf   :  { %v11603_v25 = vsel %vm6368_vm9, 4294967295, %v11602_v25  ;;  %v1199_v15 = vsel %vm11604_vm7, %v10972_v62, %v1198_v24  ;;  %vm11606_vm3 = vmmov %vm11604_vm7  ;;  %v6396_v26 = vsel %vm1386_vm1, 0.0, %v11305_v5  ;;  %v6410_v30 = vsel %vm11611_vm2, 0.0, %v11305_v5  ;;  %3652 = vrot.lane.b32.xlu0 %v3651_v16, %s4302_s10 }
  0xe0   :  { %v1230_v36 = vsel %vm11606_vm3, %v1198_v24, %v11605_v51  ;;  %vm6390_vm9 = vcmp.le.f32.partialorder %v11608_v0, 2.0  ;;  %v1261_v39 = vsub.f32 %v1199_v15, %v6200_v10  ;;  %v11613_v24 = vand.u32 2147483647, %v11612_v33  ;;  %vm874_vm15 = vmand %vm6237_vm11, %vm6362_vm12 }
  0xe1   :  { %v1262_v21 = vsub.f32 %v1230_v36, %v6198_v34  ;;  %v6426_v18 = vsel %vm873_vm10, 0.0, %v11305_v5  ;;  %vm11616_vm6 = vmand %vm11580_vm13, %vm11579_vm5  ;;  %v11617_v2 = vrot.slane %v5319_v7, 2  ;;  %v11618_v45 = vrot.slane %v5271_v52, 2 }
  0xe2   :  { %vm6414_vm0 = vcmp.le.f32.partialorder %v11613_v24, 2.0  ;;  %v6434_v35 = vsel %vm11616_vm6, 0.0, %v11305_v5  ;;  %vm11619_vm14 = vcmp.lt.s32.totalorder %v4427_v17, 6  ;;  %v6443_v37 = vsel %vm874_vm15, 0.0, %v11305_v5 }
  0xe3   :  { %v1740_v31 = vsel %vm11619_vm14, %v11618_v45, %v11617_v2  ;;  %vm1357_vm11 = vcmp.eq.f32.partialorder %v1261_v39, %v11563_v53  ;;  %vm6447_vm8 = vcmp.eq.f32.partialorder %v1262_v21, %v11571_v29  ;;  %v11622_v27 = vand.u32 2147483647, %v5049_v60  ;;  %vm11628_vm1 = vmmov %vm11619_vm14 }
  0xe4   :  { %vm11625_vm13 = vnez %v11566_v3  ;;  %v11626_v29 = vmov %v11618_v45  ;;  %v11627_v53 = vrot.slane %v5226_v8, 2  ;;  %v1748_v36 = vsub.f32 %v1740_v31, %v5271_v52  ;;  %v11632_v3 = vld [vmem:[#allocation20_spill] sm:$0xff] }
  0xe5   :  { %vm6455_vm5 = vcmp.le.f32.partialorder %v11622_v27, 2.0  ;;  %vm1389_vm12 = vmand %vm11625_vm13, %vm1357_vm11  ;;  %v1172_v0 = vrot.slane %v5317_v50, 1  ;;  %v11629_v39 = vand.u32 2147483647, %v5052_v58  ;;  %v11633_v24 = vpack.i.bf16 %v5482_v14, %v11632_v3  ;;  %v11635_v31 = vld [vmem:[#allocation16_spill] sm:$0xff]  ;;  %v11641_v14 = vld [vmem:[#allocation19_spill] sm:$0xff] }
  0xe6   :  { %v1741_v51 = vsel %vm11628_vm1, %v11627_v53, %v11626_v29  ;;  %vm11634_vm3 = vnez %v11574_v4  ;;  %v6486_v2 = vsel %vm1389_vm12, 0.0, %v11305_v5  ;;  %v10973_v27 = vrot.slane %v11635_v31, 2  ;;  %v11636_v29 = vld [vmem:[#allocation18_spill] sm:$0xff] }
  0xe7   :  { %vm6473_vm7 = vcmp.le.f32.partialorder %v11629_v39, 2.0  ;;  %3737 = vrot.lane.b32.xlu1 %v11633_v24, %s4303_s15  ;;  %vm1390_vm10 = vmand %vm11634_vm3, %vm6447_vm8  ;;  %v1747_v45 = vsub.f32 %v1741_v51, %v5226_v8  ;;  %v1688_v53 = vrot.slane %v11636_v29, 2  ;;  %v11637_v39 = vld [vmem:[#allocation57_spill] sm:$0xff]  ;;  %v11643_v4 = vpack.i.bf16 %v11641_v14, %v11642_v1  ;;  %v11648_v14 = vld [vmem:[#allocation58_spill] sm:$0xff] }
  0xe8   :  { %v11638_v62 = vand.u32 2147483647, %v11637_v39  ;;  %v6502_v3 = vsel %vm1390_vm10, 0.0, %v11305_v5  ;;  %vm1844_vm15 = vcmp.eq.f32.partialorder %v1748_v36, %v5007_v54  ;;  %v11644_v51 = vrot.slane %v11635_v31, 1 }
  0xe9   :  { %3662 = vrot.lane.b32.xlu0 %v11643_v4, %s4302_s10  ;;  %vm11645_vm6 = vcmp.lt.s32.totalorder %v4427_v17, 7  ;;  %vm1843_vm11 = vcmp.eq.f32.partialorder %v1747_v45, %v11590_v47  ;;  %vm1876_vm8 = vmand %vm6323_vm4, %vm1844_vm15  ;;  %v11649_v1 = vand.u32 2147483647, %v11648_v14  ;;  %vm11652_vm12 = vnez %v11593_v41  ;;  %v11653_v47 = vld [vmem:[#allocation26_spill] sm:$0xff]  ;;  %v11727_v4 = vld [vmem:[#allocation68_spill] sm:$0xff] }
  0xea   :  { %vm6493_vm2 = vcmp.le.f32.partialorder %v11638_v62, 2.0  ;;  %v1224_v24 = vsel %vm11645_vm6, %v1172_v0, %v11644_v51  ;;  %v11646_v62 = vrot.slane %v5319_v7, 1  ;;  %vm11647_vm14 = vmmov %vm11645_vm6  ;;  %vm11654_vm4 = vcmp.lt.s32.totalorder %v4427_v17, 6 }
  0xeb   :  { %v1236_v36 = vsub.f32 %v1224_v24, %v5317_v50  ;;  %vm6522_vm13 = vcmp.le.f32.partialorder %v11649_v1, 2.0  ;;  %vm1875_vm1 = vmand %vm11652_vm12, %vm1843_vm11  ;;  %v1737_v48 = vsel %vm11654_vm4, %v10973_v27, %v1688_v53  ;;  %v11656_v24 = vld [vmem:[#allocation22_spill] sm:$0xff]  ;;  %v11661_v27 = vld [vmem:[#allocation60_spill] sm:$0xff]  ;;  %vm11668_vm6 = vnez %v11603_v25 }
  0xec   :  { %v1225_v15 = vsel %vm11647_vm14, %v11646_v62, %v1172_v0  ;;  %v6529_v0 = vsel %vm1876_vm8, 0.0, %v11305_v5  ;;  %v11657_v62 = vld [vmem:[#allocation23_spill] sm:$0xff]  ;;  %v6542_v41 = vsel %vm1875_vm1, 0.0, %v11305_v5  ;;  %v1751_v45 = vsub.f32 %v1737_v48, %v11635_v31  ;;  %vm11670_vm11 = vmmov %vm11654_vm4 }
  0xed   :  { %v1235_v54 = vsub.f32 %v1225_v15, %v5319_v7  ;;  %v11655_v15 = vld [vmem:[#allocation25_spill] sm:$0xff]  ;;  %v11658_v1 = vpack.i.bf16 %v11656_v24, %v11657_v62  ;;  %vm6546_vm10 = vcmp.eq.f32.partialorder %v1236_v36, %v11607_v46  ;;  %v11662_v7 = vand.u32 2147483647, %v11661_v27  ;;  %v11665_v24 = vld [vmem:[#allocation88_spill] sm:$0xff]  ;;  %v11666_v62 = vld [vmem:[#allocation87_spill] sm:$0xff] }
  0xee   :  { %v1176_v51 = vrot.slane %v11655_v15, 1  ;;  %v11669_v46 = vrot.slane %v11653_v47, 2  ;;  %vm11673_vm8 = vcmp.lt.s32.totalorder %v4427_v17, 7  ;;  %v11674_v31 = vrot.slane %v11653_v47, 1  ;;  %vm1364_vm4 = vmand %vm6390_vm9, %vm6546_vm10 }
  0xef   :  { %3747 = vrot.lane.b32.xlu1 %v11658_v1, %s4303_s15  ;;  %vm1331_vm3 = vcmp.eq.f32.partialorder %v1235_v54, %v5010_v40  ;;  %vm6553_vm15 = vcmp.le.f32.partialorder %v11662_v7, 2.0  ;;  %v11667_v1 = vpack.i.bf16 %v11665_v24, %v11666_v62  ;;  %v11671_v7 = vld [vmem:[#allocation86_spill] sm:$0xff]  ;;  %vm11675_vm12 = vmmov %vm11673_vm8  ;;  %v6600_v59 = vsel %vm1364_vm4, 0.0, %v11305_v5 }
  0xf0   :  { %vm1363_vm14 = vmand %vm11668_vm6, %vm1331_vm3  ;;  %v1736_v54 = vsel %vm11670_vm11, %v1688_v53, %v11669_v46  ;;  %v11672_v36 = vrot.slane %v11671_v7, 1  ;;  %v1221_v24 = vsel %vm11675_vm12, %v11674_v31, %v1176_v51  ;;  %v11676_v62 = vld [vmem:[#allocation62_spill] sm:$0xff]  ;;  %vm1847_vm3 = vcmp.eq.f32.partialorder %v1751_v45, %v11612_v33  ;;  %v11685_v45 = vld [vmem:[#allocation64_spill] sm:$0xff] }
  0xf1   :  { %3672 = vrot.lane.b32.xlu0 %v11667_v1, %s4302_s10  ;;  %v11677_v1 = vand.u32 2147483647, %v11676_v62  ;;  %v6588_v53 = vsel %vm1363_vm14, 0.0, %v11305_v5  ;;  %v1752_v46 = vsub.f32 %v1736_v54, %v11636_v29  ;;  %v1239_v31 = vsub.f32 %v1221_v24, %v11653_v47  ;;  %vm1879_vm9 = vmand %vm6414_vm0, %vm1847_vm3  ;;  %v11684_v40 = vld [vmem:[#allocation30_spill] sm:$0xff]  ;;  %v11690_v29 = vld [vmem:[#allocation29_spill] sm:$0xff] }
  0xf2   :  { %v1220_v48 = vsel %vm11673_vm8, %v1176_v51, %v11672_v36  ;;  %v11680_v51 = vld [vmem:[#allocation63_spill] sm:$0xff]  ;;  %v1692_v33 = vrot.slane %v11684_v40, 2  ;;  %v11686_v24 = vand.u32 2147483647, %v11685_v45  ;;  %vm11703_vm4 = vcmp.lt.s32.totalorder %v4427_v17, 6 }
  0xf3   :  { %vm6579_vm1 = vcmp.le.f32.partialorder %v11677_v1, 2.0  ;;  %v11681_v36 = vand.u32 2147483647, %v11680_v51  ;;  %v1240_v63 = vsub.f32 %v1220_v48, %v11655_v15  ;;  %vm1848_vm0 = vcmp.eq.f32.partialorder %v1752_v46, %v5049_v60 }
  0xf4   :  { %vm6609_vm10 = vcmp.le.f32.partialorder %v11686_v24, 2.0  ;;  %v6621_v48 = vsel %vm1879_vm9, 0.0, %v11305_v5  ;;  %vm6624_vm14 = vcmp.eq.f32.partialorder %v1239_v31, %v5052_v58  ;;  %v11694_v24 = vld [vmem:[#allocation65_spill] sm:$0xff]  ;;  %vm1880_vm8 = vmand %vm6455_vm5, %vm1848_vm0  ;;  %v11701_v58 = vld [vmem:[#allocation32_spill] sm:$0xff]  ;;  %v11718_v60 = vpack.i.bf16 %v5885_v43, %v5897_v55 }
  0xf5   :  { %vm6595_vm6 = vcmp.le.f32.partialorder %v11681_v36, 2.0  ;;  %v11689_v36 = vld [vmem:[#allocation31_spill] sm:$0xff]  ;;  %v11695_v15 = vand.u32 2147483647, %v11694_v24  ;;  %vm6641_vm12 = vcmp.eq.f32.partialorder %v1240_v63, %v11637_v39  ;;  %v11704_v31 = vld [vmem:[#allocation34_spill] sm:$0xff]  ;;  %v6658_v16 = vsel %vm1880_vm8, 0.0, %v11305_v5  ;;  %vm1367_vm5 = vmand %vm6473_vm7, %vm6624_vm14 }
  0xf6   :  { %v11691_v42 = vpack.i.bf16 %v11689_v36, %v11690_v29  ;;  %v1180_v36 = vrot.slane %v11704_v31, 1  ;;  %v11709_v63 = vld [vmem:[#allocation35_spill] sm:$0xff]  ;;  %vm1368_vm7 = vmand %vm6493_vm2, %vm6641_vm12  ;;  %v6680_v21 = vsel %vm1367_vm5, 0.0, %v11305_v5  ;;  %v11714_v54 = vrot.slane %v11701_v58, 2 }
  0xf7   :  { %vm6630_vm11 = vcmp.le.f32.partialorder %v11695_v15, 2.0  ;;  %v11702_v15 = vrot.slane %v11671_v7, 2  ;;  %v11710_v29 = vld [vmem:[#allocation67_spill] sm:$0xff]  ;;  %vm11715_vm0 = vmmov %vm11703_vm4  ;;  %vm11717_vm14 = vcmp.lt.s32.totalorder %v4427_v17, 7  ;;  %v6695_v32 = vsel %vm1368_vm7, 0.0, %v11305_v5 }
  0xf8   :  { %3757 = vrot.lane.b32.xlu1 %v11691_v42, %s4303_s15  ;;  %v11698_v42 = vpack.i.bf16 %v5835_v12, %v5821_v11  ;;  %v11706_v11 = vand.u32 2147483647, %v11705_v57  ;;  %v11711_v10 = vand.u32 2147483647, %v11710_v29  ;;  %vm11720_vm8 = vmmov %vm11717_vm14  ;;  %v11750_v25 = vpack.i.bf16 %v6147_v13, %v6136_v28 }
  0xf9   :  { %v1733_v46 = vsel %vm11703_vm4, %v11702_v15, %v1692_v33  ;;  %v1696_v15 = vrot.slane %v5667_v61, 2  ;;  %vm11725_vm5 = vmmov %vm11715_vm0 }
  0xfa   :  { %3682 = vrot.lane.b32.xlu0 %v11698_v42, %s4302_s10  ;;  %vm6653_vm3 = vcmp.le.f32.partialorder %v11706_v11, 2.0  ;;  %v1755_v39 = vsub.f32 %v1733_v46, %v11671_v7  ;;  %vm6669_vm9 = vcmp.le.f32.partialorder %v11711_v10, 2.0  ;;  %v1732_v46 = vsel %vm11715_vm0, %v1692_v33, %v11714_v54  ;;  %v11721_v54 = vld [vmem:[#allocation91_spill] sm:$0xff] }
  0xfb   :  { %v11716_v10 = vrot.slane %v11709_v63, 1  ;;  %v1756_v22 = vsub.f32 %v1732_v46, %v11684_v40  ;;  %v11719_v7 = vrot.slane %v11701_v58, 1  ;;  %v11797_v40 = vpack.i.bf16 %v6443_v37, %v6426_v18 }
  0xfc   :  { %3767 = vrot.lane.b32.xlu1 %v11718_v60, %s4303_s15  ;;  %vm1851_vm2 = vcmp.eq.f32.partialorder %v1755_v39, %v11648_v14  ;;  %v11723_v39 = vld [vmem:[#allocation39_spill] sm:$0xff]  ;;  %v11726_v60 = vld [vmem:[#allocation40_spill] sm:$0xff] }
  0xfd   :  { %v1216_v42 = vsel %vm11717_vm14, %v1180_v36, %v11716_v10  ;;  %v1217_v33 = vsel %vm11720_vm8, %v11719_v7, %v1180_v36  ;;  %v11722_v10 = vpack.i.bf16 %v5955_v49, %v11721_v54  ;;  %vm1883_vm12 = vmand %vm6522_vm13, %vm1851_vm2  ;;  %v10991_v46 = vrot.slane %v11723_v39, 2 }
  0xfe   :  { %v1243_v55 = vsub.f32 %v1217_v33, %v11701_v58  ;;  %v1244_v14 = vsub.f32 %v1216_v42, %v11704_v31  ;;  %vm1852_vm4 = vcmp.eq.f32.partialorder %v1756_v22, %v11661_v27  ;;  %v6716_v7 = vsel %vm1883_vm12, 0.0, %v11305_v5  ;;  %vm11735_vm2 = vmmov %vm11725_vm5  ;;  %v11764_v27 = vld [vmem:[#allocation73_spill] sm:$0xff]  ;;  %v11791_v58 = vld [vmem:[#allocation36_spill] sm:$0xff] }
  0xff   :  { %3692 = vrot.lane.b32.xlu0 %v11722_v10, %s4302_s10  ;;  %v11724_v49 = vrot.slane %v11709_v63, 2  ;;  %v1184_v54 = vrot.slane %v11726_v60, 1  ;;  %v11728_v10 = vand.u32 2147483647, %v11727_v4  ;;  %vm1884_vm7 = vmand %vm6553_vm15, %vm1852_vm4  ;;  %v1728_v42 = vsel %vm11735_vm2, %v1696_v15, %v10991_v46 }
 0x100   :  { %vm6732_vm0 = vcmp.eq.f32.partialorder %v1243_v55, %v11676_v62  ;;  %vm6737_vm14 = vcmp.eq.f32.partialorder %v1244_v14, %v11680_v51  ;;  %v11740_v62 = vpack.i.bf16 %v6063_v9, %v6013_v23  ;;  %v6757_v51 = vsel %vm1884_vm7, 0.0, %v11305_v5  ;;  %v11741_v55 = vld [vmem:[#allocation42_spill] sm:$0xff] }
 0x101   :  { %v1729_v36 = vsel %vm11725_vm5, %v11724_v49, %v1696_v15  ;;  %vm6725_vm13 = vcmp.le.f32.partialorder %v11728_v10, 2.0  ;;  %v11736_v10 = vld [vmem:[#allocation69_spill] sm:$0xff]  ;;  %vm1371_vm8 = vmand %vm6579_vm1, %vm6732_vm0  ;;  %v1760_v15 = vsub.f32 %v1728_v42, %v5667_v61  ;;  %v11742_v14 = vrot.slane %v11741_v55, 1  ;;  %v11746_v23 = vld [vmem:[#allocation70_spill] sm:$0xff] }
 0x102   :  { %v1759_v49 = vsub.f32 %v1729_v36, %v11709_v63  ;;  %v11737_v50 = vand.u32 2147483647, %v11736_v10  ;;  %3777 = vrot.lane.b32.xlu1 %v11740_v62, %s4303_s15  ;;  %vm11743_vm12 = vcmp.lt.s32.totalorder %v4427_v17, 7  ;;  %v11747_v62 = vand.u32 2147483647, %v11746_v23  ;;  %vm1372_vm1 = vmand %vm6595_vm6, %vm6737_vm14 }
 0x103   :  { %v1212_v36 = vsel %vm11743_vm12, %v1184_v54, %v11742_v14  ;;  %vm11745_vm4 = vmmov %vm11743_vm12  ;;  %3702 = vrot.lane.b32.xlu0 %v11750_v25, %s4302_s10  ;;  %v11751_v14 = vld [vmem:[#allocation71_spill] sm:$0xff]  ;;  %v6800_v13 = vsel %vm1372_vm1, 0.0, %v11305_v5  ;;  %vm1856_vm2 = vcmp.eq.f32.partialorder %v1760_v15, %v11694_v24  ;;  %v11756_v15 = vld [vmem:[#allocation72_spill] sm:$0xff]  ;;  %v11765_v22 = vand.u32 2147483647, %v11764_v27 }
 0x104   :  { %vm6748_vm15 = vcmp.le.f32.partialorder %v11737_v50, 2.0  ;;  %v11744_v50 = vrot.slane %v11723_v39, 1  ;;  %vm6774_vm5 = vcmp.le.f32.partialorder %v11747_v62, 2.0  ;;  %vm1855_vm7 = vcmp.eq.f32.partialorder %v1759_v49, %v11685_v45  ;;  %vm1888_vm14 = vmand %vm6630_vm11, %vm1856_vm2 }
 0x105   :  { %vm1887_vm6 = vmand %vm6609_vm10, %vm1855_vm7  ;;  %v1248_v1 = vsub.f32 %v1212_v36, %v11726_v60  ;;  %v11757_v47 = vand.u32 2147483647, %v11756_v15  ;;  %v11760_v36 = vld [vmem:[#allocation49_spill] sm:$0xff]  ;;  %v6827_v34 = vsel %vm1888_vm14, 0.0, %v11305_v5  ;;  %vm11770_vm1 = vcmp.lt.s32.totalorder %v4427_v17, 6  ;;  %v11780_v60 = vld [vmem:[#allocation75_spill] sm:$0xff] }
 0x106   :  { %v1213_v9 = vsel %vm11745_vm4, %v11744_v50, %v1184_v54  ;;  %v6789_v54 = vsel %vm1371_vm8, 0.0, %v11305_v5  ;;  %v11752_v50 = vand.u32 2147483647, %v11751_v14  ;;  %v6812_v49 = vsel %vm1887_vm6, 0.0, %v11305_v5 }
 0x107   :  { %v1247_v42 = vsub.f32 %v1213_v9, %v11723_v39  ;;  %v11755_v9 = vld [vmem:[#allocation41_spill] sm:$0xff]  ;;  %vm6818_vm10 = vcmp.le.f32.partialorder %v11757_v47, 2.0  ;;  %v11761_v25 = vpack.i.bf16 %v6231_v56, %v11760_v36  ;;  %vm1344_vm11 = vcmp.eq.f32.partialorder %v1248_v1, %v11710_v29  ;;  %v11771_v36 = vld [vmem:[#allocation38_spill] sm:$0xff] }
 0x108   :  { %vm6795_vm0 = vcmp.le.f32.partialorder %v11752_v50, 2.0  ;;  %v1700_v24 = vrot.slane %v11755_v9, 2  ;;  %v11763_v50 = vld [vmem:[#allocation89_spill] sm:$0xff]  ;;  %vm6836_vm4 = vcmp.le.f32.partialorder %v11765_v22, 2.0  ;;  %v11768_v56 = vpack.i.bf16 %v6271_v38, %v6262_v20 }
 0x109   :  { %vm1343_vm8 = vcmp.eq.f32.partialorder %v1247_v42, %v11705_v57  ;;  %3787 = vrot.lane.b32.xlu1 %v11761_v25, %s4303_s15  ;;  %v11762_v57 = vld [vmem:[#allocation90_spill] sm:$0xff]  ;;  %v1188_v47 = vrot.slane %v11763_v50, 1  ;;  %v11769_v1 = vrot.slane %v11741_v55, 2  ;;  %vm11779_vm2 = vcmp.lt.s32.totalorder %v4427_v17, 7 }
 0x10a   :  { %vm1375_vm12 = vmand %vm6653_vm3, %vm1343_vm8  ;;  %3712 = vrot.lane.b32.xlu0 %v11768_v56, %s4302_s10  ;;  %v11772_v42 = vld [vmem:[#allocation74_spill] sm:$0xff]  ;;  %v11776_v11 = vrot.slane %v11762_v57, 2  ;;  %v11788_v31 = vmov 0  ;;  %v11822_v45 = vpack.i.bf16 %v6529_v0, %v6542_v41  ;;  %v11014_v41 = vrot.slane %v6026_v19, 2 }
 0x10b   :  { %vm1376_vm3 = vmand %vm6669_vm9, %vm1344_vm11  ;;  %v6849_v12 = vsel %vm1375_vm12, 0.0, %v11305_v5  ;;  %v1725_v22 = vsel %vm11770_vm1, %v11769_v1, %v1700_v24  ;;  %v11773_v39 = vand.u32 2147483647, %v11772_v42  ;;  %v11778_v1 = vrot.slane %v11771_v36, 1 }
 0x10c   :  { %v6863_v38 = vsel %vm1376_vm3, 0.0, %v11305_v5  ;;  %vm11777_vm9 = vmmov %vm11770_vm1  ;;  %v1763_v29 = vsub.f32 %v1725_v22, %v11741_v55  ;;  %v11786_v55 = vld [vmem:[#allocation59_spill] sm:$0xff] }
 0x10d   :  { %vm6858_vm7 = vcmp.le.f32.partialorder %v11773_v39, 2.0  ;;  %v1724_v56 = vsel %vm11777_vm9, %v1700_v24, %v11776_v11  ;;  %v1208_v25 = vsel %vm11779_vm2, %v1188_v47, %v11778_v1  ;;  %v11781_v39 = vand.u32 2147483647, %v11780_v60  ;;  %vm11785_vm14 = vmmov %vm11779_vm2 }
 0x10e   :  { %v1764_v63 = vsub.f32 %v1724_v56, %v11755_v9  ;;  %v11784_v24 = vrot.slane %v11762_v57, 1  ;;  %v1252_v11 = vsub.f32 %v1208_v25, %v11763_v50  ;;  %v11787_v1 = vand.u32 2147483647, %v11786_v55  ;;  %v11793_v25 = vld [vmem:[#allocation61_spill] sm:$0xff]  ;;  %3722 = vrot.lane.b32.xlu0 %v11797_v40, %s4302_s10 }
 0x10f   :  { %vm6876_vm6 = vcmp.le.f32.partialorder %v11781_v39, 2.0  ;;  %v11790_v39 = vpack.i.bf16 %v6396_v26, %v6378_v6  ;;  %vm1859_vm11 = vcmp.eq.f32.partialorder %v1763_v29, %v11727_v4  ;;  %v1704_v9 = vrot.slane %v11791_v58, 2  ;;  %v11800_v26 = vld [vmem:[#allocation92_spill] sm:$0xff] }
 0x110   :  { %v1209_v22 = vsel %vm11785_vm14, %v11784_v24, %v1188_v47  ;;  %vm6890_vm8 = vcmp.le.f32.partialorder %v11787_v1, 2.0  ;;  %v11792_v47 = vld [vmem:[#allocation93_spill] sm:$0xff]  ;;  %v11794_v50 = vand.u32 2147483647, %v11793_v25  ;;  %v11795_v1 = vmov 0  ;;  %vm1891_vm1 = vmand %vm6725_vm13, %vm1859_vm11 }
 0x111   :  { %v11789_v31 = vsel %vm6890_vm8, 4294967295, %v11788_v31  ;;  %3797 = vrot.lane.b32.xlu1 %v11790_v39, %s4303_s15  ;;  %v1251_v56 = vsub.f32 %v1209_v22, %v11762_v57  ;;  %v11006_v24 = vrot.slane %v11792_v47, 2  ;;  %vm1860_vm3 = vcmp.eq.f32.partialorder %v1764_v63, %v11736_v10 }
 0x112   :  { %vm6904_vm12 = vcmp.le.f32.partialorder %v11794_v50, 2.0  ;;  %vm6916_vm9 = vcmp.eq.f32.partialorder %v1252_v11, %v11751_v14  ;;  %v1192_v4 = vrot.slane %v11800_v26, 1  ;;  %v11801_v50 = vrot.slane %v5271_v52, 7 }
 0x113   :  { %v11796_v1 = vsel %vm6904_vm12, 4294967295, %v11795_v1  ;;  %v11802_v29 = vrot.slane %v5226_v8, 7  ;;  %vm11803_vm2 = vcmp.lt.s32.totalorder %v4427_v17, 1  ;;  %vm523_vm14 = vcmask 7168   ;;  %vm1892_vm12 = vmand %vm6748_vm15, %vm1860_vm3 }
 0x114   :  { %v6930_v37 = vsel %vm1891_vm1, 0.0, %v11305_v5  ;;  %vm1347_vm13 = vcmp.eq.f32.partialorder %v1251_v56, %v11746_v23  ;;  %vm11804_vm11 = vcmp.lt.s32.totalorder %v4427_v17, 6  ;;  %v11805_v63 = vrot.slane %v11771_v36, 2 }
 0x115   :  { %v327_v18 = vsel %vm11803_vm2, %v11802_v29, %v11801_v50  ;;  %v1720_v40 = vsel %vm11804_vm11, %v1704_v9, %v11006_v24  ;;  %vm11806_vm8 = vmmov %vm11804_vm11  ;;  %v6942_v10 = vsel %vm1892_vm12, 0.0, %v11305_v5  ;;  %v11807_v14 = vrot.slane %v6026_v19, 1 }
 0x116   :  { %v1721_v33 = vsel %vm11806_vm8, %v11805_v63, %v1704_v9  ;;  %vm1379_vm15 = vmand %vm6774_vm5, %vm1347_vm13  ;;  %v1768_v23 = vsub.f32 %v1720_v40, %v11791_v58  ;;  %vm11808_vm3 = vcmp.lt.s32.totalorder %v4427_v17, 7  ;;  %v11809_v11 = vpack.i.bf16 %v6502_v3, %v6486_v2  ;;  %v7016_v63 = vld [vmem:[%s10747_s0 + $0xd8] sm:$0xff] }
 0x117   :  { %v1767_v43 = vsub.f32 %v1721_v33, %v11771_v36  ;;  %v1204_v22 = vsel %vm11808_vm3, %v1192_v4, %v11807_v14  ;;  %v3856_v9 = vpack.i.bf16 %v6942_v10, %v6930_v37  ;;  %vm1380_vm5 = vmand %vm6795_vm0, %vm6916_vm9  ;;  %v6963_v46 = vsel %vm1379_vm15, 0.0, %v11305_v5  ;;  %v11904_v37 = vld [vmem:[#allocation83_spill] sm:$0xff] }
 0x118   :  { %3807 = vrot.lane.b32.xlu1 %v11809_v11, %s4303_s15  ;;  %v11810_v39 = vrot.slane %v11792_v47, 1  ;;  %vm11811_vm8 = vmmov %vm11808_vm3  ;;  %v1256_v50 = vsub.f32 %v1204_v22, %v11800_v26  ;;  %v11812_v2 = vpack.i.bf16 %v6434_v35, %v6410_v30  ;;  %v6975_v3 = vsel %vm1380_vm5, 0.0, %v11305_v5  ;;  %v11828_v11 = vld [vmem:[#allocation24_spill] sm:$0xff] }
 0x119   :  { %vm1863_vm0 = vcmp.eq.f32.partialorder %v1767_v43, %v11756_v15  ;;  %vm6979_vm12 = vcmp.eq.f32.partialorder %v1768_v23, %v11764_v27  ;;  %v334_v35 = vsub.f32 %v327_v18, %v5271_v52  ;;  %v11817_v27 = vmov %v11802_v29  ;;  %v11818_v15 = vld [vmem:[#allocation82_spill] sm:$0xff] }
 0x11a   :  { %v1205_v56 = vsel %vm11811_vm8, %v11810_v39, %v1192_v4  ;;  %3732 = vrot.lane.b32.xlu0 %v11812_v2, %s4303_s15  ;;  %v3781_v4 = vpack.i.bf16 %v6975_v3, %v6963_v46  ;;  %vm1895_vm1 = vmand %vm6818_vm10, %vm1863_vm0  ;;  %vm6989_vm9 = vcmp.eq.f32.partialorder %v1256_v50, %v11780_v60  ;;  %v11819_v29 = vrot.slane %v11818_v15, 7  ;;  %v7038_v23 = vld [vmem:[%s10747_s0 + $0xe0] sm:$0xff]  ;;  %v11833_v50 = vld [vmem:[#allocation43_spill] sm:$0xff] }
 0x11b   :  { %v1255_v6 = vsub.f32 %v1205_v56, %v11792_v47  ;;  %vm1896_vm13 = vmand %vm6836_vm4, %vm6979_vm12  ;;  %v7005_v62 = vsel %vm1895_vm1, 0.0, %v11305_v5  ;;  %v1611_v33 = vrot.slane %v7016_v63, 2  ;;  %vm7031_vm11 = vcmp.eq.f32.partialorder %v334_v35, %v11786_v55 }
 0x11c   :  { %v328_v40 = vsel %vm11803_vm2, %v11819_v29, %v11817_v27  ;;  %3817 = vrot.lane.b32.xlu1 %v11822_v45, %s4304_s18  ;;  %v11004_v0 = vrot.slane %v7038_v23, 2  ;;  %v11825_v14 = vpack.i.bf16 %v6600_v59, %v6588_v53  ;;  %v11829_v39 = vrot.slane %v11828_v11, 2  ;;  %v11839_v45 = vld [vmem:[#allocation44_spill] sm:$0xff] }
 0x11d   :  { %vm7008_vm10 = vcmp.eq.f32.partialorder %v1255_v6, %v11772_v42  ;;  %v333_v18 = vsub.f32 %v328_v40, %v5226_v8  ;;  %v7024_v42 = vsel %vm1896_vm13, 0.0, %v11305_v5  ;;  %vm11830_vm3 = vcmp.lt.s32.totalorder %v4427_v17, 6  ;;  %v7107_v40 = vld [vmem:[%s10747_s0 + $0xe8] sm:$0xff] }
 0x11e   :  { %vm1383_vm4 = vmand %vm6858_vm7, %vm7008_vm10  ;;  %3742 = vrot.lane.b32.xlu0 %v11825_v14, %s4303_s15  ;;  %v3866_v55 = vpack.i.bf16 %v7024_v42, %v7005_v62  ;;  %v1621_v53 = vsel %vm11830_vm3, %v11829_v39, %v1611_v33  ;;  %v1708_v2 = vrot.slane %v11833_v50, 2  ;;  %vm11834_vm0 = vnez %v11796_v1  ;;  %v11896_v42 = vld [vmem:[#allocation16_spill] sm:$0xff] }
 0x11f   :  { %vm1384_vm7 = vmand %vm6876_vm6, %vm6989_vm9  ;;  %v7053_v20 = vsel %vm1383_vm4, 0.0, %v11305_v5  ;;  %vm7056_vm15 = vcmp.eq.f32.partialorder %v333_v18, %v11793_v25  ;;  %vm11831_vm6 = vnez %v11789_v31  ;;  %v7078_v25 = vld [vmem:[%s10747_s0 + $0xd0] sm:$0xff]  ;;  %v11003_v30 = vrot.slane %v6121_v44, 2 }
 0x120   :  { %v7065_v59 = vsel %vm1384_vm7, 0.0, %v11305_v5  ;;  %vm462_vm5 = vmand %vm11831_vm6, %vm7031_vm11  ;;  %v1675_v56 = vsub.f32 %v1621_v53, %v7078_v25  ;;  %v11835_v35 = vpack.i.bf16 %v6658_v16, %v6621_v48  ;;  %v1099_v48 = vrot.slane %v7107_v40, 1  ;;  %v11845_v53 = vld [vmem:[#allocation28_spill] sm:$0xff] }
 0x121   :  { %vm11832_vm8 = vmmov %vm11830_vm3  ;;  %v3791_v28 = vpack.i.bf16 %v7065_v59, %v7053_v20  ;;  %v494_v31 = vsel %vm462_vm5, 0.0, %v11305_v5  ;;  %v11837_v16 = vpack.i.bf16 %v6695_v32, %v6680_v21  ;;  %v1196_v43 = vrot.slane %v11839_v45, 1  ;;  %v11842_v32 = vld [vmem:[#allocation33_spill] sm:$0xff]  ;;  %v11857_v21 = vld [vmem:[#allocation76_spill] sm:$0xff] }
 0x122   :  { %v1620_v61 = vsel %vm11832_vm8, %v1611_v33, %v11004_v0  ;;  %vm461_vm12 = vmand %vm11834_vm0, %vm7056_vm15  ;;  %3827 = vrot.lane.b32.xlu1 %v11835_v35, %s4304_s18  ;;  %527 = vst.msk [vmem:[%s10748_s1 + $0x18] sm:$0xff] %vm523_vm14, %v494_v31  ;;  %v1803_v29 = vand.u32 2147483647, %v1675_v56  ;;  %v11843_v22 = vrot.slane %v11842_v32, 1  ;;  %vm11844_vm13 = vcmp.lt.s32.totalorder %v4427_v17, 7 }
 0x123   :  { %v1676_v6 = vsub.f32 %v1620_v61, %v7016_v63  ;;  %v493_v27 = vsel %vm461_vm12, 0.0, %v11305_v5  ;;  %vm11836_vm1 = vmmov %vm11830_vm3  ;;  %3752 = vrot.lane.b32.xlu0 %v11837_v16, %s4303_s15  ;;  %v11846_v61 = vrot.slane %v11845_v53, 1  ;;  %v11858_v32 = vand.u32 2147483647, %v11857_v21 }
 0x124   :  { %v1717_v1 = vsel %vm11836_vm1, %v11014_v41, %v1708_v2  ;;  %526 = vst.msk [vmem:[%s10748_s1 + $0x10] sm:$0xff] %vm523_vm14, %v493_v27  ;;  %vm11838_vm9 = vmmov %vm11836_vm1  ;;  %vm7125_vm2 = vcmp.le.f32.partialorder %v1803_v29, 2.0  ;;  %v1104_v39 = vsel %vm11844_vm13, %v1099_v48, %v11843_v22  ;;  %v11851_v29 = vld [vmem:[#allocation46_spill] sm:$0xff]  ;;  %v3658_v22 = vpop.permute.xlu1 %3657  ;;  %v11960_v41 = vld [vmem:[#allocation35_spill] sm:$0xff] }
 0x125   :  { %v1716_v60 = vsel %vm11838_vm9, %v1708_v2, %v11003_v30  ;;  %v1771_v18 = vsub.f32 %v1717_v1, %v6026_v19  ;;  %v1804_v33 = vand.u32 2147483647, %v1676_v6  ;;  %vm11847_vm10 = vmmov %vm11844_vm13  ;;  %v1164_v27 = vsub.f32 %v1104_v39, %v7107_v40  ;;  %v7186_v39 = vld [vmem:[%s10747_s0 + $0xf8] sm:$0xff] }
 0x126   :  { %v1772_v14 = vsub.f32 %v1716_v60, %v11833_v50  ;;  %v1105_v2 = vsel %vm11847_vm10, %v11846_v61, %v1099_v48  ;;  %v11850_v1 = vpack.i.bf16 %v6757_v51, %v6716_v7  ;;  %v11852_v48 = vrot.slane %v11851_v29, 1  ;;  %vm11853_vm3 = vmmov %vm11847_vm10 }
 0x127   :  { %vm7137_vm4 = vcmp.le.f32.partialorder %v1804_v33, 2.0  ;;  %vm1867_vm11 = vcmp.eq.f32.partialorder %v1771_v18, %v1675_v56  ;;  %v1163_v35 = vsub.f32 %v1105_v2, %v7038_v23  ;;  %v11854_v56 = vrot.slane %v6121_v44, 1  ;;  %vm11855_vm6 = vmmov %vm11853_vm3  ;;  %v7160_v18 = vld [vmem:[%s10747_s0 + $0xf0] sm:$0xff]  ;;  %v11861_v2 = vld [vmem:[#allocation77_spill] sm:$0xff] }
 0x128   :  { %3837 = vrot.lane.b32.xlu1 %v11850_v1, %s4304_s18  ;;  %vm1868_vm7 = vcmp.eq.f32.partialorder %v1772_v14, %v1676_v6  ;;  %vm1899_vm15 = vmand %vm7125_vm2, %vm1867_vm11  ;;  %v1200_v16 = vsel %vm11853_vm3, %v1196_v43, %v11852_v48  ;;  %v11005_v7 = vrot.slane %v7160_v18, 2  ;;  %v11856_v51 = vpack.i.bf16 %v6800_v13, %v6789_v54 }
 0x129   :  { %v1201_v60 = vsel %vm11855_vm6, %v11854_v56, %v1196_v43  ;;  %vm1900_vm5 = vmand %vm7137_vm4, %vm1868_vm7  ;;  %v7170_v6 = vsel %vm1899_vm15, 0.0, %v11305_v5  ;;  %v1260_v43 = vsub.f32 %v1200_v16, %v11839_v45  ;;  %v1291_v14 = vand.u32 2147483647, %v1163_v35 }
 0x12a   :  { %3762 = vrot.lane.b32.xlu0 %v11856_v51, %s4303_s15  ;;  %v1259_v33 = vsub.f32 %v1201_v60, %v6121_v44  ;;  %vm7176_vm8 = vcmp.le.f32.partialorder %v11858_v32, 2.0  ;;  %v7181_v54 = vsel %vm1900_vm5, 0.0, %v11305_v5  ;;  %v1292_v13 = vand.u32 2147483647, %v1164_v27  ;;  %v11869_v51 = vld [vmem:[#allocation2_spill] sm:$0xff] }
 0x12b   :  { %v1615_v53 = vrot.slane %v7186_v39, 2  ;;  %v11007_v61 = vrot.slane %v11851_v29, 2  ;;  %v11862_v31 = vand.u32 2147483647, %v11861_v2  ;;  %v3876_v48 = vpack.i.bf16 %v7181_v54, %v7170_v6 }
 0x12c   :  { %vm1323_vm12 = vcmp.le.f32.partialorder %v1291_v14, 2.0  ;;  %vm1355_vm1 = vcmp.eq.f32.partialorder %v1259_v33, %v1163_v35  ;;  %vm7198_vm9 = vcmp.eq.f32.partialorder %v1260_v43, %v1164_v27  ;;  %v11867_v56 = vpack.i.bf16 %v6827_v34, %v6812_v49  ;;  %v11872_v27 = vld [vmem:[#allocation45_spill] sm:$0xff]  ;;  %v11873_v43 = vld [vmem:[#allocation80_spill] sm:$0xff] }
 0x12d   :  { %vm7192_vm0 = vcmp.le.f32.partialorder %v11862_v31, 2.0  ;;  %vm1324_vm2 = vcmp.le.f32.partialorder %v1292_v13, 2.0  ;;  %vm1387_vm13 = vmand %vm1323_vm12, %vm1355_vm1  ;;  %vm11868_vm10 = vcmp.lt.s32.totalorder %v4427_v17, 6  ;;  %v11870_v32 = vrot.slane %v11869_v51, 2  ;;  %v11879_v51 = vld [vmem:[#allocation7_spill] sm:$0xff] }
 0x12e   :  { %3847 = vrot.lane.b32.xlu1 %v11867_v56, %s4304_s18  ;;  %v1617_v60 = vsel %vm11868_vm10, %v11005_v7, %v1615_v53  ;;  %vm11871_vm4 = vmmov %vm11868_vm10  ;;  %v1712_v33 = vrot.slane %v11872_v27, 2  ;;  %vm2228_vm11 = vcmp.le.f32.partialorder %v11873_v43, 32.0  ;;  %v11874_v49 = vpack.i.bf16 %v6863_v38, %v6849_v12  ;;  %v11876_v38 = vld [vmem:[#allocation79_spill] sm:$0xff] }
 0x12f   :  { %v1648_v35 = vsel %vm11871_vm4, %v1615_v53, %v11870_v32  ;;  %vm1388_vm7 = vmand %vm1324_vm2, %vm7198_vm9  ;;  %v7223_v34 = vsel %vm1387_vm13, 0.0, %v11305_v5  ;;  %v1679_v14 = vsub.f32 %v1617_v60, %v7160_v18  ;;  %v1682_v53 = vrot.slane %v11818_v15, 2  ;;  %v11881_v60 = vld [vmem:[#allocation8_spill] sm:$0xff] }
 0x130   :  { %3772 = vrot.lane.b32.xlu0 %v11874_v49, %s4303_s15  ;;  %v1680_v13 = vsub.f32 %v1648_v35, %v7186_v39  ;;  %vm1037_vm15 = vcmask 15368   ;;  %v1420_v31 = vsel %vm1388_vm7, 0.0, %v11305_v5  ;;  %vm11875_vm3 = vmmov %vm11871_vm4  ;;  %v11877_v16 = vrot.slane %v11876_v38, 2 }
 0x131   :  { %v1713_v12 = vsel %vm11875_vm3, %v11007_v61, %v1712_v33  ;;  %vm11878_vm6 = vmmov %vm11875_vm3  ;;  %v11880_v32 = vrot.slane %v11879_v51, 7  ;;  %v11882_v49 = vrot.slane %v11881_v60, 7  ;;  %vm11883_vm5 = vcmp.lt.s32.totalorder %v4427_v17, 1 }
 0x132   :  { %v1744_v56 = vsel %vm11878_vm6, %v1712_v33, %v11877_v16  ;;  %v3801_v30 = vpack.i.bf16 %v1420_v31, %v7223_v34  ;;  %v1775_v0 = vsub.f32 %v1713_v12, %v11851_v29  ;;  %v1807_v24 = vand.u32 2147483647, %v1679_v14  ;;  %3857 = vrot.lane.b32.xlu1 %v3856_v9, %s4304_s18  ;;  %vm11885_vm12 = vmmov %vm11875_vm3  ;;  %v11889_v12 = vld [vmem:[#allocation5_spill] sm:$0xff] }
 0x133   :  { %v99_v35 = vsel %vm11883_vm5, %v11882_v49, %v11880_v32  ;;  %v1776_v7 = vsub.f32 %v1744_v56, %v11872_v27  ;;  %v1808_v33 = vand.u32 2147483647, %v1680_v13  ;;  %v11884_v16 = vrot.slane %v5226_v8, 2  ;;  %vm11887_vm1 = vmmov %vm11875_vm3 }
 0x134   :  { %v11886_v32 = vrot.slane %v11876_v38, 2  ;;  %v11888_v31 = vmov %v11882_v49  ;;  %v11890_v56 = vrot.slane %v11889_v12, 7  ;;  %vm11891_vm9 = vmmov %vm11883_vm5  ;;  %3782 = vrot.lane.b32.xlu0 %v3781_v4, %s4303_s15  ;;  %vm1839_vm2 = vcmp.le.f32.partialorder %v1807_v24, 2.0  ;;  %v7283_v24 = vld [vmem:[%s10747_s0 + $0x38] sm:$0xff] }
 0x135   :  { %v1742_v61 = vsel %vm11885_vm12, %v1682_v53, %v11884_v16  ;;  %vm1871_vm13 = vcmp.eq.f32.partialorder %v1775_v0, %v1679_v14  ;;  %vm7268_vm10 = vcmp.eq.f32.partialorder %v1776_v7, %v1680_v13  ;;  %vm1840_vm4 = vcmp.le.f32.partialorder %v1808_v33, 2.0  ;;  %v11894_v0 = vld [vmem:[#allocation84_spill] sm:$0xff] }
 0x136   :  { %v1743_v34 = vsel %vm11887_vm1, %v11886_v32, %v1682_v53  ;;  %v100_v49 = vsel %vm11891_vm9, %v11890_v56, %v11888_v31  ;;  %vm1903_vm7 = vmand %vm1839_vm2, %vm1871_vm13  ;;  %v1746_v9 = vsub.f32 %v1742_v61, %v11818_v15  ;;  %v7277_v53 = vld [vmem:[%s10747_s0 + $0x30] sm:$0xff]  ;;  %v114_v3 = vsub.f32 %v99_v35, %v7283_v24  ;;  %v11895_v61 = vld [vmem:[#allocation18_spill] sm:$0xff]  ;;  %3867 = vrot.lane.b32.xlu1 %v3866_v55, %s4304_s18 }
 0x137   :  { %v1745_v10 = vsub.f32 %v1743_v34, %v11876_v38  ;;  %v113_v46 = vsub.f32 %v100_v49, %v7277_v53  ;;  %vm1904_vm3 = vmand %vm1840_vm4, %vm7268_vm10  ;;  %v1935_v4 = vsel %vm1903_vm7, 0.0, %v11305_v5  ;;  %v11011_v7 = vrot.slane %v11894_v0, 7 }
 0x138   :  { %v11009_v14 = vrot.slane %v11895_v61, 7  ;;  %v1936_v13 = vsel %vm1904_vm3, 0.0, %v11305_v5  ;;  %vm1842_vm5 = vcmp.eq.f32.partialorder %v1746_v9, %v11861_v2  ;;  %v370_v33 = vand.u32 2147483647, %v114_v3  ;;  %3792 = vrot.lane.b32.xlu0 %v3791_v28, %s4303_s15 }
 0x139   :  { %vm1841_vm6 = vcmp.eq.f32.partialorder %v1745_v10, %v11857_v21  ;;  %v369_v35 = vand.u32 2147483647, %v113_v46  ;;  %v3886_v21 = vpack.i.bf16 %v1936_v13, %v1935_v4  ;;  %vm1874_vm1 = vmand %vm7192_vm0, %vm1842_vm5  ;;  %v273_v55 = vrot.slane %v11896_v42, 7 }
 0x13a   :  { %vm1873_vm12 = vmand %vm7176_vm8, %vm1841_vm6  ;;  %v2133_v2 = vsub.f32 %v11818_v15, %v5271_v52  ;;  %v1906_v16 = vsel %vm1874_vm1, 0.0, %v11305_v5  ;;  %vm7315_vm9 = vcmp.le.f32.partialorder %v370_v33, 2.0  ;;  %v11901_v59 = vsub.f32 %v11876_v38, %v5226_v8  ;;  %3877 = vrot.lane.b32.xlu1 %v3876_v48, %s4304_s18  ;;  %v7352_v48 = vld [vmem:[%s10747_s0 + $0x28] sm:$0xff] }
 0x13b   :  { %v1905_v62 = vsel %vm1873_vm12, 0.0, %v11305_v5  ;;  %vm7311_vm8 = vcmp.le.f32.partialorder %v369_v35, 2.0  ;;  %v3660_v28 = vunpack.i.h.bf16 %v3658_v22  ;;  %v3659_v1 = vunpack.i.l.bf16 %v3658_v22 }
 0x13c   :  { %vm2164_vm0 = vcmp.eq.f32.partialorder %v11901_v59, 0.0  ;;  %v3811_v34 = vpack.i.bf16 %v1906_v16, %v1905_v62  ;;  %vm11902_vm2 = vcmp.lt.s32.totalorder %v4427_v17, 1  ;;  %vm2165_vm4 = vcmp.eq.f32.partialorder %v2133_v2, 0.0  ;;  %3802 = vrot.lane.b32.xlu0 %v3801_v30, %s4303_s15  ;;  %v7360_v30 = vld [vmem:[%s10747_s0 + $0x20] sm:$0xff] }
 0x13d   :  { %v323_v31 = vsel %vm11902_vm2, %v273_v55, %v11009_v14  ;;  %vm2260_vm13 = vmand %vm2164_vm0, %vm2228_vm11  ;;  %vm2229_vm7 = vcmp.le.f32.partialorder %v11904_v37, 32.0  ;;  %1041 = vst.msk [vmem:[%s10748_s1 + $0x18] sm:$0xff] %vm1037_vm15, %v3660_v28  ;;  %v1589_v43 = vrot.slane %v7352_v48, 2  ;;  %v1686_v10 = vrot.slane %v11894_v0, 2  ;;  %v11907_v62 = vld [vmem:[#allocation6_spill] sm:$0xff] }
 0x13e   :  { %vm11903_vm10 = vmmov %vm11902_vm2  ;;  %v338_v49 = vsub.f32 %v323_v31, %v11895_v61  ;;  %1040 = vst.msk [vmem:[%s10748_s1 + $0x10] sm:$0xff] %vm1037_vm15, %v3659_v1  ;;  %v2292_v54 = vsel %vm2260_vm13, 0.0, %v11305_v5  ;;  %v2104_v4 = vsub.f32 %v7360_v30, %v7277_v53  ;;  %v2105_v13 = vsub.f32 %v7352_v48, %v7283_v24  ;;  %3887 = vrot.lane.b32.xlu1 %v3886_v21, %s4304_s18  ;;  %v11912_v21 = vld [vmem:[#allocation85_spill] sm:$0xff] }
 0x13f   :  { %v324_v56 = vsel %vm11903_vm10, %v11011_v7, %v273_v55  ;;  %vm2261_vm11 = vmand %vm2165_vm4, %vm2229_vm7  ;;  %vm11906_vm12 = vcmp.lt.s32.totalorder %v4427_v17, 6  ;;  %v11908_v55 = vrot.slane %v11907_v62, 2  ;;  %v11913_v32 = vrot.slane %v11912_v21, 2 }
 0x140   :  { %v337_v6 = vsub.f32 %v324_v56, %v11896_v42  ;;  %vm434_vm3 = vcmp.eq.f32.partialorder %v338_v49, %v114_v3  ;;  %v2293_v9 = vsel %vm2261_vm11, 0.0, %v11305_v5  ;;  %v11905_v3 = vrot.slane %v11881_v60, 2  ;;  %vm11909_vm1 = vmmov %vm11906_vm12  ;;  %3812 = vrot.lane.b32.xlu0 %v3811_v34, %s4304_s18  ;;  %v3668_v56 = vpop.permute.xlu1 %3667 }
 0x141   :  { %vm466_vm5 = vmand %vm7315_vm9, %vm434_vm3  ;;  %v3896_v35 = vpack.i.bf16 %v2293_v9, %v2292_v54  ;;  %v1643_v2 = vsel %vm11909_vm1, %v11908_v55, %v1589_v43  ;;  %v11910_v60 = vrot.slane %v11896_v42, 2  ;;  %v2136_v31 = vsub.f32 %v11912_v21, %v11896_v42  ;;  %v7434_v55 = vld [vmem:[%s10747_s0 + $0x48] sm:$0xff]  ;;  %v7478_v9 = vld [vmem:[%s10747_s0 + $0x40] sm:$0xff] }
 0x142   :  { %vm433_vm6 = vcmp.eq.f32.partialorder %v337_v6, %v113_v46  ;;  %v1642_v33 = vsel %vm11906_vm12, %v1589_v43, %v11905_v3  ;;  %v498_v46 = vsel %vm466_vm5, 0.0, %v11305_v5  ;;  %v1653_v22 = vsub.f32 %v1643_v2, %v7360_v30  ;;  %vm11911_vm9 = vmmov %vm11909_vm1 }
 0x143   :  { %vm465_vm0 = vmand %vm7311_vm8, %vm433_vm6  ;;  %v1654_v16 = vsub.f32 %v1642_v33, %v7352_v48  ;;  %v1738_v20 = vsel %vm11911_vm9, %v1686_v10, %v11910_v60  ;;  %531 = vst.msk [vmem:[%s10748_s1 + $0x38] sm:$0xff] %vm523_vm14, %v498_v46  ;;  %v2137_v6 = vsub.f32 %v11894_v0, %v11895_v61  ;;  %v3670_v54 = vunpack.i.h.bf16 %v3668_v56  ;;  %3897 = vrot.lane.b32.xlu1 %v3896_v35, %s4305_s21  ;;  %v11923_v46 = vld [vmem:[#allocation25_spill] sm:$0xff] }
 0x144   :  { %v497_v59 = vsel %vm465_vm0, 0.0, %v11305_v5  ;;  %vm11914_vm8 = vmmov %vm11909_vm1  ;;  %v1750_v1 = vsub.f32 %v1738_v20, %v11894_v0  ;;  %v1781_v49 = vand.u32 2147483647, %v1653_v22  ;;  %v3669_v43 = vunpack.i.l.bf16 %v3668_v56  ;;  %v7453_v20 = vld [vmem:[%s10747_s0 + $0x58] sm:$0xff] }
 0x145   :  { %v1739_v28 = vsel %vm11914_vm8, %v11913_v32, %v1686_v10  ;;  %530 = vst.msk [vmem:[%s10748_s1 + $0x30] sm:$0xff] %vm523_vm14, %v497_v59  ;;  %v1782_v37 = vand.u32 2147483647, %v1654_v16  ;;  %vm7410_vm13 = vcmp.eq.f32.partialorder %v2136_v31, 0.0  ;;  %vm7419_vm11 = vcmp.eq.f32.partialorder %v2137_v6, 0.0  ;;  %11925 = vst [vmem:[#allocation50_spill] sm:$0xff] %v7453_v20 }
 0x146   :  { %v1749_v34 = vsub.f32 %v1739_v28, %v11912_v21  ;;  %vm7406_vm2 = vcmp.eq.f32.partialorder %v1750_v1, %v1654_v16  ;;  %vm1813_vm10 = vcmp.le.f32.partialorder %v1781_v49, 2.0  ;;  %1044 = vst.msk [vmem:[%s10748_s1 + $0x30] sm:$0xff] %vm1037_vm15, %v3669_v43  ;;  %1045 = vst.msk [vmem:[%s10748_s1 + $0x38] sm:$0xff] %vm1037_vm15, %v3670_v54  ;;  %v2200_v35 = vand.u32 2147483647, %v2104_v4  ;;  %v7447_v4 = vld [vmem:[%s10747_s0 + $0x50] sm:$0xff] }
 0x147   :  { %vm7415_vm4 = vcmp.le.f32.partialorder %v1782_v37, 2.0  ;;  %v2201_v62 = vand.u32 2147483647, %v2105_v13  ;;  %v1593_v2 = vrot.slane %v7434_v55, 2  ;;  %v11010_v60 = vrot.slane %v7434_v55, 7  ;;  %11924 = vst [vmem:[#allocation47_spill] sm:$0xff] %v7447_v4  ;;  %vm11930_vm9 = vmmov %vm11909_vm1 }
 0x148   :  { %vm1845_vm7 = vcmp.eq.f32.partialorder %v1749_v34, %v1653_v22  ;;  %v1690_v22 = vrot.slane %v11923_v46, 2  ;;  %vm1878_vm6 = vmand %vm7415_vm4, %vm7406_vm2  ;;  %v50_v13 = vrot.slane %v7447_v4, 7  ;;  %v11008_v59 = vrot.slane %v7453_v20, 7  ;;  %v11926_v28 = vld [vmem:[#allocation10_spill] sm:$0xff]  ;;  %v11928_v34 = vld [vmem:[#allocation9_spill] sm:$0xff] }
 0x149   :  { %vm1877_vm3 = vmand %vm1813_vm10, %vm1845_vm7  ;;  %v1910_v32 = vsel %vm1878_vm6, 0.0, %v11305_v5  ;;  %vm2232_vm5 = vcmp.le.f32.partialorder %v2200_v35, 32.0  ;;  %vm2233_vm12 = vcmp.le.f32.partialorder %v2201_v62, 32.0  ;;  %v11927_v1 = vrot.slane %v11926_v28, 2  ;;  %v11931_v54 = vld [vmem:[#allocation86_spill] sm:$0xff] }
 0x14a   :  { %v1909_v16 = vsel %vm1877_vm3, 0.0, %v11305_v5  ;;  %vm2264_vm0 = vmand %vm7410_vm13, %vm2232_vm5  ;;  %v11929_v49 = vrot.slane %v11928_v34, 2  ;;  %v11932_v43 = vrot.slane %v11931_v54, 2  ;;  %v11934_v62 = vld [vmem:[#allocation26_spill] sm:$0xff]  ;;  %vm11937_vm10 = vcmp.lt.s32.totalorder %v4427_v17, 1  ;;  %v7493_v34 = vpop.permute.xlu1 %3677 }
 0x14b   :  { %v1638_v31 = vsel %vm11909_vm1, %v1593_v2, %v11927_v1  ;;  %v3821_v56 = vpack.i.bf16 %v1910_v32, %v1909_v16  ;;  %vm11933_vm8 = vmmov %vm11909_vm1  ;;  %v2296_v3 = vsel %vm2264_vm0, 0.0, %v11305_v5  ;;  %v11961_v51 = vrot.slane %v11960_v41, 2 }
 0x14c   :  { %v1639_v37 = vsel %vm11930_vm9, %v11929_v49, %v1593_v2  ;;  %v1658_v6 = vsub.f32 %v1638_v31, %v7434_v55  ;;  %v1734_v10 = vsel %vm11933_vm8, %v1690_v22, %v11932_v43  ;;  %vm2265_vm2 = vmand %vm7419_vm11, %vm2233_vm12  ;;  %v11935_v2 = vrot.slane %v11934_v62, 2 }
 0x14d   :  { %v1657_v35 = vsub.f32 %v1639_v37, %v7478_v9  ;;  %vm11936_vm13 = vmmov %vm11909_vm1  ;;  %v1754_v32 = vsub.f32 %v1734_v10, %v11923_v46  ;;  %3822 = vrot.lane.b32.xlu0 %v3821_v56, %s4304_s18  ;;  %v2297_v33 = vsel %vm2265_vm2, 0.0, %v11305_v5  ;;  %v95_v31 = vsel %vm11937_vm10, %v50_v13, %v11008_v59 }
 0x14e   :  { %v1735_v16 = vsel %vm11936_vm13, %v11935_v2, %v1690_v22  ;;  %v1786_v1 = vand.u32 2147483647, %v1658_v6  ;;  %v3906_v49 = vpack.i.bf16 %v2297_v33, %v2296_v3  ;;  %vm11938_vm7 = vmmov %vm11937_vm10  ;;  %v118_v43 = vsub.f32 %v95_v31, %v7453_v20  ;;  %v11939_v3 = vld [vmem:[#allocation30_spill] sm:$0xff] }
 0x14f   :  { %v1753_v28 = vsub.f32 %v1735_v16, %v11934_v62  ;;  %v1785_v37 = vand.u32 2147483647, %v1657_v35  ;;  %vm1850_vm4 = vcmp.eq.f32.partialorder %v1754_v32, %v1658_v6  ;;  %v96_v22 = vsel %vm11938_vm7, %v11010_v60, %v50_v13  ;;  %vm11944_vm9 = vmmov %vm11938_vm7 }
 0x150   :  { %vm1818_vm11 = vcmp.le.f32.partialorder %v1786_v1, 2.0  ;;  %v117_v56 = vsub.f32 %v96_v22, %v7447_v4  ;;  %3907 = vrot.lane.b32.xlu1 %v3906_v49, %s4305_s21  ;;  %v11013_v10 = vrot.slane %v11923_v46, 7  ;;  %v11012_v2 = vrot.slane %v11939_v3, 7  ;;  %vm11945_vm8 = vmmov %vm11938_vm7  ;;  %v7602_v22 = vld [vmem:[%s10747_s0 + $0x78] sm:$0xff] }
 0x151   :  { %vm1849_vm3 = vcmp.eq.f32.partialorder %v1753_v28, %v1657_v35  ;;  %vm1817_vm6 = vcmp.le.f32.partialorder %v1785_v37, 2.0  ;;  %vm1882_vm5 = vmand %vm1818_vm11, %vm1850_vm4  ;;  %v3680_v6 = vunpack.i.h.bf16 %v7493_v34  ;;  %v374_v32 = vand.u32 2147483647, %v118_v43  ;;  %11966 = vst [vmem:[#allocation54_spill] sm:$0xff] %v7602_v22 }
 0x152   :  { %vm1881_vm12 = vmand %vm1817_vm6, %vm1849_vm3  ;;  %v1914_v16 = vsel %vm1882_vm5, 0.0, %v11305_v5  ;;  %v373_v13 = vand.u32 2147483647, %v117_v56  ;;  %v3679_v35 = vunpack.i.l.bf16 %v7493_v34  ;;  %v277_v28 = vrot.slane %v11931_v54, 7 }
 0x153   :  { %v1913_v33 = vsel %vm1881_vm12, 0.0, %v11305_v5  ;;  %v2108_v1 = vsub.f32 %v7478_v9, %v7447_v4  ;;  %v2109_v31 = vsub.f32 %v7434_v55, %v7453_v20  ;;  %vm7517_vm0 = vcmp.le.f32.partialorder %v374_v32, 2.0  ;;  %v7694_v4 = vpop.permute.xlu1 %3687 }
 0x154   :  { %v3831_v49 = vpack.i.bf16 %v1914_v16, %v1913_v33  ;;  %vm7513_vm1 = vcmp.le.f32.partialorder %v373_v13, 2.0  ;;  %v2140_v34 = vsub.f32 %v11934_v62, %v11931_v54  ;;  %v319_v59 = vsel %vm11944_vm9, %v277_v28, %v11012_v2  ;;  %v11949_v2 = vld [vmem:[#allocation34_spill] sm:$0xff] }
 0x155   :  { %v320_v16 = vsel %vm11945_vm8, %v11013_v10, %v277_v28  ;;  %v2141_v13 = vsub.f32 %v11923_v46, %v11939_v3  ;;  %v2204_v32 = vand.u32 2147483647, %v2108_v1  ;;  %v342_v14 = vsub.f32 %v319_v59, %v11939_v3  ;;  %v7543_v28 = vld [vmem:[%s10747_s0 + $0x68] sm:$0xff]  ;;  %v7554_v59 = vld [vmem:[%s10747_s0 + $0x60] sm:$0xff] }
 0x156   :  { %3832 = vrot.lane.b32.xlu0 %v3831_v49, %s4304_s18  ;;  %v341_v33 = vsub.f32 %v320_v16, %v11931_v54  ;;  %vm2172_vm2 = vcmp.eq.f32.partialorder %v2140_v34, 0.0  ;;  %v2205_v60 = vand.u32 2147483647, %v2109_v31  ;;  %11948 = vst [vmem:[#allocation51_spill] sm:$0xff] %v7543_v28  ;;  %v1597_v1 = vrot.slane %v7543_v28, 2  ;;  %11952 = vst [vmem:[#allocation52_spill] sm:$0xff] %v7554_v59 }
 0x157   :  { %vm7536_vm13 = vcmp.eq.f32.partialorder %v2141_v13, 0.0  ;;  %vm2236_vm10 = vcmp.le.f32.partialorder %v2204_v32, 32.0  ;;  %v1694_v49 = vrot.slane %v11949_v2, 2  ;;  %vm7547_vm7 = vcmp.eq.f32.partialorder %v342_v14, %v118_v43  ;;  %v7559_v31 = vld [vmem:[%s10747_s0 + $0x70] sm:$0xff]  ;;  %v11957_v32 = vld [vmem:[#allocation11_spill] sm:$0xff] }
 0x158   :  { %vm437_vm4 = vcmp.eq.f32.partialorder %v341_v33, %v117_v56  ;;  %vm2237_vm11 = vcmp.le.f32.partialorder %v2205_v60, 32.0  ;;  %vm2268_vm3 = vmand %vm2172_vm2, %vm2236_vm10  ;;  %11953 = vst [vmem:[#allocation53_spill] sm:$0xff] %v7559_v31  ;;  %v2112_v34 = vsub.f32 %v7554_v59, %v7559_v31  ;;  %v11954_v56 = vld [vmem:[#allocation12_spill] sm:$0xff]  ;;  %vm11956_vm5 = vcmp.lt.s32.totalorder %v4427_v17, 6 }
 0x159   :  { %vm469_vm6 = vmand %vm7513_vm1, %vm437_vm4  ;;  %v2300_v14 = vsel %vm2268_vm3, 0.0, %v11305_v5  ;;  %v11955_v43 = vrot.slane %v11954_v56, 2  ;;  %v11958_v33 = vrot.slane %v11957_v32, 2  ;;  %v11963_v32 = vld [vmem:[#allocation32_spill] sm:$0xff] }
 0x15a   :  { %vm11959_vm12 = vmmov %vm11956_vm5  ;;  %v501_v37 = vsel %vm469_vm6, 0.0, %v11305_v5  ;;  %v11964_v3 = vrot.slane %v11963_v32, 2 }
 0x15b   :  { %v1634_v13 = vsel %vm11956_vm5, %v1597_v1, %v11955_v43  ;;  %v1635_v10 = vsel %vm11959_vm12, %v11958_v33, %v1597_v1  ;;  %vm11962_vm9 = vmmov %vm11956_vm5  ;;  %534 = vst.msk [vmem:[%s10748_s1 + $0x50] sm:$0xff] %vm523_vm14, %v501_v37  ;;  %v11983_v37 = vld [vmem:[#allocation13_spill] sm:$0xff] }
 0x15c   :  { %v1730_v12 = vsel %vm11962_vm9, %v1694_v49, %v11961_v51  ;;  %vm470_vm1 = vmand %vm7517_vm0, %vm7547_vm7  ;;  %v1661_v56 = vsub.f32 %v1635_v10, %v7554_v59  ;;  %v1662_v43 = vsub.f32 %v1634_v13, %v7543_v28  ;;  %1048 = vst.msk [vmem:[%s10748_s1 + $0x50] sm:$0xff] %vm1037_vm15, %v3679_v35  ;;  %v11971_v35 = vld [vmem:[#allocation37_spill] sm:$0xff] }
 0x15d   :  { %vm11965_vm8 = vmmov %vm11956_vm5  ;;  %v502_v33 = vsel %vm470_vm1, 0.0, %v11305_v5  ;;  %v1758_v10 = vsub.f32 %v1730_v12, %v11949_v2 }
 0x15e   :  { %v1731_v1 = vsel %vm11965_vm8, %v11964_v3, %v1694_v49  ;;  %vm2269_vm0 = vmand %vm7536_vm13, %vm2237_vm11  ;;  %v2113_v3 = vsub.f32 %v7543_v28, %v7602_v22  ;;  %535 = vst.msk [vmem:[%s10748_s1 + $0x58] sm:$0xff] %vm523_vm14, %v502_v33  ;;  %v1789_v7 = vand.u32 2147483647, %v1661_v56  ;;  %v1790_v60 = vand.u32 2147483647, %v1662_v43 }
 0x15f   :  { %v1757_v51 = vsub.f32 %v1731_v1, %v11963_v32  ;;  %v2301_v12 = vsel %vm2269_vm0, 0.0, %v11305_v5  ;;  %v2144_v49 = vsub.f32 %v11963_v32, %v11960_v41  ;;  %1049 = vst.msk [vmem:[%s10748_s1 + $0x58] sm:$0xff] %vm1037_vm15, %v3680_v6  ;;  %vm7625_vm13 = vcmp.eq.f32.partialorder %v1758_v10, %v1662_v43  ;;  %v7649_v43 = vld [vmem:[%s10747_s0 + $0x88] sm:$0xff]  ;;  %v11979_v10 = vld [vmem:[#allocation40_spill] sm:$0xff]  ;;  %vm11982_vm1 = vmmov %vm11965_vm8 }
 0x160   :  { %v3916_v16 = vpack.i.bf16 %v2301_v12, %v2300_v14  ;;  %v2145_v1 = vsub.f32 %v11949_v2, %v11971_v35  ;;  %vm1821_vm10 = vcmp.le.f32.partialorder %v1789_v7, 2.0  ;;  %vm7631_vm4 = vcmp.le.f32.partialorder %v1790_v60, 2.0  ;;  %11978 = vst [vmem:[#allocation55_spill] sm:$0xff] %v7649_v43  ;;  %vm11985_vm8 = vmmov %vm11982_vm1  ;;  %v7677_v32 = vld [vmem:[%s10747_s0 + $0x80] sm:$0xff]  ;;  %v11990_v14 = vld [vmem:[#allocation39_spill] sm:$0xff] }
 0x161   :  { %vm7621_vm2 = vcmp.eq.f32.partialorder %v1757_v51, %v1661_v56  ;;  %vm7635_vm7 = vcmp.eq.f32.partialorder %v2144_v49, 0.0  ;;  %v2208_v6 = vand.u32 2147483647, %v2112_v34  ;;  %v2209_v56 = vand.u32 2147483647, %v2113_v3  ;;  %vm1886_vm6 = vmand %vm7631_vm4, %vm7625_vm13  ;;  %v11980_v49 = vld [vmem:[#allocation14_spill] sm:$0xff] }
 0x162   :  { %3917 = vrot.lane.b32.xlu1 %v3916_v16, %s4305_s21  ;;  %vm1885_vm11 = vmand %vm1821_vm10, %vm7621_vm2  ;;  %vm7642_vm3 = vcmp.eq.f32.partialorder %v2145_v1, 0.0  ;;  %v1601_v51 = vrot.slane %v7649_v43, 2  ;;  %v1698_v12 = vrot.slane %v11979_v10, 2  ;;  %v54_v3 = vrot.slane %v7559_v31, 7  ;;  %11986 = vst [vmem:[#allocation56_spill] sm:$0xff] %v7677_v32 }
 0x163   :  { %v1917_v34 = vsel %vm1885_vm11, 0.0, %v11305_v5  ;;  %vm2240_vm5 = vcmp.le.f32.partialorder %v2208_v6, 32.0  ;;  %v1918_v60 = vsel %vm1886_vm6, 0.0, %v11305_v5  ;;  %vm2241_vm12 = vcmp.le.f32.partialorder %v2209_v56, 32.0  ;;  %vm11989_vm2 = vmmov %vm11982_vm1 }
 0x164   :  { %vm2272_vm9 = vmand %vm7635_vm7, %vm2240_vm5  ;;  %v11981_v16 = vrot.slane %v11980_v49, 2  ;;  %v11984_v1 = vrot.slane %v11983_v37, 2  ;;  %v3841_v6 = vpack.i.bf16 %v1918_v60, %v1917_v34  ;;  %v11987_v37 = vld [vmem:[#allocation42_spill] sm:$0xff]  ;;  %v11991_v34 = vrot.slane %v11990_v14, 2 }
 0x165   :  { %vm2273_vm0 = vmand %vm7642_vm3, %vm2241_vm12  ;;  %v2304_v7 = vsel %vm2272_vm9, 0.0, %v11305_v5  ;;  %v11988_v59 = vrot.slane %v11987_v37, 2  ;;  %vm11993_vm10 = vcmp.lt.s32.totalorder %v4427_v17, 1 }
 0x166   :  { %v1630_v13 = vsel %vm11982_vm1, %v1601_v51, %v11981_v16  ;;  %v1631_v33 = vsel %vm11985_vm8, %v11984_v1, %v1601_v51  ;;  %v2305_v16 = vsel %vm2273_vm0, 0.0, %v11305_v5  ;;  %vm11992_vm13 = vmmov %vm11982_vm1  ;;  %v11024_v1 = vrot.slane %v7602_v22, 7  ;;  %3842 = vrot.lane.b32.xlu0 %v3841_v6, %s4304_s18 }
 0x167   :  { %v1665_v56 = vsub.f32 %v1631_v33, %v7677_v32  ;;  %v1666_v49 = vsub.f32 %v1630_v13, %v7649_v43  ;;  %v1726_v51 = vsel %vm11989_vm2, %v1698_v12, %v11988_v59  ;;  %v1727_v60 = vsel %vm11992_vm13, %v11991_v34, %v1698_v12  ;;  %vm11995_vm4 = vmmov %vm11993_vm10 }
 0x168   :  { %v3926_v54 = vpack.i.bf16 %v2305_v16, %v2304_v7  ;;  %v1761_v33 = vsub.f32 %v1727_v60, %v11990_v14  ;;  %v1762_v13 = vsub.f32 %v1726_v51, %v11979_v10  ;;  %v91_v59 = vsel %vm11993_vm10, %v54_v3, %v11024_v1  ;;  %vm11998_vm1 = vmmov %vm11995_vm4 }
 0x169   :  { %v1793_v20 = vand.u32 2147483647, %v1665_v56  ;;  %v1794_v46 = vand.u32 2147483647, %v1666_v49  ;;  %v11994_v12 = vrot.slane %v7543_v28, 7  ;;  %v11034_v7 = vrot.slane %v11949_v2, 7  ;;  %vm11999_vm8 = vmmov %vm11998_vm1 }
 0x16a   :  { %3927 = vrot.lane.b32.xlu1 %v3926_v54, %s4305_s21  ;;  %vm1857_vm11 = vcmp.eq.f32.partialorder %v1761_v33, %v1665_v56  ;;  %vm1858_vm3 = vcmp.eq.f32.partialorder %v1762_v13, %v1666_v49  ;;  %v122_v16 = vsub.f32 %v91_v59, %v7602_v22  ;;  %v11030_v51 = vrot.slane %v11971_v35, 7  ;;  %v7724_v33 = vld [vmem:[%s10747_s0 + $0x98] sm:$0xff]  ;;  %v7788_v22 = vld [vmem:[%s10747_s0 + $0xa0] sm:$0xff] }
 0x16b   :  { %v92_v34 = vsel %vm11995_vm4, %v11994_v12, %v54_v3  ;;  %vm1825_vm7 = vcmp.le.f32.partialorder %v1793_v20, 2.0  ;;  %vm1826_vm6 = vcmp.le.f32.partialorder %v1794_v46, 2.0  ;;  %v3690_v60 = vunpack.i.h.bf16 %v7694_v4  ;;  %v7717_v46 = vld [vmem:[%s10747_s0 + $0x90] sm:$0xff]  ;;  %12014 = vst [vmem:[#allocation20_spill] sm:$0xff] %v7788_v22 }
 0x16c   :  { %v121_v6 = vsub.f32 %v92_v34, %v7559_v31  ;;  %vm1889_vm5 = vmand %vm1825_vm7, %vm1857_vm11  ;;  %v3689_v1 = vunpack.i.l.bf16 %v7694_v4  ;;  %v281_v20 = vrot.slane %v11960_v41, 7  ;;  %v378_v56 = vand.u32 2147483647, %v122_v16  ;;  %v12002_v31 = vld [vmem:[#allocation41_spill] sm:$0xff] }
 0x16d   :  { %vm1890_vm12 = vmand %vm1826_vm6, %vm1858_vm3  ;;  %v1921_v3 = vsel %vm1889_vm5, 0.0, %v11305_v5  ;;  %v2116_v49 = vsub.f32 %v7677_v32, %v7717_v46  ;;  %v2117_v4 = vsub.f32 %v7649_v43, %v7724_v33  ;;  %vm12008_vm6 = vcmp.lt.s32.totalorder %v4427_v17, 6 }
 0x16e   :  { %v377_v12 = vand.u32 2147483647, %v121_v6  ;;  %v1922_v54 = vsel %vm1890_vm12, 0.0, %v11305_v5  ;;  %v315_v34 = vsel %vm11998_vm1, %v281_v20, %v11030_v51  ;;  %v316_v32 = vsel %vm11999_vm8, %v11034_v7, %v281_v20  ;;  %v7754_v20 = vld [vmem:[%s10747_s0 + $0xa8] sm:$0xff]  ;;  %vm12011_vm12 = vmmov %vm12008_vm6 }
 0x16f   :  { %v3851_v13 = vpack.i.bf16 %v1922_v54, %v1921_v3  ;;  %vm7740_vm0 = vcmp.le.f32.partialorder %v378_v56, 2.0  ;;  %v345_v3 = vsub.f32 %v316_v32, %v11960_v41  ;;  %v2148_v54 = vsub.f32 %v11990_v14, %v11987_v37  ;;  %v12003_v32 = vld [vmem:[#allocation89_spill] sm:$0xff]  ;;  %vm12016_vm8 = vmmov %vm12008_vm6  ;;  %v7872_v14 = vpop.permute.xlu1 %3697 }
 0x170   :  { %vm7728_vm9 = vcmp.le.f32.partialorder %v377_v12, 2.0  ;;  %v346_v12 = vsub.f32 %v315_v34, %v11971_v35  ;;  %v2149_v51 = vsub.f32 %v11979_v10, %v12002_v31  ;;  %v2212_v2 = vand.u32 2147483647, %v2116_v49  ;;  %v12006_v49 = vld [vmem:[#allocation17_spill] sm:$0xff] }
 0x171   :  { %3852 = vrot.lane.b32.xlu0 %v3851_v13, %s4304_s18  ;;  %v2213_v28 = vand.u32 2147483647, %v2117_v4  ;;  %v1605_v56 = vrot.slane %v7754_v20, 2  ;;  %vm441_vm2 = vcmp.eq.f32.partialorder %v345_v3, %v121_v6  ;;  %vm2180_vm10 = vcmp.eq.f32.partialorder %v2148_v54, 0.0  ;;  %v7824_v13 = vld [vmem:[%s10747_s0 + $0xb8] sm:$0xff] }
 0x172   :  { %vm442_vm13 = vcmp.eq.f32.partialorder %v346_v12, %v122_v16  ;;  %v1702_v34 = vrot.slane %v12003_v32, 2  ;;  %vm473_vm4 = vmand %vm7728_vm9, %vm441_vm2  ;;  %vm7760_vm7 = vcmp.eq.f32.partialorder %v2149_v51, 0.0  ;;  %vm2244_vm11 = vcmp.le.f32.partialorder %v2212_v2, 32.0  ;;  %v12009_v16 = vld [vmem:[#allocation15_spill] sm:$0xff] }
 0x173   :  { %vm2245_vm3 = vcmp.le.f32.partialorder %v2213_v28, 32.0  ;;  %v12007_v4 = vrot.slane %v12006_v49, 2  ;;  %vm474_vm5 = vmand %vm7740_vm0, %vm442_vm13  ;;  %v505_v6 = vsel %vm473_vm4, 0.0, %v11305_v5  ;;  %v12010_v3 = vrot.slane %v12009_v16, 2 }
 0x174   :  { %v12012_v2 = vrot.slane %v11771_v36, 2  ;;  %vm12013_vm9 = vmmov %vm12008_vm6  ;;  %v506_v54 = vsel %vm474_vm5, 0.0, %v11305_v5  ;;  %538 = vst.msk [vmem:[%s10748_s1 + $0x70] sm:$0xff] %vm523_vm14, %v505_v6  ;;  %v285_v35 = vrot.slane %v11987_v37, 7 }
 0x175   :  { %v1626_v7 = vsel %vm12008_vm6, %v1605_v56, %v12007_v4  ;;  %v1627_v51 = vsel %vm12011_vm12, %v12010_v3, %v1605_v56  ;;  %vm2276_vm1 = vmand %vm2180_vm10, %vm2244_vm11  ;;  %v12015_v56 = vrot.slane %v11762_v57, 2  ;;  %539 = vst.msk [vmem:[%s10748_s1 + $0x78] sm:$0xff] %vm523_vm14, %v506_v54  ;;  %v7812_v3 = vld [vmem:[%s10747_s0 + $0xb0] sm:$0xff]  ;;  %v2152_v54 = vsub.f32 %v11762_v57, %v11771_v36 }
 0x176   :  { %v1670_v59 = vsub.f32 %v1626_v7, %v7754_v20  ;;  %v1722_v12 = vsel %vm12013_vm9, %v1702_v34, %v12012_v2  ;;  %v1669_v7 = vsub.f32 %v1627_v51, %v7788_v22  ;;  %1052 = vst.msk [vmem:[%s10748_s1 + $0x70] sm:$0xff] %vm1037_vm15, %v3689_v1  ;;  %vm2277_vm0 = vmand %vm7760_vm7, %vm2245_vm3  ;;  %v2308_v6 = vsel %vm2276_vm1, 0.0, %v11305_v5 }
 0x177   :  { %v1723_v49 = vsel %vm12016_vm8, %v12015_v56, %v1702_v34  ;;  %v1766_v4 = vsub.f32 %v1722_v12, %v12003_v32  ;;  %v2120_v51 = vsub.f32 %v7788_v22, %v7812_v3  ;;  %1053 = vst.msk [vmem:[%s10748_s1 + $0x78] sm:$0xff] %vm1037_vm15, %v3690_v60  ;;  %v2309_v28 = vsel %vm2277_vm0, 0.0, %v11305_v5  ;;  %vm12018_vm1 = vmmov %vm12016_vm8 }
 0x178   :  { %v1765_v34 = vsub.f32 %v1723_v49, %v11762_v57  ;;  %v1798_v16 = vand.u32 2147483647, %v1670_v59  ;;  %v1797_v1 = vand.u32 2147483647, %v1669_v7  ;;  %v2121_v2 = vsub.f32 %v7754_v20, %v7824_v13  ;;  %vm12021_vm8 = vmmov %vm12018_vm1 }
 0x179   :  { %vm1862_vm2 = vcmp.eq.f32.partialorder %v1766_v4, %v1670_v59  ;;  %v3936_v12 = vpack.i.bf16 %v2309_v28, %v2308_v6  ;;  %v2153_v60 = vsub.f32 %v12003_v32, %v11791_v58  ;;  %v2216_v59 = vand.u32 2147483647, %v2120_v51  ;;  %vm12023_vm0 = vmmov %vm12018_vm1 }
 0x17a   :  { %vm1830_vm13 = vcmp.le.f32.partialorder %v1798_v16, 2.0  ;;  %vm1861_vm10 = vcmp.eq.f32.partialorder %v1765_v34, %v1669_v7  ;;  %vm1829_vm4 = vcmp.le.f32.partialorder %v1797_v1, 2.0  ;;  %v2217_v56 = vand.u32 2147483647, %v2121_v2  ;;  %v7837_v7 = vld [vmem:[%s10747_s0 + $0xc8] sm:$0xff]  ;;  %v12019_v1 = vld [vmem:[#allocation21_spill] sm:$0xff] }
 0x17b   :  { %vm1894_vm7 = vmand %vm1830_vm13, %vm1862_vm2  ;;  %3937 = vrot.lane.b32.xlu1 %v3936_v12, %s4305_s21  ;;  %vm2184_vm3 = vcmp.eq.f32.partialorder %v2152_v54, 0.0  ;;  %v1609_v4 = vrot.slane %v7837_v7, 2  ;;  %v1706_v6 = vrot.slane %v11800_v26, 2  ;;  %vm2185_vm6 = vcmp.eq.f32.partialorder %v2153_v60, 0.0 }
 0x17c   :  { %vm1893_vm11 = vmand %vm1829_vm4, %vm1861_vm10  ;;  %v1926_v49 = vsel %vm1894_vm7, 0.0, %v11305_v5  ;;  %vm2248_vm5 = vcmp.le.f32.partialorder %v2216_v59, 32.0  ;;  %vm2249_vm12 = vcmp.le.f32.partialorder %v2217_v56, 32.0  ;;  %v12017_v51 = vrot.slane %v11828_v11, 2  ;;  %v7858_v11 = vld [vmem:[%s10747_s0 + $0xc0] sm:$0xff] }
 0x17d   :  { %v1925_v34 = vsel %vm1893_vm11, 0.0, %v11305_v5  ;;  %vm2280_vm9 = vmand %vm2184_vm3, %vm2248_vm5  ;;  %v12020_v2 = vrot.slane %v12019_v1, 2  ;;  %v12022_v54 = vrot.slane %v6026_v19, 2  ;;  %vm12030_vm3 = vcmp.lt.s32.totalorder %v4427_v17, 1 }
 0x17e   :  { %v3861_v16 = vpack.i.bf16 %v1926_v49, %v1925_v34  ;;  %v1622_v28 = vsel %vm12018_vm1, %v1609_v4, %v12017_v51  ;;  %vm2281_vm2 = vmand %vm2185_vm6, %vm2249_vm12  ;;  %v2312_v60 = vsel %vm2280_vm9, 0.0, %v11305_v5  ;;  %v12024_v49 = vrot.slane %v11792_v47, 2 }
 0x17f   :  { %v1623_v12 = vsel %vm12021_vm8, %v12020_v2, %v1609_v4  ;;  %v1718_v57 = vsel %vm12023_vm0, %v1706_v6, %v12022_v54  ;;  %v1674_v56 = vsub.f32 %v1622_v28, %v7837_v7  ;;  %vm12025_vm13 = vmmov %vm12023_vm0  ;;  %v2313_v34 = vsel %vm2281_vm2, 0.0, %v11305_v5 }
 0x180   :  { %v1673_v59 = vsub.f32 %v1623_v12, %v7858_v11  ;;  %v1719_v4 = vsel %vm12025_vm13, %v12024_v49, %v1706_v6  ;;  %3862 = vrot.lane.b32.xlu0 %v3861_v16, %s4304_s18  ;;  %v1770_v1 = vsub.f32 %v1718_v57, %v11800_v26  ;;  %v11040_v2 = vrot.slane %v7649_v43, 7  ;;  %vm12031_vm5 = vmmov %vm12030_vm3 }
 0x181   :  { %v1769_v51 = vsub.f32 %v1719_v4, %v11792_v47  ;;  %v3946_v54 = vpack.i.bf16 %v2313_v34, %v2312_v60  ;;  %v1802_v12 = vand.u32 2147483647, %v1674_v56  ;;  %v58_v28 = vrot.slane %v7717_v46, 7  ;;  %vm12032_vm9 = vmmov %vm12030_vm3 }
 0x182   :  { %v1801_v22 = vand.u32 2147483647, %v1673_v59  ;;  %vm7878_vm4 = vcmp.eq.f32.partialorder %v1770_v1, %v1674_v56  ;;  %v11039_v16 = vrot.slane %v7724_v33, 7  ;;  %v11048_v57 = vrot.slane %v11979_v10, 7  ;;  %vm12033_vm1 = vmmov %vm12030_vm3 }
 0x183   :  { %vm7874_vm10 = vcmp.eq.f32.partialorder %v1769_v51, %v1673_v59  ;;  %3947 = vrot.lane.b32.xlu1 %v3946_v54, %s4305_s21  ;;  %vm1834_vm11 = vcmp.le.f32.partialorder %v1802_v12, 2.0  ;;  %v88_v60 = vsel %vm12030_vm3, %v11040_v2, %v58_v28  ;;  %v11041_v59 = vrot.slane %v12002_v31, 7 }
 0x184   :  { %vm1833_vm7 = vcmp.le.f32.partialorder %v1801_v22, 2.0  ;;  %v87_v56 = vsel %vm12031_vm5, %v58_v28, %v11039_v16  ;;  %v125_v49 = vsub.f32 %v88_v60, %v7717_v46  ;;  %v3700_v22 = vunpack.i.h.bf16 %v7872_v14  ;;  %vm1898_vm12 = vmand %vm1834_vm11, %vm7878_vm4 }
 0x185   :  { %vm1897_vm6 = vmand %vm1833_vm7, %vm7874_vm10  ;;  %v3699_v4 = vunpack.i.l.bf16 %v7872_v14  ;;  %v126_v51 = vsub.f32 %v87_v56, %v7724_v33  ;;  %v2124_v1 = vsub.f32 %v7858_v11, %v7078_v25  ;;  %v1930_v54 = vsel %vm1898_vm12, 0.0, %v11305_v5 }
 0x186   :  { %v1929_v34 = vsel %vm1897_vm6, 0.0, %v11305_v5  ;;  %v381_v12 = vand.u32 2147483647, %v125_v49  ;;  %v2125_v28 = vsub.f32 %v7837_v7, %v7016_v63  ;;  %v2156_v14 = vsub.f32 %v11792_v47, %v6026_v19 }
 0x187   :  { %v3871_v6 = vpack.i.bf16 %v1930_v54, %v1929_v34  ;;  %v382_v60 = vand.u32 2147483647, %v126_v51  ;;  %v311_v56 = vsel %vm12032_vm9, %v285_v35, %v11041_v59  ;;  %v312_v25 = vsel %vm12033_vm1, %v11048_v57, %v285_v35 }
 0x188   :  { %vm7919_vm8 = vcmp.le.f32.partialorder %v381_v12, 2.0  ;;  %v349_v63 = vsub.f32 %v312_v25, %v11987_v37  ;;  %v350_v2 = vsub.f32 %v311_v56, %v12002_v31  ;;  %v2157_v34 = vsub.f32 %v11800_v26, %v11833_v50 }
 0x189   :  { %3872 = vrot.lane.b32.xlu0 %v3871_v6, %s4304_s18  ;;  %vm7928_vm0 = vcmp.le.f32.partialorder %v382_v60, 2.0  ;;  %vm7932_vm2 = vcmp.eq.f32.partialorder %v2156_v14, 0.0  ;;  %v2220_v35 = vand.u32 2147483647, %v2124_v1  ;;  %v2221_v12 = vand.u32 2147483647, %v2125_v28 }
 0x18a   :  { %vm445_vm13 = vcmp.eq.f32.partialorder %v349_v63, %v125_v49  ;;  %vm446_vm10 = vcmp.eq.f32.partialorder %v350_v2, %v126_v51  ;;  %vm7936_vm4 = vcmp.eq.f32.partialorder %v2157_v34, 0.0  ;;  %v1613_v56 = vrot.slane %v7107_v40, 2 }
 0x18b   :  { %vm477_vm7 = vmand %vm7919_vm8, %vm445_vm13  ;;  %vm2252_vm11 = vcmp.le.f32.partialorder %v2220_v35, 32.0  ;;  %vm2253_vm3 = vcmp.le.f32.partialorder %v2221_v12, 32.0  ;;  %v1710_v14 = vrot.slane %v11839_v45, 2  ;;  %v2128_v6 = vsub.f32 %v7038_v23, %v7160_v18 }
 0x18c   :  { %vm478_vm6 = vmand %vm7928_vm0, %vm446_vm10  ;;  %v509_v2 = vsel %vm477_vm7, 0.0, %v11305_v5  ;;  %v12042_v49 = vrot.slane %v7160_v18, 2  ;;  %vm12043_vm5 = vcmp.lt.s32.totalorder %v4427_v17, 6  ;;  %v12044_v16 = vrot.slane %v7038_v23, 2 }
 0x18d   :  { %vm12045_vm12 = vmmov %vm12043_vm5  ;;  %v2129_v28 = vsub.f32 %v7107_v40, %v7186_v39  ;;  %v510_v60 = vsel %vm478_vm6, 0.0, %v11305_v5  ;;  %542 = vst.msk [vmem:[%s10748_s1 + $0x90] sm:$0xff] %vm523_vm14, %v509_v2  ;;  %v12046_v54 = vrot.slane %v11851_v29, 2  ;;  %v2160_v2 = vsub.f32 %v6121_v44, %v11851_v29 }
 0x18e   :  { %v1618_v51 = vsel %vm12043_vm5, %v1613_v56, %v12042_v49  ;;  %v1619_v1 = vsel %vm12045_vm12, %v12044_v16, %v1613_v56  ;;  %vm2284_vm9 = vmand %vm7932_vm2, %vm2252_vm11  ;;  %543 = vst.msk [vmem:[%s10748_s1 + $0x98] sm:$0xff] %vm523_vm14, %v510_v60  ;;  %v2224_v60 = vand.u32 2147483647, %v2128_v6  ;;  %v8026_v6 = vld [vmem:[%s10747_s0 + $0x8] sm:$0xff]  ;;  %v11047_v16 = vrot.slane %v7754_v20, 7 }
 0x18f   :  { %v1677_v63 = vsub.f32 %v1619_v1, %v7038_v23  ;;  %v1678_v34 = vsub.f32 %v1618_v51, %v7107_v40  ;;  %vm12047_vm1 = vmmov %vm12043_vm5  ;;  %1056 = vst.msk [vmem:[%s10748_s1 + $0x90] sm:$0xff] %vm1037_vm15, %v3699_v4  ;;  %v2316_v23 = vsel %vm2284_vm9, 0.0, %v11305_v5  ;;  %v12048_v40 = vrot.slane %v6121_v44, 2 }
 0x190   :  { %v1714_v35 = vsel %vm12047_vm1, %v1710_v14, %v12046_v54  ;;  %vm2285_vm8 = vmand %vm7936_vm4, %vm2253_vm3  ;;  %1057 = vst.msk [vmem:[%s10748_s1 + $0x98] sm:$0xff] %vm1037_vm15, %v3700_v22  ;;  %vm8003_vm13 = vcmp.eq.f32.partialorder %v2160_v2, 0.0  ;;  %v2225_v54 = vand.u32 2147483647, %v2129_v28  ;;  %vm2256_vm5 = vcmp.le.f32.partialorder %v2224_v60, 32.0 }
 0x191   :  { %vm12049_vm0 = vmmov %vm12047_vm1  ;;  %v1774_v56 = vsub.f32 %v1714_v35, %v11839_v45  ;;  %v2317_v4 = vsel %vm2285_vm8, 0.0, %v11305_v5  ;;  %v1805_v25 = vand.u32 2147483647, %v1677_v63  ;;  %v1806_v49 = vand.u32 2147483647, %v1678_v34  ;;  %v8019_v35 = vld [vmem:[%s10747_s0] sm:$0xff] }
 0x192   :  { %v1715_v59 = vsel %vm12049_vm0, %v12048_v40, %v1710_v14  ;;  %v3956_v51 = vpack.i.bf16 %v2317_v4, %v2316_v23  ;;  %v2161_v14 = vsub.f32 %v11839_v45, %v11872_v27  ;;  %v2098_v23 = vsub.f32 %v7160_v18, %v8019_v35  ;;  %vm2288_vm9 = vmand %vm8003_vm13, %vm2256_vm5 }
 0x193   :  { %v1773_v12 = vsub.f32 %v1715_v59, %v6121_v44  ;;  %vm7997_vm2 = vcmp.eq.f32.partialorder %v1774_v56, %v1678_v34  ;;  %vm1837_vm10 = vcmp.le.f32.partialorder %v1805_v25, 2.0  ;;  %vm8007_vm4 = vcmp.le.f32.partialorder %v1806_v49, 2.0  ;;  %v8045_v49 = vpop.permute.xlu1 %3707 }
 0x194   :  { %3957 = vrot.lane.b32.xlu1 %v3956_v51, %s4305_s21  ;;  %vm8012_vm3 = vcmp.eq.f32.partialorder %v2161_v14, 0.0  ;;  %vm1902_vm6 = vmand %vm8007_vm4, %vm7997_vm2  ;;  %v2130_v40 = vsub.f32 %v11851_v29, %v11876_v38  ;;  %v2131_v59 = vsub.f32 %v11872_v27, %v11818_v15  ;;  %vm2257_vm12 = vcmp.le.f32.partialorder %v2225_v54, 32.0 }
 0x195   :  { %vm1869_vm7 = vcmp.eq.f32.partialorder %v1773_v12, %v1677_v63  ;;  %v2099_v63 = vsub.f32 %v7186_v39, %v8026_v6  ;;  %v1934_v56 = vsel %vm1902_vm6, 0.0, %v11305_v5  ;;  %v2194_v2 = vand.u32 2147483647, %v2098_v23  ;;  %vm2289_vm1 = vmand %vm8012_vm3, %vm2257_vm12 }
 0x196   :  { %vm1901_vm11 = vmand %vm1837_vm10, %vm1869_vm7  ;;  %v2320_v25 = vsel %vm2288_vm9, 0.0, %v11305_v5  ;;  %vm2162_vm8 = vcmp.eq.f32.partialorder %v2130_v40, 0.0  ;;  %vm2163_vm0 = vcmp.eq.f32.partialorder %v2131_v59, 0.0  ;;  %v2321_v51 = vsel %vm2289_vm1, 0.0, %v11305_v5 }
 0x197   :  { %v1933_v28 = vsel %vm1901_vm11, 0.0, %v11305_v5  ;;  %v2195_v4 = vand.u32 2147483647, %v2099_v63  ;;  %vm2226_vm2 = vcmp.le.f32.partialorder %v2194_v2, 32.0  ;;  %v3966_v14 = vpack.i.bf16 %v2321_v51, %v2320_v25  ;;  %v8073_v25 = vld [vmem:[%s10747_s0 + $0x10] sm:$0xff] }
 0x198   :  { %v3881_v12 = vpack.i.bf16 %v1934_v56, %v1933_v28  ;;  %vm2258_vm13 = vmand %vm2162_vm8, %vm2226_vm2  ;;  %v62_v1 = vrot.slane %v7812_v3, 7  ;;  %v11043_v22 = vrot.slane %v7824_v13, 7  ;;  %v11044_v60 = vrot.slane %v12003_v32, 7  ;;  %12060 = vst [vmem:[#allocation57_spill] sm:$0xff] %v8073_v25 }
 0x199   :  { %vm2227_vm10 = vcmp.le.f32.partialorder %v2195_v4, 32.0  ;;  %v2290_v34 = vsel %vm2258_vm13, 0.0, %v11305_v5  ;;  %v11042_v54 = vrot.slane %v11791_v58, 7  ;;  %v3710_v23 = vunpack.i.h.bf16 %v8045_v49  ;;  %3967 = vrot.lane.b32.xlu1 %v3966_v14, %s4305_s21 }
 0x19a   :  { %3882 = vrot.lane.b32.xlu0 %v3881_v12, %s4304_s18  ;;  %vm2259_vm4 = vmand %vm2163_vm0, %vm2227_vm10  ;;  %v3709_v63 = vunpack.i.l.bf16 %v8045_v49  ;;  %vm12058_vm7 = vcmp.lt.s32.totalorder %v4427_v17, 1  ;;  %v289_v56 = vrot.slane %v11771_v36, 7  ;;  %v2485_v49 = vsub.f32 %v7160_v18, %v8073_v25 }
 0x19b   :  { %v2291_v28 = vsel %vm2259_vm4, 0.0, %v11305_v5  ;;  %v83_v40 = vsel %vm12058_vm7, %v62_v1, %v11043_v22  ;;  %vm12059_vm11 = vmmov %vm12058_vm7  ;;  %v2517_v18 = vsub.f32 %v11851_v29, %v5226_v8 }
 0x19c   :  { %v84_v59 = vsel %vm12059_vm11, %v11047_v16, %v62_v1  ;;  %v3891_v2 = vpack.i.bf16 %v2291_v28, %v2290_v34  ;;  %v130_v12 = vsub.f32 %v83_v40, %v7824_v13  ;;  %vm12061_vm3 = vmmov %vm12058_vm7  ;;  %v8088_v1 = vld [vmem:[%s10747_s0 + $0x18] sm:$0xff] }
 0x19d   :  { %v129_v4 = vsub.f32 %v84_v59, %v7812_v3  ;;  %v307_v51 = vsel %vm12061_vm3, %v289_v56, %v11042_v54  ;;  %vm12062_vm6 = vmmov %vm12061_vm3  ;;  %12063 = vst [vmem:[#allocation19_spill] sm:$0xff] %v8088_v1  ;;  %v2486_v34 = vsub.f32 %v7186_v39, %v8088_v1  ;;  %vm8099_vm5 = vcmp.eq.f32.partialorder %v2517_v18, 0.0 }
 0x19e   :  { %v308_v14 = vsel %vm12062_vm6, %v11044_v60, %v289_v56  ;;  %3892 = vrot.lane.b32.xlu0 %v3891_v2, %s4305_s21  ;;  %v386_v40 = vand.u32 2147483647, %v130_v12  ;;  %v354_v54 = vsub.f32 %v307_v51, %v11791_v58  ;;  %v2518_v56 = vsub.f32 %v11872_v27, %v5271_v52 }
 0x19f   :  { %v385_v28 = vand.u32 2147483647, %v129_v4  ;;  %v353_v59 = vsub.f32 %v308_v14, %v11771_v36  ;;  %v2581_v60 = vand.u32 2147483647, %v2485_v49  ;;  %v2582_v39 = vand.u32 2147483647, %v2486_v34 }
 0x1a0   :  { %vm418_vm9 = vcmp.le.f32.partialorder %v386_v40, 2.0  ;;  %vm450_vm8 = vcmp.eq.f32.partialorder %v354_v54, %v130_v12  ;;  %vm8103_vm2 = vcmp.eq.f32.partialorder %v2518_v56, 0.0  ;;  %v2102_v51 = vsub.f32 %v8073_v25, %v7360_v30 }
 0x1a1   :  { %vm417_vm12 = vcmp.le.f32.partialorder %v385_v28, 2.0  ;;  %vm449_vm1 = vcmp.eq.f32.partialorder %v353_v59, %v129_v4  ;;  %vm2613_vm10 = vcmp.le.f32.partialorder %v2581_v60, 32.0  ;;  %vm2614_vm13 = vcmp.le.f32.partialorder %v2582_v39, 32.0  ;;  %vm482_vm4 = vmand %vm418_vm9, %vm450_vm8 }
 0x1a2   :  { %vm481_vm0 = vmand %vm417_vm12, %vm449_vm1  ;;  %v2103_v49 = vsub.f32 %v8088_v1, %v7352_v48  ;;  %v2134_v4 = vsub.f32 %v5226_v8, %v11912_v21  ;;  %v2135_v54 = vsub.f32 %v5271_v52, %v11894_v0  ;;  %v514_v12 = vsel %vm482_vm4, 0.0, %v11305_v5 }
 0x1a3   :  { %v513_v14 = vsel %vm481_vm0, 0.0, %v11305_v5  ;;  %vm2645_vm7 = vmand %vm8099_vm5, %vm2613_vm10  ;;  %v2198_v30 = vand.u32 2147483647, %v2102_v51  ;;  %v2489_v48 = vsub.f32 %v8073_v25, %v7277_v53  ;;  %v2490_v60 = vsub.f32 %v8088_v1, %v7283_v24  ;;  %547 = vst.msk [vmem:[%s10748_s1 + $0xb8] sm:$0xff] %vm523_vm14, %v514_v12  ;;  %v12087_v25 = vld [vmem:[#allocation52_spill] sm:$0xff] }
 0x1a4   :  { %546 = vst.msk [vmem:[%s10748_s1 + $0xb0] sm:$0xff] %vm523_vm14, %v513_v14  ;;  %vm2646_vm11 = vmand %vm8103_vm2, %vm2614_vm13  ;;  %v2677_v22 = vsel %vm2645_vm7, 0.0, %v11305_v5  ;;  %vm2166_vm3 = vcmp.eq.f32.partialorder %v2134_v4, 0.0  ;;  %vm2167_vm6 = vcmp.eq.f32.partialorder %v2135_v54, 0.0  ;;  %v2199_v34 = vand.u32 2147483647, %v2103_v49 }
 0x1a5   :  { %1060 = vst.msk [vmem:[%s10748_s1 + $0xb0] sm:$0xff] %vm1037_vm15, %v3709_v63  ;;  %1061 = vst.msk [vmem:[%s10748_s1 + $0xb8] sm:$0xff] %vm1037_vm15, %v3710_v23  ;;  %v2678_v18 = vsel %vm2646_vm11, 0.0, %v11305_v5  ;;  %vm2230_vm5 = vcmp.le.f32.partialorder %v2198_v30, 32.0  ;;  %v2521_v63 = vsub.f32 %v5226_v8, %v11896_v42  ;;  %v2522_v28 = vsub.f32 %v5271_v52, %v11895_v61  ;;  %v12068_v4 = vld [vmem:[#allocation25_spill] sm:$0xff] }
 0x1a6   :  { %v3976_v40 = vpack.i.bf16 %v2678_v18, %v2677_v22  ;;  %vm2231_vm12 = vcmp.le.f32.partialorder %v2199_v34, 32.0  ;;  %vm2262_vm9 = vmand %vm2166_vm3, %vm2230_vm5  ;;  %v2585_v59 = vand.u32 2147483647, %v2489_v48  ;;  %v2586_v56 = vand.u32 2147483647, %v2490_v60  ;;  %v8164_v48 = vld [vmem:[%s10747_s0 + $0xd0] sm:$0xff]  ;;  %v8169_v22 = vpop.permute.xlu1 %3717 }
 0x1a7   :  { %vm2263_vm1 = vmand %vm2167_vm6, %vm2231_vm12  ;;  %v2294_v39 = vsel %vm2262_vm9, 0.0, %v11305_v5  ;;  %vm2553_vm8 = vcmp.eq.f32.partialorder %v2521_v63, 0.0  ;;  %vm2554_vm0 = vcmp.eq.f32.partialorder %v2522_v28, 0.0  ;;  %v2106_v23 = vsub.f32 %v7277_v53, %v7478_v9  ;;  %v8174_v18 = vld [vmem:[%s10747_s0 + $0xd8] sm:$0xff] }
 0x1a8   :  { %3977 = vrot.lane.b32.xlu1 %v3976_v40, %s4306_s19  ;;  %v2295_v2 = vsel %vm2263_vm1, 0.0, %v11305_v5  ;;  %vm2617_vm2 = vcmp.le.f32.partialorder %v2585_v59, 32.0  ;;  %vm2618_vm10 = vcmp.le.f32.partialorder %v2586_v56, 32.0  ;;  %v2107_v51 = vsub.f32 %v7283_v24, %v7434_v55 }
 0x1a9   :  { %v3901_v14 = vpack.i.bf16 %v2295_v2, %v2294_v39  ;;  %vm2649_vm13 = vmand %vm2553_vm8, %vm2617_vm2  ;;  %v2138_v49 = vsub.f32 %v11896_v42, %v11934_v62  ;;  %v2139_v54 = vsub.f32 %v11895_v61, %v12068_v4  ;;  %v2202_v12 = vand.u32 2147483647, %v2106_v23 }
 0x1aa   :  { %vm2650_vm4 = vmand %vm2554_vm0, %vm2618_vm10  ;;  %v2681_v53 = vsel %vm2649_vm13, 0.0, %v11305_v5  ;;  %v2203_v9 = vand.u32 2147483647, %v2107_v51  ;;  %v11046_v30 = vrot.slane %v7837_v7, 7  ;;  %v66_v24 = vrot.slane %v8164_v48, 7 }
 0x1ab   :  { %3902 = vrot.lane.b32.xlu0 %v3901_v14, %s4305_s21  ;;  %v2682_v60 = vsel %vm2650_vm4, 0.0, %v11305_v5  ;;  %vm2170_vm7 = vcmp.eq.f32.partialorder %v2138_v49, 0.0  ;;  %vm2171_vm11 = vcmp.eq.f32.partialorder %v2139_v54, 0.0  ;;  %vm2234_vm3 = vcmp.le.f32.partialorder %v2202_v12, 32.0 }
 0x1ac   :  { %v3986_v34 = vpack.i.bf16 %v2682_v60, %v2681_v53  ;;  %vm2235_vm6 = vcmp.le.f32.partialorder %v2203_v9, 32.0  ;;  %vm2266_vm5 = vmand %vm2170_vm7, %vm2234_vm3  ;;  %v11045_v63 = vrot.slane %v8174_v18, 7  ;;  %vm12069_vm12 = vcmp.lt.s32.totalorder %v4427_v17, 1  ;;  %v8198_v9 = vld [vmem:[%s10747_s0 + $0x30] sm:$0xff]  ;;  %v12072_v60 = vld [vmem:[#allocation47_spill] sm:$0xff] }
 0x1ad   :  { %v80_v28 = vsel %vm12069_vm12, %v11046_v30, %v66_v24  ;;  %vm2267_vm9 = vmand %vm2171_vm11, %vm2235_vm6  ;;  %v2298_v40 = vsel %vm2266_vm5, 0.0, %v11305_v5  ;;  %v11057_v56 = vrot.slane %v11800_v26, 7  ;;  %v11054_v39 = vrot.slane %v11833_v50, 7  ;;  %12071 = vst [vmem:[#allocation27_spill] sm:$0xff] %v8198_v9 }
 0x1ae   :  { %v133_v59 = vsub.f32 %v80_v28, %v8164_v48  ;;  %3987 = vrot.lane.b32.xlu1 %v3986_v34, %s4306_s19  ;;  %v2299_v23 = vsel %vm2267_vm9, 0.0, %v11305_v5  ;;  %vm12070_vm1 = vmmov %vm12069_vm12  ;;  %v3720_v51 = vunpack.i.h.bf16 %v8169_v22  ;;  %v3719_v14 = vunpack.i.l.bf16 %v8169_v22  ;;  %v12074_v22 = vld [vmem:[#allocation50_spill] sm:$0xff] }
 0x1af   :  { %v79_v2 = vsel %vm12070_vm1, %v66_v24, %v11045_v63  ;;  %v3911_v49 = vpack.i.bf16 %v2299_v23, %v2298_v40  ;;  %v293_v53 = vrot.slane %v6026_v19, 7  ;;  %v2493_v34 = vsub.f32 %v8198_v9, %v12072_v60  ;;  %v8205_v24 = vld [vmem:[%s10747_s0 + $0x38] sm:$0xff]  ;;  %v12075_v40 = vld [vmem:[#allocation86_spill] sm:$0xff]  ;;  %vm12079_vm0 = vmmov %vm12070_vm1 }
 0x1b0   :  { %v134_v54 = vsub.f32 %v79_v2, %v8174_v18  ;;  %v389_v12 = vand.u32 2147483647, %v133_v59  ;;  %12073 = vst [vmem:[#allocation58_spill] sm:$0xff] %v8205_v24  ;;  %v2494_v28 = vsub.f32 %v8205_v24, %v12074_v22  ;;  %v2525_v23 = vsub.f32 %v11896_v42, %v12075_v40  ;;  %v12076_v2 = vld [vmem:[#allocation30_spill] sm:$0xff]  ;;  %vm12080_vm2 = vmmov %vm12079_vm0 }
 0x1b1   :  { %v2526_v63 = vsub.f32 %v11895_v61, %v12076_v2  ;;  %3912 = vrot.lane.b32.xlu0 %v3911_v49, %s4305_s21  ;;  %v303_v57 = vsel %vm12079_vm0, %v293_v53, %v11054_v39  ;;  %v304_v42 = vsel %vm12080_vm2, %v11057_v56, %v293_v53  ;;  %v2589_v39 = vand.u32 2147483647, %v2493_v34 }
 0x1b2   :  { %v390_v30 = vand.u32 2147483647, %v134_v54  ;;  %vm8214_vm8 = vcmp.le.f32.partialorder %v389_v12, 2.0  ;;  %v357_v24 = vsub.f32 %v304_v42, %v6026_v19  ;;  %v358_v9 = vsub.f32 %v303_v57, %v11833_v50  ;;  %v12088_v42 = vld [vmem:[#allocation51_spill] sm:$0xff] }
 0x1b3   :  { %vm8228_vm10 = vcmp.eq.f32.partialorder %v2525_v23, 0.0  ;;  %vm8232_vm13 = vcmp.eq.f32.partialorder %v2526_v63, 0.0  ;;  %v2590_v1 = vand.u32 2147483647, %v2494_v28  ;;  %v2110_v53 = vsub.f32 %v12072_v60, %v12087_v25  ;;  %v12089_v23 = vld [vmem:[#allocation32_spill] sm:$0xff] }
 0x1b4   :  { %vm8236_vm4 = vcmp.le.f32.partialorder %v390_v30, 2.0  ;;  %vm453_vm7 = vcmp.eq.f32.partialorder %v357_v24, %v133_v59  ;;  %vm454_vm11 = vcmp.eq.f32.partialorder %v358_v9, %v134_v54  ;;  %v2111_v57 = vsub.f32 %v12074_v22, %v12088_v42  ;;  %v12090_v30 = vld [vmem:[#allocation34_spill] sm:$0xff]  ;;  %v12093_v9 = vld [vmem:[#allocation53_spill] sm:$0xff] }
 0x1b5   :  { %v2142_v63 = vsub.f32 %v12075_v40, %v12089_v23  ;;  %vm485_vm3 = vmand %vm8214_vm8, %vm453_vm7  ;;  %vm2621_vm6 = vcmp.le.f32.partialorder %v2589_v39, 32.0  ;;  %vm2622_vm5 = vcmp.le.f32.partialorder %v2590_v1, 32.0  ;;  %v2143_v34 = vsub.f32 %v12076_v2, %v12090_v30  ;;  %v12096_v24 = vld [vmem:[#allocation54_spill] sm:$0xff] }
 0x1b6   :  { %v2206_v28 = vand.u32 2147483647, %v2110_v53  ;;  %vm486_vm12 = vmand %vm8236_vm4, %vm454_vm11  ;;  %v517_v25 = vsel %vm485_vm3, 0.0, %v11305_v5  ;;  %v2207_v54 = vand.u32 2147483647, %v2111_v57  ;;  %v2497_v16 = vsub.f32 %v12072_v60, %v12093_v9  ;;  %v12097_v57 = vld [vmem:[#allocation37_spill] sm:$0xff] }
 0x1b7   :  { %vm8253_vm9 = vcmp.eq.f32.partialorder %v2142_v63, 0.0  ;;  %v518_v39 = vsel %vm486_vm12, 0.0, %v11305_v5  ;;  %550 = vst.msk [vmem:[%s10748_s1 + $0xd0] sm:$0xff] %vm523_vm14, %v517_v25  ;;  %vm2653_vm1 = vmand %vm8228_vm10, %vm2621_vm6  ;;  %vm8266_vm8 = vcmp.eq.f32.partialorder %v2143_v34, 0.0  ;;  %v2498_v53 = vsub.f32 %v12074_v22, %v12096_v24  ;;  %v12098_v34 = vld [vmem:[#allocation56_spill] sm:$0xff] }
 0x1b8   :  { %vm2238_vm0 = vcmp.le.f32.partialorder %v2206_v28, 32.0  ;;  %551 = vst.msk [vmem:[%s10748_s1 + $0xd8] sm:$0xff] %vm523_vm14, %v518_v39  ;;  %vm2654_vm2 = vmand %vm8232_vm13, %vm2622_vm5  ;;  %v2685_v60 = vsel %vm2653_vm1, 0.0, %v11305_v5  ;;  %vm2239_vm10 = vcmp.le.f32.partialorder %v2207_v54, 32.0  ;;  %v2529_v49 = vsub.f32 %v12075_v40, %v11960_v41  ;;  %v12099_v39 = vld [vmem:[#allocation39_spill] sm:$0xff] }
 0x1b9   :  { %1064 = vst.msk [vmem:[%s10748_s1 + $0xd0] sm:$0xff] %vm1037_vm15, %v3719_v14  ;;  %v2530_v63 = vsub.f32 %v12076_v2, %v12097_v57  ;;  %1065 = vst.msk [vmem:[%s10748_s1 + $0xd8] sm:$0xff] %vm1037_vm15, %v3720_v51  ;;  %v2686_v14 = vsel %vm2654_vm2, 0.0, %v11305_v5  ;;  %v2593_v1 = vand.u32 2147483647, %v2497_v16  ;;  %v2114_v28 = vsub.f32 %v12093_v9, %v12098_v34 }
 0x1ba   :  { %vm2270_vm4 = vmand %vm8253_vm9, %vm2238_vm0  ;;  %v2594_v12 = vand.u32 2147483647, %v2498_v53  ;;  %v3996_v25 = vpack.i.bf16 %v2686_v14, %v2685_v60  ;;  %vm2561_vm7 = vcmp.eq.f32.partialorder %v2529_v49, 0.0  ;;  %v2115_v59 = vsub.f32 %v12096_v24, %v7649_v43  ;;  %v8312_v14 = vld [vmem:[%s10747_s0 + $0xe8] sm:$0xff] }
 0x1bb   :  { %vm2271_vm13 = vmand %vm8266_vm8, %vm2239_vm10  ;;  %v2302_v54 = vsel %vm2270_vm4, 0.0, %v11305_v5  ;;  %vm2562_vm11 = vcmp.eq.f32.partialorder %v2530_v63, 0.0  ;;  %vm2625_vm3 = vcmp.le.f32.partialorder %v2593_v1, 32.0  ;;  %v2146_v53 = vsub.f32 %v11960_v41, %v12099_v39 }
 0x1bc   :  { %v2303_v51 = vsel %vm2271_vm13, 0.0, %v11305_v5  ;;  %vm2626_vm6 = vcmp.le.f32.partialorder %v2594_v12, 32.0  ;;  %3997 = vrot.lane.b32.xlu1 %v3996_v25, %s4306_s19  ;;  %vm2657_vm5 = vmand %vm2561_vm7, %vm2625_vm3  ;;  %v2147_v8 = vsub.f32 %v12097_v57, %v11979_v10  ;;  %v2210_v60 = vand.u32 2147483647, %v2114_v28  ;;  %v8318_v12 = vld [vmem:[%s10747_s0 + $0xf0] sm:$0xff]  ;;  %v8323_v25 = vpop.permute.xlu1 %3727 }
 0x1bd   :  { %v3921_v16 = vpack.i.bf16 %v2303_v51, %v2302_v54  ;;  %vm2658_vm12 = vmand %vm2562_vm11, %vm2626_vm6  ;;  %v2689_v49 = vsel %vm2657_vm5, 0.0, %v11305_v5  ;;  %v2211_v63 = vand.u32 2147483647, %v2115_v59  ;;  %v11058_v1 = vrot.slane %v8312_v14, 7  ;;  %12100 = vst [vmem:[#allocation22_spill] sm:$0xff] %v8318_v12  ;;  %v8328_v51 = vld [vmem:[%s10747_s0 + $0xf8] sm:$0xff] }
 0x1be   :  { %v70_v34 = vrot.slane %v8318_v12, 7  ;;  %v2690_v28 = vsel %vm2658_vm12, 0.0, %v11305_v5  ;;  %vm2178_vm9 = vcmp.eq.f32.partialorder %v2146_v53, 0.0  ;;  %vm2179_vm1 = vcmp.eq.f32.partialorder %v2147_v8, 0.0  ;;  %12101 = vst [vmem:[#allocation23_spill] sm:$0xff] %v8328_v51 }
 0x1bf   :  { %3922 = vrot.lane.b32.xlu0 %v3921_v16, %s4305_s21  ;;  %vm2242_vm8 = vcmp.le.f32.partialorder %v2210_v60, 32.0  ;;  %v4006_v54 = vpack.i.bf16 %v2690_v28, %v2689_v49  ;;  %vm2243_vm0 = vcmp.le.f32.partialorder %v2211_v63, 32.0  ;;  %v71_v59 = vrot.slane %v8328_v51, 7  ;;  %v8339_v63 = vpop.permute.xlu0 %3652 }
 0x1c0   :  { %vm2274_vm2 = vmand %vm2178_vm9, %vm2242_vm8  ;;  %vm12102_vm10 = vcmp.lt.s32.totalorder %v4427_v17, 1  ;;  %v298_v49 = vrot.slane %v11872_v27, 7  ;;  %v3729_v40 = vunpack.i.l.bf16 %v8323_v25  ;;  %v297_v60 = vrot.slane %v11851_v29, 7 }
 0x1c1   :  { %v76_v16 = vsel %vm12102_vm10, %v11058_v1, %v70_v34  ;;  %vm2275_vm4 = vmand %vm2179_vm1, %vm2243_vm0  ;;  %v2306_v53 = vsel %vm2274_vm2, 0.0, %v11305_v5  ;;  %4007 = vrot.lane.b32.xlu1 %v4006_v54, %s4306_s19  ;;  %v3730_v1 = vunpack.i.h.bf16 %v8323_v25  ;;  %v267_v39 = vrot.slane %v11876_v38, 7 }
 0x1c2   :  { %v137_v8 = vsub.f32 %v76_v16, %v8318_v12  ;;  %v2307_v28 = vsel %vm2275_vm4, 0.0, %v11305_v5  ;;  %vm12103_vm13 = vmmov %vm12102_vm10  ;;  %v3655_v12 = vunpack.i.h.bf16 %v8339_v63  ;;  %v40_v2 = vrot.slane %v8019_v35, 7 }
 0x1c3   :  { %v75_v56 = vsel %vm12103_vm13, %v70_v34, %v71_v59  ;;  %v3931_v10 = vpack.i.bf16 %v2307_v28, %v2306_v53  ;;  %vm12106_vm11 = vmmov %vm12102_vm10  ;;  %v12107_v25 = vrot.slane %v11839_v45, 7 }
 0x1c4   :  { %v138_v16 = vsub.f32 %v75_v56, %v8328_v51  ;;  %v393_v43 = vand.u32 2147483647, %v137_v8  ;;  %v299_v56 = vsel %vm12106_vm11, %v297_v60, %v298_v49  ;;  %vm12108_vm3 = vmmov %vm12102_vm10  ;;  %v12109_v51 = vrot.slane %v11818_v15, 7 }
 0x1c5   :  { %3932 = vrot.lane.b32.xlu0 %v3931_v10, %s4305_s21  ;;  %v300_v53 = vsel %vm12108_vm3, %v12107_v25, %v297_v60  ;;  %v362_v54 = vsub.f32 %v299_v56, %v11872_v27  ;;  %vm12110_vm6 = vmmov %vm12108_vm3  ;;  %v12114_v25 = vld [vmem:[#allocation4_spill] sm:$0xff] }
 0x1c6   :  { %v394_v34 = vand.u32 2147483647, %v138_v16  ;;  %vm8354_vm7 = vcmp.le.f32.partialorder %v393_v43, 2.0  ;;  %v361_v28 = vsub.f32 %v300_v53, %v11851_v29  ;;  %v329_v43 = vsel %vm12110_vm6, %v267_v39, %v12109_v51  ;;  %vm12111_vm5 = vmmov %vm12108_vm3 }
 0x1c7   :  { %v330_v10 = vsel %vm12111_vm5, %v298_v49, %v267_v39  ;;  %v332_v60 = vsub.f32 %v329_v43, %v11818_v15  ;;  %v12115_v53 = vrot.slane %v12114_v25, 7  ;;  %vm12116_vm9 = vmmov %vm12108_vm3  ;;  %vm458_vm8 = vcmp.eq.f32.partialorder %v362_v54, %v138_v16  ;;  %v3738_v25 = vpop.permute.xlu1 %3737 }
 0x1c8   :  { %vm8372_vm12 = vcmp.le.f32.partialorder %v394_v34, 2.0  ;;  %v331_v42 = vsub.f32 %v330_v10, %v11876_v38  ;;  %vm457_vm1 = vcmp.eq.f32.partialorder %v361_v28, %v137_v8  ;;  %vm12117_vm0 = vmmov %vm12108_vm3  ;;  %v2501_v34 = vsub.f32 %v12093_v9, %v7717_v46 }
 0x1c9   :  { %v105_v56 = vsel %vm12116_vm9, %v40_v2, %v12115_v53  ;;  %v106_v51 = vsel %vm12117_vm0, %v71_v59, %v40_v2  ;;  %vm489_vm2 = vmand %vm8354_vm7, %vm457_vm1  ;;  %v2502_v43 = vsub.f32 %v12096_v24, %v7724_v33  ;;  %v2533_v8 = vsub.f32 %v11960_v41, %v11987_v37  ;;  %v12126_v53 = vld [vmem:[#allocation20_spill] sm:$0xff]  ;;  %v12186_v41 = vld [vmem:[#allocation22_spill] sm:$0xff] }
 0x1ca   :  { %v108_v39 = vsub.f32 %v105_v56, %v8026_v6  ;;  %v107_v49 = vsub.f32 %v106_v51, %v8019_v35  ;;  %vm490_vm10 = vmand %vm8372_vm12, %vm458_vm8  ;;  %v521_v2 = vsel %vm489_vm2, 0.0, %v11305_v5  ;;  %v2534_v16 = vsub.f32 %v12097_v57, %v12002_v31  ;;  %v12127_v51 = vld [vmem:[#allocation90_spill] sm:$0xff] }
 0x1cb   :  { %v522_v9 = vsel %vm490_vm10, 0.0, %v11305_v5  ;;  %554 = vst.msk [vmem:[%s10748_s1 + $0xf0] sm:$0xff] %vm523_vm14, %v521_v2  ;;  %vm8412_vm7 = vcmp.eq.f32.partialorder %v2533_v8, 0.0  ;;  %v2597_v10 = vand.u32 2147483647, %v2501_v34  ;;  %v2119_v56 = vsub.f32 %v7724_v33, %v7754_v20  ;;  %v8445_v34 = vpop.permute.xlu0 %3662 }
 0x1cc   :  { %v364_v59 = vand.u32 2147483647, %v108_v39  ;;  %vm8397_vm4 = vcmp.eq.f32.partialorder %v332_v60, %v108_v39  ;;  %v363_v54 = vand.u32 2147483647, %v107_v49  ;;  %vm8408_vm13 = vcmp.eq.f32.partialorder %v331_v42, %v107_v49  ;;  %555 = vst.msk [vmem:[%s10748_s1 + $0xf8] sm:$0xff] %vm523_vm14, %v522_v9 }
 0x1cd   :  { %1068 = vst.msk [vmem:[%s10748_s1 + $0xf0] sm:$0xff] %vm1037_vm15, %v3729_v40  ;;  %vm8424_vm3 = vcmp.eq.f32.partialorder %v2534_v16, 0.0  ;;  %v2598_v60 = vand.u32 2147483647, %v2502_v43  ;;  %1069 = vst.msk [vmem:[%s10748_s1 + $0xf8] sm:$0xff] %vm1037_vm15, %v3730_v1  ;;  %v2118_v40 = vsub.f32 %v7717_v46, %v12126_v53  ;;  %v2150_v39 = vsub.f32 %v11987_v37, %v12127_v51 }
 0x1ce   :  { %vm396_vm11 = vcmp.le.f32.partialorder %v364_v59, 2.0  ;;  %vm395_vm6 = vcmp.le.f32.partialorder %v363_v54, 2.0  ;;  %vm2629_vm9 = vcmp.le.f32.partialorder %v2597_v10, 32.0  ;;  %v2151_v1 = vsub.f32 %v12002_v31, %v12003_v32 }
 0x1cf   :  { %vm460_vm5 = vmand %vm396_vm11, %vm8397_vm4  ;;  %vm2630_vm1 = vcmp.le.f32.partialorder %v2598_v60, 32.0  ;;  %vm8454_vm0 = vcmp.eq.f32.partialorder %v2150_v39, 0.0  ;;  %v2214_v2 = vand.u32 2147483647, %v2118_v40  ;;  %v2215_v59 = vand.u32 2147483647, %v2119_v56 }
 0x1d0   :  { %vm459_vm12 = vmand %vm395_vm6, %vm8408_vm13  ;;  %v492_v49 = vsel %vm460_vm5, 0.0, %v11305_v5  ;;  %vm8469_vm10 = vcmp.eq.f32.partialorder %v2151_v1, 0.0  ;;  %vm1551_vm4 = vcmask 23568   ;;  %v3740_v9 = vunpack.i.h.bf16 %v3738_v25  ;;  %v12133_v1 = vld [vmem:[#allocation5_spill] sm:$0xff] }
 0x1d1   :  { %v491_v43 = vsel %vm459_vm12, 0.0, %v11305_v5  ;;  %525 = vst.msk [vmem:[%s10748_s1 + $0x8] sm:$0xff] %vm523_vm14, %v492_v49  ;;  %vm2661_vm8 = vmand %vm8412_vm7, %vm2629_vm9  ;;  %v12132_v54 = vunpack.i.l.bf16 %v8339_v63  ;;  %vm2246_vm13 = vcmp.le.f32.partialorder %v2214_v2, 32.0  ;;  %vm2247_vm7 = vcmp.le.f32.partialorder %v2215_v59, 32.0  ;;  %v8489_v63 = vld [vmem:[%s10747_s0 + $0x20] sm:$0xff]  ;;  %v12136_v2 = vld [vmem:[#allocation3_spill] sm:$0xff] }
 0x1d2   :  { %524 = vst.msk [vmem:[%s10748_s1] sm:$0xff] %vm523_vm14, %v491_v43  ;;  %vm2662_vm2 = vmand %vm8424_vm3, %vm2630_vm1  ;;  %v2693_v30 = vsel %vm2661_vm8, 0.0, %v11305_v5  ;;  %v3739_v22 = vunpack.i.l.bf16 %v3738_v25  ;;  %v44_v42 = vrot.slane %v8489_v63, 7  ;;  %v271_v10 = vrot.slane %v11912_v21, 7  ;;  %v3748_v25 = vpop.permute.xlu1 %3747 }
 0x1d3   :  { %1039 = vst.msk [vmem:[%s10748_s1 + $0x8] sm:$0xff] %vm1037_vm15, %v3655_v12  ;;  %1038 = vst.msk [vmem:[%s10748_s1] sm:$0xff] %vm1037_vm15, %v12132_v54  ;;  %v2694_v12 = vsel %vm2662_vm2, 0.0, %v11305_v5  ;;  %v3665_v60 = vunpack.i.h.bf16 %v8445_v34  ;;  %v3664_v40 = vunpack.i.l.bf16 %v8445_v34  ;;  %v2505_v56 = vsub.f32 %v7717_v46, %v7812_v3 }
 0x1d4   :  { %v4016_v28 = vpack.i.bf16 %v2694_v12, %v2693_v30  ;;  %vm2278_vm11 = vmand %vm8454_vm0, %vm2246_vm13  ;;  %1555 = vst.msk [vmem:[%s10748_s1 + $0x18] sm:$0xff] %vm1551_vm4, %v3740_v9  ;;  %v2506_v39 = vsub.f32 %v7724_v33, %v7824_v13  ;;  %v12134_v43 = vrot.slane %v12133_v1, 7  ;;  %vm12135_vm6 = vcmp.lt.s32.totalorder %v4427_v17, 1  ;;  %v8520_v9 = vpop.permute.xlu0 %3672 }
 0x1d5   :  { %vm2279_vm3 = vmand %vm8469_vm10, %vm2247_vm7  ;;  %v2310_v53 = vsel %vm2278_vm11, 0.0, %v11305_v5  ;;  %1554 = vst.msk [vmem:[%s10748_s1 + $0x10] sm:$0xff] %vm1551_vm4, %v3739_v22  ;;  %v12137_v59 = vrot.slane %v12136_v2, 7  ;;  %v12139_v16 = vrot.slane %v11894_v0, 7  ;;  %v8526_v22 = vld [vmem:[%s10747_s0 + $0x28] sm:$0xff]  ;;  %v12141_v1 = vrot.slane %v5271_v52, 7 }
 0x1d6   :  { %4017 = vrot.lane.b32.xlu1 %v4016_v28, %s4306_s19  ;;  %v2311_v49 = vsel %vm2279_vm3, 0.0, %v11305_v5  ;;  %v101_v8 = vsel %vm12135_vm6, %v44_v42, %v12134_v43  ;;  %vm12138_vm5 = vmmov %vm12135_vm6 }
 0x1d7   :  { %v102_v30 = vsel %vm12138_vm5, %v12137_v59, %v44_v42  ;;  %vm12140_vm12 = vmmov %vm12138_vm5  ;;  %v3941_v54 = vpack.i.bf16 %v2311_v49, %v2310_v53  ;;  %v112_v28 = vsub.f32 %v101_v8, %v8526_v22  ;;  %v2537_v53 = vsub.f32 %v11987_v37, %v11771_v36 }
 0x1d8   :  { %v325_v46 = vsel %vm12140_vm12, %v271_v10, %v12139_v16  ;;  %v111_v12 = vsub.f32 %v102_v30, %v8489_v63  ;;  %vm12142_vm9 = vmmov %vm12138_vm5  ;;  %v2538_v49 = vsub.f32 %v12002_v31, %v11791_v58  ;;  %v2601_v8 = vand.u32 2147483647, %v2505_v56  ;;  %v8558_v56 = vpop.permute.xlu1 %3757 }
 0x1d9   :  { %v326_v42 = vsel %vm12142_vm9, %v12141_v1, %v271_v10  ;;  %v336_v2 = vsub.f32 %v325_v46, %v11894_v0  ;;  %3942 = vrot.lane.b32.xlu0 %v3941_v54, %s4305_s21  ;;  %v368_v30 = vand.u32 2147483647, %v112_v28  ;;  %v2122_v16 = vsub.f32 %v7812_v3, %v7858_v11 }
 0x1da   :  { %v335_v43 = vsub.f32 %v326_v42, %v11912_v21  ;;  %v367_v59 = vand.u32 2147483647, %v111_v12  ;;  %vm8550_vm0 = vcmp.eq.f32.partialorder %v2537_v53, 0.0  ;;  %vm8554_vm2 = vcmp.eq.f32.partialorder %v2538_v49, 0.0 }
 0x1db   :  { %vm8546_vm8 = vcmp.eq.f32.partialorder %v336_v2, %v112_v28  ;;  %vm400_vm13 = vcmp.le.f32.partialorder %v368_v30, 2.0  ;;  %v2602_v3 = vand.u32 2147483647, %v2506_v39  ;;  %vm2633_vm7 = vcmp.le.f32.partialorder %v2601_v8, 32.0 }
 0x1dc   :  { %vm8542_vm1 = vcmp.eq.f32.partialorder %v335_v43, %v111_v12  ;;  %vm399_vm10 = vcmp.le.f32.partialorder %v367_v59, 2.0  ;;  %v2123_v11 = vsub.f32 %v7824_v13, %v7837_v7  ;;  %v2154_v12 = vsub.f32 %v11771_v36, %v11792_v47  ;;  %v8568_v43 = vpop.permute.xlu0 %3682  ;;  %vm464_vm3 = vmand %vm400_vm13, %vm8546_vm8 }
 0x1dd   :  { %vm463_vm11 = vmand %vm399_vm10, %vm8542_vm1  ;;  %v2155_v28 = vsub.f32 %v11791_v58, %v11800_v26  ;;  %v2218_v42 = vand.u32 2147483647, %v2122_v16  ;;  %vm2634_vm6 = vcmp.le.f32.partialorder %v2602_v3, 32.0  ;;  %v3750_v2 = vunpack.i.h.bf16 %v3748_v25  ;;  %v8625_v3 = vpop.permute.xlu1 %3767  ;;  %v12187_v26 = vld [vmem:[#allocation23_spill] sm:$0xff] }
 0x1de   :  { %v495_v39 = vsel %vm463_vm11, 0.0, %v11305_v5  ;;  %v3749_v53 = vunpack.i.l.bf16 %v3748_v25  ;;  %v496_v49 = vsel %vm464_vm3, 0.0, %v11305_v5  ;;  %vm2665_vm5 = vmand %vm8550_vm0, %vm2633_vm7  ;;  %vm8580_vm12 = vcmp.eq.f32.partialorder %v2154_v12, 0.0 }
 0x1df   :  { %528 = vst.msk [vmem:[%s10748_s1 + $0x20] sm:$0xff] %vm523_vm14, %v495_v39  ;;  %vm8584_vm9 = vcmp.eq.f32.partialorder %v2155_v28, 0.0  ;;  %v2219_v8 = vand.u32 2147483647, %v2123_v11  ;;  %529 = vst.msk [vmem:[%s10748_s1 + $0x28] sm:$0xff] %vm523_vm14, %v496_v49  ;;  %v2697_v25 = vsel %vm2665_vm5, 0.0, %v11305_v5  ;;  %v3675_v1 = vunpack.i.h.bf16 %v8520_v9 }
 0x1e0   :  { %1042 = vst.msk [vmem:[%s10748_s1 + $0x20] sm:$0xff] %vm1037_vm15, %v3664_v40  ;;  %vm2666_vm1 = vmand %vm8554_vm2, %vm2634_vm6  ;;  %vm2250_vm8 = vcmp.le.f32.partialorder %v2218_v42, 32.0  ;;  %v8610_v40 = vld [vmem:[%s10747_s0 + $0x40] sm:$0xff]  ;;  %v275_v10 = vrot.slane %v11934_v62, 7  ;;  %v3674_v54 = vunpack.i.l.bf16 %v8520_v9  ;;  %vm12156_vm13 = vcmp.lt.s32.totalorder %v4427_v17, 1  ;;  %v12157_v28 = vld [vmem:[#allocation7_spill] sm:$0xff]  ;;  %v8650_v30 = vpop.permute.xlu0 %3692 }
 0x1e1   :  { %1559 = vst.msk [vmem:[%s10748_s1 + $0x38] sm:$0xff] %vm1551_vm4, %v3750_v2  ;;  %1558 = vst.msk [vmem:[%s10748_s1 + $0x30] sm:$0xff] %vm1551_vm4, %v3749_v53  ;;  %v48_v16 = vrot.slane %v8610_v40, 7  ;;  %v2698_v46 = vsel %vm2666_vm1, 0.0, %v11305_v5  ;;  %vm2251_vm0 = vcmp.le.f32.partialorder %v2219_v8, 32.0  ;;  %v12158_v42 = vrot.slane %v12157_v28, 7 }
 0x1e2   :  { %1043 = vst.msk [vmem:[%s10748_s1 + $0x28] sm:$0xff] %vm1037_vm15, %v3665_v60  ;;  %vm2282_vm2 = vmand %vm8580_vm12, %vm2250_vm8  ;;  %v4026_v11 = vpack.i.bf16 %v2698_v46, %v2697_v25  ;;  %v12155_v60 = vrot.slane %v7434_v55, 7  ;;  %v8643_v53 = vld [vmem:[%s10747_s0 + $0x48] sm:$0xff]  ;;  %v12160_v55 = vrot.slane %v12068_v4, 7  ;;  %v12162_v25 = vrot.slane %v11895_v61, 7 }
 0x1e3   :  { %vm2283_vm10 = vmand %vm8584_vm9, %vm2251_vm0  ;;  %v2314_v34 = vsel %vm2282_vm2, 0.0, %v11305_v5 }
 0x1e4   :  { %v97_v12 = vsel %vm12156_vm13, %v48_v16, %v12155_v60  ;;  %vm12159_vm7 = vmmov %vm12156_vm13  ;;  %v2315_v9 = vsel %vm2283_vm10, 0.0, %v11305_v5  ;;  %4027 = vrot.lane.b32.xlu1 %v4026_v11, %s4306_s19  ;;  %v8661_v60 = vld [vmem:[%s10747_s0 + $0xb0] sm:$0xff] }
 0x1e5   :  { %v98_v39 = vsel %vm12159_vm7, %v12158_v42, %v48_v16  ;;  %v116_v49 = vsub.f32 %v97_v12, %v8643_v53  ;;  %vm12161_vm11 = vmmov %vm12159_vm7  ;;  %v3951_v8 = vpack.i.bf16 %v2315_v9, %v2314_v34  ;;  %12164 = vst [vmem:[#allocation60_spill] sm:$0xff] %v8661_v60  ;;  %v2509_v12 = vsub.f32 %v8661_v60, %v8164_v48  ;;  %v8669_v34 = vld [vmem:[%s10747_s0 + $0xb8] sm:$0xff] }
 0x1e6   :  { %v115_v2 = vsub.f32 %v98_v39, %v8610_v40  ;;  %v321_v59 = vsel %vm12161_vm11, %v275_v10, %v12160_v55  ;;  %vm12163_vm3 = vmmov %vm12159_vm7  ;;  %12165 = vst [vmem:[#allocation88_spill] sm:$0xff] %v8669_v34  ;;  %v2541_v9 = vsub.f32 %v11771_v36, %v6026_v19  ;;  %v2542_v55 = vsub.f32 %v11791_v58, %v11833_v50  ;;  %v12180_v36 = vld [vmem:[#allocation34_spill] sm:$0xff] }
 0x1e7   :  { %v322_v16 = vsel %vm12163_vm3, %v12162_v25, %v275_v10  ;;  %v340_v46 = vsub.f32 %v321_v59, %v12068_v4  ;;  %v372_v11 = vand.u32 2147483647, %v116_v49  ;;  %v2510_v10 = vsub.f32 %v8669_v34, %v8174_v18  ;;  %3952 = vrot.lane.b32.xlu0 %v3951_v8, %s4305_s21  ;;  %v8686_v34 = vpop.permute.xlu1 %3777  ;;  %v8695_v8 = vld [vmem:[%s10747_s0 + $0xe0] sm:$0xff] }
 0x1e8   :  { %v339_v28 = vsub.f32 %v322_v16, %v11934_v62  ;;  %v371_v42 = vand.u32 2147483647, %v115_v2  ;;  %v2605_v59 = vand.u32 2147483647, %v2509_v12  ;;  %vm2573_vm8 = vcmp.eq.f32.partialorder %v2541_v9, 0.0 }
 0x1e9   :  { %vm8674_vm6 = vcmp.eq.f32.partialorder %v340_v46, %v116_v49  ;;  %vm8682_vm12 = vcmp.le.f32.partialorder %v372_v11, 2.0  ;;  %v2606_v16 = vand.u32 2147483647, %v2510_v10  ;;  %vm8688_vm0 = vcmp.eq.f32.partialorder %v2542_v55, 0.0 }
 0x1ea   :  { %vm403_vm5 = vcmp.le.f32.partialorder %v371_v42, 2.0  ;;  %vm435_vm9 = vcmp.eq.f32.partialorder %v339_v28, %v115_v2  ;;  %vm2637_vm2 = vcmp.le.f32.partialorder %v2605_v59, 32.0  ;;  %v2126_v46 = vsub.f32 %v8164_v48, %v8695_v8  ;;  %vm468_vm10 = vmand %vm8682_vm12, %vm8674_vm6  ;;  %v8708_v42 = vpop.permute.xlu0 %3702 }
 0x1eb   :  { %vm467_vm1 = vmand %vm403_vm5, %vm435_vm9  ;;  %vm2638_vm13 = vcmp.le.f32.partialorder %v2606_v16, 32.0  ;;  %v2127_v12 = vsub.f32 %v8174_v18, %v8312_v14  ;;  %v2158_v28 = vsub.f32 %v6026_v19, %v6121_v44  ;;  %v500_v11 = vsel %vm468_vm10, 0.0, %v11305_v5 }
 0x1ec   :  { %v499_v2 = vsel %vm467_vm1, 0.0, %v11305_v5  ;;  %vm2669_vm7 = vmand %vm2573_vm8, %vm2637_vm2  ;;  %v2159_v10 = vsub.f32 %v11833_v50, %v11839_v45  ;;  %v2222_v39 = vand.u32 2147483647, %v2126_v46  ;;  %v3760_v9 = vunpack.i.h.bf16 %v8558_v56  ;;  %533 = vst.msk [vmem:[%s10748_s1 + $0x48] sm:$0xff] %vm523_vm14, %v500_v11 }
 0x1ed   :  { %532 = vst.msk [vmem:[%s10748_s1 + $0x40] sm:$0xff] %vm523_vm14, %v499_v2  ;;  %vm2670_vm11 = vmand %vm8688_vm0, %vm2638_vm13  ;;  %v2701_v55 = vsel %vm2669_vm7, 0.0, %v11305_v5  ;;  %vm2190_vm3 = vcmp.eq.f32.partialorder %v2158_v28, 0.0  ;;  %v2223_v59 = vand.u32 2147483647, %v2127_v12  ;;  %v3759_v25 = vunpack.i.l.bf16 %v8558_v56  ;;  %v8751_v2 = vpop.permute.xlu1 %3787  ;;  %v12173_v28 = vld [vmem:[#allocation51_spill] sm:$0xff] }
 0x1ee   :  { %1046 = vst.msk [vmem:[%s10748_s1 + $0x40] sm:$0xff] %vm1037_vm15, %v3674_v54  ;;  %1047 = vst.msk [vmem:[%s10748_s1 + $0x48] sm:$0xff] %vm1037_vm15, %v3675_v1  ;;  %v2702_v16 = vsel %vm2670_vm11, 0.0, %v11305_v5  ;;  %vm2191_vm6 = vcmp.eq.f32.partialorder %v2159_v10, 0.0  ;;  %vm2254_vm5 = vcmp.le.f32.partialorder %v2222_v39, 32.0  ;;  %v8742_v54 = vld [vmem:[%s10747_s0 + $0x60] sm:$0xff]  ;;  %v3685_v46 = vunpack.i.h.bf16 %v8568_v43 }
 0x1ef   :  { %1563 = vst.msk [vmem:[%s10748_s1 + $0x58] sm:$0xff] %vm1551_vm4, %v3760_v9  ;;  %12172 = vst [vmem:[#allocation87_spill] sm:$0xff] %v8742_v54  ;;  %v52_v56 = vrot.slane %v8742_v54, 7  ;;  %v4036_v49 = vpack.i.bf16 %v2702_v16, %v2701_v55  ;;  %vm2255_vm12 = vcmp.le.f32.partialorder %v2223_v59, 32.0  ;;  %v279_v1 = vrot.slane %v12089_v23, 7  ;;  %v12176_v39 = vld [vmem:[#allocation50_spill] sm:$0xff] }
 0x1f0   :  { %vm2286_vm9 = vmand %vm2190_vm3, %vm2254_vm5  ;;  %1562 = vst.msk [vmem:[%s10748_s1 + $0x50] sm:$0xff] %vm1551_vm4, %v3759_v25  ;;  %v12174_v11 = vrot.slane %v12173_v28, 7  ;;  %vm12175_vm8 = vcmp.lt.s32.totalorder %v4427_v17, 1  ;;  %v12177_v9 = vrot.slane %v12176_v39, 7  ;;  %v3684_v59 = vunpack.i.l.bf16 %v8568_v43  ;;  %v8769_v28 = vld [vmem:[%s10747_s0 + $0x68] sm:$0xff] }
 0x1f1   :  { %vm2287_vm1 = vmand %vm2191_vm6, %vm2255_vm12  ;;  %v2318_v12 = vsel %vm2286_vm9, 0.0, %v11305_v5  ;;  %4037 = vrot.lane.b32.xlu1 %v4036_v49, %s4306_s19  ;;  %12179 = vst [vmem:[#allocation62_spill] sm:$0xff] %v8769_v28  ;;  %v12181_v39 = vrot.slane %v12180_v36, 7  ;;  %v12183_v49 = vld [vmem:[#allocation30_spill] sm:$0xff] }
 0x1f2   :  { %v93_v10 = vsel %vm12175_vm8, %v52_v56, %v12174_v11  ;;  %vm12178_vm0 = vmmov %vm12175_vm8  ;;  %v2319_v25 = vsel %vm2287_vm1, 0.0, %v11305_v5  ;;  %v12184_v60 = vrot.slane %v12183_v49, 7 }
 0x1f3   :  { %v94_v55 = vsel %vm12178_vm0, %v12177_v9, %v52_v56  ;;  %v120_v11 = vsub.f32 %v93_v10, %v8769_v28  ;;  %vm12182_vm2 = vmmov %vm12178_vm0  ;;  %v8776_v9 = vpop.permute.xlu0 %3712  ;;  %v3961_v43 = vpack.i.bf16 %v2319_v25, %v2318_v12  ;;  %v8801_v25 = vpop.permute.xlu1 %3797 }
 0x1f4   :  { %v119_v16 = vsub.f32 %v94_v55, %v8742_v54  ;;  %v317_v56 = vsel %vm12182_vm2, %v279_v1, %v12181_v39  ;;  %vm12185_vm10 = vmmov %vm12178_vm0  ;;  %v2513_v54 = vsub.f32 %v8164_v48, %v12186_v41  ;;  %v2514_v39 = vsub.f32 %v8174_v18, %v12187_v26 }
 0x1f5   :  { %v318_v55 = vsel %vm12185_vm10, %v12184_v60, %v279_v1  ;;  %v344_v37 = vsub.f32 %v317_v56, %v12180_v36  ;;  %v376_v58 = vand.u32 2147483647, %v120_v11  ;;  %3962 = vrot.lane.b32.xlu0 %v3961_v43, %s4305_s21  ;;  %v2545_v60 = vsub.f32 %v6026_v19, %v11851_v29  ;;  %v12206_v29 = vld [vmem:[#allocation19_spill] sm:$0xff] }
 0x1f6   :  { %v343_v10 = vsub.f32 %v318_v55, %v12089_v23  ;;  %v375_v28 = vand.u32 2147483647, %v119_v16  ;;  %v2546_v1 = vsub.f32 %v11833_v50, %v11872_v27  ;;  %v2609_v41 = vand.u32 2147483647, %v2513_v54 }
 0x1f7   :  { %vm8789_vm13 = vcmp.eq.f32.partialorder %v344_v37, %v120_v11  ;;  %vm8797_vm11 = vcmp.le.f32.partialorder %v376_v58, 2.0  ;;  %v2610_v26 = vand.u32 2147483647, %v2514_v39  ;;  %vm2577_vm5 = vcmp.eq.f32.partialorder %v2545_v60, 0.0  ;;  %v8861_v48 = vpop.permute.xlu1 %3807  ;;  %v12195_v37 = vld [vmem:[#allocation55_spill] sm:$0xff] }
 0x1f8   :  { %vm407_vm7 = vcmp.le.f32.partialorder %v375_v28, 2.0  ;;  %vm439_vm3 = vcmp.eq.f32.partialorder %v343_v10, %v119_v16  ;;  %vm8803_vm12 = vcmp.eq.f32.partialorder %v2546_v1, 0.0  ;;  %vm2641_vm9 = vcmp.le.f32.partialorder %v2609_v41, 32.0  ;;  %vm472_vm1 = vmand %vm8797_vm11, %vm8789_vm13  ;;  %v8818_v28 = vpop.permute.xlu0 %3722 }
 0x1f9   :  { %vm471_vm6 = vmand %vm407_vm7, %vm439_vm3  ;;  %v2483_v11 = vsub.f32 %v8695_v8, %v8019_v35  ;;  %vm2642_vm8 = vcmp.le.f32.partialorder %v2610_v26, 32.0  ;;  %v2484_v54 = vsub.f32 %v8312_v14, %v8026_v6  ;;  %v2515_v16 = vsub.f32 %v6121_v44, %v11876_v38 }
 0x1fa   :  { %v503_v58 = vsel %vm471_vm6, 0.0, %v11305_v5  ;;  %v504_v56 = vsel %vm472_vm1, 0.0, %v11305_v5  ;;  %vm2673_vm0 = vmand %vm2577_vm5, %vm2641_vm9  ;;  %v2516_v35 = vsub.f32 %v11839_v45, %v11818_v15  ;;  %v3770_v55 = vunpack.i.h.bf16 %v8625_v3 }
 0x1fb   :  { %536 = vst.msk [vmem:[%s10748_s1 + $0x60] sm:$0xff] %vm523_vm14, %v503_v58  ;;  %v2579_v43 = vand.u32 2147483647, %v2483_v11  ;;  %537 = vst.msk [vmem:[%s10748_s1 + $0x68] sm:$0xff] %vm523_vm14, %v504_v56  ;;  %v2705_v6 = vsel %vm2673_vm0, 0.0, %v11305_v5  ;;  %vm2547_vm10 = vcmp.eq.f32.partialorder %v2515_v16, 0.0  ;;  %v3769_v39 = vunpack.i.l.bf16 %v8625_v3 }
 0x1fc   :  { %1050 = vst.msk [vmem:[%s10748_s1 + $0x60] sm:$0xff] %vm1037_vm15, %v3684_v59  ;;  %vm2674_vm2 = vmand %vm8803_vm12, %vm2642_vm8  ;;  %v2580_v10 = vand.u32 2147483647, %v2484_v54  ;;  %vm2548_vm13 = vcmp.eq.f32.partialorder %v2516_v35, 0.0  ;;  %v8852_v59 = vld [vmem:[%s10747_s0 + $0x80] sm:$0xff]  ;;  %v3695_v41 = vunpack.i.h.bf16 %v8650_v30  ;;  %v12196_v11 = vrot.slane %v12195_v37, 7 }
 0x1fd   :  { %1051 = vst.msk [vmem:[%s10748_s1 + $0x68] sm:$0xff] %vm1037_vm15, %v3685_v46  ;;  %v2706_v12 = vsel %vm2674_vm2, 0.0, %v11305_v5  ;;  %vm2611_vm7 = vcmp.le.f32.partialorder %v2579_v43, 32.0  ;;  %v56_v3 = vrot.slane %v8852_v59, 7  ;;  %v12194_v46 = vld [vmem:[#allocation39_spill] sm:$0xff]  ;;  %vm12197_vm5 = vcmp.lt.s32.totalorder %v4427_v17, 1 }
 0x1fe   :  { %1567 = vst.msk [vmem:[%s10748_s1 + $0x78] sm:$0xff] %vm1551_vm4, %v3770_v55  ;;  %v4046_v60 = vpack.i.bf16 %v2706_v12, %v2705_v6  ;;  %vm2612_vm11 = vcmp.le.f32.partialorder %v2580_v10, 32.0  ;;  %vm2643_vm3 = vmand %vm2547_vm10, %vm2611_vm7  ;;  %v283_v1 = vrot.slane %v12194_v46, 7  ;;  %v12198_v54 = vrot.slane %v12096_v24, 7  ;;  %v8879_v55 = vld [vmem:[%s10747_s0 + $0x88] sm:$0xff]  ;;  %v12200_v10 = vld [vmem:[#allocation40_spill] sm:$0xff]  ;;  %v8886_v12 = vpop.permute.xlu0 %3732 }
 0x1ff   :  { %1566 = vst.msk [vmem:[%s10748_s1 + $0x70] sm:$0xff] %vm1551_vm4, %v3769_v39  ;;  %vm2644_vm6 = vmand %vm2548_vm13, %vm2612_vm11  ;;  %v2675_v26 = vsel %vm2643_vm3, 0.0, %v11305_v5  ;;  %v89_v58 = vsel %vm12197_vm5, %v56_v3, %v12196_v11  ;;  %v3694_v56 = vunpack.i.l.bf16 %v8650_v30  ;;  %v12201_v24 = vrot.slane %v12200_v10, 7  ;;  %v12205_v11 = vld [vmem:[#allocation57_spill] sm:$0xff] }
 0x200   :  { %vm12199_vm12 = vmmov %vm12197_vm5  ;;  %4047 = vrot.lane.b32.xlu1 %v4046_v60, %s4306_s19  ;;  %v2676_v35 = vsel %vm2644_vm6, 0.0, %v11305_v5  ;;  %v124_v6 = vsub.f32 %v89_v58, %v8879_v55 }
 0x201   :  { %v90_v16 = vsel %vm12199_vm12, %v12198_v54, %v56_v3  ;;  %vm12202_vm9 = vmmov %vm12197_vm5  ;;  %v3971_v30 = vpack.i.bf16 %v2676_v35, %v2675_v26  ;;  %v12203_v3 = vrot.slane %v12097_v57, 7  ;;  %v2870_v54 = vsub.f32 %v8489_v63, %v12205_v11  ;;  %v12209_v35 = vld [vmem:[#allocation78_spill] sm:$0xff]  ;;  %v8911_v11 = vpop.permute.xlu1 %3817 }
 0x202   :  { %v123_v43 = vsub.f32 %v90_v16, %v8852_v59  ;;  %v313_v39 = vsel %vm12202_vm9, %v283_v1, %v12201_v24  ;;  %vm12204_vm1 = vmmov %vm12197_vm5  ;;  %v380_v27 = vand.u32 2147483647, %v124_v6  ;;  %v2871_v24 = vsub.f32 %v8526_v22, %v12206_v29 }
 0x203   :  { %v314_v60 = vsel %vm12204_vm1, %v12203_v3, %v283_v1  ;;  %v348_v37 = vsub.f32 %v313_v39, %v12200_v10  ;;  %3972 = vrot.lane.b32.xlu0 %v3971_v30, %s4306_s19  ;;  %v2902_v1 = vsub.f32 %v11912_v21, %v12209_v35  ;;  %v2903_v39 = vsub.f32 %v11894_v0, %v5271_v52  ;;  %v8920_v30 = vld [vmem:[%s10747_s0] sm:$0xff]  ;;  %v12223_v52 = vld [vmem:[#allocation27_spill] sm:$0xff] }
 0x204   :  { %v347_v58 = vsub.f32 %v314_v60, %v12194_v46  ;;  %v379_v16 = vand.u32 2147483647, %v123_v43  ;;  %v2966_v3 = vand.u32 2147483647, %v2870_v54  ;;  %vm8907_vm2 = vcmp.le.f32.partialorder %v380_v27, 2.0 }
 0x205   :  { %vm8899_vm8 = vcmp.eq.f32.partialorder %v348_v37, %v124_v6  ;;  %v2967_v29 = vand.u32 2147483647, %v2871_v24  ;;  %vm2934_vm7 = vcmp.eq.f32.partialorder %v2902_v1, 0.0  ;;  %vm8913_vm11 = vcmp.eq.f32.partialorder %v2903_v39, 0.0  ;;  %v8932_v37 = vld [vmem:[%s10747_s0 + $0x8] sm:$0xff] }
 0x206   :  { %vm411_vm0 = vcmp.le.f32.partialorder %v379_v16, 2.0  ;;  %vm443_vm10 = vcmp.eq.f32.partialorder %v347_v58, %v123_v43  ;;  %vm2998_vm3 = vcmp.le.f32.partialorder %v2966_v3, 32.0  ;;  %v2487_v27 = vsub.f32 %v8920_v30, %v8489_v63  ;;  %vm476_vm6 = vmand %vm8907_vm2, %vm8899_vm8  ;;  %12214 = vst [vmem:[#allocation63_spill] sm:$0xff] %v8932_v37  ;;  %v8938_v16 = vpop.permute.xlu0 %3742 }
 0x207   :  { %vm475_vm13 = vmand %vm411_vm0, %vm443_vm10  ;;  %vm2999_vm5 = vcmp.le.f32.partialorder %v2967_v29, 32.0  ;;  %v2488_v54 = vsub.f32 %v8932_v37, %v8526_v22  ;;  %v2519_v58 = vsub.f32 %v11876_v38, %v11912_v21  ;;  %v508_v24 = vsel %vm476_vm6, 0.0, %v11305_v5  ;;  %v12224_v37 = vld [vmem:[#allocation58_spill] sm:$0xff] }
 0x208   :  { %v507_v43 = vsel %vm475_vm13, 0.0, %v11305_v5  ;;  %vm3030_vm12 = vmand %vm2934_vm7, %vm2998_vm3  ;;  %v2520_v26 = vsub.f32 %v11818_v15, %v11894_v0  ;;  %v2583_v1 = vand.u32 2147483647, %v2487_v27  ;;  %v3780_v39 = vunpack.i.h.bf16 %v8686_v34  ;;  %541 = vst.msk [vmem:[%s10748_s1 + $0x88] sm:$0xff] %vm523_vm14, %v508_v24 }
 0x209   :  { %540 = vst.msk [vmem:[%s10748_s1 + $0x80] sm:$0xff] %vm523_vm14, %v507_v43  ;;  %vm3031_vm9 = vmand %vm8913_vm11, %vm2999_vm5  ;;  %v3062_v3 = vsel %vm3030_vm12, 0.0, %v11305_v5  ;;  %vm2551_vm1 = vcmp.eq.f32.partialorder %v2519_v58, 0.0  ;;  %v2584_v60 = vand.u32 2147483647, %v2488_v54  ;;  %v3779_v29 = vunpack.i.l.bf16 %v8686_v34  ;;  %v8981_v54 = vpop.permute.xlu1 %3827 }
 0x20a   :  { %1054 = vst.msk [vmem:[%s10748_s1 + $0x80] sm:$0xff] %vm1037_vm15, %v3694_v56  ;;  %1055 = vst.msk [vmem:[%s10748_s1 + $0x88] sm:$0xff] %vm1037_vm15, %v3695_v41  ;;  %v3063_v27 = vsel %vm3031_vm9, 0.0, %v11305_v5  ;;  %vm2552_vm8 = vcmp.eq.f32.partialorder %v2520_v26, 0.0  ;;  %vm2615_vm0 = vcmp.le.f32.partialorder %v2583_v1, 32.0  ;;  %v8972_v56 = vld [vmem:[%s10747_s0 + $0xa0] sm:$0xff]  ;;  %v3705_v43 = vunpack.i.h.bf16 %v8708_v42 }
 0x20b   :  { %1571 = vst.msk [vmem:[%s10748_s1 + $0x98] sm:$0xff] %vm1551_vm4, %v3780_v39  ;;  %v60_v34 = vrot.slane %v8972_v56, 7  ;;  %v4056_v6 = vpack.i.bf16 %v3063_v27, %v3062_v3  ;;  %vm2616_vm2 = vcmp.le.f32.partialorder %v2584_v60, 32.0  ;;  %vm2647_vm10 = vmand %vm2551_vm1, %vm2615_vm0  ;;  %v287_v41 = vrot.slane %v12127_v51, 7 }
 0x20c   :  { %1570 = vst.msk [vmem:[%s10748_s1 + $0x90] sm:$0xff] %vm1551_vm4, %v3779_v29  ;;  %vm2648_vm13 = vmand %vm2552_vm8, %vm2616_vm2  ;;  %v2679_v58 = vsel %vm2647_vm10, 0.0, %v11305_v5  ;;  %v12215_v24 = vrot.slane %v7754_v20, 7  ;;  %vm12216_vm7 = vcmp.lt.s32.totalorder %v4427_v17, 1  ;;  %v12217_v1 = vrot.slane %v7724_v33, 7  ;;  %v8999_v20 = vld [vmem:[%s10747_s0 + $0xa8] sm:$0xff] }
 0x20d   :  { %vm12218_vm11 = vmmov %vm12216_vm7  ;;  %v3704_v3 = vunpack.i.l.bf16 %v8708_v42  ;;  %4057 = vrot.lane.b32.xlu1 %v4056_v6, %s4307_s29  ;;  %v2680_v60 = vsel %vm2648_vm13, 0.0, %v11305_v5  ;;  %v12219_v33 = vrot.slane %v12003_v32, 7  ;;  %v9006_v42 = vpop.permute.xlu0 %3752  ;;  %v12221_v6 = vrot.slane %v12002_v31, 7 }
 0x20e   :  { %v85_v26 = vsel %vm12216_vm7, %v60_v34, %v12215_v24  ;;  %v86_v39 = vsel %vm12218_vm11, %v12217_v1, %v60_v34  ;;  %vm12220_vm3 = vmmov %vm12216_vm7  ;;  %v3981_v24 = vpack.i.bf16 %v2680_v60, %v2679_v58  ;;  %v2874_v35 = vsub.f32 %v8610_v40, %v12223_v52  ;;  %v12227_v60 = vld [vmem:[#allocation16_spill] sm:$0xff] }
 0x20f   :  { %v127_v29 = vsub.f32 %v86_v39, %v8972_v56  ;;  %v128_v27 = vsub.f32 %v85_v26, %v8999_v20  ;;  %v309_v34 = vsel %vm12220_vm3, %v287_v41, %v12219_v33  ;;  %vm12222_vm6 = vmmov %vm12220_vm3  ;;  %v2875_v33 = vsub.f32 %v8643_v53, %v12224_v37 }
 0x210   :  { %v310_v1 = vsel %vm12222_vm6, %v12221_v6, %v287_v41  ;;  %v352_v39 = vsub.f32 %v309_v34, %v12003_v32  ;;  %3982 = vrot.lane.b32.xlu0 %v3981_v24, %s4306_s19  ;;  %v2906_v41 = vsub.f32 %v11934_v62, %v12227_v60  ;;  %v2907_v34 = vsub.f32 %v12068_v4, %v11895_v61 }
 0x211   :  { %v351_v26 = vsub.f32 %v310_v1, %v12127_v51  ;;  %v383_v15 = vand.u32 2147483647, %v127_v29  ;;  %v384_v38 = vand.u32 2147483647, %v128_v27  ;;  %v2970_v52 = vand.u32 2147483647, %v2874_v35  ;;  %v9031_v1 = vpop.permute.xlu1 %3837 }
 0x212   :  { %vm9019_vm5 = vcmp.eq.f32.partialorder %v352_v39, %v128_v27  ;;  %v2971_v37 = vand.u32 2147483647, %v2875_v33  ;;  %vm2938_vm0 = vcmp.eq.f32.partialorder %v2906_v41, 0.0  ;;  %vm9033_vm2 = vcmp.eq.f32.partialorder %v2907_v34, 0.0 }
 0x213   :  { %vm415_vm12 = vcmp.le.f32.partialorder %v383_v15, 2.0  ;;  %vm9027_vm9 = vcmp.le.f32.partialorder %v384_v38, 2.0  ;;  %vm447_vm1 = vcmp.eq.f32.partialorder %v351_v26, %v127_v29  ;;  %vm3002_vm10 = vcmp.le.f32.partialorder %v2970_v52, 32.0  ;;  %v9048_v29 = vpop.permute.xlu0 %3762 }
 0x214   :  { %vm479_vm8 = vmand %vm415_vm12, %vm447_vm1  ;;  %v2491_v24 = vsub.f32 %v8489_v63, %v8610_v40  ;;  %vm3003_vm7 = vcmp.le.f32.partialorder %v2971_v37, 32.0  ;;  %v2492_v38 = vsub.f32 %v8526_v22, %v8643_v53  ;;  %v2523_v35 = vsub.f32 %v11912_v21, %v11934_v62 }
 0x215   :  { %vm480_vm13 = vmand %vm9027_vm9, %vm9019_vm5  ;;  %v511_v15 = vsel %vm479_vm8, 0.0, %v11305_v5  ;;  %v2524_v63 = vsub.f32 %v11894_v0, %v12068_v4  ;;  %v3790_v33 = vunpack.i.h.bf16 %v8751_v2  ;;  %v3789_v41 = vunpack.i.l.bf16 %v8751_v2  ;;  %v9091_v37 = vpop.permute.xlu1 %3847 }
 0x216   :  { %v512_v39 = vsel %vm480_vm13, 0.0, %v11305_v5  ;;  %544 = vst.msk [vmem:[%s10748_s1 + $0xa0] sm:$0xff] %vm523_vm14, %v511_v15  ;;  %vm3034_vm11 = vmand %vm2938_vm0, %vm3002_vm10  ;;  %v2587_v26 = vand.u32 2147483647, %v2491_v24  ;;  %vm2555_vm6 = vcmp.eq.f32.partialorder %v2523_v35, 0.0  ;;  %v3715_v6 = vunpack.i.h.bf16 %v8776_v9 }
 0x217   :  { %545 = vst.msk [vmem:[%s10748_s1 + $0xa8] sm:$0xff] %vm523_vm14, %v512_v39  ;;  %vm3035_vm3 = vmand %vm9033_vm2, %vm3003_vm7  ;;  %v3066_v22 = vsel %vm3034_vm11, 0.0, %v11305_v5  ;;  %v2588_v58 = vand.u32 2147483647, %v2492_v38  ;;  %vm2556_vm5 = vcmp.eq.f32.partialorder %v2524_v63, 0.0  ;;  %v12232_v24 = vrot.slane %v7837_v7, 7 }
 0x218   :  { %1058 = vst.msk [vmem:[%s10748_s1 + $0xa0] sm:$0xff] %vm1037_vm15, %v3704_v3  ;;  %1059 = vst.msk [vmem:[%s10748_s1 + $0xa8] sm:$0xff] %vm1037_vm15, %v3705_v43  ;;  %v3067_v34 = vsel %vm3035_vm3, 0.0, %v11305_v5  ;;  %vm2619_vm12 = vcmp.le.f32.partialorder %v2587_v26, 32.0  ;;  %v9082_v3 = vld [vmem:[%s10747_s0 + $0xc0] sm:$0xff]  ;;  %v291_v43 = vrot.slane %v11792_v47, 7  ;;  %v3714_v39 = vunpack.i.l.bf16 %v8776_v9 }
 0x219   :  { %1575 = vst.msk [vmem:[%s10748_s1 + $0xb8] sm:$0xff] %vm1551_vm4, %v3790_v33  ;;  %v64_v2 = vrot.slane %v9082_v3, 7  ;;  %v4066_v52 = vpack.i.bf16 %v3067_v34, %v3066_v22  ;;  %vm2620_vm9 = vcmp.le.f32.partialorder %v2588_v58, 32.0  ;;  %vm2651_vm1 = vmand %vm2555_vm6, %vm2619_vm12  ;;  %vm12233_vm0 = vcmp.lt.s32.totalorder %v4427_v17, 1  ;;  %v9109_v7 = vld [vmem:[%s10747_s0 + $0xc8] sm:$0xff]  ;;  %v12236_v22 = vld [vmem:[#allocation92_spill] sm:$0xff] }
 0x21a   :  { %1574 = vst.msk [vmem:[%s10748_s1 + $0xb0] sm:$0xff] %vm1551_vm4, %v3789_v41  ;;  %vm2652_vm8 = vmand %vm2556_vm5, %vm2620_vm9  ;;  %v2683_v27 = vsel %vm2651_vm1, 0.0, %v11305_v5  ;;  %v12234_v38 = vrot.slane %v7824_v13, 7  ;;  %v12237_v13 = vrot.slane %v12236_v22, 7  ;;  %v9116_v41 = vpop.permute.xlu0 %3772  ;;  %v12240_v34 = vld [vmem:[#allocation36_spill] sm:$0xff] }
 0x21b   :  { %v81_v15 = vsel %vm12233_vm0, %v64_v2, %v12232_v24  ;;  %vm12235_vm2 = vmmov %vm12233_vm0  ;;  %4067 = vrot.lane.b32.xlu1 %v4066_v52, %s4307_s29  ;;  %v2684_v63 = vsel %vm2652_vm8, 0.0, %v11305_v5  ;;  %12239 = vst [vmem:[#allocation64_spill] sm:$0xff] %v9116_v41  ;;  %v9151_v41 = vpop.permute.xlu1 %3857 }
 0x21c   :  { %v82_v35 = vsel %vm12235_vm2, %v12234_v38, %v64_v2  ;;  %v132_v33 = vsub.f32 %v81_v15, %v9109_v7  ;;  %vm12238_vm10 = vmmov %vm12233_vm0  ;;  %v3991_v9 = vpack.i.bf16 %v2684_v63, %v2683_v27  ;;  %v12241_v2 = vrot.slane %v12240_v34, 7  ;;  %v9126_v38 = vld [vmem:[%s10747_s0 + $0x50] sm:$0xff]  ;;  %v12244_v15 = vld [vmem:[#allocation87_spill] sm:$0xff] }
 0x21d   :  { %v131_v26 = vsub.f32 %v82_v35, %v9082_v3  ;;  %v305_v58 = vsel %vm12238_vm10, %v291_v43, %v12237_v13  ;;  %vm12242_vm13 = vmmov %vm12233_vm0  ;;  %12243 = vst [vmem:[#allocation31_spill] sm:$0xff] %v9126_v38  ;;  %v2878_v35 = vsub.f32 %v12244_v15, %v9126_v38  ;;  %v9134_v27 = vld [vmem:[%s10747_s0 + $0x58] sm:$0xff] }
 0x21e   :  { %v306_v52 = vsel %vm12242_vm13, %v12241_v2, %v291_v43  ;;  %v356_v24 = vsub.f32 %v305_v58, %v12236_v22  ;;  %v388_v21 = vand.u32 2147483647, %v132_v33  ;;  %12245 = vst [vmem:[#allocation29_spill] sm:$0xff] %v9134_v27  ;;  %v12246_v43 = vld [vmem:[#allocation62_spill] sm:$0xff]  ;;  %3992 = vrot.lane.b32.xlu0 %v3991_v9, %s4306_s19  ;;  %v2495_v9 = vsub.f32 %v8610_v40, %v12244_v15 }
 0x21f   :  { %v355_v13 = vsub.f32 %v306_v52, %v11792_v47  ;;  %v387_v0 = vand.u32 2147483647, %v131_v26  ;;  %v2879_v63 = vsub.f32 %v12246_v43, %v9134_v27  ;;  %v12249_v2 = vld [vmem:[#allocation86_spill] sm:$0xff]  ;;  %v2911_v52 = vsub.f32 %v12180_v36, %v12183_v49  ;;  %v9206_v58 = vpop.permute.xlu1 %3867 }
 0x220   :  { %vm9139_vm7 = vcmp.eq.f32.partialorder %v356_v24, %v132_v33  ;;  %v2910_v38 = vsub.f32 %v12089_v23, %v12249_v2  ;;  %v2974_v61 = vand.u32 2147483647, %v2878_v35  ;;  %vm9147_vm3 = vcmp.le.f32.partialorder %v388_v21, 2.0  ;;  %v9168_v24 = vpop.permute.xlu0 %3782 }
 0x221   :  { %vm419_vm11 = vcmp.le.f32.partialorder %v387_v0, 2.0  ;;  %vm451_vm6 = vcmp.eq.f32.partialorder %v355_v13, %v131_v26  ;;  %v2975_v27 = vand.u32 2147483647, %v2879_v63  ;;  %vm9153_vm9 = vcmp.eq.f32.partialorder %v2911_v52, 0.0  ;;  %vm484_vm8 = vmand %vm9147_vm3, %vm9139_vm7 }
 0x222   :  { %vm483_vm5 = vmand %vm419_vm11, %vm451_vm6  ;;  %vm2942_vm12 = vcmp.eq.f32.partialorder %v2910_v38, 0.0  ;;  %vm3006_vm1 = vcmp.le.f32.partialorder %v2974_v61, 32.0  ;;  %v2496_v21 = vsub.f32 %v8643_v53, %v12246_v43  ;;  %v2527_v26 = vsub.f32 %v11934_v62, %v12089_v23 }
 0x223   :  { %v515_v0 = vsel %vm483_vm5, 0.0, %v11305_v5  ;;  %vm3007_vm0 = vcmp.le.f32.partialorder %v2975_v27, 32.0  ;;  %v516_v61 = vsel %vm484_vm8, 0.0, %v11305_v5  ;;  %vm3038_vm2 = vmand %vm2942_vm12, %vm3006_vm1  ;;  %v2528_v40 = vsub.f32 %v12068_v4, %v12180_v36 }
 0x224   :  { %548 = vst.msk [vmem:[%s10748_s1 + $0xc0] sm:$0xff] %vm523_vm14, %v515_v0  ;;  %v2591_v60 = vand.u32 2147483647, %v2495_v9  ;;  %v3800_v38 = vunpack.i.h.bf16 %v8801_v25  ;;  %549 = vst.msk [vmem:[%s10748_s1 + $0xc8] sm:$0xff] %vm523_vm14, %v516_v61  ;;  %v3070_v53 = vsel %vm3038_vm2, 0.0, %v11305_v5  ;;  %vm2559_vm13 = vcmp.eq.f32.partialorder %v2527_v26, 0.0 }
 0x225   :  { %1062 = vst.msk [vmem:[%s10748_s1 + $0xc0] sm:$0xff] %vm1037_vm15, %v3714_v39  ;;  %vm3039_vm10 = vmand %vm9153_vm9, %vm3007_vm0  ;;  %v2592_v35 = vand.u32 2147483647, %v2496_v21  ;;  %v3799_v13 = vunpack.i.l.bf16 %v8801_v25  ;;  %vm2560_vm7 = vcmp.eq.f32.partialorder %v2528_v40, 0.0  ;;  %v68_v39 = vrot.slane %v8695_v8, 7 }
 0x226   :  { %1063 = vst.msk [vmem:[%s10748_s1 + $0xc8] sm:$0xff] %vm1037_vm15, %v3715_v6  ;;  %v3071_v27 = vsel %vm3039_vm10, 0.0, %v11305_v5  ;;  %vm2623_vm11 = vcmp.le.f32.partialorder %v2591_v60, 32.0  ;;  %v295_v25 = vrot.slane %v6121_v44, 7  ;;  %v3725_v6 = vunpack.i.h.bf16 %v8818_v28 }
 0x227   :  { %1579 = vst.msk [vmem:[%s10748_s1 + $0xd8] sm:$0xff] %vm1551_vm4, %v3800_v38  ;;  %v4076_v63 = vpack.i.bf16 %v3071_v27, %v3070_v53  ;;  %vm2624_vm3 = vcmp.le.f32.partialorder %v2592_v35, 32.0  ;;  %vm2655_vm6 = vmand %vm2559_vm13, %vm2623_vm11  ;;  %v12254_v33 = vrot.slane %v8312_v14, 7  ;;  %vm12255_vm12 = vcmp.lt.s32.totalorder %v4427_v17, 1  ;;  %v9224_v14 = vld [vmem:[%s10747_s0 + $0xe8] sm:$0xff]  ;;  %v9231_v53 = vpop.permute.xlu0 %3792 }
 0x228   :  { %1578 = vst.msk [vmem:[%s10748_s1 + $0xd0] sm:$0xff] %vm1551_vm4, %v3799_v13  ;;  %vm2656_vm5 = vmand %vm2560_vm7, %vm2624_vm3  ;;  %v2687_v52 = vsel %vm2655_vm6, 0.0, %v11305_v5  ;;  %v12256_v0 = vrot.slane %v8174_v18, 7  ;;  %v3724_v26 = vunpack.i.l.bf16 %v8818_v28  ;;  %v12259_v18 = vrot.slane %v11839_v45, 7 }
 0x229   :  { %v77_v9 = vsel %vm12255_vm12, %v68_v39, %v12254_v33  ;;  %vm12257_vm9 = vmmov %vm12255_vm12  ;;  %4077 = vrot.lane.b32.xlu1 %v4076_v63, %s4307_s29  ;;  %v2688_v61 = vsel %vm2656_vm5, 0.0, %v11305_v5  ;;  %12258 = vst [vmem:[#allocation65_spill] sm:$0xff] %v9224_v14  ;;  %v12261_v35 = vrot.slane %v11833_v50, 7 }
 0x22a   :  { %v78_v21 = vsel %vm12257_vm9, %v12256_v0, %v68_v39  ;;  %v136_v60 = vsub.f32 %v77_v9, %v9224_v14  ;;  %vm12260_vm1 = vmmov %vm12257_vm9  ;;  %v4001_v28 = vpack.i.bf16 %v2688_v61, %v2687_v52  ;;  %v9241_v39 = vld [vmem:[%s10747_s0 + $0x70] sm:$0xff]  ;;  %v9249_v52 = vld [vmem:[%s10747_s0 + $0x78] sm:$0xff] }
 0x22b   :  { %v135_v40 = vsub.f32 %v78_v21, %v8695_v8  ;;  %v301_v38 = vsel %vm12260_vm1, %v295_v25, %v12259_v18  ;;  %vm12262_vm8 = vmmov %vm12260_vm1  ;;  %v2882_v63 = vsub.f32 %v8852_v59, %v9241_v39  ;;  %12263 = vst [vmem:[#allocation66_spill] sm:$0xff] %v9249_v52  ;;  %v2883_v17 = vsub.f32 %v8879_v55, %v9249_v52  ;;  %v12266_v21 = vld [vmem:[#allocation35_spill] sm:$0xff]  ;;  %v9266_v52 = vpop.permute.xlu1 %3877 }
 0x22c   :  { %v302_v13 = vsel %vm12262_vm8, %v12261_v35, %v295_v25  ;;  %v360_v27 = vsub.f32 %v301_v38, %v11839_v45  ;;  %v392_v0 = vand.u32 2147483647, %v136_v60  ;;  %4002 = vrot.lane.b32.xlu0 %v4001_v28, %s4306_s19  ;;  %v2914_v61 = vsub.f32 %v12194_v46, %v12266_v21 }
 0x22d   :  { %v359_v33 = vsub.f32 %v302_v13, %v6121_v44  ;;  %v391_v9 = vand.u32 2147483647, %v135_v40  ;;  %v2915_v18 = vsub.f32 %v12200_v10, %v12097_v57  ;;  %v2978_v38 = vand.u32 2147483647, %v2882_v63 }
 0x22e   :  { %vm9254_vm0 = vcmp.eq.f32.partialorder %v360_v27, %v136_v60  ;;  %vm9262_vm10 = vcmp.le.f32.partialorder %v392_v0, 2.0  ;;  %v2979_v13 = vand.u32 2147483647, %v2883_v17  ;;  %vm2946_vm11 = vcmp.eq.f32.partialorder %v2914_v61, 0.0 }
 0x22f   :  { %vm423_vm2 = vcmp.le.f32.partialorder %v391_v9, 2.0  ;;  %vm455_vm13 = vcmp.eq.f32.partialorder %v359_v33, %v135_v40  ;;  %vm9268_vm3 = vcmp.eq.f32.partialorder %v2915_v18, 0.0  ;;  %vm3010_vm6 = vcmp.le.f32.partialorder %v2978_v38, 32.0  ;;  %vm488_vm5 = vmand %vm9262_vm10, %vm9254_vm0  ;;  %v9283_v33 = vpop.permute.xlu0 %3802 }
 0x230   :  { %vm487_vm7 = vmand %vm423_vm2, %vm455_vm13  ;;  %v2499_v28 = vsub.f32 %v12244_v15, %v8852_v59  ;;  %vm3011_vm12 = vcmp.le.f32.partialorder %v2979_v13, 32.0  ;;  %v2500_v27 = vsub.f32 %v12246_v43, %v8879_v55  ;;  %v2531_v63 = vsub.f32 %v12089_v23, %v12194_v46  ;;  %v9327_v13 = vpop.permute.xlu1 %3887 }
 0x231   :  { %v519_v40 = vsel %vm487_vm7, 0.0, %v11305_v5  ;;  %v520_v9 = vsel %vm488_vm5, 0.0, %v11305_v5  ;;  %vm3042_vm9 = vmand %vm2946_vm11, %vm3010_vm6  ;;  %v2532_v15 = vsub.f32 %v12180_v36, %v12200_v10  ;;  %v3810_v17 = vunpack.i.h.bf16 %v8861_v48 }
 0x232   :  { %552 = vst.msk [vmem:[%s10748_s1 + $0xe0] sm:$0xff] %vm523_vm14, %v519_v40  ;;  %v2595_v0 = vand.u32 2147483647, %v2499_v28  ;;  %553 = vst.msk [vmem:[%s10748_s1 + $0xe8] sm:$0xff] %vm523_vm14, %v520_v9  ;;  %v3074_v43 = vsel %vm3042_vm9, 0.0, %v11305_v5  ;;  %vm2563_vm8 = vcmp.eq.f32.partialorder %v2531_v63, 0.0  ;;  %v3809_v61 = vunpack.i.l.bf16 %v8861_v48 }
 0x233   :  { %1066 = vst.msk [vmem:[%s10748_s1 + $0xe0] sm:$0xff] %vm1037_vm15, %v3724_v26  ;;  %vm3043_vm1 = vmand %vm9268_vm3, %vm3011_vm12  ;;  %v2596_v25 = vand.u32 2147483647, %v2500_v27  ;;  %vm2564_vm14 = vcmp.eq.f32.partialorder %v2532_v15, 0.0  ;;  %v3735_v26 = vunpack.i.h.bf16 %v8886_v12  ;;  %v3734_v48 = vunpack.i.l.bf16 %v8886_v12  ;;  %v9337_v12 = vld [vmem:[%s10747_s0 + $0x98] sm:$0xff]  ;;  %v12271_v40 = vld [vmem:[#allocation42_spill] sm:$0xff] }
 0x234   :  { %1067 = vst.msk [vmem:[%s10748_s1 + $0xe8] sm:$0xff] %vm1037_vm15, %v3725_v6  ;;  %v3075_v18 = vsel %vm3043_vm1, 0.0, %v11305_v5  ;;  %vm2627_vm0 = vcmp.le.f32.partialorder %v2595_v0, 32.0  ;;  %v9323_v6 = vld [vmem:[%s10747_s0 + $0x90] sm:$0xff]  ;;  %v2887_v28 = vsub.f32 %v8999_v20, %v9337_v12  ;;  %v2918_v27 = vsub.f32 %v12127_v51, %v12271_v40 }
 0x235   :  { %1583 = vst.msk [vmem:[%s10748_s1 + $0xf8] sm:$0xff] %vm1551_vm4, %v3810_v17  ;;  %v4086_v38 = vpack.i.bf16 %v3075_v18, %v3074_v43  ;;  %vm2628_vm2 = vcmp.le.f32.partialorder %v2596_v25, 32.0  ;;  %vm2659_vm10 = vmand %vm2563_vm8, %vm2627_vm0  ;;  %v2886_v35 = vsub.f32 %v8972_v56, %v9323_v6  ;;  %v2919_v63 = vsub.f32 %v12003_v32, %v12002_v31  ;;  %v9355_v43 = vpop.permute.xlu0 %3812 }
 0x236   :  { %1582 = vst.msk [vmem:[%s10748_s1 + $0xf0] sm:$0xff] %vm1551_vm4, %v3809_v61  ;;  %vm2660_vm15 = vmand %vm2564_vm14, %vm2628_vm2  ;;  %v2691_v60 = vsel %vm2659_vm10, 0.0, %v11305_v5  ;;  %v2503_v0 = vsub.f32 %v8852_v59, %v8972_v56  ;;  %v2504_v17 = vsub.f32 %v8879_v55, %v8999_v20  ;;  %vm2950_vm13 = vcmp.eq.f32.partialorder %v2918_v27, 0.0 }
 0x237   :  { %1553 = vst.msk [vmem:[%s10748_s1 + $0x8] sm:$0xff] %vm1551_vm4, %v3735_v26  ;;  %4087 = vrot.lane.b32.xlu1 %v4086_v38, %s4307_s29  ;;  %v2692_v9 = vsel %vm2660_vm15, 0.0, %v11305_v5  ;;  %1552 = vst.msk [vmem:[%s10748_s1] sm:$0xff] %vm1551_vm4, %v3734_v48  ;;  %v2982_v15 = vand.u32 2147483647, %v2886_v35  ;;  %vm2951_vm7 = vcmp.eq.f32.partialorder %v2919_v63, 0.0  ;;  %v2535_v18 = vsub.f32 %v12194_v46, %v12127_v51  ;;  %v9364_v35 = vpop.permute.xlu1 %3897 }
 0x238   :  { %v4011_v25 = vpack.i.bf16 %v2692_v9, %v2691_v60  ;;  %v2983_v61 = vand.u32 2147483647, %v2887_v28  ;;  %v2536_v26 = vsub.f32 %v12200_v10, %v12003_v32  ;;  %v2599_v38 = vand.u32 2147483647, %v2503_v0  ;;  %v12272_v0 = vld [vmem:[#allocation60_spill] sm:$0xff] }
 0x239   :  { %vm3014_vm11 = vcmp.le.f32.partialorder %v2982_v15, 32.0  ;;  %v2600_v59 = vand.u32 2147483647, %v2504_v17  ;;  %vm2065_vm5 = vcmask 31768   ;;  %v3820_v55 = vunpack.i.h.bf16 %v8911_v11 }
 0x23a   :  { %4012 = vrot.lane.b32.xlu0 %v4011_v25, %s4306_s19  ;;  %vm3015_vm3 = vcmp.le.f32.partialorder %v2983_v61, 32.0  ;;  %vm3046_vm6 = vmand %vm2950_vm13, %vm3014_vm11  ;;  %vm2567_vm9 = vcmp.eq.f32.partialorder %v2535_v18, 0.0  ;;  %vm2568_vm1 = vcmp.eq.f32.partialorder %v2536_v26, 0.0  ;;  %vm2631_vm8 = vcmp.le.f32.partialorder %v2599_v38, 32.0  ;;  %v9377_v25 = vpop.permute.xlu0 %3822  ;;  %v12274_v18 = vld [vmem:[#allocation38_spill] sm:$0xff] }
 0x23b   :  { %vm3047_vm12 = vmand %vm2951_vm7, %vm3015_vm3  ;;  %v3078_v48 = vsel %vm3046_vm6, 0.0, %v11305_v5  ;;  %vm2632_vm14 = vcmp.le.f32.partialorder %v2600_v59, 32.0  ;;  %2069 = vst.msk [vmem:[%s10748_s1 + $0x18] sm:$0xff] %vm2065_vm5, %v3820_v55  ;;  %v3819_v28 = vunpack.i.l.bf16 %v8911_v11  ;;  %v3745_v27 = vunpack.i.h.bf16 %v8938_v16  ;;  %v12273_v11 = vld [vmem:[#allocation88_spill] sm:$0xff] }
 0x23c   :  { %v3079_v60 = vsel %vm3047_vm12, 0.0, %v11305_v5  ;;  %vm2663_vm0 = vmand %vm2567_vm9, %vm2631_vm8  ;;  %v3744_v15 = vunpack.i.l.bf16 %v8938_v16  ;;  %v2890_v17 = vsub.f32 %v9082_v3, %v12272_v0  ;;  %v2891_v16 = vsub.f32 %v9109_v7, %v12273_v11  ;;  %v9408_v0 = vpop.permute.xlu1 %3907 }
 0x23d   :  { %v4096_v63 = vpack.i.bf16 %v3079_v60, %v3078_v48  ;;  %vm2664_vm2 = vmand %vm2568_vm1, %vm2632_vm14  ;;  %v2695_v9 = vsel %vm2663_vm0, 0.0, %v11305_v5  ;;  %2068 = vst.msk [vmem:[%s10748_s1 + $0x10] sm:$0xff] %vm2065_vm5, %v3819_v28  ;;  %v2922_v26 = vsub.f32 %v11792_v47, %v12274_v18  ;;  %v2923_v38 = vsub.f32 %v12236_v22, %v12240_v34 }
 0x23e   :  { %v2696_v61 = vsel %vm2664_vm2, 0.0, %v11305_v5  ;;  %1557 = vst.msk [vmem:[%s10748_s1 + $0x28] sm:$0xff] %vm1551_vm4, %v3745_v27  ;;  %1556 = vst.msk [vmem:[%s10748_s1 + $0x20] sm:$0xff] %vm1551_vm4, %v3744_v15  ;;  %v2986_v55 = vand.u32 2147483647, %v2890_v17  ;;  %v2507_v48 = vsub.f32 %v8972_v56, %v9082_v3  ;;  %v2508_v60 = vsub.f32 %v8999_v20, %v9109_v7 }
 0x23f   :  { %4097 = vrot.lane.b32.xlu1 %v4096_v63, %s4307_s29  ;;  %v4021_v59 = vpack.i.bf16 %v2696_v61, %v2695_v9  ;;  %vm2954_vm10 = vcmp.eq.f32.partialorder %v2922_v26, 0.0  ;;  %vm2955_vm15 = vcmp.eq.f32.partialorder %v2923_v38, 0.0  ;;  %v2987_v28 = vand.u32 2147483647, %v2891_v16  ;;  %v9413_v61 = vpop.permute.xlu0 %3832  ;;  %v9429_v26 = vld [vmem:[%s10747_s0 + $0xd0] sm:$0xff] }
 0x240   :  { %v2539_v27 = vsub.f32 %v12127_v51, %v11792_v47  ;;  %vm3018_vm13 = vcmp.le.f32.partialorder %v2986_v55, 32.0  ;;  %v2540_v63 = vsub.f32 %v12003_v32, %v12236_v22  ;;  %v2603_v9 = vand.u32 2147483647, %v2507_v48  ;;  %v9437_v48 = vld [vmem:[%s10747_s0 + $0xd8] sm:$0xff] }
 0x241   :  { %4022 = vrot.lane.b32.xlu0 %v4021_v59, %s4306_s19  ;;  %v2604_v15 = vand.u32 2147483647, %v2508_v60  ;;  %vm3019_vm7 = vcmp.le.f32.partialorder %v2987_v28, 32.0  ;;  %vm3050_vm11 = vmand %vm2954_vm10, %vm3018_vm13  ;;  %v3830_v56 = vunpack.i.h.bf16 %v8981_v54  ;;  %v3829_v20 = vunpack.i.l.bf16 %v8981_v54 }
 0x242   :  { %vm2571_vm3 = vcmp.eq.f32.partialorder %v2539_v27, 0.0  ;;  %vm3051_vm6 = vmand %vm2955_vm15, %vm3019_vm7  ;;  %v3082_v17 = vsel %vm3050_vm11, 0.0, %v11305_v5  ;;  %vm2572_vm12 = vcmp.eq.f32.partialorder %v2540_v63, 0.0  ;;  %vm2635_vm9 = vcmp.le.f32.partialorder %v2603_v9, 32.0 }
 0x243   :  { %vm2636_vm1 = vcmp.le.f32.partialorder %v2604_v15, 32.0  ;;  %v3083_v11 = vsel %vm3051_vm6, 0.0, %v11305_v5  ;;  %vm2667_vm8 = vmand %vm2571_vm3, %vm2635_vm9  ;;  %2073 = vst.msk [vmem:[%s10748_s1 + $0x38] sm:$0xff] %vm2065_vm5, %v3830_v56  ;;  %v3755_v54 = vunpack.i.h.bf16 %v9006_v42  ;;  %v3754_v16 = vunpack.i.l.bf16 %v9006_v42 }
 0x244   :  { %2072 = vst.msk [vmem:[%s10748_s1 + $0x30] sm:$0xff] %vm2065_vm5, %v3829_v20  ;;  %v2894_v38 = vsub.f32 %v8695_v8, %v9429_v26  ;;  %v4106_v59 = vpack.i.bf16 %v3083_v11, %v3082_v17  ;;  %vm2668_vm14 = vmand %vm2572_vm12, %vm2636_vm1  ;;  %v2699_v55 = vsel %vm2667_vm8, 0.0, %v11305_v5  ;;  %v2895_v42 = vsub.f32 %v9224_v14, %v9437_v48  ;;  %v9459_v17 = vpop.permute.xlu1 %3917 }
 0x245   :  { %v2926_v60 = vsub.f32 %v6121_v44, %v6026_v19  ;;  %v2700_v28 = vsel %vm2668_vm14, 0.0, %v11305_v5  ;;  %1560 = vst.msk [vmem:[%s10748_s1 + $0x40] sm:$0xff] %vm1551_vm4, %v3754_v16  ;;  %1561 = vst.msk [vmem:[%s10748_s1 + $0x48] sm:$0xff] %vm1551_vm4, %v3755_v54  ;;  %v2927_v27 = vsub.f32 %v11839_v45, %v11833_v50  ;;  %v2511_v9 = vsub.f32 %v9082_v3, %v8695_v8 }
 0x246   :  { %v2990_v63 = vand.u32 2147483647, %v2894_v38  ;;  %4107 = vrot.lane.b32.xlu1 %v4106_v59, %s4307_s29  ;;  %v4031_v15 = vpack.i.bf16 %v2700_v28, %v2699_v55  ;;  %v2991_v56 = vand.u32 2147483647, %v2895_v42  ;;  %v2512_v20 = vsub.f32 %v9109_v7, %v9224_v14  ;;  %12275 = vst [vmem:[#allocation67_spill] sm:$0xff] %v9459_v17  ;;  %v9467_v38 = vpop.permute.xlu0 %3842  ;;  %v9529_v17 = vld [vmem:[%s10747_s0 + $0x18] sm:$0xff] }
 0x247   :  { %vm2958_vm0 = vcmp.eq.f32.partialorder %v2926_v60, 0.0  ;;  %vm2959_vm2 = vcmp.eq.f32.partialorder %v2927_v27, 0.0  ;;  %v2543_v11 = vsub.f32 %v11792_v47, %v6121_v44  ;;  %v2544_v54 = vsub.f32 %v12236_v22, %v11839_v45  ;;  %12276 = vst [vmem:[#allocation91_spill] sm:$0xff] %v9467_v38  ;;  %v9489_v27 = vld [vmem:[%s10747_s0 + $0xf0] sm:$0xff] }
 0x248   :  { %vm3022_vm10 = vcmp.le.f32.partialorder %v2990_v63, 32.0  ;;  %4032 = vrot.lane.b32.xlu0 %v4031_v15, %s4306_s19  ;;  %vm3023_vm15 = vcmp.le.f32.partialorder %v2991_v56, 32.0  ;;  %v2607_v8 = vand.u32 2147483647, %v2511_v9  ;;  %v2608_v3 = vand.u32 2147483647, %v2512_v20 }
 0x249   :  { %vm3054_vm13 = vmand %vm2958_vm0, %vm3022_vm10  ;;  %v3840_v16 = vunpack.i.h.bf16 %v9031_v1  ;;  %vm2575_vm11 = vcmp.eq.f32.partialorder %v2543_v11, 0.0  ;;  %vm9470_vm3 = vcmp.eq.f32.partialorder %v2544_v54, 0.0  ;;  %v3839_v55 = vunpack.i.l.bf16 %v9031_v1  ;;  %v9496_v9 = vld [vmem:[%s10747_s0 + $0xf8] sm:$0xff]  ;;  %v12279_v15 = vld [vmem:[#allocation63_spill] sm:$0xff] }
 0x24a   :  { %vm3055_vm7 = vmand %vm2959_vm2, %vm3023_vm15  ;;  %v3086_v7 = vsel %vm3054_vm13, 0.0, %v11305_v5  ;;  %vm2639_vm6 = vcmp.le.f32.partialorder %v2607_v8, 32.0  ;;  %vm2640_vm12 = vcmp.le.f32.partialorder %v2608_v3, 32.0  ;;  %v3765_v60 = vunpack.i.h.bf16 %v9048_v29  ;;  %v12280_v20 = vld [vmem:[#allocation46_spill] sm:$0xff]  ;;  %v12281_v11 = vld [vmem:[#allocation79_spill] sm:$0xff]  ;;  %v9535_v44 = vpop.permute.xlu0 %3852 }
 0x24b   :  { %v3087_v42 = vsel %vm3055_vm7, 0.0, %v11305_v5  ;;  %2077 = vst.msk [vmem:[%s10748_s1 + $0x58] sm:$0xff] %vm2065_vm5, %v3840_v16  ;;  %vm2671_vm9 = vmand %vm2575_vm11, %vm2639_vm6  ;;  %v3764_v1 = vunpack.i.l.bf16 %v9048_v29  ;;  %v2898_v63 = vsub.f32 %v8920_v30, %v9489_v27  ;;  %v2899_v56 = vsub.f32 %v12279_v15, %v9496_v9  ;;  %v12282_v8 = vld [vmem:[#allocation45_spill] sm:$0xff]  ;;  %v12283_v3 = vld [vmem:[#allocation82_spill] sm:$0xff] }
 0x24c   :  { %v4116_v28 = vpack.i.bf16 %v3087_v42, %v3086_v7  ;;  %2076 = vst.msk [vmem:[%s10748_s1 + $0x50] sm:$0xff] %vm2065_vm5, %v3839_v55  ;;  %vm2672_vm1 = vmand %vm9470_vm3, %vm2640_vm12  ;;  %v2703_v29 = vsel %vm2671_vm9, 0.0, %v11305_v5  ;;  %v2930_v54 = vsub.f32 %v12281_v11, %v12280_v20  ;;  %v2931_v16 = vsub.f32 %v12283_v3, %v12282_v8  ;;  %v9514_v7 = vld [vmem:[%s10747_s0 + $0x10] sm:$0xff]  ;;  %v9518_v55 = vpop.permute.xlu1 %3927 }
 0x24d   :  { %1565 = vst.msk [vmem:[%s10748_s1 + $0x68] sm:$0xff] %vm1551_vm4, %v3765_v60  ;;  %v2868_v59 = vsub.f32 %v9514_v7, %v8920_v30  ;;  %12284 = vst [vmem:[#allocation68_spill] sm:$0xff] %v9518_v55  ;;  %v2704_v42 = vsel %vm2672_vm1, 0.0, %v11305_v5  ;;  %v2994_v60 = vand.u32 2147483647, %v2898_v63  ;;  %v2869_v30 = vsub.f32 %v9529_v17, %v12279_v15 }
 0x24e   :  { %4117 = vrot.lane.b32.xlu1 %v4116_v28, %s4307_s29  ;;  %1564 = vst.msk [vmem:[%s10748_s1 + $0x60] sm:$0xff] %vm1551_vm4, %v3764_v1  ;;  %v2995_v38 = vand.u32 2147483647, %v2899_v56  ;;  %v4041_v55 = vpack.i.bf16 %v2704_v42, %v2703_v29  ;;  %vm2962_vm8 = vcmp.eq.f32.partialorder %v2930_v54, 0.0  ;;  %vm2963_vm14 = vcmp.eq.f32.partialorder %v2931_v16, 0.0  ;;  %v12285_v28 = vld [vmem:[#allocation78_spill] sm:$0xff] }
 0x24f   :  { %v2900_v45 = vsub.f32 %v12285_v28, %v12281_v11  ;;  %12286 = vst [vmem:[#allocation69_spill] sm:$0xff] %v9535_v44  ;;  %vm3026_vm0 = vcmp.le.f32.partialorder %v2994_v60, 32.0  ;;  %v12287_v1 = vld [vmem:[#allocation81_spill] sm:$0xff]  ;;  %v2964_v56 = vand.u32 2147483647, %v2868_v59  ;;  %v3850_v15 = vunpack.i.h.bf16 %v9091_v37  ;;  %v12288_v16 = vld [vmem:[#allocation64_spill] sm:$0xff]  ;;  %v9584_v44 = vpop.permute.xlu0 %3862 }
 0x250   :  { %vm3027_vm2 = vcmp.le.f32.partialorder %v2995_v38, 32.0  ;;  %v2901_v63 = vsub.f32 %v12287_v1, %v12283_v3  ;;  %4042 = vrot.lane.b32.xlu0 %v4041_v55, %s4306_s19  ;;  %vm3058_vm10 = vmand %vm2962_vm8, %vm3026_vm0  ;;  %v2965_v14 = vand.u32 2147483647, %v2869_v30  ;;  %v3849_v29 = vunpack.i.l.bf16 %v9091_v37  ;;  %v4280_v37 = vld [vmem:[%s10747_s0 + $0x30] sm:$0xff]  ;;  %v4281_v30 = vld [vmem:[%s10747_s0 + $0x38] sm:$0xff]  ;;  %12293 = vst [vmem:[#allocation72_spill] sm:$0xff] %v9584_v44 }
 0x251   :  { %vm2932_vm15 = vcmp.eq.f32.partialorder %v2900_v45, 0.0  ;;  %vm3059_vm13 = vmand %vm2963_vm14, %vm3027_vm2  ;;  %v3090_v54 = vsel %vm3058_vm10, 0.0, %v11305_v5  ;;  %vm2996_vm11 = vcmp.le.f32.partialorder %v2964_v56, 32.0  ;;  %v3775_v38 = vunpack.i.h.bf16 %v12288_v16  ;;  %2081 = vst.msk [vmem:[%s10748_s1 + $0x78] sm:$0xff] %vm2065_vm5, %v3850_v15  ;;  %v12290_v56 = vld [vmem:[#allocation16_spill] sm:$0xff] }
 0x252   :  { %vm2933_vm7 = vcmp.eq.f32.partialorder %v2901_v63, 0.0  ;;  %v3091_v42 = vsel %vm3059_vm13, 0.0, %v11305_v5  ;;  %vm2997_vm3 = vcmp.le.f32.partialorder %v2965_v14, 32.0  ;;  %vm3028_vm6 = vmand %vm2932_vm15, %vm2996_vm11  ;;  %2080 = vst.msk [vmem:[%s10748_s1 + $0x70] sm:$0xff] %vm2065_vm5, %v3849_v29  ;;  %v3774_v45 = vunpack.i.l.bf16 %v12288_v16  ;;  %v9558_v14 = vpop.permute.xlu1 %3937 }
 0x253   :  { %v3255_v59 = vsub.f32 %v4280_v37, %v9514_v7  ;;  %12289 = vst [vmem:[#allocation70_spill] sm:$0xff] %v9558_v14  ;;  %v4126_v55 = vpack.i.bf16 %v3091_v42, %v3090_v54  ;;  %vm3029_vm12 = vmand %vm2933_vm7, %vm2997_vm3  ;;  %v3060_v60 = vsel %vm3028_vm6, 0.0, %v11305_v5  ;;  %v3256_v63 = vsub.f32 %v4281_v30, %v9529_v17  ;;  %v12291_v54 = vld [vmem:[#allocation18_spill] sm:$0xff] }
 0x254   :  { %1569 = vst.msk [vmem:[%s10748_s1 + $0x88] sm:$0xff] %vm1551_vm4, %v3775_v38  ;;  %v3287_v15 = vsub.f32 %v12290_v56, %v12285_v28  ;;  %v3061_v29 = vsel %vm3029_vm12, 0.0, %v11305_v5  ;;  %1568 = vst.msk [vmem:[%s10748_s1 + $0x80] sm:$0xff] %vm1551_vm4, %v3774_v45  ;;  %v3288_v16 = vsub.f32 %v12291_v54, %v12287_v1  ;;  %v9581_v42 = vld [vmem:[%s10747_s0 + $0x20] sm:$0xff]  ;;  %v9590_v45 = vld [vmem:[%s10747_s0 + $0x28] sm:$0xff] }
 0x255   :  { %v3351_v38 = vand.u32 2147483647, %v3255_v59  ;;  %12292 = vst [vmem:[#allocation71_spill] sm:$0xff] %v9581_v42  ;;  %v2872_v14 = vsub.f32 %v4280_v37, %v9581_v42  ;;  %4127 = vrot.lane.b32.xlu1 %v4126_v55, %s4307_s29  ;;  %v4051_v3 = vpack.i.bf16 %v3061_v29, %v3060_v60  ;;  %v3352_v11 = vand.u32 2147483647, %v3256_v63  ;;  %v12294_v1 = vld [vmem:[#allocation85_spill] sm:$0xff] }
 0x256   :  { %vm3319_vm9 = vcmp.eq.f32.partialorder %v3287_v15, 0.0  ;;  %v2873_v59 = vsub.f32 %v4281_v30, %v9590_v45  ;;  %vm3320_vm1 = vcmp.eq.f32.partialorder %v3288_v16, 0.0  ;;  %v2904_v28 = vsub.f32 %v12290_v56, %v12294_v1  ;;  %v12295_v42 = vld [vmem:[#allocation84_spill] sm:$0xff] }
 0x257   :  { %vm3383_vm8 = vcmp.le.f32.partialorder %v3351_v38, 32.0  ;;  %v2905_v44 = vsub.f32 %v12291_v54, %v12295_v42  ;;  %4052 = vrot.lane.b32.xlu0 %v4051_v3, %s4307_s29  ;;  %vm3384_vm14 = vcmp.le.f32.partialorder %v3352_v11, 32.0  ;;  %v2968_v55 = vand.u32 2147483647, %v2872_v14  ;;  %v9605_v38 = vpop.permute.xlu1 %3947 }
 0x258   :  { %vm3415_vm0 = vmand %vm3319_vm9, %vm3383_vm8  ;;  %v2969_v60 = vand.u32 2147483647, %v2873_v59  ;;  %v3860_v63 = vunpack.i.h.bf16 %v9151_v41  ;;  %vm2936_vm10 = vcmp.eq.f32.partialorder %v2904_v28, 0.0  ;;  %v3859_v16 = vunpack.i.l.bf16 %v9151_v41  ;;  %v12298_v41 = vld [vmem:[#allocation31_spill] sm:$0xff]  ;;  %v12299_v59 = vld [vmem:[#allocation29_spill] sm:$0xff] }
 0x259   :  { %vm3416_vm2 = vmand %vm3320_vm1, %vm3384_vm14  ;;  %v3447_v15 = vsel %vm3415_vm0, 0.0, %v11305_v5  ;;  %vm9600_vm15 = vcmp.eq.f32.partialorder %v2905_v44, 0.0  ;;  %vm3000_vm13 = vcmp.le.f32.partialorder %v2968_v55, 32.0  ;;  %v3785_v11 = vunpack.i.h.bf16 %v9168_v24 }
 0x25a   :  { %v3448_v3 = vsel %vm3416_vm2, 0.0, %v11305_v5  ;;  %vm3001_vm7 = vcmp.le.f32.partialorder %v2969_v60, 32.0  ;;  %2085 = vst.msk [vmem:[%s10748_s1 + $0x98] sm:$0xff] %vm2065_vm5, %v3860_v63  ;;  %vm3032_vm11 = vmand %vm2936_vm10, %vm3000_vm13  ;;  %v3784_v44 = vunpack.i.l.bf16 %v9168_v24  ;;  %v3259_v14 = vsub.f32 %v12298_v41, %v4280_v37  ;;  %v9620_v60 = vpop.permute.xlu0 %3872  ;;  %v9636_v37 = vld [vmem:[%s10747_s0 + $0x40] sm:$0xff] }
 0x25b   :  { %v4136_v28 = vpack.i.bf16 %v3448_v3, %v3447_v15  ;;  %2084 = vst.msk [vmem:[%s10748_s1 + $0x90] sm:$0xff] %vm2065_vm5, %v3859_v16  ;;  %v3260_v55 = vsub.f32 %v12299_v59, %v4281_v30  ;;  %12300 = vst [vmem:[#allocation49_spill] sm:$0xff] %v9620_v60  ;;  %v3064_v63 = vsel %vm3032_vm11, 0.0, %v11305_v5  ;;  %v3291_v15 = vsub.f32 %v12249_v2, %v12290_v56  ;;  %v9649_v16 = vld [vmem:[%s10747_s0 + $0x48] sm:$0xff] }
 0x25c   :  { %vm3033_vm3 = vmand %vm9600_vm15, %vm3001_vm7  ;;  %1573 = vst.msk [vmem:[%s10748_s1 + $0xa8] sm:$0xff] %vm1551_vm4, %v3785_v11  ;;  %v3292_v24 = vsub.f32 %v12183_v49, %v12291_v54  ;;  %v2876_v30 = vsub.f32 %v12298_v41, %v9636_v37  ;;  %v3355_v56 = vand.u32 2147483647, %v3259_v14  ;;  %v2877_v3 = vsub.f32 %v12299_v59, %v9649_v16 }
 0x25d   :  { %4137 = vrot.lane.b32.xlu1 %v4136_v28, %s4308_s12  ;;  %v3065_v29 = vsel %vm3033_vm3, 0.0, %v11305_v5  ;;  %1572 = vst.msk [vmem:[%s10748_s1 + $0xa0] sm:$0xff] %vm1551_vm4, %v3784_v44  ;;  %v3356_v54 = vand.u32 2147483647, %v3260_v55  ;;  %vm3323_vm6 = vcmp.eq.f32.partialorder %v3291_v15, 0.0  ;;  %v2908_v28 = vsub.f32 %v12249_v2, %v11934_v62  ;;  %v9657_v55 = vpop.permute.xlu1 %3957 }
 0x25e   :  { %v4061_v11 = vpack.i.bf16 %v3065_v29, %v3064_v63  ;;  %vm3324_vm12 = vcmp.eq.f32.partialorder %v3292_v24, 0.0  ;;  %vm3387_vm9 = vcmp.le.f32.partialorder %v3355_v56, 32.0  ;;  %v2909_v44 = vsub.f32 %v12183_v49, %v12068_v4  ;;  %v9664_v56 = vpop.permute.xlu0 %3882 }
 0x25f   :  { %vm3388_vm1 = vcmp.le.f32.partialorder %v3356_v54, 32.0  ;;  %v2972_v14 = vand.u32 2147483647, %v2876_v30  ;;  %vm3419_vm8 = vmand %vm3323_vm6, %vm3387_vm9  ;;  %vm2940_vm14 = vcmp.eq.f32.partialorder %v2908_v28, 0.0  ;;  %v2973_v60 = vand.u32 2147483647, %v2877_v3 }
 0x260   :  { %4062 = vrot.lane.b32.xlu0 %v4061_v11, %s4307_s29  ;;  %v3870_v63 = vunpack.i.h.bf16 %v9206_v58  ;;  %v3869_v15 = vunpack.i.l.bf16 %v9206_v58  ;;  %vm3420_vm0 = vmand %vm3324_vm12, %vm3388_vm1  ;;  %v3451_v24 = vsel %vm3419_vm8, 0.0, %v11305_v5  ;;  %vm2941_vm2 = vcmp.eq.f32.partialorder %v2909_v44, 0.0  ;;  %v12301_v11 = vld [vmem:[#allocation66_spill] sm:$0xff] }
 0x261   :  { %vm3004_vm10 = vcmp.le.f32.partialorder %v2972_v14, 32.0  ;;  %v3795_v29 = vunpack.i.h.bf16 %v9231_v53  ;;  %v3452_v30 = vsel %vm3420_vm0, 0.0, %v11305_v5  ;;  %vm3005_vm15 = vcmp.le.f32.partialorder %v2973_v60, 32.0 }
 0x262   :  { %vm3036_vm13 = vmand %vm2940_vm14, %vm3004_vm10  ;;  %2089 = vst.msk [vmem:[%s10748_s1 + $0xb8] sm:$0xff] %vm2065_vm5, %v3870_v63  ;;  %v3794_v58 = vunpack.i.l.bf16 %v9231_v53  ;;  %v3263_v54 = vsub.f32 %v9241_v39, %v12298_v41  ;;  %v4146_v3 = vpack.i.bf16 %v3452_v30, %v3451_v24  ;;  %v3264_v28 = vsub.f32 %v12301_v11, %v12299_v59  ;;  %v9697_v63 = vld [vmem:[%s10747_s0 + $0x60] sm:$0xff]  ;;  %v9705_v24 = vld [vmem:[%s10747_s0 + $0x68] sm:$0xff] }
 0x263   :  { %2088 = vst.msk [vmem:[%s10748_s1 + $0xb0] sm:$0xff] %vm2065_vm5, %v3869_v15  ;;  %vm3037_vm7 = vmand %vm2941_vm2, %vm3005_vm15  ;;  %v3068_v60 = vsel %vm3036_vm13, 0.0, %v11305_v5  ;;  %v3295_v44 = vsub.f32 %v12266_v21, %v12249_v2  ;;  %v3296_v41 = vsub.f32 %v12097_v57, %v12183_v49  ;;  %v2880_v59 = vsub.f32 %v9241_v39, %v9697_v63 }
 0x264   :  { %1577 = vst.msk [vmem:[%s10748_s1 + $0xc8] sm:$0xff] %vm1551_vm4, %v3795_v29  ;;  %v3069_v53 = vsel %vm3037_vm7, 0.0, %v11305_v5  ;;  %1576 = vst.msk [vmem:[%s10748_s1 + $0xc0] sm:$0xff] %vm1551_vm4, %v3794_v58  ;;  %v3359_v14 = vand.u32 2147483647, %v3263_v54  ;;  %4147 = vrot.lane.b32.xlu1 %v4146_v3, %s4308_s12  ;;  %v2881_v49 = vsub.f32 %v12301_v11, %v9705_v24  ;;  %v9709_v29 = vpop.permute.xlu1 %3967  ;;  %v2912_v30 = vsub.f32 %v12266_v21, %v12089_v23 }
 0x265   :  { %v4071_v2 = vpack.i.bf16 %v3069_v53, %v3068_v60  ;;  %vm3327_vm11 = vcmp.eq.f32.partialorder %v3295_v44, 0.0  ;;  %v3360_v15 = vand.u32 2147483647, %v3264_v28  ;;  %vm3328_vm3 = vcmp.eq.f32.partialorder %v3296_v41, 0.0  ;;  %v9717_v28 = vpop.permute.xlu0 %3892 }
 0x266   :  { %vm3391_vm6 = vcmp.le.f32.partialorder %v3359_v14, 32.0  ;;  %v2913_v58 = vsub.f32 %v12097_v57, %v12180_v36  ;;  %v2976_v54 = vand.u32 2147483647, %v2880_v59  ;;  %v2977_v3 = vand.u32 2147483647, %v2881_v49 }
 0x267   :  { %4072 = vrot.lane.b32.xlu0 %v4071_v2, %s4307_s29  ;;  %vm3392_vm12 = vcmp.le.f32.partialorder %v3360_v15, 32.0  ;;  %vm3423_vm9 = vmand %vm3327_vm11, %vm3391_vm6  ;;  %v3880_v60 = vunpack.i.h.bf16 %v9266_v52  ;;  %vm2944_vm8 = vcmp.eq.f32.partialorder %v2912_v30, 0.0  ;;  %v3879_v53 = vunpack.i.l.bf16 %v9266_v52 }
 0x268   :  { %vm3424_vm1 = vmand %vm3328_vm3, %vm3392_vm12  ;;  %v3455_v44 = vsel %vm3423_vm9, 0.0, %v11305_v5  ;;  %vm2945_vm14 = vcmp.eq.f32.partialorder %v2913_v58, 0.0  ;;  %vm3008_vm0 = vcmp.le.f32.partialorder %v2976_v54, 32.0  ;;  %vm3009_vm2 = vcmp.le.f32.partialorder %v2977_v3, 32.0  ;;  %v9752_v58 = vpop.permute.xlu1 %3977  ;;  %v9763_v3 = vld [vmem:[%s10747_s0 + $0x88] sm:$0xff] }
 0x269   :  { %v3456_v41 = vsel %vm3424_vm1, 0.0, %v11305_v5  ;;  %2093 = vst.msk [vmem:[%s10748_s1 + $0xd8] sm:$0xff] %vm2065_vm5, %v3880_v60  ;;  %v3805_v14 = vunpack.i.h.bf16 %v9283_v33  ;;  %vm3040_vm10 = vmand %vm2944_vm8, %vm3008_vm0  ;;  %v3804_v52 = vunpack.i.l.bf16 %v9283_v33  ;;  %v3267_v2 = vsub.f32 %v9323_v6, %v9241_v39  ;;  %v9748_v39 = vld [vmem:[%s10747_s0 + $0x80] sm:$0xff] }
 0x26a   :  { %v4156_v59 = vpack.i.bf16 %v3456_v41, %v3455_v44  ;;  %2092 = vst.msk [vmem:[%s10748_s1 + $0xd0] sm:$0xff] %vm2065_vm5, %v3879_v53  ;;  %v3268_v15 = vsub.f32 %v9337_v12, %v12301_v11  ;;  %vm3041_vm15 = vmand %vm2945_vm14, %vm3009_vm2  ;;  %v3072_v49 = vsel %vm3040_vm10, 0.0, %v11305_v5  ;;  %v3299_v30 = vsub.f32 %v12271_v40, %v12266_v21  ;;  %v9769_v41 = vpop.permute.xlu0 %3902 }
 0x26b   :  { %1581 = vst.msk [vmem:[%s10748_s1 + $0xe8] sm:$0xff] %vm1551_vm4, %v3805_v14  ;;  %v3300_v33 = vsub.f32 %v12002_v31, %v12097_v57  ;;  %v2884_v11 = vsub.f32 %v9323_v6, %v9748_v39  ;;  %v3073_v54 = vsel %vm3041_vm15, 0.0, %v11305_v5  ;;  %1580 = vst.msk [vmem:[%s10748_s1 + $0xe0] sm:$0xff] %vm1551_vm4, %v3804_v52  ;;  %v3363_v57 = vand.u32 2147483647, %v3267_v2 }
 0x26c   :  { %4157 = vrot.lane.b32.xlu1 %v4156_v59, %s4308_s12  ;;  %v3364_v21 = vand.u32 2147483647, %v3268_v15  ;;  %v2885_v60 = vsub.f32 %v9337_v12, %v9763_v3  ;;  %v4081_v44 = vpack.i.bf16 %v3073_v54, %v3072_v49  ;;  %vm3331_vm13 = vcmp.eq.f32.partialorder %v3299_v30, 0.0 }
 0x26d   :  { %vm3332_vm7 = vcmp.eq.f32.partialorder %v3300_v33, 0.0  ;;  %v2916_v53 = vsub.f32 %v12271_v40, %v12194_v46  ;;  %vm3395_vm11 = vcmp.le.f32.partialorder %v3363_v57, 32.0  ;;  %v2917_v14 = vsub.f32 %v12002_v31, %v12200_v10  ;;  %v9792_v57 = vpop.permute.xlu1 %3987 }
 0x26e   :  { %vm3396_vm4 = vcmp.le.f32.partialorder %v3364_v21, 32.0  ;;  %v2980_v59 = vand.u32 2147483647, %v2884_v11  ;;  %4082 = vrot.lane.b32.xlu0 %v4081_v44, %s4307_s29  ;;  %vm3427_vm3 = vmand %vm3331_vm13, %vm3395_vm11  ;;  %v2981_v52 = vand.u32 2147483647, %v2885_v60  ;;  %v3890_v2 = vunpack.i.h.bf16 %v9327_v13  ;;  %v4290_v11 = vld [vmem:[%s10747_s0 + $0xb0] sm:$0xff] }
 0x26f   :  { %vm2948_vm6 = vcmp.eq.f32.partialorder %v2916_v53, 0.0  ;;  %v3889_v15 = vunpack.i.l.bf16 %v9327_v13  ;;  %vm3428_vm12 = vmand %vm3332_vm7, %vm3396_vm4  ;;  %v3459_v49 = vsel %vm3427_vm3, 0.0, %v11305_v5  ;;  %vm2949_vm9 = vcmp.eq.f32.partialorder %v2917_v14, 0.0 }
 0x270   :  { %vm3012_vm1 = vcmp.le.f32.partialorder %v2980_v59, 32.0  ;;  %v3815_v30 = vunpack.i.h.bf16 %v9355_v43  ;;  %v3460_v33 = vsel %vm3428_vm12, 0.0, %v11305_v5  ;;  %vm3013_vm8 = vcmp.le.f32.partialorder %v2981_v52, 32.0  ;;  %2097 = vst.msk [vmem:[%s10748_s1 + $0xf8] sm:$0xff] %vm2065_vm5, %v3890_v2  ;;  %v9815_v52 = vld [vmem:[%s10747_s0 + $0xa0] sm:$0xff]  ;;  %v9818_v2 = vpop.permute.xlu0 %3912 }
 0x271   :  { %vm3044_vm14 = vmand %vm2948_vm6, %vm3012_vm1  ;;  %2096 = vst.msk [vmem:[%s10748_s1 + $0xf0] sm:$0xff] %vm2065_vm5, %v3889_v15  ;;  %v3814_v13 = vunpack.i.l.bf16 %v9355_v43  ;;  %v3271_v54 = vsub.f32 %v4290_v11, %v9323_v6  ;;  %v4166_v21 = vpack.i.bf16 %v3460_v33, %v3459_v49  ;;  %v4291_v43 = vld [vmem:[%s10747_s0 + $0xb8] sm:$0xff]  ;;  %v3303_v6 = vsub.f32 %v12274_v18, %v12271_v40  ;;  %v9824_v49 = vld [vmem:[%s10747_s0 + $0xa8] sm:$0xff] }
 0x272   :  { %vm3045_vm0 = vmand %vm2949_vm9, %vm3013_vm8  ;;  %v3076_v60 = vsel %vm3044_vm14, 0.0, %v11305_v5  ;;  %2067 = vst.msk [vmem:[%s10748_s1 + $0x8] sm:$0xff] %vm2065_vm5, %v3815_v30  ;;  %v3272_v44 = vsub.f32 %v4291_v43, %v9337_v12  ;;  %v3304_v14 = vsub.f32 %v12240_v34, %v12002_v31  ;;  %v2888_v12 = vsub.f32 %v4290_v11, %v9815_v52 }
 0x273   :  { %v3077_v53 = vsel %vm3045_vm0, 0.0, %v11305_v5  ;;  %2066 = vst.msk [vmem:[%s10748_s1] sm:$0xff] %vm2065_vm5, %v3814_v13  ;;  %v3367_v59 = vand.u32 2147483647, %v3271_v54  ;;  %4167 = vrot.lane.b32.xlu1 %v4166_v21, %s4308_s12  ;;  %vm3335_vm2 = vcmp.eq.f32.partialorder %v3303_v6, 0.0  ;;  %v2889_v31 = vsub.f32 %v4291_v43, %v9824_v49 }
 0x274   :  { %v4091_v40 = vpack.i.bf16 %v3077_v53, %v3076_v60  ;;  %v3368_v15 = vand.u32 2147483647, %v3272_v44  ;;  %vm3336_vm10 = vcmp.eq.f32.partialorder %v3304_v14, 0.0  ;;  %v2920_v30 = vsub.f32 %v12274_v18, %v12127_v51  ;;  %v9834_v44 = vpop.permute.xlu1 %3997 }
 0x275   :  { %vm3399_vm15 = vcmp.le.f32.partialorder %v3367_v59, 32.0  ;;  %v2921_v33 = vsub.f32 %v12240_v34, %v12003_v32  ;;  %v2984_v13 = vand.u32 2147483647, %v2888_v12  ;;  %v2985_v54 = vand.u32 2147483647, %v2889_v31 }
 0x276   :  { %4092 = vrot.lane.b32.xlu0 %v4091_v40, %s4307_s29  ;;  %vm3400_vm13 = vcmp.le.f32.partialorder %v3368_v15, 32.0  ;;  %vm3431_vm7 = vmand %vm3335_vm2, %vm3399_vm15  ;;  %vm2450_vm11 = vcmask 39968   ;;  %vm2952_vm3 = vcmp.eq.f32.partialorder %v2920_v30, 0.0  ;;  %v3900_v60 = vunpack.i.h.bf16 %v9364_v35  ;;  %v9845_v15 = vpop.permute.xlu0 %3922 }
 0x277   :  { %vm3432_vm4 = vmand %vm3336_vm10, %vm3400_vm13  ;;  %v3463_v21 = vsel %vm3431_vm7, 0.0, %v11305_v5  ;;  %vm2953_vm6 = vcmp.eq.f32.partialorder %v2921_v33, 0.0  ;;  %vm3016_vm12 = vcmp.le.f32.partialorder %v2984_v13, 32.0  ;;  %vm3017_vm9 = vcmp.le.f32.partialorder %v2985_v54, 32.0  ;;  %v9877_v33 = vld [vmem:[%s10747_s0 + $0xc8] sm:$0xff] }
 0x278   :  { %v3464_v6 = vsel %vm3432_vm4, 0.0, %v11305_v5  ;;  %v3899_v53 = vunpack.i.l.bf16 %v9364_v35  ;;  %vm3048_vm1 = vmand %vm2952_vm3, %vm3016_vm12  ;;  %2454 = vst.msk [vmem:[%s10748_s1 + $0x18] sm:$0xff] %vm2450_vm11, %v3900_v60  ;;  %v3825_v59 = vunpack.i.h.bf16 %v9377_v25  ;;  %v3824_v12 = vunpack.i.l.bf16 %v9377_v25 }
 0x279   :  { %v4176_v14 = vpack.i.bf16 %v3464_v6, %v3463_v21  ;;  %v3275_v40 = vsub.f32 %v9429_v26, %v4290_v11  ;;  %vm3049_vm8 = vmand %vm2953_vm6, %vm3017_vm9  ;;  %v3080_v31 = vsel %vm3048_vm1, 0.0, %v11305_v5  ;;  %v3276_v35 = vsub.f32 %v9437_v48, %v4291_v43 }
 0x27a   :  { %2453 = vst.msk [vmem:[%s10748_s1 + $0x10] sm:$0xff] %vm2450_vm11, %v3899_v53  ;;  %v3307_v30 = vsub.f32 %v6026_v19, %v12274_v18  ;;  %v3308_v25 = vsub.f32 %v11833_v50, %v12240_v34  ;;  %v3081_v11 = vsel %vm3049_vm8, 0.0, %v11305_v5  ;;  %v9870_v18 = vld [vmem:[%s10747_s0 + $0xc0] sm:$0xff]  ;;  %v2893_v13 = vsub.f32 %v9437_v48, %v9877_v33 }
 0x27b   :  { %4177 = vrot.lane.b32.xlu1 %v4176_v14, %s4308_s12  ;;  %2070 = vst.msk [vmem:[%s10748_s1 + $0x20] sm:$0xff] %vm2065_vm5, %v3824_v12  ;;  %2071 = vst.msk [vmem:[%s10748_s1 + $0x28] sm:$0xff] %vm2065_vm5, %v3825_v59  ;;  %v3371_v43 = vand.u32 2147483647, %v3275_v40  ;;  %v2892_v34 = vsub.f32 %v9429_v26, %v9870_v18  ;;  %v4101_v54 = vpack.i.bf16 %v3081_v11, %v3080_v31  ;;  %v3372_v21 = vand.u32 2147483647, %v3276_v35  ;;  %v9885_v14 = vpop.permute.xlu1 %4007  ;;  %v9891_v35 = vpop.permute.xlu0 %3932 }
 0x27c   :  { %vm3339_vm14 = vcmp.eq.f32.partialorder %v3307_v30, 0.0  ;;  %vm3340_vm0 = vcmp.eq.f32.partialorder %v3308_v25, 0.0  ;;  %v2924_v60 = vsub.f32 %v6026_v19, %v11792_v47  ;;  %v2925_v6 = vsub.f32 %v11833_v50, %v12236_v22 }
 0x27d   :  { %vm3403_vm2 = vcmp.le.f32.partialorder %v3371_v43, 32.0  ;;  %v2988_v53 = vand.u32 2147483647, %v2892_v34  ;;  %4102 = vrot.lane.b32.xlu0 %v4101_v54, %s4307_s29  ;;  %vm3404_vm10 = vcmp.le.f32.partialorder %v3372_v21, 32.0  ;;  %v2989_v59 = vand.u32 2147483647, %v2893_v13 }
 0x27e   :  { %vm3435_vm15 = vmand %vm3339_vm14, %vm3403_vm2  ;;  %v3910_v12 = vunpack.i.h.bf16 %v9408_v0  ;;  %v3909_v40 = vunpack.i.l.bf16 %v9408_v0  ;;  %vm2956_vm7 = vcmp.eq.f32.partialorder %v2924_v60, 0.0  ;;  %vm2957_vm4 = vcmp.eq.f32.partialorder %v2925_v6, 0.0 }
 0x27f   :  { %vm3436_vm13 = vmand %vm3340_vm0, %vm3404_vm10  ;;  %v3467_v31 = vsel %vm3435_vm15, 0.0, %v11305_v5  ;;  %vm3020_vm3 = vcmp.le.f32.partialorder %v2988_v53, 32.0  ;;  %vm3021_vm6 = vcmp.le.f32.partialorder %v2989_v59, 32.0  ;;  %v3835_v0 = vunpack.i.h.bf16 %v9413_v61  ;;  %v12302_v59 = vld [vmem:[#allocation65_spill] sm:$0xff] }
 0x280   :  { %v3468_v30 = vsel %vm3436_vm13, 0.0, %v11305_v5  ;;  %vm3052_vm12 = vmand %vm2956_vm7, %vm3020_vm3  ;;  %2457 = vst.msk [vmem:[%s10748_s1 + $0x30] sm:$0xff] %vm2450_vm11, %v3909_v40  ;;  %v3834_v25 = vunpack.i.l.bf16 %v9413_v61  ;;  %v3279_v34 = vsub.f32 %v9489_v27, %v9429_v26  ;;  %v3280_v13 = vsub.f32 %v9496_v9, %v9437_v48  ;;  %v9925_v48 = vld [vmem:[%s10747_s0 + $0xe0] sm:$0xff] }
 0x281   :  { %2458 = vst.msk [vmem:[%s10748_s1 + $0x38] sm:$0xff] %vm2450_vm11, %v3910_v12  ;;  %v4186_v11 = vpack.i.bf16 %v3468_v30, %v3467_v31  ;;  %vm3053_vm9 = vmand %vm2957_vm4, %vm3021_vm6  ;;  %v3084_v43 = vsel %vm3052_vm12, 0.0, %v11305_v5  ;;  %v3311_v61 = vsub.f32 %v12280_v20, %v6026_v19  ;;  %v3312_v26 = vsub.f32 %v12282_v8, %v11833_v50  ;;  %v9932_v19 = vpop.permute.xlu1 %4017  ;;  %v12303_v50 = vld [vmem:[#allocation48_spill] sm:$0xff] }
 0x282   :  { %v3085_v54 = vsel %vm3053_vm9, 0.0, %v11305_v5  ;;  %2074 = vst.msk [vmem:[%s10748_s1 + $0x40] sm:$0xff] %vm2065_vm5, %v3834_v25  ;;  %2075 = vst.msk [vmem:[%s10748_s1 + $0x48] sm:$0xff] %vm2065_vm5, %v3835_v0  ;;  %v2896_v21 = vsub.f32 %v9489_v27, %v9925_v48  ;;  %v3375_v6 = vand.u32 2147483647, %v3279_v34  ;;  %v2897_v12 = vsub.f32 %v9496_v9, %v12302_v59  ;;  %v12304_v31 = vld [vmem:[#allocation44_spill] sm:$0xff] }
 0x283   :  { %4187 = vrot.lane.b32.xlu1 %v4186_v11, %s4308_s12  ;;  %v4111_v60 = vpack.i.bf16 %v3085_v54, %v3084_v43  ;;  %v3376_v53 = vand.u32 2147483647, %v3280_v13  ;;  %vm3343_vm1 = vcmp.eq.f32.partialorder %v3311_v61, 0.0  ;;  %vm3344_vm8 = vcmp.eq.f32.partialorder %v3312_v26, 0.0  ;;  %v9939_v11 = vpop.permute.xlu0 %3942  ;;  %v12307_v34 = vld [vmem:[#allocation67_spill] sm:$0xff] }
 0x284   :  { %v2928_v40 = vsub.f32 %v12280_v20, %v12303_v50  ;;  %v2929_v30 = vsub.f32 %v12282_v8, %v12304_v31  ;;  %vm3407_vm14 = vcmp.le.f32.partialorder %v3375_v6, 32.0  ;;  %v2992_v0 = vand.u32 2147483647, %v2896_v21  ;;  %v12308_v26 = vld [vmem:[#allocation91_spill] sm:$0xff] }
 0x285   :  { %4112 = vrot.lane.b32.xlu0 %v4111_v60, %s4307_s29  ;;  %vm3408_vm0 = vcmp.le.f32.partialorder %v3376_v53, 32.0  ;;  %v2993_v25 = vand.u32 2147483647, %v2897_v12  ;;  %vm3439_vm2 = vmand %vm3343_vm1, %vm3407_vm14  ;;  %v3920_v13 = vunpack.i.h.bf16 %v12307_v34  ;;  %v3919_v54 = vunpack.i.l.bf16 %v12307_v34  ;;  %v9984_v34 = vld [vmem:[%s10747_s0] sm:$0xff] }
 0x286   :  { %vm2960_vm10 = vcmp.eq.f32.partialorder %v2928_v40, 0.0  ;;  %vm9941_vm15 = vcmp.eq.f32.partialorder %v2929_v30, 0.0  ;;  %vm3440_vm13 = vmand %vm3344_vm8, %vm3408_vm0  ;;  %v3471_v61 = vsel %vm3439_vm2, 0.0, %v11305_v5  ;;  %vm3024_vm7 = vcmp.le.f32.partialorder %v2992_v0, 32.0  ;;  %v12309_v30 = vld [vmem:[#allocation78_spill] sm:$0xff] }
 0x287   :  { %vm3025_vm4 = vcmp.le.f32.partialorder %v2993_v25, 32.0  ;;  %v3845_v21 = vunpack.i.h.bf16 %v12308_v26  ;;  %v3472_v60 = vsel %vm3440_vm13, 0.0, %v11305_v5  ;;  %vm3056_vm3 = vmand %vm2960_vm10, %vm3024_vm7  ;;  %2461 = vst.msk [vmem:[%s10748_s1 + $0x50] sm:$0xff] %vm2450_vm11, %v3919_v54  ;;  %v3844_v6 = vunpack.i.l.bf16 %v12308_v26  ;;  %v12310_v25 = vld [vmem:[#allocation81_spill] sm:$0xff]  ;;  %v9992_v54 = vld [vmem:[%s10747_s0 + $0x8] sm:$0xff]  ;;  %v9996_v26 = vpop.permute.xlu0 %3952 }
 0x288   :  { %2462 = vst.msk [vmem:[%s10748_s1 + $0x58] sm:$0xff] %vm2450_vm11, %v3920_v13  ;;  %v3283_v53 = vsub.f32 %v9514_v7, %v9489_v27  ;;  %v3284_v59 = vsub.f32 %v9529_v17, %v9496_v9  ;;  %v4196_v12 = vpack.i.bf16 %v3472_v60, %v3471_v61  ;;  %vm3057_vm6 = vmand %vm9941_vm15, %vm3025_vm4  ;;  %v3088_v40 = vsel %vm3056_vm3, 0.0, %v11305_v5  ;;  %v9974_v7 = vpop.permute.xlu1 %4027 }
 0x289   :  { %2079 = vst.msk [vmem:[%s10748_s1 + $0x68] sm:$0xff] %vm2065_vm5, %v3845_v21  ;;  %v3315_v0 = vsub.f32 %v12309_v30, %v12280_v20  ;;  %v3316_v27 = vsub.f32 %v12310_v25, %v12282_v8  ;;  %v3089_v17 = vsel %vm3057_vm6, 0.0, %v11305_v5  ;;  %2078 = vst.msk [vmem:[%s10748_s1 + $0x60] sm:$0xff] %vm2065_vm5, %v3844_v6  ;;  %v12311_v20 = vld [vmem:[#allocation71_spill] sm:$0xff]  ;;  %v3254_v61 = vsub.f32 %v9590_v45, %v9992_v54  ;;  %v12313_v6 = vld [vmem:[#allocation82_spill] sm:$0xff] }
 0x28a   :  { %v3379_v9 = vand.u32 2147483647, %v3283_v53  ;;  %v3380_v43 = vand.u32 2147483647, %v3284_v59  ;;  %v3253_v13 = vsub.f32 %v12311_v20, %v9984_v34  ;;  %4197 = vrot.lane.b32.xlu1 %v4196_v12, %s4308_s12  ;;  %v4121_v8 = vpack.i.bf16 %v3089_v17, %v3088_v40  ;;  %v12312_v21 = vld [vmem:[#allocation79_spill] sm:$0xff]  ;;  %v12314_v40 = vld [vmem:[#allocation68_spill] sm:$0xff] }
 0x28b   :  { %vm3347_vm12 = vcmp.eq.f32.partialorder %v3315_v0, 0.0  ;;  %vm3348_vm9 = vcmp.eq.f32.partialorder %v3316_v27, 0.0  ;;  %v3285_v60 = vsub.f32 %v12294_v1, %v12312_v21  ;;  %v3286_v53 = vsub.f32 %v12295_v42, %v12313_v6  ;;  %v12317_v17 = vld [vmem:[#allocation69_spill] sm:$0xff] }
 0x28c   :  { %vm3411_vm1 = vcmp.le.f32.partialorder %v3379_v9, 32.0  ;;  %vm3412_vm8 = vcmp.le.f32.partialorder %v3380_v43, 32.0  ;;  %4122 = vrot.lane.b32.xlu0 %v4121_v8, %s4307_s29  ;;  %v3349_v59 = vand.u32 2147483647, %v3253_v13  ;;  %v3350_v12 = vand.u32 2147483647, %v3254_v61  ;;  %v10021_v8 = vpop.permute.xlu1 %4037 }
 0x28d   :  { %vm3443_vm14 = vmand %vm3347_vm12, %vm3411_vm1  ;;  %v3930_v30 = vunpack.i.h.bf16 %v12314_v40  ;;  %v3929_v0 = vunpack.i.l.bf16 %v12314_v40  ;;  %vm3317_vm2 = vcmp.eq.f32.partialorder %v3285_v60, 0.0  ;;  %vm10006_vm10 = vcmp.eq.f32.partialorder %v3286_v53, 0.0 }
 0x28e   :  { %vm3444_vm0 = vmand %vm3348_vm9, %vm3412_vm8  ;;  %v3475_v25 = vsel %vm3443_vm14, 0.0, %v11305_v5  ;;  %v3855_v9 = vunpack.i.h.bf16 %v12317_v17  ;;  %vm3381_vm15 = vcmp.le.f32.partialorder %v3349_v59, 32.0  ;;  %vm3382_vm13 = vcmp.le.f32.partialorder %v3350_v12, 32.0 }
 0x28f   :  { %v3476_v43 = vsel %vm3444_vm0, 0.0, %v11305_v5  ;;  %2465 = vst.msk [vmem:[%s10748_s1 + $0x70] sm:$0xff] %vm2450_vm11, %v3929_v0  ;;  %2466 = vst.msk [vmem:[%s10748_s1 + $0x78] sm:$0xff] %vm2450_vm11, %v3930_v30  ;;  %v3854_v13 = vunpack.i.l.bf16 %v12317_v17  ;;  %v3257_v60 = vsub.f32 %v9636_v37, %v12311_v20  ;;  %v3258_v53 = vsub.f32 %v9649_v16, %v9590_v45  ;;  %v12318_v20 = vld [vmem:[#allocation70_spill] sm:$0xff]  ;;  %v10044_v0 = vpop.permute.xlu0 %3962 }
 0x290   :  { %v4206_v61 = vpack.i.bf16 %v3476_v43, %v3475_v25  ;;  %vm3413_vm7 = vmand %vm3317_vm2, %vm3381_vm15  ;;  %2083 = vst.msk [vmem:[%s10748_s1 + $0x88] sm:$0xff] %vm2065_vm5, %v3855_v9  ;;  %v3289_v59 = vsub.f32 %v11934_v62, %v12294_v1  ;;  %v3290_v40 = vsub.f32 %v12068_v4, %v12295_v42  ;;  %v3940_v30 = vunpack.i.h.bf16 %v12318_v20  ;;  %v12321_v42 = vld [vmem:[#allocation72_spill] sm:$0xff] }
 0x291   :  { %vm3414_vm4 = vmand %vm10006_vm10, %vm3382_vm13  ;;  %v3445_v12 = vsel %vm3413_vm7, 0.0, %v11305_v5  ;;  %2082 = vst.msk [vmem:[%s10748_s1 + $0x80] sm:$0xff] %vm2065_vm5, %v3854_v13  ;;  %v3939_v45 = vunpack.i.l.bf16 %v12318_v20  ;;  %v3353_v25 = vand.u32 2147483647, %v3257_v60  ;;  %v3354_v27 = vand.u32 2147483647, %v3258_v53 }
 0x292   :  { %4207 = vrot.lane.b32.xlu1 %v4206_v61, %s4308_s12  ;;  %v3446_v1 = vsel %vm3414_vm4, 0.0, %v11305_v5  ;;  %vm3321_vm3 = vcmp.eq.f32.partialorder %v3289_v59, 0.0  ;;  %vm10048_vm6 = vcmp.eq.f32.partialorder %v3290_v40, 0.0  ;;  %2470 = vst.msk [vmem:[%s10748_s1 + $0x98] sm:$0xff] %vm2450_vm11, %v3940_v30  ;;  %v3865_v43 = vunpack.i.h.bf16 %v12321_v42 }
 0x293   :  { %v4131_v17 = vpack.i.bf16 %v3446_v1, %v3445_v12  ;;  %2469 = vst.msk [vmem:[%s10748_s1 + $0x90] sm:$0xff] %vm2450_vm11, %v3939_v45  ;;  %v3864_v13 = vunpack.i.l.bf16 %v12321_v42  ;;  %vm3385_vm12 = vcmp.le.f32.partialorder %v3353_v25, 32.0  ;;  %vm3386_vm9 = vcmp.le.f32.partialorder %v3354_v27, 32.0  ;;  %v10081_v12 = vpop.permute.xlu1 %4047  ;;  %v12322_v45 = vld [vmem:[#allocation49_spill] sm:$0xff]  ;;  %v10101_v25 = vpop.permute.xlu0 %3972 }
 0x294   :  { %v3261_v61 = vsub.f32 %v9697_v63, %v9636_v37  ;;  %v3262_v60 = vsub.f32 %v9705_v24, %v9649_v16  ;;  %vm3417_vm1 = vmand %vm3321_vm3, %vm3385_vm12  ;;  %2087 = vst.msk [vmem:[%s10748_s1 + $0xa8] sm:$0xff] %vm2065_vm5, %v3865_v43  ;;  %v3293_v53 = vsub.f32 %v12089_v23, %v11934_v62  ;;  %v3294_v37 = vsub.f32 %v12180_v36, %v12068_v4 }
 0x295   :  { %4132 = vrot.lane.b32.xlu0 %v4131_v17, %s4308_s12  ;;  %2086 = vst.msk [vmem:[%s10748_s1 + $0xa0] sm:$0xff] %vm2065_vm5, %v3864_v13  ;;  %v3950_v16 = vunpack.i.h.bf16 %v9605_v38  ;;  %v3949_v59 = vunpack.i.l.bf16 %v9605_v38  ;;  %vm3418_vm8 = vmand %vm10048_vm6, %vm3386_vm9  ;;  %v3449_v40 = vsel %vm3417_vm1, 0.0, %v11305_v5  ;;  %v3875_v1 = vunpack.i.h.bf16 %v12322_v45 }
 0x296   :  { %v3357_v20 = vand.u32 2147483647, %v3261_v61  ;;  %v3358_v30 = vand.u32 2147483647, %v3262_v60  ;;  %v3450_v62 = vsel %vm3418_vm8, 0.0, %v11305_v5  ;;  %vm3325_vm14 = vcmp.eq.f32.partialorder %v3293_v53, 0.0 }
 0x297   :  { %vm10088_vm0 = vcmp.eq.f32.partialorder %v3294_v37, 0.0  ;;  %2473 = vst.msk [vmem:[%s10748_s1 + $0xb0] sm:$0xff] %vm2450_vm11, %v3949_v59  ;;  %2474 = vst.msk [vmem:[%s10748_s1 + $0xb8] sm:$0xff] %vm2450_vm11, %v3950_v16  ;;  %v3874_v38 = vunpack.i.l.bf16 %v12322_v45  ;;  %v4141_v27 = vpack.i.bf16 %v3450_v62, %v3449_v40  ;;  %v3265_v17 = vsub.f32 %v9748_v39, %v9697_v63  ;;  %v10135_v37 = vpop.permute.xlu1 %4057 }
 0x298   :  { %vm3389_vm2 = vcmp.le.f32.partialorder %v3357_v20, 32.0  ;;  %vm3390_vm10 = vcmp.le.f32.partialorder %v3358_v30, 32.0  ;;  %2091 = vst.msk [vmem:[%s10748_s1 + $0xc8] sm:$0xff] %vm2065_vm5, %v3875_v1  ;;  %v3266_v9 = vsub.f32 %v9763_v3, %v9705_v24  ;;  %v3297_v42 = vsub.f32 %v12194_v46, %v12089_v23 }
 0x299   :  { %vm3421_vm15 = vmand %vm3325_vm14, %vm3389_vm2  ;;  %2090 = vst.msk [vmem:[%s10748_s1 + $0xc0] sm:$0xff] %vm2065_vm5, %v3874_v38  ;;  %v3298_v43 = vsub.f32 %v12200_v10, %v12180_v36  ;;  %v3960_v13 = vunpack.i.h.bf16 %v9657_v55  ;;  %4142 = vrot.lane.b32.xlu0 %v4141_v27, %s4308_s12  ;;  %v3361_v61 = vand.u32 2147483647, %v3265_v17  ;;  %v3959_v60 = vunpack.i.l.bf16 %v9657_v55 }
 0x29a   :  { %vm3422_vm13 = vmand %vm10088_vm0, %vm3390_vm10  ;;  %v3453_v63 = vsel %vm3421_vm15, 0.0, %v11305_v5  ;;  %v3885_v24 = vunpack.i.h.bf16 %v9664_v56  ;;  %vm3329_vm7 = vcmp.eq.f32.partialorder %v3297_v42, 0.0  ;;  %v3362_v36 = vand.u32 2147483647, %v3266_v9 }
 0x29b   :  { %v3454_v53 = vsel %vm3422_vm13, 0.0, %v11305_v5  ;;  %vm10127_vm4 = vcmp.eq.f32.partialorder %v3298_v43, 0.0  ;;  %2478 = vst.msk [vmem:[%s10748_s1 + $0xd8] sm:$0xff] %vm2450_vm11, %v3960_v13  ;;  %vm3393_vm3 = vcmp.le.f32.partialorder %v3361_v61, 32.0  ;;  %2477 = vst.msk [vmem:[%s10748_s1 + $0xd0] sm:$0xff] %vm2450_vm11, %v3959_v60  ;;  %v3884_v55 = vunpack.i.l.bf16 %v9664_v56  ;;  %v10154_v56 = vpop.permute.xlu0 %3982  ;;  %v10187_v42 = vpop.permute.xlu1 %4067 }
 0x29c   :  { %v4151_v16 = vpack.i.bf16 %v3454_v53, %v3453_v63  ;;  %2095 = vst.msk [vmem:[%s10748_s1 + $0xe8] sm:$0xff] %vm2065_vm5, %v3885_v24  ;;  %v3269_v59 = vsub.f32 %v9815_v52, %v9748_v39  ;;  %vm3394_vm6 = vcmp.le.f32.partialorder %v3362_v36, 32.0  ;;  %vm3425_vm12 = vmand %vm3329_vm7, %vm3393_vm3  ;;  %v3270_v40 = vsub.f32 %v9824_v49, %v9763_v3 }
 0x29d   :  { %v3301_v20 = vsub.f32 %v12127_v51, %v12194_v46  ;;  %v3302_v30 = vsub.f32 %v12003_v32, %v12200_v10  ;;  %vm3426_vm9 = vmand %vm10127_vm4, %vm3394_vm6  ;;  %v3457_v39 = vsel %vm3425_vm12, 0.0, %v11305_v5  ;;  %2094 = vst.msk [vmem:[%s10748_s1 + $0xe0] sm:$0xff] %vm2065_vm5, %v3884_v55  ;;  %v3970_v46 = vunpack.i.h.bf16 %v9709_v29 }
 0x29e   :  { %4152 = vrot.lane.b32.xlu0 %v4151_v16, %s4308_s12  ;;  %v3365_v3 = vand.u32 2147483647, %v3269_v59  ;;  %v3969_v45 = vunpack.i.l.bf16 %v9709_v29  ;;  %v3458_v10 = vsel %vm3426_vm9, 0.0, %v11305_v5  ;;  %v3366_v62 = vand.u32 2147483647, %v3270_v40 }
 0x29f   :  { %vm3333_vm1 = vcmp.eq.f32.partialorder %v3301_v20, 0.0  ;;  %vm10167_vm8 = vcmp.eq.f32.partialorder %v3302_v30, 0.0  ;;  %v4161_v4 = vpack.i.bf16 %v3458_v10, %v3457_v39  ;;  %2482 = vst.msk [vmem:[%s10748_s1 + $0xf8] sm:$0xff] %vm2450_vm11, %v3970_v46  ;;  %v3895_v29 = vunpack.i.h.bf16 %v9717_v28  ;;  %v10205_v63 = vpop.permute.xlu0 %3992  ;;  %v10247_v40 = vpop.permute.xlu1 %4077 }
 0x2a0   :  { %vm3397_vm14 = vcmp.le.f32.partialorder %v3365_v3, 32.0  ;;  %2481 = vst.msk [vmem:[%s10748_s1 + $0xf0] sm:$0xff] %vm2450_vm11, %v3969_v45  ;;  %v3894_v38 = vunpack.i.l.bf16 %v9717_v28  ;;  %vm3398_vm5 = vcmp.le.f32.partialorder %v3366_v62, 32.0  ;;  %v3273_v27 = vsub.f32 %v9870_v18, %v9815_v52 }
 0x2a1   :  { %vm3429_vm0 = vmand %vm3333_vm1, %vm3397_vm14  ;;  %v3274_v17 = vsub.f32 %v9877_v33, %v9824_v49  ;;  %v3305_v9 = vsub.f32 %v11792_v47, %v12127_v51  ;;  %2452 = vst.msk [vmem:[%s10748_s1 + $0x8] sm:$0xff] %vm2450_vm11, %v3895_v29  ;;  %v3306_v51 = vsub.f32 %v12236_v22, %v12003_v32  ;;  %vm2835_vm10 = vcmask 48168  }
 0x2a2   :  { %4162 = vrot.lane.b32.xlu0 %v4161_v4, %s4308_s12  ;;  %vm3430_vm2 = vmand %vm10167_vm8, %vm3398_vm5  ;;  %v3461_v28 = vsel %vm3429_vm0, 0.0, %v11305_v5  ;;  %2451 = vst.msk [vmem:[%s10748_s1] sm:$0xff] %vm2450_vm11, %v3894_v38  ;;  %v3980_v52 = vunpack.i.h.bf16 %v9752_v58  ;;  %v3369_v43 = vand.u32 2147483647, %v3273_v27  ;;  %v3979_v24 = vunpack.i.l.bf16 %v9752_v58  ;;  %v4299_v58 = vld [vmem:[%s10747_s0 + $0xe8] sm:$0xff] }
 0x2a3   :  { %v3462_v49 = vsel %vm3430_vm2, 0.0, %v11305_v5  ;;  %vm3337_vm15 = vcmp.eq.f32.partialorder %v3305_v9, 0.0  ;;  %v3370_v13 = vand.u32 2147483647, %v3274_v17  ;;  %vm10207_vm13 = vcmp.eq.f32.partialorder %v3306_v51, 0.0  ;;  %v10269_v46 = vpop.permute.xlu0 %4002 }
 0x2a4   :  { %v4171_v61 = vpack.i.bf16 %v3462_v49, %v3461_v28  ;;  %2839 = vst.msk [vmem:[%s10748_s1 + $0x18] sm:$0xff] %vm2835_vm10, %v3980_v52  ;;  %v3905_v32 = vunpack.i.h.bf16 %v9769_v41  ;;  %vm3401_vm7 = vcmp.le.f32.partialorder %v3369_v43, 32.0  ;;  %v3904_v53 = vunpack.i.l.bf16 %v9769_v41  ;;  %2838 = vst.msk [vmem:[%s10748_s1 + $0x10] sm:$0xff] %vm2835_vm10, %v3979_v24 }
 0x2a5   :  { %vm3402_vm4 = vcmp.le.f32.partialorder %v3370_v13, 32.0  ;;  %v3277_v23 = vsub.f32 %v9925_v48, %v9870_v18  ;;  %vm3433_vm3 = vmand %vm3337_vm15, %vm3401_vm7  ;;  %v3278_v41 = vsub.f32 %v4299_v58, %v9877_v33  ;;  %v3309_v18 = vsub.f32 %v12303_v50, %v11792_v47 }
 0x2a6   :  { %4172 = vrot.lane.b32.xlu0 %v4171_v61, %s4308_s12  ;;  %2456 = vst.msk [vmem:[%s10748_s1 + $0x28] sm:$0xff] %vm2450_vm11, %v3905_v32  ;;  %v3310_v36 = vsub.f32 %v12304_v31, %v12236_v22  ;;  %v3990_v16 = vunpack.i.h.bf16 %v9792_v57  ;;  %vm3434_vm6 = vmand %vm10207_vm13, %vm3402_vm4  ;;  %v3465_v55 = vsel %vm3433_vm3, 0.0, %v11305_v5  ;;  %v3989_v33 = vunpack.i.l.bf16 %v9792_v57 }
 0x2a7   :  { %2455 = vst.msk [vmem:[%s10748_s1 + $0x20] sm:$0xff] %vm2450_vm11, %v3904_v53  ;;  %v3373_v59 = vand.u32 2147483647, %v3277_v23  ;;  %v3915_v47 = vunpack.i.h.bf16 %v9818_v2  ;;  %v3466_v22 = vsel %vm3434_vm6, 0.0, %v11305_v5  ;;  %vm3341_vm12 = vcmp.eq.f32.partialorder %v3309_v18, 0.0 }
 0x2a8   :  { %vm10250_vm9 = vcmp.eq.f32.partialorder %v3310_v36, 0.0  ;;  %v3374_v30 = vand.u32 2147483647, %v3278_v41  ;;  %2843 = vst.msk [vmem:[%s10748_s1 + $0x38] sm:$0xff] %vm2835_vm10, %v3990_v16  ;;  %v4181_v39 = vpack.i.bf16 %v3466_v22, %v3465_v55  ;;  %2842 = vst.msk [vmem:[%s10748_s1 + $0x30] sm:$0xff] %vm2835_vm10, %v3989_v33  ;;  %v3914_v57 = vunpack.i.l.bf16 %v9818_v2 }
 0x2a9   :  { %vm3405_vm1 = vcmp.le.f32.partialorder %v3373_v59, 32.0  ;;  %2460 = vst.msk [vmem:[%s10748_s1 + $0x48] sm:$0xff] %vm2450_vm11, %v3915_v47  ;;  %v3281_v3 = vsub.f32 %v9984_v34, %v9925_v48  ;;  %v3282_v45 = vsub.f32 %v9992_v54, %v4299_v58  ;;  %v3313_v10 = vsub.f32 %v12312_v21, %v12303_v50  ;;  %v10301_v4 = vpop.permute.xlu1 %4087 }
 0x2aa   :  { %vm3406_vm8 = vcmp.le.f32.partialorder %v3374_v30, 32.0  ;;  %vm3437_vm14 = vmand %vm3341_vm12, %vm3405_vm1  ;;  %v3314_v2 = vsub.f32 %v12313_v6, %v12304_v31  ;;  %4182 = vrot.lane.b32.xlu0 %v4181_v39, %s4308_s12  ;;  %2459 = vst.msk [vmem:[%s10748_s1 + $0x40] sm:$0xff] %vm2450_vm11, %v3914_v57  ;;  %v4000_v34 = vunpack.i.h.bf16 %v9834_v44  ;;  %v3999_v50 = vunpack.i.l.bf16 %v9834_v44 }
 0x2ab   :  { %vm3438_vm5 = vmand %vm10250_vm9, %vm3406_vm8  ;;  %v3469_v1 = vsel %vm3437_vm14, 0.0, %v11305_v5  ;;  %v3377_v48 = vand.u32 2147483647, %v3281_v3  ;;  %vm3345_vm0 = vcmp.eq.f32.partialorder %v3313_v10, 0.0  ;;  %v3378_v21 = vand.u32 2147483647, %v3282_v45 }
 0x2ac   :  { %v3470_v54 = vsel %vm3438_vm5, 0.0, %v11305_v5  ;;  %vm10287_vm2 = vcmp.eq.f32.partialorder %v3314_v2, 0.0  ;;  %2846 = vst.msk [vmem:[%s10748_s1 + $0x50] sm:$0xff] %vm2835_vm10, %v3999_v50  ;;  %2847 = vst.msk [vmem:[%s10748_s1 + $0x58] sm:$0xff] %vm2835_vm10, %v4000_v34  ;;  %v3925_v44 = vunpack.i.h.bf16 %v9845_v15  ;;  %v3924_v62 = vunpack.i.l.bf16 %v9845_v15  ;;  %v10321_v28 = vpop.permute.xlu0 %4012 }
 0x2ad   :  { %v4191_v6 = vpack.i.bf16 %v3470_v54, %v3469_v1  ;;  %vm3409_vm15 = vcmp.le.f32.partialorder %v3377_v48, 32.0  ;;  %vm3410_vm13 = vcmp.le.f32.partialorder %v3378_v21, 32.0  ;;  %v4010_v29 = vunpack.i.h.bf16 %v9885_v14 }
 0x2ae   :  { %vm3441_vm7 = vmand %vm3345_vm0, %vm3409_vm15  ;;  %v4009_v38 = vunpack.i.l.bf16 %v9885_v14  ;;  %v3935_v27 = vunpack.i.h.bf16 %v9891_v35  ;;  %2463 = vst.msk [vmem:[%s10748_s1 + $0x60] sm:$0xff] %vm2450_vm11, %v3924_v62  ;;  %v3934_v15 = vunpack.i.l.bf16 %v9891_v35  ;;  %v4020_v14 = vunpack.i.h.bf16 %v9932_v19 }
 0x2af   :  { %4192 = vrot.lane.b32.xlu0 %v4191_v6, %s4308_s12  ;;  %vm3442_vm4 = vmand %vm10287_vm2, %vm3410_vm13  ;;  %v3473_v17 = vsel %vm3441_vm7, 0.0, %v11305_v5  ;;  %2464 = vst.msk [vmem:[%s10748_s1 + $0x68] sm:$0xff] %vm2450_vm11, %v3925_v44  ;;  %v4019_v9 = vunpack.i.l.bf16 %v9932_v19  ;;  %v3945_v35 = vunpack.i.h.bf16 %v9939_v11  ;;  %v3944_v19 = vunpack.i.l.bf16 %v9939_v11 }
 0x2b0   :  { %v3474_v51 = vsel %vm3442_vm4, 0.0, %v11305_v5  ;;  %2850 = vst.msk [vmem:[%s10748_s1 + $0x70] sm:$0xff] %vm2835_vm10, %v4009_v38  ;;  %2851 = vst.msk [vmem:[%s10748_s1 + $0x78] sm:$0xff] %vm2835_vm10, %v4010_v29  ;;  %v4030_v5 = vunpack.i.h.bf16 %v9974_v7  ;;  %v4029_v11 = vunpack.i.l.bf16 %v9974_v7  ;;  %v3955_v49 = vunpack.i.h.bf16 %v9996_v26 }
 0x2b1   :  { %2468 = vst.msk [vmem:[%s10748_s1 + $0x88] sm:$0xff] %vm2450_vm11, %v3935_v27  ;;  %v4201_v52 = vpack.i.bf16 %v3474_v51, %v3473_v17  ;;  %2467 = vst.msk [vmem:[%s10748_s1 + $0x80] sm:$0xff] %vm2450_vm11, %v3934_v15  ;;  %v3954_v43 = vunpack.i.l.bf16 %v9996_v26  ;;  %v4040_v7 = vunpack.i.h.bf16 %v10021_v8  ;;  %v4039_v13 = vunpack.i.l.bf16 %v10021_v8  ;;  %v4098_v32 = vpop.permute.xlu1 %4097 }
 0x2b2   :  { %2854 = vst.msk [vmem:[%s10748_s1 + $0x90] sm:$0xff] %vm2835_vm10, %v4019_v9  ;;  %2855 = vst.msk [vmem:[%s10748_s1 + $0x98] sm:$0xff] %vm2835_vm10, %v4020_v14  ;;  %v3965_v26 = vunpack.i.h.bf16 %v10044_v0  ;;  %v3964_v61 = vunpack.i.l.bf16 %v10044_v0  ;;  %v4050_v8 = vunpack.i.h.bf16 %v10081_v12  ;;  %v4049_v0 = vunpack.i.l.bf16 %v10081_v12 }
 0x2b3   :  { %2471 = vst.msk [vmem:[%s10748_s1 + $0xa0] sm:$0xff] %vm2450_vm11, %v3944_v19  ;;  %2472 = vst.msk [vmem:[%s10748_s1 + $0xa8] sm:$0xff] %vm2450_vm11, %v3945_v35  ;;  %4202 = vrot.lane.b32.xlu0 %v4201_v52, %s4308_s12  ;;  %v3975_v60 = vunpack.i.h.bf16 %v10101_v25  ;;  %v3974_v24 = vunpack.i.l.bf16 %v10101_v25  ;;  %vm3220_vm3 = vcmask 56368   ;;  %v4060_v12 = vunpack.i.h.bf16 %v10135_v37  ;;  %v4023_v18 = vpop.permute.xlu0 %4022 }
 0x2b4   :  { %2859 = vst.msk [vmem:[%s10748_s1 + $0xb8] sm:$0xff] %vm2835_vm10, %v4030_v5  ;;  %2858 = vst.msk [vmem:[%s10748_s1 + $0xb0] sm:$0xff] %vm2835_vm10, %v4029_v11  ;;  %v4059_v25 = vunpack.i.l.bf16 %v10135_v37  ;;  %v3985_v53 = vunpack.i.h.bf16 %v10154_v56  ;;  %v3984_v37 = vunpack.i.l.bf16 %v10154_v56  ;;  %v4070_v23 = vunpack.i.h.bf16 %v10187_v42 }
 0x2b5   :  { %2475 = vst.msk [vmem:[%s10748_s1 + $0xc0] sm:$0xff] %vm2450_vm11, %v3954_v43  ;;  %2476 = vst.msk [vmem:[%s10748_s1 + $0xc8] sm:$0xff] %vm2450_vm11, %v3955_v49  ;;  %v4069_v58 = vunpack.i.l.bf16 %v10187_v42  ;;  %v3995_v41 = vunpack.i.h.bf16 %v10205_v63  ;;  %v3994_v56 = vunpack.i.l.bf16 %v10205_v63  ;;  %v4080_v42 = vunpack.i.h.bf16 %v10247_v40 }
 0x2b6   :  { %2862 = vst.msk [vmem:[%s10748_s1 + $0xd0] sm:$0xff] %vm2835_vm10, %v4039_v13  ;;  %2863 = vst.msk [vmem:[%s10748_s1 + $0xd8] sm:$0xff] %vm2835_vm10, %v4040_v7  ;;  %v4079_v36 = vunpack.i.l.bf16 %v10247_v40  ;;  %v4005_v16 = vunpack.i.h.bf16 %v10269_v46  ;;  %v4004_v63 = vunpack.i.l.bf16 %v10269_v46  ;;  %v4090_v55 = vunpack.i.h.bf16 %v10301_v4 }
 0x2b7   :  { %2479 = vst.msk [vmem:[%s10748_s1 + $0xe0] sm:$0xff] %vm2450_vm11, %v3964_v61  ;;  %2480 = vst.msk [vmem:[%s10748_s1 + $0xe8] sm:$0xff] %vm2450_vm11, %v3965_v26  ;;  %v4089_v59 = vunpack.i.l.bf16 %v10301_v4  ;;  %v4015_v33 = vunpack.i.h.bf16 %v10321_v28  ;;  %v4014_v47 = vunpack.i.l.bf16 %v10321_v28  ;;  %v4100_v40 = vunpack.i.h.bf16 %v4098_v32 }
 0x2b8   :  { %2866 = vst.msk [vmem:[%s10748_s1 + $0xf0] sm:$0xff] %vm2835_vm10, %v4049_v0  ;;  %2867 = vst.msk [vmem:[%s10748_s1 + $0xf8] sm:$0xff] %vm2835_vm10, %v4050_v8  ;;  %v4099_v22 = vunpack.i.l.bf16 %v4098_v32  ;;  %v4025_v20 = vunpack.i.h.bf16 %v4023_v18  ;;  %v4024_v30 = vunpack.i.l.bf16 %v4023_v18  ;;  %v4108_v39 = vpop.permute.xlu1 %4107  ;;  %vm3605_vm11 = vcmask 64568  }
 0x2b9   :  { %2836 = vst.msk [vmem:[%s10748_s1] sm:$0xff] %vm2835_vm10, %v3974_v24  ;;  %2837 = vst.msk [vmem:[%s10748_s1 + $0x8] sm:$0xff] %vm2835_vm10, %v3975_v60  ;;  %v4110_v57 = vunpack.i.h.bf16 %v4108_v39  ;;  %v4109_v3 = vunpack.i.l.bf16 %v4108_v39 }
 0x2ba   :  { %3223 = vst.msk [vmem:[%s10748_s1 + $0x10] sm:$0xff] %vm3220_vm3, %v4059_v25  ;;  %3224 = vst.msk [vmem:[%s10748_s1 + $0x18] sm:$0xff] %vm3220_vm3, %v4060_v12  ;;  %v4033_v46 = vpop.permute.xlu0 %4032 }
 0x2bb   :  { %2841 = vst.msk [vmem:[%s10748_s1 + $0x28] sm:$0xff] %vm2835_vm10, %v3985_v53  ;;  %2840 = vst.msk [vmem:[%s10748_s1 + $0x20] sm:$0xff] %vm2835_vm10, %v3984_v37  ;;  %v4035_v45 = vunpack.i.h.bf16 %v4033_v46  ;;  %v4034_v10 = vunpack.i.l.bf16 %v4033_v46 }
 0x2bc   :  { %3227 = vst.msk [vmem:[%s10748_s1 + $0x30] sm:$0xff] %vm3220_vm3, %v4069_v58  ;;  %3228 = vst.msk [vmem:[%s10748_s1 + $0x38] sm:$0xff] %vm3220_vm3, %v4070_v23 }
 0x2bd   :  { %2845 = vst.msk [vmem:[%s10748_s1 + $0x48] sm:$0xff] %vm2835_vm10, %v3995_v41  ;;  %2844 = vst.msk [vmem:[%s10748_s1 + $0x40] sm:$0xff] %vm2835_vm10, %v3994_v56 }
 0x2be   :  { %3231 = vst.msk [vmem:[%s10748_s1 + $0x50] sm:$0xff] %vm3220_vm3, %v4079_v36  ;;  %3232 = vst.msk [vmem:[%s10748_s1 + $0x58] sm:$0xff] %vm3220_vm3, %v4080_v42 }
 0x2bf   :  { %2849 = vst.msk [vmem:[%s10748_s1 + $0x68] sm:$0xff] %vm2835_vm10, %v4005_v16  ;;  %2848 = vst.msk [vmem:[%s10748_s1 + $0x60] sm:$0xff] %vm2835_vm10, %v4004_v63 }
 0x2c0   :  { %3235 = vst.msk [vmem:[%s10748_s1 + $0x70] sm:$0xff] %vm3220_vm3, %v4089_v59  ;;  %3236 = vst.msk [vmem:[%s10748_s1 + $0x78] sm:$0xff] %vm3220_vm3, %v4090_v55  ;;  %v4118_v2 = vpop.permute.xlu1 %4117 }
 0x2c1   :  { %2853 = vst.msk [vmem:[%s10748_s1 + $0x88] sm:$0xff] %vm2835_vm10, %v4015_v33  ;;  %2852 = vst.msk [vmem:[%s10748_s1 + $0x80] sm:$0xff] %vm2835_vm10, %v4014_v47  ;;  %v4120_v1 = vunpack.i.h.bf16 %v4118_v2  ;;  %v4119_v48 = vunpack.i.l.bf16 %v4118_v2 }
 0x2c2   :  { %3239 = vst.msk [vmem:[%s10748_s1 + $0x90] sm:$0xff] %vm3220_vm3, %v4099_v22  ;;  %3240 = vst.msk [vmem:[%s10748_s1 + $0x98] sm:$0xff] %vm3220_vm3, %v4100_v40  ;;  %v4043_v34 = vpop.permute.xlu0 %4042 }
 0x2c3   :  { %2857 = vst.msk [vmem:[%s10748_s1 + $0xa8] sm:$0xff] %vm2835_vm10, %v4025_v20  ;;  %2856 = vst.msk [vmem:[%s10748_s1 + $0xa0] sm:$0xff] %vm2835_vm10, %v4024_v30  ;;  %v4045_v50 = vunpack.i.h.bf16 %v4043_v34  ;;  %v4044_v54 = vunpack.i.l.bf16 %v4043_v34 }
 0x2c4   :  { %3243 = vst.msk [vmem:[%s10748_s1 + $0xb0] sm:$0xff] %vm3220_vm3, %v4109_v3  ;;  %3244 = vst.msk [vmem:[%s10748_s1 + $0xb8] sm:$0xff] %vm3220_vm3, %v4110_v57 }
 0x2c5   :  { %2860 = vst.msk [vmem:[%s10748_s1 + $0xc0] sm:$0xff] %vm2835_vm10, %v4034_v10  ;;  %2861 = vst.msk [vmem:[%s10748_s1 + $0xc8] sm:$0xff] %vm2835_vm10, %v4035_v45 }
 0x2c6   :  { %3247 = vst.msk [vmem:[%s10748_s1 + $0xd0] sm:$0xff] %vm3220_vm3, %v4119_v48  ;;  %3248 = vst.msk [vmem:[%s10748_s1 + $0xd8] sm:$0xff] %vm3220_vm3, %v4120_v1 }
 0x2c7   :  { %2864 = vst.msk [vmem:[%s10748_s1 + $0xe0] sm:$0xff] %vm2835_vm10, %v4044_v54  ;;  %2865 = vst.msk [vmem:[%s10748_s1 + $0xe8] sm:$0xff] %vm2835_vm10, %v4045_v50  ;;  %v4128_v31 = vpop.permute.xlu1 %4127 }
 0x2c8   :  { %v4130_v21 = vunpack.i.h.bf16 %v4128_v31  ;;  %v4129_v6 = vunpack.i.l.bf16 %v4128_v31 }
 0x2c9   :  { %v4053_v44 = vpop.permute.xlu0 %4052 }
 0x2ca   :  { %3251 = vst.msk [vmem:[%s10748_s1 + $0xf0] sm:$0xff] %vm3220_vm3, %v4129_v6  ;;  %3252 = vst.msk [vmem:[%s10748_s1 + $0xf8] sm:$0xff] %vm3220_vm3, %v4130_v21  ;;  %v4055_v62 = vunpack.i.h.bf16 %v4053_v44  ;;  %v4054_v4 = vunpack.i.l.bf16 %v4053_v44 }
 0x2cc   :  { %3221 = vst.msk [vmem:[%s10748_s1] sm:$0xff] %vm3220_vm3, %v4054_v4  ;;  %3222 = vst.msk [vmem:[%s10748_s1 + $0x8] sm:$0xff] %vm3220_vm3, %v4055_v62 }
 0x2cf   :  { %v4138_v29 = vpop.permute.xlu1 %4137 }
 0x2d0   :  { %v4140_v38 = vunpack.i.h.bf16 %v4138_v29  ;;  %v4139_v27 = vunpack.i.l.bf16 %v4138_v29 }
 0x2d2   :  { %3608 = vst.msk [vmem:[%s10748_s1 + $0x10] sm:$0xff] %vm3605_vm11, %v4139_v27  ;;  %3609 = vst.msk [vmem:[%s10748_s1 + $0x18] sm:$0xff] %vm3605_vm11, %v4140_v38  ;;  %v4063_v17 = vpop.permute.xlu0 %4062 }
 0x2d3   :  { %v4065_v15 = vunpack.i.h.bf16 %v4063_v17  ;;  %v4064_v14 = vunpack.i.l.bf16 %v4063_v17 }
 0x2d5   :  { %3225 = vst.msk [vmem:[%s10748_s1 + $0x20] sm:$0xff] %vm3220_vm3, %v4064_v14  ;;  %3226 = vst.msk [vmem:[%s10748_s1 + $0x28] sm:$0xff] %vm3220_vm3, %v4065_v15 }
 0x2d6   :  { %v4148_v9 = vpop.permute.xlu1 %4147 }
 0x2d7   :  { %v4150_v28 = vunpack.i.h.bf16 %v4148_v9  ;;  %v4149_v51 = vunpack.i.l.bf16 %v4148_v9 }
 0x2d9   :  { %v4073_v35 = vpop.permute.xlu0 %4072  ;;  %3612 = vst.msk [vmem:[%s10748_s1 + $0x30] sm:$0xff] %vm3605_vm11, %v4149_v51  ;;  %3613 = vst.msk [vmem:[%s10748_s1 + $0x38] sm:$0xff] %vm3605_vm11, %v4150_v28 }
 0x2da   :  { %v4075_v19 = vunpack.i.h.bf16 %v4073_v35  ;;  %v4074_v5 = vunpack.i.l.bf16 %v4073_v35 }
 0x2dc   :  { %3229 = vst.msk [vmem:[%s10748_s1 + $0x40] sm:$0xff] %vm3220_vm3, %v4074_v5  ;;  %3230 = vst.msk [vmem:[%s10748_s1 + $0x48] sm:$0xff] %vm3220_vm3, %v4075_v19 }
 0x2de   :  { %v4158_v52 = vpop.permute.xlu1 %4157 }
 0x2df   :  { %v4160_v11 = vunpack.i.h.bf16 %v4158_v52  ;;  %v4159_v49 = vunpack.i.l.bf16 %v4158_v52 }
 0x2e0   :  { %v4083_v43 = vpop.permute.xlu0 %4082 }
 0x2e1   :  { %3616 = vst.msk [vmem:[%s10748_s1 + $0x50] sm:$0xff] %vm3605_vm11, %v4159_v49  ;;  %3617 = vst.msk [vmem:[%s10748_s1 + $0x58] sm:$0xff] %vm3605_vm11, %v4160_v11  ;;  %v4085_v7 = vunpack.i.h.bf16 %v4083_v43  ;;  %v4084_v13 = vunpack.i.l.bf16 %v4083_v43 }
 0x2e3   :  { %3233 = vst.msk [vmem:[%s10748_s1 + $0x60] sm:$0xff] %vm3220_vm3, %v4084_v13  ;;  %3234 = vst.msk [vmem:[%s10748_s1 + $0x68] sm:$0xff] %vm3220_vm3, %v4085_v7 }
 0x2e5   :  { %v4168_v26 = vpop.permute.xlu1 %4167 }
 0x2e6   :  { %v4170_v61 = vunpack.i.h.bf16 %v4168_v26  ;;  %v4169_v8 = vunpack.i.l.bf16 %v4168_v26 }
 0x2e8   :  { %v4093_v0 = vpop.permute.xlu0 %4092  ;;  %3620 = vst.msk [vmem:[%s10748_s1 + $0x70] sm:$0xff] %vm3605_vm11, %v4169_v8  ;;  %3621 = vst.msk [vmem:[%s10748_s1 + $0x78] sm:$0xff] %vm3605_vm11, %v4170_v61 }
 0x2e9   :  { %v4095_v60 = vunpack.i.h.bf16 %v4093_v0  ;;  %v4094_v24 = vunpack.i.l.bf16 %v4093_v0 }
 0x2eb   :  { %3237 = vst.msk [vmem:[%s10748_s1 + $0x80] sm:$0xff] %vm3220_vm3, %v4094_v24  ;;  %3238 = vst.msk [vmem:[%s10748_s1 + $0x88] sm:$0xff] %vm3220_vm3, %v4095_v60 }
 0x2ed   :  { %v4178_v32 = vpop.permute.xlu1 %4177 }
 0x2ee   :  { %v4180_v12 = vunpack.i.h.bf16 %v4178_v32  ;;  %v4179_v25 = vunpack.i.l.bf16 %v4178_v32 }
 0x2ef   :  { %v4103_v53 = vpop.permute.xlu0 %4102 }
 0x2f0   :  { %3624 = vst.msk [vmem:[%s10748_s1 + $0x90] sm:$0xff] %vm3605_vm11, %v4179_v25  ;;  %3625 = vst.msk [vmem:[%s10748_s1 + $0x98] sm:$0xff] %vm3605_vm11, %v4180_v12  ;;  %v4105_v37 = vunpack.i.h.bf16 %v4103_v53  ;;  %v4104_v23 = vunpack.i.l.bf16 %v4103_v53 }
 0x2f2   :  { %3241 = vst.msk [vmem:[%s10748_s1 + $0xa0] sm:$0xff] %vm3220_vm3, %v4104_v23  ;;  %3242 = vst.msk [vmem:[%s10748_s1 + $0xa8] sm:$0xff] %vm3220_vm3, %v4105_v37 }
 0x2f5   :  { %v4188_v58 = vpop.permute.xlu1 %4187 }
 0x2f6   :  { %v4190_v41 = vunpack.i.h.bf16 %v4188_v58  ;;  %v4189_v18 = vunpack.i.l.bf16 %v4188_v58 }
 0x2f7   :  { %v4113_v56 = vpop.permute.xlu0 %4112 }
 0x2f8   :  { %3628 = vst.msk [vmem:[%s10748_s1 + $0xb0] sm:$0xff] %vm3605_vm11, %v4189_v18  ;;  %3629 = vst.msk [vmem:[%s10748_s1 + $0xb8] sm:$0xff] %vm3605_vm11, %v4190_v41  ;;  %v4115_v42 = vunpack.i.h.bf16 %v4113_v56  ;;  %v4114_v36 = vunpack.i.l.bf16 %v4113_v56 }
 0x2fa   :  { %3245 = vst.msk [vmem:[%s10748_s1 + $0xc0] sm:$0xff] %vm3220_vm3, %v4114_v36  ;;  %3246 = vst.msk [vmem:[%s10748_s1 + $0xc8] sm:$0xff] %vm3220_vm3, %v4115_v42 }
 0x2fc   :  { %v4198_v16 = vpop.permute.xlu1 %4197 }
 0x2fd   :  { %v4200_v63 = vunpack.i.h.bf16 %v4198_v16  ;;  %v4199_v55 = vunpack.i.l.bf16 %v4198_v16 }
 0x2fe   :  { %v4123_v59 = vpop.permute.xlu0 %4122 }
 0x2ff   :  { %3632 = vst.msk [vmem:[%s10748_s1 + $0xd0] sm:$0xff] %vm3605_vm11, %v4199_v55  ;;  %3633 = vst.msk [vmem:[%s10748_s1 + $0xd8] sm:$0xff] %vm3605_vm11, %v4200_v63  ;;  %v4125_v33 = vunpack.i.h.bf16 %v4123_v59  ;;  %v4124_v47 = vunpack.i.l.bf16 %v4123_v59 }
 0x301   :  { %3249 = vst.msk [vmem:[%s10748_s1 + $0xe0] sm:$0xff] %vm3220_vm3, %v4124_v47  ;;  %3250 = vst.msk [vmem:[%s10748_s1 + $0xe8] sm:$0xff] %vm3220_vm3, %v4125_v33 }
 0x304   :  { %v4208_v40 = vpop.permute.xlu1 %4207 }
 0x305   :  { %v4210_v22 = vunpack.i.h.bf16 %v4208_v40  ;;  %v4209_v20 = vunpack.i.l.bf16 %v4208_v40 }
 0x307   :  { %3636 = vst.msk [vmem:[%s10748_s1 + $0xf0] sm:$0xff] %vm3605_vm11, %v4209_v20  ;;  %3637 = vst.msk [vmem:[%s10748_s1 + $0xf8] sm:$0xff] %vm3605_vm11, %v4210_v22  ;;  %v4133_v30 = vpop.permute.xlu0 %4132 }
 0x308   :  { %v4135_v39 = vunpack.i.h.bf16 %v4133_v30  ;;  %v4134_v57 = vunpack.i.l.bf16 %v4133_v30 }
 0x30a   :  { %3606 = vst.msk [vmem:[%s10748_s1] sm:$0xff] %vm3605_vm11, %v4134_v57  ;;  %3607 = vst.msk [vmem:[%s10748_s1 + $0x8] sm:$0xff] %vm3605_vm11, %v4135_v39 }
 0x30b   :  { %v4143_v3 = vpop.permute.xlu0 %4142 }
 0x30c   :  { %v4145_v46 = vunpack.i.h.bf16 %v4143_v3  ;;  %v4144_v45 = vunpack.i.l.bf16 %v4143_v3 }
 0x30e   :  { %3610 = vst.msk [vmem:[%s10748_s1 + $0x20] sm:$0xff] %vm3605_vm11, %v4144_v45  ;;  %3611 = vst.msk [vmem:[%s10748_s1 + $0x28] sm:$0xff] %vm3605_vm11, %v4145_v46 }
 0x310   :  { %v4153_v10 = vpop.permute.xlu0 %4152 }
 0x311   :  { %v4155_v2 = vunpack.i.h.bf16 %v4153_v10  ;;  %v4154_v1 = vunpack.i.l.bf16 %v4153_v10 }
 0x313   :  { %3614 = vst.msk [vmem:[%s10748_s1 + $0x40] sm:$0xff] %vm3605_vm11, %v4154_v1  ;;  %3615 = vst.msk [vmem:[%s10748_s1 + $0x48] sm:$0xff] %vm3605_vm11, %v4155_v2 }
 0x314   :  { %v4163_v48 = vpop.permute.xlu0 %4162 }
 0x315   :  { %v4165_v34 = vunpack.i.h.bf16 %v4163_v48  ;;  %v4164_v50 = vunpack.i.l.bf16 %v4163_v48 }
 0x317   :  { %3618 = vst.msk [vmem:[%s10748_s1 + $0x60] sm:$0xff] %vm3605_vm11, %v4164_v50  ;;  %3619 = vst.msk [vmem:[%s10748_s1 + $0x68] sm:$0xff] %vm3605_vm11, %v4165_v34 }
 0x318   :  { %v4173_v54 = vpop.permute.xlu0 %4172 }
 0x319   :  { %v4175_v31 = vunpack.i.h.bf16 %v4173_v54  ;;  %v4174_v21 = vunpack.i.l.bf16 %v4173_v54 }
 0x31b   :  { %3622 = vst.msk [vmem:[%s10748_s1 + $0x80] sm:$0xff] %vm3605_vm11, %v4174_v21  ;;  %3623 = vst.msk [vmem:[%s10748_s1 + $0x88] sm:$0xff] %vm3605_vm11, %v4175_v31 }
 0x31c   :  { %v4183_v6 = vpop.permute.xlu0 %4182 }
 0x31d   :  { %v4185_v44 = vunpack.i.h.bf16 %v4183_v6  ;;  %v4184_v62 = vunpack.i.l.bf16 %v4183_v6 }
 0x31f   :  { %3626 = vst.msk [vmem:[%s10748_s1 + $0xa0] sm:$0xff] %vm3605_vm11, %v4184_v62  ;;  %3627 = vst.msk [vmem:[%s10748_s1 + $0xa8] sm:$0xff] %vm3605_vm11, %v4185_v44 }
 0x321   :  { %v4193_v4 = vpop.permute.xlu0 %4192 }
 0x322   :  { %v4195_v29 = vunpack.i.h.bf16 %v4193_v4  ;;  %v4194_v38 = vunpack.i.l.bf16 %v4193_v4 }
 0x324   :  { %3630 = vst.msk [vmem:[%s10748_s1 + $0xc0] sm:$0xff] %vm3605_vm11, %v4194_v38  ;;  %3631 = vst.msk [vmem:[%s10748_s1 + $0xc8] sm:$0xff] %vm3605_vm11, %v4195_v29 }
 0x325   :  { %v4203_v27 = vpop.permute.xlu0 %4202 }
 0x326   :  { %v4205_v17 = vunpack.i.h.bf16 %v4203_v27  ;;  %v4204_v15 = vunpack.i.l.bf16 %v4203_v27 }
 0x328   :  { %3634 = vst.msk [vmem:[%s10748_s1 + $0xe0] sm:$0xff] %vm3605_vm11, %v4204_v15  ;;  %3635 = vst.msk [vmem:[%s10748_s1 + $0xe8] sm:$0xff] %vm3605_vm11, %v4205_v17 }

</bundles_post_ra>
